<compile_context>
chip_gen: v7x
topology: tpu7x:2x2x1
jax: 0.10.0
libtpu: 0.0.40
codegen_flags: <defaults>
</compile_context>

<pallas_src>
import functools

import jax
import jax.numpy as jnp
import numpy as np
from jax import lax
from jax.experimental import pallas as pl
from jax.experimental.pallas import tpu as pltpu


_VPU_MAX_C = 8        # <= this many channels -> VPU/scalar path (no MXU)
_MIN_GRID_STEPS = 8   # >= ~4 steps per TensorCore on v7x; harmless elsewhere


def _round_up(a, b):
    return (a + b - 1) // b * b


def _vmem_capacity_bytes():
    """Physical VMEM per core; conservative fallback if the query fails."""
    try:
        info = pltpu.get_tpu_info()
        cap = int(getattr(info, "vmem_capacity_bytes", 0) or 0)
        if cap > 0:
            return cap
    except Exception:  # query may be unsupported in some environments
        pass
    return 64 << 20    # v7x-sized conservative fallback


def _vmem_budget_bytes():
    """(working-set budget, physical capacity) -- generation aware."""
    cap = _vmem_capacity_bytes()
    if cap >= (96 << 20):          # v5e / v6e: 128 MiB physical -> ~96 MiB target
        return cap - (32 << 20), cap
    return 24 << 20, cap           # v7x (64 MiB) / unknown: 24 MiB working set


def _pick_block_batch(N, per_sample_bytes, budget_bytes):
    """Largest divisor of N that fits the budget and leaves enough grid steps."""
    max_nb = max(1, int(budget_bytes) // max(int(per_sample_bytes), 1))
    divs = [d for d in range(1, N + 1) if N % d == 0 and d <= max_nb] or [1]
    good = [d for d in divs if N // d >= _MIN_GRID_STEPS]
    if good:
        return max(good)
    ok = [d for d in divs if N // d >= 2]
    return max(ok) if ok else max(divs)


# ----------------------------------------------------------------------------
# Small-C path: NCHW-native, VPU scalar-broadcast FMAs, weights in SMEM.
# ----------------------------------------------------------------------------

def _roll_last(x, shift):
    """out[..., i] = x[..., (i - shift) mod n] with a static shift."""
    n = x.shape[-1]
    shift = shift % n
    if shift == 0:
        return x
    return jnp.concatenate([x[..., n - shift:], x[..., :n - shift]], axis=-1)


def _conv_circ_small(x, w_ref, col_w, k, H, W):
    """Circular 'same' conv on (nb, C, H*W) via VPU scalar-broadcast FMAs.

    x:     (nb, C, H*W) float32
    w_ref: SMEM ref, flat OIHW weights, length C*C*k*k
    col_w: (nb, C, H*W) int32, value = (lane index) mod W
    """
    nb, C, HW = x.shape
    p = k // 2
    # taps[dh*k+dw][n, c, h*W + w] = x[n, c, (h+dh-p) % H, (w+dw-p) % W]
    taps = []
    for dh in range(k):
        th = _roll_last(x, (p - dh) * W)          # circular H shift (flat roll by rows)
        for dw in range(k):
            sw = (p - dw) % W                      # circular W shift within each row
            if sw == 0:
                taps.append(th)
            else:
                a = _roll_last(th, sw)             # valid for lanes with w >= sw
                b = _roll_last(th, sw - W)         # valid for lanes with w <  sw
                taps.append(jnp.where(col_w >= sw, a, b))
    # Per-(tap, cin) channel planes, computed once and reused for every cout.
    chans = [[t[:, ci, :] for ci in range(C)] for t in taps]
    outs = []
    for co in range(C):
        acc = jnp.zeros((nb, HW), jnp.float32)
        for dh in range(k):
            for dw in range(k):
                t = chans[dh * k + dw]
                for ci in range(C):
                    wv = w_ref[((co * C + ci) * k + dh) * k + dw]   # SMEM scalar
                    acc = acc + wv * t[ci]
        outs.append(acc[:, None, :])
    return jnp.concatenate(outs, axis=1)           # (nb, C, H*W)


def _resi_small_kernel(k, H, W, x_ref, w1_ref, w2_ref, o_ref):
    x = x_ref[...].astype(jnp.float32)             # (nb, C, H*W)
    idx = lax.broadcasted_iota(jnp.int32, x.shape, 2)
    if (W & (W - 1)) == 0:                         # power-of-two W: cheap mask
        col_w = idx & (W - 1)
    else:
        col_w = idx % W
    h = jnp.maximum(_conv_circ_small(x, w1_ref, col_w, k, H, W), 0.0)
    y = _conv_circ_small(h, w2_ref, col_w, k, H, W) + x
    o_ref[...] = jnp.maximum(y, 0.0).astype(o_ref.dtype)


def _resi_forward_small(x_nchw, w1_oihw, w2_oihw, block_batch=None):
    N, C, H, W = x_nchw.shape
    k = int(w1_oihw.shape[-1])
    HW = H * W
    x2 = x_nchw.reshape(N, C, HW)                  # free view; lane dim = H*W
    w1 = w1_oihw.reshape(-1).astype(jnp.float32)   # OIHW flat -> SMEM scalars
    w2 = w2_oihw.reshape(-1).astype(jnp.float32)

    # Explicit (tile-padded) per-sample VMEM byte count -> batch block nb.
    isz = x_nchw.dtype.itemsize
    pad_elems = _round_up(C, 8) * _round_up(HW, 128)
    blk_f32 = pad_elems * 4                        # one fp32 copy of one sample
    io_bytes = 4 * isz * pad_elems                 # in + out, each double-buffered
    tmp_bytes = (2 * k * k + 6) * blk_f32          # taps, channel planes, h, y, acc...
    per_sample = io_bytes + tmp_bytes
    budget, cap = _vmem_budget_bytes()
    nb = (int(block_batch) if block_batch is not None
          else _pick_block_batch(N, per_sample, budget))
    assert N % nb == 0
    grid = (N // nb,)

    vmem_limit = int(min(budget + (8 << 20),
                         max(16 << 20, nb * per_sample + (4 << 20))))
    vmem_limit = int(min(vmem_limit, cap - (8 << 20)))

    flops = 2 * (2 * N * HW * (k * k * C) * C)     # two convs
    bytes_accessed = 2 * N * C * HW * isz + 2 * C * C * k * k * 4
    cost = pl.CostEstimate(flops=flops, transcendentals=0,
                           bytes_accessed=int(bytes_accessed))

    out = pl.pallas_call(
        functools.partial(_resi_small_kernel, k, H, W),
        out_shape=jax.ShapeDtypeStruct((N, C, HW), x_nchw.dtype),
        grid_spec=pltpu.PrefetchScalarGridSpec(
            num_scalar_prefetch=0,
            grid=grid,
            in_specs=[
                pl.BlockSpec((nb, C, HW), lambda n: (n, 0, 0)),
                pl.BlockSpec(memory_space=pltpu.MemorySpace.SMEM),
                pl.BlockSpec(memory_space=pltpu.MemorySpace.SMEM),
            ],
            out_specs=pl.BlockSpec((nb, C, HW), lambda n: (n, 0, 0)),
        ),
        compiler_params=pltpu.CompilerParams(
            dimension_semantics=("parallel",),
            vmem_limit_bytes=vmem_limit,
        ),
        cost_estimate=cost,
    )(x2, w1, w2)
    return out.reshape(N, C, H, W)


# ----------------------------------------------------------------------------
# Large-C path: NHWC, k*k accumulating MXU dots (no im2col), bf16 MXU inputs.
# ----------------------------------------------------------------------------

def _circular_pad_hw_nhwc(a, p):
    if p == 0:
        return a
    a = jnp.concatenate([a[:, -p:], a, a[:, :p]], axis=1)        # wrap H
    a = jnp.concatenate([a[:, :, -p:], a, a[:, :, :p]], axis=2)  # wrap W
    return a


def _conv_circ_large(x, w_ref, k):
    """Circular 'same' conv on (nb, H, W, C): k*k accumulating MXU dots."""
    nb, H, W, C = x.shape
    p = k // 2
    xp = _circular_pad_hw_nhwc(x, p)                              # (nb, H+2p, W+2p, C)
    cout = w_ref.shape[-1]
    acc = jnp.zeros((nb * H * W, cout), jnp.float32)
    for dh in range(k):
        for dw in range(k):
            tap = xp[:, dh:dh + H, dw:dw + W, :].reshape(nb * H * W, C)
            acc = acc + jnp.dot(tap, w_ref[dh * k + dw],
                                preferred_element_type=jnp.float32)
    return acc.reshape(nb, H, W, cout)


def _resi_large_kernel(k, mm_dtype, x_ref, w1_ref, w2_ref, o_ref):
    x = x_ref[...].astype(jnp.float32)                            # (nb, H, W, C)
    h = jnp.maximum(_conv_circ_large(x.astype(mm_dtype), w1_ref, k), 0.0)
    y = _conv_circ_large(h.astype(mm_dtype), w2_ref, k) + x       # residual in fp32
    o_ref[...] = jnp.maximum(y, 0.0).astype(o_ref.dtype)


def resi_forward_nhwc(x_nhwc, w1_oihw, w2_oihw, *, block_batch=None,
                      matmul_dtype=jnp.bfloat16):
    """NHWC entry point (NHWC callers skip the NCHW<->NHWC HBM transposes).

    weights: PyTorch OIHW (C, C, k, k), no bias.  MXU inputs are cast to
    `matmul_dtype` (bfloat16 by default, fp32 accumulation); pass jnp.float32
    for bit-tight parity with the PyTorch fp32 module.
    """
    N, H, W, C = x_nhwc.shape
    k = int(w1_oihw.shape[-1])
    assert k % 2 == 1, "circular 'same' padding assumes odd kernel size"
    assert w1_oihw.shape == (C, C, k, k) and w2_oihw.shape == (C, C, k, k)

    if C <= _VPU_MAX_C:
        x_nchw = jnp.transpose(x_nhwc, (0, 3, 1, 2))
        y = _resi_forward_small(x_nchw, w1_oihw, w2_oihw, block_batch)
        return jnp.transpose(y, (0, 2, 3, 1))

    # (Cout, Cin, kh, kw) -> (kh*kw, Cin, Cout)
    def prep(w):
        return jnp.transpose(w, (2, 3, 1, 0)).reshape(k * k, C, C).astype(matmul_dtype)

    w1 = prep(w1_oihw)
    w2 = prep(w2_oihw)
    mmsz = jnp.dtype(matmul_dtype).itemsize
    isz = x_nhwc.dtype.itemsize

    # Explicit per-sample VMEM byte count (padded to the (8,128) tile grid).
    c_pad = _round_up(C, 128)
    w_pad = _round_up(W, 8)
    blk_f32 = H * w_pad * c_pad * 4
    blk_mm = H * w_pad * c_pad * mmsz
    io_bytes = 4 * isz * H * w_pad * c_pad             # in + out, double-buffered
    tmp_bytes = 3 * blk_f32 + 4 * blk_mm               # x_f32/acc/y + slab/taps/h_mm
    per_sample = io_bytes + tmp_bytes
    w_bytes = 2 * 2 * k * k * C * c_pad * mmsz         # both convs, double-buffered

    budget, cap = _vmem_budget_bytes()
    nb = (int(block_batch) if block_batch is not None
          else _pick_block_batch(N, per_sample, max(budget - w_bytes, per_sample)))
    assert N % nb == 0
    grid = (N // nb,)

    vmem_limit = int(min(budget + (8 << 20),
                         max(16 << 20, nb * per_sample + w_bytes + (4 << 20))))
    vmem_limit = int(min(vmem_limit, cap - (8 << 20)))

    flops = 2 * (2 * N * H * W * (k * k * C) * C)
    bytes_accessed = 2 * N * H * W * C * isz + 2 * k * k * C * C * mmsz
    cost = pl.CostEstimate(flops=flops, transcendentals=0,
                           bytes_accessed=int(bytes_accessed))

    out = pl.pallas_call(
        functools.partial(_resi_large_kernel, k, matmul_dtype),
        out_shape=jax.ShapeDtypeStruct((N, H, W, C), x_nhwc.dtype),
        grid_spec=pltpu.PrefetchScalarGridSpec(
            num_scalar_prefetch=0,
            grid=grid,
            in_specs=[
                pl.BlockSpec((nb, H, W, C), lambda n: (n, 0, 0, 0)),
                pl.BlockSpec((k * k, C, C), lambda n: (0, 0, 0)),
                pl.BlockSpec((k * k, C, C), lambda n: (0, 0, 0)),
            ],
            out_specs=pl.BlockSpec((nb, H, W, C), lambda n: (n, 0, 0, 0)),
        ),
        compiler_params=pltpu.CompilerParams(
            dimension_semantics=("parallel",),
            vmem_limit_bytes=vmem_limit,
        ),
        cost_estimate=cost,
    )(x_nhwc, w1, w2)
    return out


# ----------------------------------------------------------------------------
# Public PyTorch-layout entry point.
# ----------------------------------------------------------------------------

def resi_forward(x_nchw, w1_oihw, w2_oihw, *, block_batch=None,
                 matmul_dtype=jnp.bfloat16):
    """PyTorch-layout entry: (N, C, H, W) in/out, OIHW weights (no bias)."""
    N, C, H, W = x_nchw.shape
    k = int(w1_oihw.shape[-1])
    assert k % 2 == 1, "circular 'same' padding assumes odd kernel size"
    assert w1_oihw.shape == (C, C, k, k) and w2_oihw.shape == (C, C, k, k)
    if C <= _VPU_MAX_C:
        # Small-C path is NCHW-native: no HBM transposes at all.
        return _resi_forward_small(x_nchw, w1_oihw, w2_oihw, block_batch)
    # TODO(synk): fold this NCHW<->NHWC conversion into the large-C kernel
    # (per-block in-VMEM einshape) instead of paying two XLA transposes.
    x = jnp.transpose(x_nchw, (0, 2, 3, 1))
    y = resi_forward_nhwc(x, w1_oihw, w2_oihw, block_batch=block_batch,
                          matmul_dtype=matmul_dtype)
    return jnp.transpose(y, (0, 3, 1, 2))


def ref_forward(x, w1, w2):
    """Pure-JAX fp32 reference (NCHW / OIHW, circular padding)."""
    def conv_circ(a, w):
        p = w.shape[-1] // 2
        ap = jnp.pad(a, ((0, 0), (0, 0), (p, p), (p, p)), mode="wrap")
        return lax.conv_general_dilated(
            ap, w, window_strides=(1, 1), padding="VALID",
            dimension_numbers=("NCHW", "OIHW", "NCHW"))
    h = jax.nn.relu(conv_circ(x, w1))
    return jax.nn.relu(conv_circ(h, w2) + x)


if __name__ == "__main__":
    key = jax.random.PRNGKey(0)
    kx, kw1, kw2, kx2, kw3, kw4 = jax.random.split(key, 6)

    # 1) Small-C regime (NCHW-native VPU path, fp32-exact): batch=2, chn=4, 16x16.
    N, C, H, W, K = 2, 4, 16, 16, 3
    x = jax.random.normal(kx, (N, C, H, W), dtype=jnp.float32)
    s = 1.0 / np.sqrt(C * K * K)
    w1 = jax.random.uniform(kw1, (C, C, K, K), jnp.float32, -s, s)
    w2 = jax.random.uniform(kw2, (C, C, K, K), jnp.float32, -s, s)
    out = jax.block_until_ready(resi_forward(x, w1, w2))
    ref = jax.block_until_ready(ref_forward(x, w1, w2))
    assert out.shape == (N, C, H, W)
    assert np.allclose(np.asarray(out), np.asarray(ref), atol=1e-4, rtol=1e-4)

    # 2) Large-C regime (MXU path, bf16 inputs / fp32 accumulation).
    N2, C2, H2, W2 = 4, 128, 8, 8
    x2 = jax.random.normal(kx2, (N2, C2, H2, W2), dtype=jnp.float32)
    s2 = 1.0 / np.sqrt(C2 * K * K)
    w3 = jax.random.uniform(kw3, (C2, C2, K, K), jnp.float32, -s2, s2)
    w4 = jax.random.uniform(kw4, (C2, C2, K, K), jnp.float32, -s2, s2)
    out2 = jax.block_until_ready(resi_forward(x2, w3, w4))
    ref2 = jax.block_until_ready(ref_forward(x2, w3, w4))
    assert out2.shape == (N2, C2, H2, W2)
    assert np.allclose(np.asarray(out2), np.asarray(ref2), atol=5e-2, rtol=5e-2)

    print("KERNEL_OK")
</pallas_src>

<mosaic_0001>
module attributes {stable_mosaic.version = 11 : i64} {
  func.func @_resi_small_kernel(%arg0: i32, %arg1: memref<1x4x256xf32, #tpu.memory_space<vmem>>, %arg2: memref<144xf32, #tpu.memory_space<smem>>, %arg3: memref<144xf32, #tpu.memory_space<smem>>, %arg4: memref<1x4x256xf32, #tpu.memory_space<vmem>>) attributes {dimension_semantics = [#tpu.dimension_semantics<parallel>], iteration_bounds = array<i64: 2>, scalar_prefetch = 0 : i64, scratch_operands = 0 : i64, tpu.core_type = #tpu.core_type<tc>, window_params = [{transform_indices = @transform_0, window_bounds = array<i64: 1, 4, 256>}, {transform_indices = @transform_1, window_bounds = array<i64: 144>}, {transform_indices = @transform_2, window_bounds = array<i64: 144>}, {transform_indices = @transform_3, window_bounds = array<i64: 1, 4, 256>}]} {
    %c0 = arith.constant 0 : index
    %c0_0 = arith.constant 0 : index
    %c0_1 = arith.constant 0 : index
    %0 = vector.load %arg1[%c0, %c0_0, %c0_1] : memref<1x4x256xf32, #tpu.memory_space<vmem>>, vector<1x4x256xf32>
    %1 = tpu.iota {dimensions = array<i32: 2>} : vector<1x4x256xi32>
    %c15_i32 = arith.constant 15 : i32
    %2 = vector.broadcast %c15_i32 : i32 to vector<1x4x256xi32>
    %3 = arith.andi %1, %2 : vector<1x4x256xi32>
    %4 = vector.extract_strided_slice %0 {offsets = [0, 0, 240], sizes = [1, 4, 16], strides = [1, 1, 1]} : vector<1x4x256xf32> to vector<1x4x16xf32>
    %5 = vector.extract_strided_slice %0 {offsets = [0, 0, 0], sizes = [1, 4, 240], strides = [1, 1, 1]} : vector<1x4x256xf32> to vector<1x4x240xf32>
    %6 = tpu.concatenate %4, %5 in 2 : vector<1x4x16xf32>, vector<1x4x240xf32> -> vector<1x4x256xf32>
    %7 = vector.extract_strided_slice %6 {offsets = [0, 0, 255], sizes = [1, 4, 1], strides = [1, 1, 1]} : vector<1x4x256xf32> to vector<1x4x1xf32>
    %8 = vector.extract_strided_slice %6 {offsets = [0, 0, 0], sizes = [1, 4, 255], strides = [1, 1, 1]} : vector<1x4x256xf32> to vector<1x4x255xf32>
    %9 = tpu.concatenate %7, %8 in 2 : vector<1x4x1xf32>, vector<1x4x255xf32> -> vector<1x4x256xf32>
    %10 = vector.extract_strided_slice %6 {offsets = [0, 0, 15], sizes = [1, 4, 241], strides = [1, 1, 1]} : vector<1x4x256xf32> to vector<1x4x241xf32>
    %11 = vector.extract_strided_slice %6 {offsets = [0, 0, 0], sizes = [1, 4, 15], strides = [1, 1, 1]} : vector<1x4x256xf32> to vector<1x4x15xf32>
    %12 = tpu.concatenate %10, %11 in 2 : vector<1x4x241xf32>, vector<1x4x15xf32> -> vector<1x4x256xf32>
    %c1_i32 = arith.constant 1 : i32
    %13 = vector.broadcast %c1_i32 : i32 to vector<1x4x256xi32>
    %14 = arith.cmpi sge, %3, %13 : vector<1x4x256xi32>
    %15 = arith.select %14, %9, %12 : vector<1x4x256xi1>, vector<1x4x256xf32>
    %16 = vector.extract_strided_slice %6 {offsets = [0, 0, 241], sizes = [1, 4, 15], strides = [1, 1, 1]} : vector<1x4x256xf32> to vector<1x4x15xf32>
    %17 = vector.extract_strided_slice %6 {offsets = [0, 0, 0], sizes = [1, 4, 241], strides = [1, 1, 1]} : vector<1x4x256xf32> to vector<1x4x241xf32>
    %18 = tpu.concatenate %16, %17 in 2 : vector<1x4x15xf32>, vector<1x4x241xf32> -> vector<1x4x256xf32>
    %19 = vector.extract_strided_slice %6 {offsets = [0, 0, 1], sizes = [1, 4, 255], strides = [1, 1, 1]} : vector<1x4x256xf32> to vector<1x4x255xf32>
    %20 = vector.extract_strided_slice %6 {offsets = [0, 0, 0], sizes = [1, 4, 1], strides = [1, 1, 1]} : vector<1x4x256xf32> to vector<1x4x1xf32>
    %21 = tpu.concatenate %19, %20 in 2 : vector<1x4x255xf32>, vector<1x4x1xf32> -> vector<1x4x256xf32>
    %c15_i32_2 = arith.constant 15 : i32
    %22 = vector.broadcast %c15_i32_2 : i32 to vector<1x4x256xi32>
    %23 = arith.cmpi sge, %3, %22 : vector<1x4x256xi32>
    %24 = arith.select %23, %18, %21 : vector<1x4x256xi1>, vector<1x4x256xf32>
    %25 = vector.extract_strided_slice %0 {offsets = [0, 0, 255], sizes = [1, 4, 1], strides = [1, 1, 1]} : vector<1x4x256xf32> to vector<1x4x1xf32>
    %26 = vector.extract_strided_slice %0 {offsets = [0, 0, 0], sizes = [1, 4, 255], strides = [1, 1, 1]} : vector<1x4x256xf32> to vector<1x4x255xf32>
    %27 = tpu.concatenate %25, %26 in 2 : vector<1x4x1xf32>, vector<1x4x255xf32> -> vector<1x4x256xf32>
    %28 = vector.extract_strided_slice %0 {offsets = [0, 0, 15], sizes = [1, 4, 241], strides = [1, 1, 1]} : vector<1x4x256xf32> to vector<1x4x241xf32>
    %29 = vector.extract_strided_slice %0 {offsets = [0, 0, 0], sizes = [1, 4, 15], strides = [1, 1, 1]} : vector<1x4x256xf32> to vector<1x4x15xf32>
    %30 = tpu.concatenate %28, %29 in 2 : vector<1x4x241xf32>, vector<1x4x15xf32> -> vector<1x4x256xf32>
    %c1_i32_3 = arith.constant 1 : i32
    %31 = vector.broadcast %c1_i32_3 : i32 to vector<1x4x256xi32>
    %32 = arith.cmpi sge, %3, %31 : vector<1x4x256xi32>
    %33 = arith.select %32, %27, %30 : vector<1x4x256xi1>, vector<1x4x256xf32>
    %34 = vector.extract_strided_slice %0 {offsets = [0, 0, 241], sizes = [1, 4, 15], strides = [1, 1, 1]} : vector<1x4x256xf32> to vector<1x4x15xf32>
    %35 = vector.extract_strided_slice %0 {offsets = [0, 0, 0], sizes = [1, 4, 241], strides = [1, 1, 1]} : vector<1x4x256xf32> to vector<1x4x241xf32>
    %36 = tpu.concatenate %34, %35 in 2 : vector<1x4x15xf32>, vector<1x4x241xf32> -> vector<1x4x256xf32>
    %37 = vector.extract_strided_slice %0 {offsets = [0, 0, 1], sizes = [1, 4, 255], strides = [1, 1, 1]} : vector<1x4x256xf32> to vector<1x4x255xf32>
    %38 = vector.extract_strided_slice %0 {offsets = [0, 0, 0], sizes = [1, 4, 1], strides = [1, 1, 1]} : vector<1x4x256xf32> to vector<1x4x1xf32>
    %39 = tpu.concatenate %37, %38 in 2 : vector<1x4x255xf32>, vector<1x4x1xf32> -> vector<1x4x256xf32>
    %c15_i32_4 = arith.constant 15 : i32
    %40 = vector.broadcast %c15_i32_4 : i32 to vector<1x4x256xi32>
    %41 = arith.cmpi sge, %3, %40 : vector<1x4x256xi32>
    %42 = arith.select %41, %36, %39 : vector<1x4x256xi1>, vector<1x4x256xf32>
    %43 = vector.extract_strided_slice %0 {offsets = [0, 0, 16], sizes = [1, 4, 240], strides = [1, 1, 1]} : vector<1x4x256xf32> to vector<1x4x240xf32>
    %44 = vector.extract_strided_slice %0 {offsets = [0, 0, 0], sizes = [1, 4, 16], strides = [1, 1, 1]} : vector<1x4x256xf32> to vector<1x4x16xf32>
    %45 = tpu.concatenate %43, %44 in 2 : vector<1x4x240xf32>, vector<1x4x16xf32> -> vector<1x4x256xf32>
    %46 = vector.extract_strided_slice %45 {offsets = [0, 0, 255], sizes = [1, 4, 1], strides = [1, 1, 1]} : vector<1x4x256xf32> to vector<1x4x1xf32>
    %47 = vector.extract_strided_slice %45 {offsets = [0, 0, 0], sizes = [1, 4, 255], strides = [1, 1, 1]} : vector<1x4x256xf32> to vector<1x4x255xf32>
    %48 = tpu.concatenate %46, %47 in 2 : vector<1x4x1xf32>, vector<1x4x255xf32> -> vector<1x4x256xf32>
    %49 = vector.extract_strided_slice %45 {offsets = [0, 0, 15], sizes = [1, 4, 241], strides = [1, 1, 1]} : vector<1x4x256xf32> to vector<1x4x241xf32>
    %50 = vector.extract_strided_slice %45 {offsets = [0, 0, 0], sizes = [1, 4, 15], strides = [1, 1, 1]} : vector<1x4x256xf32> to vector<1x4x15xf32>
    %51 = tpu.concatenate %49, %50 in 2 : vector<1x4x241xf32>, vector<1x4x15xf32> -> vector<1x4x256xf32>
    %c1_i32_5 = arith.constant 1 : i32
    %52 = vector.broadcast %c1_i32_5 : i32 to vector<1x4x256xi32>
    %53 = arith.cmpi sge, %3, %52 : vector<1x4x256xi32>
    %54 = arith.select %53, %48, %51 : vector<1x4x256xi1>, vector<1x4x256xf32>
    %55 = vector.extract_strided_slice %45 {offsets = [0, 0, 241], sizes = [1, 4, 15], strides = [1, 1, 1]} : vector<1x4x256xf32> to vector<1x4x15xf32>
    %56 = vector.extract_strided_slice %45 {offsets = [0, 0, 0], sizes = [1, 4, 241], strides = [1, 1, 1]} : vector<1x4x256xf32> to vector<1x4x241xf32>
    %57 = tpu.concatenate %55, %56 in 2 : vector<1x4x15xf32>, vector<1x4x241xf32> -> vector<1x4x256xf32>
    %58 = vector.extract_strided_slice %45 {offsets = [0, 0, 1], sizes = [1, 4, 255], strides = [1, 1, 1]} : vector<1x4x256xf32> to vector<1x4x255xf32>
    %59 = vector.extract_strided_slice %45 {offsets = [0, 0, 0], sizes = [1, 4, 1], strides = [1, 1, 1]} : vector<1x4x256xf32> to vector<1x4x1xf32>
    %60 = tpu.concatenate %58, %59 in 2 : vector<1x4x255xf32>, vector<1x4x1xf32> -> vector<1x4x256xf32>
    %c15_i32_6 = arith.constant 15 : i32
    %61 = vector.broadcast %c15_i32_6 : i32 to vector<1x4x256xi32>
    %62 = arith.cmpi sge, %3, %61 : vector<1x4x256xi32>
    %63 = arith.select %62, %57, %60 : vector<1x4x256xi1>, vector<1x4x256xf32>
    %64 = vector.extract_strided_slice %15 {offsets = [0, 0, 0], sizes = [1, 1, 256], strides = [1, 1, 1]} : vector<1x4x256xf32> to vector<1x1x256xf32>
    %65 = vector.shape_cast %64 : vector<1x1x256xf32> to vector<1x256xf32>
    %66 = vector.extract_strided_slice %15 {offsets = [0, 1, 0], sizes = [1, 1, 256], strides = [1, 1, 1]} : vector<1x4x256xf32> to vector<1x1x256xf32>
    %67 = vector.shape_cast %66 : vector<1x1x256xf32> to vector<1x256xf32>
    %68 = vector.extract_strided_slice %15 {offsets = [0, 2, 0], sizes = [1, 1, 256], strides = [1, 1, 1]} : vector<1x4x256xf32> to vector<1x1x256xf32>
    %69 = vector.shape_cast %68 : vector<1x1x256xf32> to vector<1x256xf32>
    %70 = vector.extract_strided_slice %15 {offsets = [0, 3, 0], sizes = [1, 1, 256], strides = [1, 1, 1]} : vector<1x4x256xf32> to vector<1x1x256xf32>
    %71 = vector.shape_cast %70 : vector<1x1x256xf32> to vector<1x256xf32>
    %72 = vector.extract_strided_slice %6 {offsets = [0, 0, 0], sizes = [1, 1, 256], strides = [1, 1, 1]} : vector<1x4x256xf32> to vector<1x1x256xf32>
    %73 = vector.shape_cast %72 : vector<1x1x256xf32> to vector<1x256xf32>
    %74 = vector.extract_strided_slice %6 {offsets = [0, 1, 0], sizes = [1, 1, 256], strides = [1, 1, 1]} : vector<1x4x256xf32> to vector<1x1x256xf32>
    %75 = vector.shape_cast %74 : vector<1x1x256xf32> to vector<1x256xf32>
    %76 = vector.extract_strided_slice %6 {offsets = [0, 2, 0], sizes = [1, 1, 256], strides = [1, 1, 1]} : vector<1x4x256xf32> to vector<1x1x256xf32>
    %77 = vector.shape_cast %76 : vector<1x1x256xf32> to vector<1x256xf32>
    %78 = vector.extract_strided_slice %6 {offsets = [0, 3, 0], sizes = [1, 1, 256], strides = [1, 1, 1]} : vector<1x4x256xf32> to vector<1x1x256xf32>
    %79 = vector.shape_cast %78 : vector<1x1x256xf32> to vector<1x256xf32>
    %80 = vector.extract_strided_slice %24 {offsets = [0, 0, 0], sizes = [1, 1, 256], strides = [1, 1, 1]} : vector<1x4x256xf32> to vector<1x1x256xf32>
    %81 = vector.shape_cast %80 : vector<1x1x256xf32> to vector<1x256xf32>
    %82 = vector.extract_strided_slice %24 {offsets = [0, 1, 0], sizes = [1, 1, 256], strides = [1, 1, 1]} : vector<1x4x256xf32> to vector<1x1x256xf32>
    %83 = vector.shape_cast %82 : vector<1x1x256xf32> to vector<1x256xf32>
    %84 = vector.extract_strided_slice %24 {offsets = [0, 2, 0], sizes = [1, 1, 256], strides = [1, 1, 1]} : vector<1x4x256xf32> to vector<1x1x256xf32>
    %85 = vector.shape_cast %84 : vector<1x1x256xf32> to vector<1x256xf32>
    %86 = vector.extract_strided_slice %24 {offsets = [0, 3, 0], sizes = [1, 1, 256], strides = [1, 1, 1]} : vector<1x4x256xf32> to vector<1x1x256xf32>
    %87 = vector.shape_cast %86 : vector<1x1x256xf32> to vector<1x256xf32>
    %88 = vector.extract_strided_slice %33 {offsets = [0, 0, 0], sizes = [1, 1, 256], strides = [1, 1, 1]} : vector<1x4x256xf32> to vector<1x1x256xf32>
    %89 = vector.shape_cast %88 : vector<1x1x256xf32> to vector<1x256xf32>
    %90 = vector.extract_strided_slice %33 {offsets = [0, 1, 0], sizes = [1, 1, 256], strides = [1, 1, 1]} : vector<1x4x256xf32> to vector<1x1x256xf32>
    %91 = vector.shape_cast %90 : vector<1x1x256xf32> to vector<1x256xf32>
    %92 = vector.extract_strided_slice %33 {offsets = [0, 2, 0], sizes = [1, 1, 256], strides = [1, 1, 1]} : vector<1x4x256xf32> to vector<1x1x256xf32>
    %93 = vector.shape_cast %92 : vector<1x1x256xf32> to vector<1x256xf32>
    %94 = vector.extract_strided_slice %33 {offsets = [0, 3, 0], sizes = [1, 1, 256], strides = [1, 1, 1]} : vector<1x4x256xf32> to vector<1x1x256xf32>
    %95 = vector.shape_cast %94 : vector<1x1x256xf32> to vector<1x256xf32>
    %96 = vector.extract_strided_slice %0 {offsets = [0, 0, 0], sizes = [1, 1, 256], strides = [1, 1, 1]} : vector<1x4x256xf32> to vector<1x1x256xf32>
    %97 = vector.shape_cast %96 : vector<1x1x256xf32> to vector<1x256xf32>
    %98 = vector.extract_strided_slice %0 {offsets = [0, 1, 0], sizes = [1, 1, 256], strides = [1, 1, 1]} : vector<1x4x256xf32> to vector<1x1x256xf32>
    %99 = vector.shape_cast %98 : vector<1x1x256xf32> to vector<1x256xf32>
    %100 = vector.extract_strided_slice %0 {offsets = [0, 2, 0], sizes = [1, 1, 256], strides = [1, 1, 1]} : vector<1x4x256xf32> to vector<1x1x256xf32>
    %101 = vector.shape_cast %100 : vector<1x1x256xf32> to vector<1x256xf32>
    %102 = vector.extract_strided_slice %0 {offsets = [0, 3, 0], sizes = [1, 1, 256], strides = [1, 1, 1]} : vector<1x4x256xf32> to vector<1x1x256xf32>
    %103 = vector.shape_cast %102 : vector<1x1x256xf32> to vector<1x256xf32>
    %104 = vector.extract_strided_slice %42 {offsets = [0, 0, 0], sizes = [1, 1, 256], strides = [1, 1, 1]} : vector<1x4x256xf32> to vector<1x1x256xf32>
    %105 = vector.shape_cast %104 : vector<1x1x256xf32> to vector<1x256xf32>
    %106 = vector.extract_strided_slice %42 {offsets = [0, 1, 0], sizes = [1, 1, 256], strides = [1, 1, 1]} : vector<1x4x256xf32> to vector<1x1x256xf32>
    %107 = vector.shape_cast %106 : vector<1x1x256xf32> to vector<1x256xf32>
    %108 = vector.extract_strided_slice %42 {offsets = [0, 2, 0], sizes = [1, 1, 256], strides = [1, 1, 1]} : vector<1x4x256xf32> to vector<1x1x256xf32>
    %109 = vector.shape_cast %108 : vector<1x1x256xf32> to vector<1x256xf32>
    %110 = vector.extract_strided_slice %42 {offsets = [0, 3, 0], sizes = [1, 1, 256], strides = [1, 1, 1]} : vector<1x4x256xf32> to vector<1x1x256xf32>
    %111 = vector.shape_cast %110 : vector<1x1x256xf32> to vector<1x256xf32>
    %112 = vector.extract_strided_slice %54 {offsets = [0, 0, 0], sizes = [1, 1, 256], strides = [1, 1, 1]} : vector<1x4x256xf32> to vector<1x1x256xf32>
    %113 = vector.shape_cast %112 : vector<1x1x256xf32> to vector<1x256xf32>
    %114 = vector.extract_strided_slice %54 {offsets = [0, 1, 0], sizes = [1, 1, 256], strides = [1, 1, 1]} : vector<1x4x256xf32> to vector<1x1x256xf32>
    %115 = vector.shape_cast %114 : vector<1x1x256xf32> to vector<1x256xf32>
    %116 = vector.extract_strided_slice %54 {offsets = [0, 2, 0], sizes = [1, 1, 256], strides = [1, 1, 1]} : vector<1x4x256xf32> to vector<1x1x256xf32>
    %117 = vector.shape_cast %116 : vector<1x1x256xf32> to vector<1x256xf32>
    %118 = vector.extract_strided_slice %54 {offsets = [0, 3, 0], sizes = [1, 1, 256], strides = [1, 1, 1]} : vector<1x4x256xf32> to vector<1x1x256xf32>
    %119 = vector.shape_cast %118 : vector<1x1x256xf32> to vector<1x256xf32>
    %120 = vector.extract_strided_slice %45 {offsets = [0, 0, 0], sizes = [1, 1, 256], strides = [1, 1, 1]} : vector<1x4x256xf32> to vector<1x1x256xf32>
    %121 = vector.shape_cast %120 : vector<1x1x256xf32> to vector<1x256xf32>
    %122 = vector.extract_strided_slice %45 {offsets = [0, 1, 0], sizes = [1, 1, 256], strides = [1, 1, 1]} : vector<1x4x256xf32> to vector<1x1x256xf32>
    %123 = vector.shape_cast %122 : vector<1x1x256xf32> to vector<1x256xf32>
    %124 = vector.extract_strided_slice %45 {offsets = [0, 2, 0], sizes = [1, 1, 256], strides = [1, 1, 1]} : vector<1x4x256xf32> to vector<1x1x256xf32>
    %125 = vector.shape_cast %124 : vector<1x1x256xf32> to vector<1x256xf32>
    %126 = vector.extract_strided_slice %45 {offsets = [0, 3, 0], sizes = [1, 1, 256], strides = [1, 1, 1]} : vector<1x4x256xf32> to vector<1x1x256xf32>
    %127 = vector.shape_cast %126 : vector<1x1x256xf32> to vector<1x256xf32>
    %128 = vector.extract_strided_slice %63 {offsets = [0, 0, 0], sizes = [1, 1, 256], strides = [1, 1, 1]} : vector<1x4x256xf32> to vector<1x1x256xf32>
    %129 = vector.shape_cast %128 : vector<1x1x256xf32> to vector<1x256xf32>
    %130 = vector.extract_strided_slice %63 {offsets = [0, 1, 0], sizes = [1, 1, 256], strides = [1, 1, 1]} : vector<1x4x256xf32> to vector<1x1x256xf32>
    %131 = vector.shape_cast %130 : vector<1x1x256xf32> to vector<1x256xf32>
    %132 = vector.extract_strided_slice %63 {offsets = [0, 2, 0], sizes = [1, 1, 256], strides = [1, 1, 1]} : vector<1x4x256xf32> to vector<1x1x256xf32>
    %133 = vector.shape_cast %132 : vector<1x1x256xf32> to vector<1x256xf32>
    %134 = vector.extract_strided_slice %63 {offsets = [0, 3, 0], sizes = [1, 1, 256], strides = [1, 1, 1]} : vector<1x4x256xf32> to vector<1x1x256xf32>
    %135 = vector.shape_cast %134 : vector<1x1x256xf32> to vector<1x256xf32>
    %cst = arith.constant 0.000000e+00 : f32
    %136 = vector.broadcast %cst : f32 to vector<1x256xf32>
    %c0_7 = arith.constant 0 : index
    %137 = memref.load %arg2[%c0_7] : memref<144xf32, #tpu.memory_space<smem>>
    %138 = vector.broadcast %137 : f32 to vector<1x256xf32>
    %139 = arith.mulf %138, %65 : vector<1x256xf32>
    %140 = arith.addf %136, %139 : vector<1x256xf32>
    %c9 = arith.constant 9 : index
    %141 = memref.load %arg2[%c9] : memref<144xf32, #tpu.memory_space<smem>>
    %142 = vector.broadcast %141 : f32 to vector<1x256xf32>
    %143 = arith.mulf %142, %67 : vector<1x256xf32>
    %144 = arith.addf %140, %143 : vector<1x256xf32>
    %c18 = arith.constant 18 : index
    %145 = memref.load %arg2[%c18] : memref<144xf32, #tpu.memory_space<smem>>
    %146 = vector.broadcast %145 : f32 to vector<1x256xf32>
    %147 = arith.mulf %146, %69 : vector<1x256xf32>
    %148 = arith.addf %144, %147 : vector<1x256xf32>
    %c27 = arith.constant 27 : index
    %149 = memref.load %arg2[%c27] : memref<144xf32, #tpu.memory_space<smem>>
    %150 = vector.broadcast %149 : f32 to vector<1x256xf32>
    %151 = arith.mulf %150, %71 : vector<1x256xf32>
    %152 = arith.addf %148, %151 : vector<1x256xf32>
    %c1 = arith.constant 1 : index
    %153 = memref.load %arg2[%c1] : memref<144xf32, #tpu.memory_space<smem>>
    %154 = vector.broadcast %153 : f32 to vector<1x256xf32>
    %155 = arith.mulf %154, %73 : vector<1x256xf32>
    %156 = arith.addf %152, %155 : vector<1x256xf32>
    %c10 = arith.constant 10 : index
    %157 = memref.load %arg2[%c10] : memref<144xf32, #tpu.memory_space<smem>>
    %158 = vector.broadcast %157 : f32 to vector<1x256xf32>
    %159 = arith.mulf %158, %75 : vector<1x256xf32>
    %160 = arith.addf %156, %159 : vector<1x256xf32>
    %c19 = arith.constant 19 : index
    %161 = memref.load %arg2[%c19] : memref<144xf32, #tpu.memory_space<smem>>
    %162 = vector.broadcast %161 : f32 to vector<1x256xf32>
    %163 = arith.mulf %162, %77 : vector<1x256xf32>
    %164 = arith.addf %160, %163 : vector<1x256xf32>
    %c28 = arith.constant 28 : index
    %165 = memref.load %arg2[%c28] : memref<144xf32, #tpu.memory_space<smem>>
    %166 = vector.broadcast %165 : f32 to vector<1x256xf32>
    %167 = arith.mulf %166, %79 : vector<1x256xf32>
    %168 = arith.addf %164, %167 : vector<1x256xf32>
    %c2 = arith.constant 2 : index
    %169 = memref.load %arg2[%c2] : memref<144xf32, #tpu.memory_space<smem>>
    %170 = vector.broadcast %169 : f32 to vector<1x256xf32>
    %171 = arith.mulf %170, %81 : vector<1x256xf32>
    %172 = arith.addf %168, %171 : vector<1x256xf32>
    %c11 = arith.constant 11 : index
    %173 = memref.load %arg2[%c11] : memref<144xf32, #tpu.memory_space<smem>>
    %174 = vector.broadcast %173 : f32 to vector<1x256xf32>
    %175 = arith.mulf %174, %83 : vector<1x256xf32>
    %176 = arith.addf %172, %175 : vector<1x256xf32>
    %c20 = arith.constant 20 : index
    %177 = memref.load %arg2[%c20] : memref<144xf32, #tpu.memory_space<smem>>
    %178 = vector.broadcast %177 : f32 to vector<1x256xf32>
    %179 = arith.mulf %178, %85 : vector<1x256xf32>
    %180 = arith.addf %176, %179 : vector<1x256xf32>
    %c29 = arith.constant 29 : index
    %181 = memref.load %arg2[%c29] : memref<144xf32, #tpu.memory_space<smem>>
    %182 = vector.broadcast %181 : f32 to vector<1x256xf32>
    %183 = arith.mulf %182, %87 : vector<1x256xf32>
    %184 = arith.addf %180, %183 : vector<1x256xf32>
    %c3 = arith.constant 3 : index
    %185 = memref.load %arg2[%c3] : memref<144xf32, #tpu.memory_space<smem>>
    %186 = vector.broadcast %185 : f32 to vector<1x256xf32>
    %187 = arith.mulf %186, %89 : vector<1x256xf32>
    %188 = arith.addf %184, %187 : vector<1x256xf32>
    %c12 = arith.constant 12 : index
    %189 = memref.load %arg2[%c12] : memref<144xf32, #tpu.memory_space<smem>>
    %190 = vector.broadcast %189 : f32 to vector<1x256xf32>
    %191 = arith.mulf %190, %91 : vector<1x256xf32>
    %192 = arith.addf %188, %191 : vector<1x256xf32>
    %c21 = arith.constant 21 : index
    %193 = memref.load %arg2[%c21] : memref<144xf32, #tpu.memory_space<smem>>
    %194 = vector.broadcast %193 : f32 to vector<1x256xf32>
    %195 = arith.mulf %194, %93 : vector<1x256xf32>
    %196 = arith.addf %192, %195 : vector<1x256xf32>
    %c30 = arith.constant 30 : index
    %197 = memref.load %arg2[%c30] : memref<144xf32, #tpu.memory_space<smem>>
    %198 = vector.broadcast %197 : f32 to vector<1x256xf32>
    %199 = arith.mulf %198, %95 : vector<1x256xf32>
    %200 = arith.addf %196, %199 : vector<1x256xf32>
    %c4 = arith.constant 4 : index
    %201 = memref.load %arg2[%c4] : memref<144xf32, #tpu.memory_space<smem>>
    %202 = vector.broadcast %201 : f32 to vector<1x256xf32>
    %203 = arith.mulf %202, %97 : vector<1x256xf32>
    %204 = arith.addf %200, %203 : vector<1x256xf32>
    %c13 = arith.constant 13 : index
    %205 = memref.load %arg2[%c13] : memref<144xf32, #tpu.memory_space<smem>>
    %206 = vector.broadcast %205 : f32 to vector<1x256xf32>
    %207 = arith.mulf %206, %99 : vector<1x256xf32>
    %208 = arith.addf %204, %207 : vector<1x256xf32>
    %c22 = arith.constant 22 : index
    %209 = memref.load %arg2[%c22] : memref<144xf32, #tpu.memory_space<smem>>
    %210 = vector.broadcast %209 : f32 to vector<1x256xf32>
    %211 = arith.mulf %210, %101 : vector<1x256xf32>
    %212 = arith.addf %208, %211 : vector<1x256xf32>
    %c31 = arith.constant 31 : index
    %213 = memref.load %arg2[%c31] : memref<144xf32, #tpu.memory_space<smem>>
    %214 = vector.broadcast %213 : f32 to vector<1x256xf32>
    %215 = arith.mulf %214, %103 : vector<1x256xf32>
    %216 = arith.addf %212, %215 : vector<1x256xf32>
    %c5 = arith.constant 5 : index
    %217 = memref.load %arg2[%c5] : memref<144xf32, #tpu.memory_space<smem>>
    %218 = vector.broadcast %217 : f32 to vector<1x256xf32>
    %219 = arith.mulf %218, %105 : vector<1x256xf32>
    %220 = arith.addf %216, %219 : vector<1x256xf32>
    %c14 = arith.constant 14 : index
    %221 = memref.load %arg2[%c14] : memref<144xf32, #tpu.memory_space<smem>>
    %222 = vector.broadcast %221 : f32 to vector<1x256xf32>
    %223 = arith.mulf %222, %107 : vector<1x256xf32>
    %224 = arith.addf %220, %223 : vector<1x256xf32>
    %c23 = arith.constant 23 : index
    %225 = memref.load %arg2[%c23] : memref<144xf32, #tpu.memory_space<smem>>
    %226 = vector.broadcast %225 : f32 to vector<1x256xf32>
    %227 = arith.mulf %226, %109 : vector<1x256xf32>
    %228 = arith.addf %224, %227 : vector<1x256xf32>
    %c32 = arith.constant 32 : index
    %229 = memref.load %arg2[%c32] : memref<144xf32, #tpu.memory_space<smem>>
    %230 = vector.broadcast %229 : f32 to vector<1x256xf32>
    %231 = arith.mulf %230, %111 : vector<1x256xf32>
    %232 = arith.addf %228, %231 : vector<1x256xf32>
    %c6 = arith.constant 6 : index
    %233 = memref.load %arg2[%c6] : memref<144xf32, #tpu.memory_space<smem>>
    %234 = vector.broadcast %233 : f32 to vector<1x256xf32>
    %235 = arith.mulf %234, %113 : vector<1x256xf32>
    %236 = arith.addf %232, %235 : vector<1x256xf32>
    %c15 = arith.constant 15 : index
    %237 = memref.load %arg2[%c15] : memref<144xf32, #tpu.memory_space<smem>>
    %238 = vector.broadcast %237 : f32 to vector<1x256xf32>
    %239 = arith.mulf %238, %115 : vector<1x256xf32>
    %240 = arith.addf %236, %239 : vector<1x256xf32>
    %c24 = arith.constant 24 : index
    %241 = memref.load %arg2[%c24] : memref<144xf32, #tpu.memory_space<smem>>
    %242 = vector.broadcast %241 : f32 to vector<1x256xf32>
    %243 = arith.mulf %242, %117 : vector<1x256xf32>
    %244 = arith.addf %240, %243 : vector<1x256xf32>
    %c33 = arith.constant 33 : index
    %245 = memref.load %arg2[%c33] : memref<144xf32, #tpu.memory_space<smem>>
    %246 = vector.broadcast %245 : f32 to vector<1x256xf32>
    %247 = arith.mulf %246, %119 : vector<1x256xf32>
    %248 = arith.addf %244, %247 : vector<1x256xf32>
    %c7 = arith.constant 7 : index
    %249 = memref.load %arg2[%c7] : memref<144xf32, #tpu.memory_space<smem>>
    %250 = vector.broadcast %249 : f32 to vector<1x256xf32>
    %251 = arith.mulf %250, %121 : vector<1x256xf32>
    %252 = arith.addf %248, %251 : vector<1x256xf32>
    %c16 = arith.constant 16 : index
    %253 = memref.load %arg2[%c16] : memref<144xf32, #tpu.memory_space<smem>>
    %254 = vector.broadcast %253 : f32 to vector<1x256xf32>
    %255 = arith.mulf %254, %123 : vector<1x256xf32>
    %256 = arith.addf %252, %255 : vector<1x256xf32>
    %c25 = arith.constant 25 : index
    %257 = memref.load %arg2[%c25] : memref<144xf32, #tpu.memory_space<smem>>
    %258 = vector.broadcast %257 : f32 to vector<1x256xf32>
    %259 = arith.mulf %258, %125 : vector<1x256xf32>
    %260 = arith.addf %256, %259 : vector<1x256xf32>
    %c34 = arith.constant 34 : index
    %261 = memref.load %arg2[%c34] : memref<144xf32, #tpu.memory_space<smem>>
    %262 = vector.broadcast %261 : f32 to vector<1x256xf32>
    %263 = arith.mulf %262, %127 : vector<1x256xf32>
    %264 = arith.addf %260, %263 : vector<1x256xf32>
    %c8 = arith.constant 8 : index
    %265 = memref.load %arg2[%c8] : memref<144xf32, #tpu.memory_space<smem>>
    %266 = vector.broadcast %265 : f32 to vector<1x256xf32>
    %267 = arith.mulf %266, %129 : vector<1x256xf32>
    %268 = arith.addf %264, %267 : vector<1x256xf32>
    %c17 = arith.constant 17 : index
    %269 = memref.load %arg2[%c17] : memref<144xf32, #tpu.memory_space<smem>>
    %270 = vector.broadcast %269 : f32 to vector<1x256xf32>
    %271 = arith.mulf %270, %131 : vector<1x256xf32>
    %272 = arith.addf %268, %271 : vector<1x256xf32>
    %c26 = arith.constant 26 : index
    %273 = memref.load %arg2[%c26] : memref<144xf32, #tpu.memory_space<smem>>
    %274 = vector.broadcast %273 : f32 to vector<1x256xf32>
    %275 = arith.mulf %274, %133 : vector<1x256xf32>
    %276 = arith.addf %272, %275 : vector<1x256xf32>
    %c35 = arith.constant 35 : index
    %277 = memref.load %arg2[%c35] : memref<144xf32, #tpu.memory_space<smem>>
    %278 = vector.broadcast %277 : f32 to vector<1x256xf32>
    %279 = arith.mulf %278, %135 : vector<1x256xf32>
    %280 = arith.addf %276, %279 : vector<1x256xf32>
    %281 = vector.shape_cast %280 : vector<1x256xf32> to vector<1x1x256xf32>
    %cst_8 = arith.constant 0.000000e+00 : f32
    %282 = vector.broadcast %cst_8 : f32 to vector<1x256xf32>
    %c36 = arith.constant 36 : index
    %283 = memref.load %arg2[%c36] : memref<144xf32, #tpu.memory_space<smem>>
    %284 = vector.broadcast %283 : f32 to vector<1x256xf32>
    %285 = arith.mulf %284, %65 : vector<1x256xf32>
    %286 = arith.addf %282, %285 : vector<1x256xf32>
    %c45 = arith.constant 45 : index
    %287 = memref.load %arg2[%c45] : memref<144xf32, #tpu.memory_space<smem>>
    %288 = vector.broadcast %287 : f32 to vector<1x256xf32>
    %289 = arith.mulf %288, %67 : vector<1x256xf32>
    %290 = arith.addf %286, %289 : vector<1x256xf32>
    %c54 = arith.constant 54 : index
    %291 = memref.load %arg2[%c54] : memref<144xf32, #tpu.memory_space<smem>>
    %292 = vector.broadcast %291 : f32 to vector<1x256xf32>
    %293 = arith.mulf %292, %69 : vector<1x256xf32>
    %294 = arith.addf %290, %293 : vector<1x256xf32>
    %c63 = arith.constant 63 : index
    %295 = memref.load %arg2[%c63] : memref<144xf32, #tpu.memory_space<smem>>
    %296 = vector.broadcast %295 : f32 to vector<1x256xf32>
    %297 = arith.mulf %296, %71 : vector<1x256xf32>
    %298 = arith.addf %294, %297 : vector<1x256xf32>
    %c37 = arith.constant 37 : index
    %299 = memref.load %arg2[%c37] : memref<144xf32, #tpu.memory_space<smem>>
    %300 = vector.broadcast %299 : f32 to vector<1x256xf32>
    %301 = arith.mulf %300, %73 : vector<1x256xf32>
    %302 = arith.addf %298, %301 : vector<1x256xf32>
    %c46 = arith.constant 46 : index
    %303 = memref.load %arg2[%c46] : memref<144xf32, #tpu.memory_space<smem>>
    %304 = vector.broadcast %303 : f32 to vector<1x256xf32>
    %305 = arith.mulf %304, %75 : vector<1x256xf32>
    %306 = arith.addf %302, %305 : vector<1x256xf32>
    %c55 = arith.constant 55 : index
    %307 = memref.load %arg2[%c55] : memref<144xf32, #tpu.memory_space<smem>>
    %308 = vector.broadcast %307 : f32 to vector<1x256xf32>
    %309 = arith.mulf %308, %77 : vector<1x256xf32>
    %310 = arith.addf %306, %309 : vector<1x256xf32>
    %c64 = arith.constant 64 : index
    %311 = memref.load %arg2[%c64] : memref<144xf32, #tpu.memory_space<smem>>
    %312 = vector.broadcast %311 : f32 to vector<1x256xf32>
    %313 = arith.mulf %312, %79 : vector<1x256xf32>
    %314 = arith.addf %310, %313 : vector<1x256xf32>
    %c38 = arith.constant 38 : index
    %315 = memref.load %arg2[%c38] : memref<144xf32, #tpu.memory_space<smem>>
    %316 = vector.broadcast %315 : f32 to vector<1x256xf32>
    %317 = arith.mulf %316, %81 : vector<1x256xf32>
    %318 = arith.addf %314, %317 : vector<1x256xf32>
    %c47 = arith.constant 47 : index
    %319 = memref.load %arg2[%c47] : memref<144xf32, #tpu.memory_space<smem>>
    %320 = vector.broadcast %319 : f32 to vector<1x256xf32>
    %321 = arith.mulf %320, %83 : vector<1x256xf32>
    %322 = arith.addf %318, %321 : vector<1x256xf32>
    %c56 = arith.constant 56 : index
    %323 = memref.load %arg2[%c56] : memref<144xf32, #tpu.memory_space<smem>>
    %324 = vector.broadcast %323 : f32 to vector<1x256xf32>
    %325 = arith.mulf %324, %85 : vector<1x256xf32>
    %326 = arith.addf %322, %325 : vector<1x256xf32>
    %c65 = arith.constant 65 : index
    %327 = memref.load %arg2[%c65] : memref<144xf32, #tpu.memory_space<smem>>
    %328 = vector.broadcast %327 : f32 to vector<1x256xf32>
    %329 = arith.mulf %328, %87 : vector<1x256xf32>
    %330 = arith.addf %326, %329 : vector<1x256xf32>
    %c39 = arith.constant 39 : index
    %331 = memref.load %arg2[%c39] : memref<144xf32, #tpu.memory_space<smem>>
    %332 = vector.broadcast %331 : f32 to vector<1x256xf32>
    %333 = arith.mulf %332, %89 : vector<1x256xf32>
    %334 = arith.addf %330, %333 : vector<1x256xf32>
    %c48 = arith.constant 48 : index
    %335 = memref.load %arg2[%c48] : memref<144xf32, #tpu.memory_space<smem>>
    %336 = vector.broadcast %335 : f32 to vector<1x256xf32>
    %337 = arith.mulf %336, %91 : vector<1x256xf32>
    %338 = arith.addf %334, %337 : vector<1x256xf32>
    %c57 = arith.constant 57 : index
    %339 = memref.load %arg2[%c57] : memref<144xf32, #tpu.memory_space<smem>>
    %340 = vector.broadcast %339 : f32 to vector<1x256xf32>
    %341 = arith.mulf %340, %93 : vector<1x256xf32>
    %342 = arith.addf %338, %341 : vector<1x256xf32>
    %c66 = arith.constant 66 : index
    %343 = memref.load %arg2[%c66] : memref<144xf32, #tpu.memory_space<smem>>
    %344 = vector.broadcast %343 : f32 to vector<1x256xf32>
    %345 = arith.mulf %344, %95 : vector<1x256xf32>
    %346 = arith.addf %342, %345 : vector<1x256xf32>
    %c40 = arith.constant 40 : index
    %347 = memref.load %arg2[%c40] : memref<144xf32, #tpu.memory_space<smem>>
    %348 = vector.broadcast %347 : f32 to vector<1x256xf32>
    %349 = arith.mulf %348, %97 : vector<1x256xf32>
    %350 = arith.addf %346, %349 : vector<1x256xf32>
    %c49 = arith.constant 49 : index
    %351 = memref.load %arg2[%c49] : memref<144xf32, #tpu.memory_space<smem>>
    %352 = vector.broadcast %351 : f32 to vector<1x256xf32>
    %353 = arith.mulf %352, %99 : vector<1x256xf32>
    %354 = arith.addf %350, %353 : vector<1x256xf32>
    %c58 = arith.constant 58 : index
    %355 = memref.load %arg2[%c58] : memref<144xf32, #tpu.memory_space<smem>>
    %356 = vector.broadcast %355 : f32 to vector<1x256xf32>
    %357 = arith.mulf %356, %101 : vector<1x256xf32>
    %358 = arith.addf %354, %357 : vector<1x256xf32>
    %c67 = arith.constant 67 : index
    %359 = memref.load %arg2[%c67] : memref<144xf32, #tpu.memory_space<smem>>
    %360 = vector.broadcast %359 : f32 to vector<1x256xf32>
    %361 = arith.mulf %360, %103 : vector<1x256xf32>
    %362 = arith.addf %358, %361 : vector<1x256xf32>
    %c41 = arith.constant 41 : index
    %363 = memref.load %arg2[%c41] : memref<144xf32, #tpu.memory_space<smem>>
    %364 = vector.broadcast %363 : f32 to vector<1x256xf32>
    %365 = arith.mulf %364, %105 : vector<1x256xf32>
    %366 = arith.addf %362, %365 : vector<1x256xf32>
    %c50 = arith.constant 50 : index
    %367 = memref.load %arg2[%c50] : memref<144xf32, #tpu.memory_space<smem>>
    %368 = vector.broadcast %367 : f32 to vector<1x256xf32>
    %369 = arith.mulf %368, %107 : vector<1x256xf32>
    %370 = arith.addf %366, %369 : vector<1x256xf32>
    %c59 = arith.constant 59 : index
    %371 = memref.load %arg2[%c59] : memref<144xf32, #tpu.memory_space<smem>>
    %372 = vector.broadcast %371 : f32 to vector<1x256xf32>
    %373 = arith.mulf %372, %109 : vector<1x256xf32>
    %374 = arith.addf %370, %373 : vector<1x256xf32>
    %c68 = arith.constant 68 : index
    %375 = memref.load %arg2[%c68] : memref<144xf32, #tpu.memory_space<smem>>
    %376 = vector.broadcast %375 : f32 to vector<1x256xf32>
    %377 = arith.mulf %376, %111 : vector<1x256xf32>
    %378 = arith.addf %374, %377 : vector<1x256xf32>
    %c42 = arith.constant 42 : index
    %379 = memref.load %arg2[%c42] : memref<144xf32, #tpu.memory_space<smem>>
    %380 = vector.broadcast %379 : f32 to vector<1x256xf32>
    %381 = arith.mulf %380, %113 : vector<1x256xf32>
    %382 = arith.addf %378, %381 : vector<1x256xf32>
    %c51 = arith.constant 51 : index
    %383 = memref.load %arg2[%c51] : memref<144xf32, #tpu.memory_space<smem>>
    %384 = vector.broadcast %383 : f32 to vector<1x256xf32>
    %385 = arith.mulf %384, %115 : vector<1x256xf32>
    %386 = arith.addf %382, %385 : vector<1x256xf32>
    %c60 = arith.constant 60 : index
    %387 = memref.load %arg2[%c60] : memref<144xf32, #tpu.memory_space<smem>>
    %388 = vector.broadcast %387 : f32 to vector<1x256xf32>
    %389 = arith.mulf %388, %117 : vector<1x256xf32>
    %390 = arith.addf %386, %389 : vector<1x256xf32>
    %c69 = arith.constant 69 : index
    %391 = memref.load %arg2[%c69] : memref<144xf32, #tpu.memory_space<smem>>
    %392 = vector.broadcast %391 : f32 to vector<1x256xf32>
    %393 = arith.mulf %392, %119 : vector<1x256xf32>
    %394 = arith.addf %390, %393 : vector<1x256xf32>
    %c43 = arith.constant 43 : index
    %395 = memref.load %arg2[%c43] : memref<144xf32, #tpu.memory_space<smem>>
    %396 = vector.broadcast %395 : f32 to vector<1x256xf32>
    %397 = arith.mulf %396, %121 : vector<1x256xf32>
    %398 = arith.addf %394, %397 : vector<1x256xf32>
    %c52 = arith.constant 52 : index
    %399 = memref.load %arg2[%c52] : memref<144xf32, #tpu.memory_space<smem>>
    %400 = vector.broadcast %399 : f32 to vector<1x256xf32>
    %401 = arith.mulf %400, %123 : vector<1x256xf32>
    %402 = arith.addf %398, %401 : vector<1x256xf32>
    %c61 = arith.constant 61 : index
    %403 = memref.load %arg2[%c61] : memref<144xf32, #tpu.memory_space<smem>>
    %404 = vector.broadcast %403 : f32 to vector<1x256xf32>
    %405 = arith.mulf %404, %125 : vector<1x256xf32>
    %406 = arith.addf %402, %405 : vector<1x256xf32>
    %c70 = arith.constant 70 : index
    %407 = memref.load %arg2[%c70] : memref<144xf32, #tpu.memory_space<smem>>
    %408 = vector.broadcast %407 : f32 to vector<1x256xf32>
    %409 = arith.mulf %408, %127 : vector<1x256xf32>
    %410 = arith.addf %406, %409 : vector<1x256xf32>
    %c44 = arith.constant 44 : index
    %411 = memref.load %arg2[%c44] : memref<144xf32, #tpu.memory_space<smem>>
    %412 = vector.broadcast %411 : f32 to vector<1x256xf32>
    %413 = arith.mulf %412, %129 : vector<1x256xf32>
    %414 = arith.addf %410, %413 : vector<1x256xf32>
    %c53 = arith.constant 53 : index
    %415 = memref.load %arg2[%c53] : memref<144xf32, #tpu.memory_space<smem>>
    %416 = vector.broadcast %415 : f32 to vector<1x256xf32>
    %417 = arith.mulf %416, %131 : vector<1x256xf32>
    %418 = arith.addf %414, %417 : vector<1x256xf32>
    %c62 = arith.constant 62 : index
    %419 = memref.load %arg2[%c62] : memref<144xf32, #tpu.memory_space<smem>>
    %420 = vector.broadcast %419 : f32 to vector<1x256xf32>
    %421 = arith.mulf %420, %133 : vector<1x256xf32>
    %422 = arith.addf %418, %421 : vector<1x256xf32>
    %c71 = arith.constant 71 : index
    %423 = memref.load %arg2[%c71] : memref<144xf32, #tpu.memory_space<smem>>
    %424 = vector.broadcast %423 : f32 to vector<1x256xf32>
    %425 = arith.mulf %424, %135 : vector<1x256xf32>
    %426 = arith.addf %422, %425 : vector<1x256xf32>
    %427 = vector.shape_cast %426 : vector<1x256xf32> to vector<1x1x256xf32>
    %cst_9 = arith.constant 0.000000e+00 : f32
    %428 = vector.broadcast %cst_9 : f32 to vector<1x256xf32>
    %c72 = arith.constant 72 : index
    %429 = memref.load %arg2[%c72] : memref<144xf32, #tpu.memory_space<smem>>
    %430 = vector.broadcast %429 : f32 to vector<1x256xf32>
    %431 = arith.mulf %430, %65 : vector<1x256xf32>
    %432 = arith.addf %428, %431 : vector<1x256xf32>
    %c81 = arith.constant 81 : index
    %433 = memref.load %arg2[%c81] : memref<144xf32, #tpu.memory_space<smem>>
    %434 = vector.broadcast %433 : f32 to vector<1x256xf32>
    %435 = arith.mulf %434, %67 : vector<1x256xf32>
    %436 = arith.addf %432, %435 : vector<1x256xf32>
    %c90 = arith.constant 90 : index
    %437 = memref.load %arg2[%c90] : memref<144xf32, #tpu.memory_space<smem>>
    %438 = vector.broadcast %437 : f32 to vector<1x256xf32>
    %439 = arith.mulf %438, %69 : vector<1x256xf32>
    %440 = arith.addf %436, %439 : vector<1x256xf32>
    %c99 = arith.constant 99 : index
    %441 = memref.load %arg2[%c99] : memref<144xf32, #tpu.memory_space<smem>>
    %442 = vector.broadcast %441 : f32 to vector<1x256xf32>
    %443 = arith.mulf %442, %71 : vector<1x256xf32>
    %444 = arith.addf %440, %443 : vector<1x256xf32>
    %c73 = arith.constant 73 : index
    %445 = memref.load %arg2[%c73] : memref<144xf32, #tpu.memory_space<smem>>
    %446 = vector.broadcast %445 : f32 to vector<1x256xf32>
    %447 = arith.mulf %446, %73 : vector<1x256xf32>
    %448 = arith.addf %444, %447 : vector<1x256xf32>
    %c82 = arith.constant 82 : index
    %449 = memref.load %arg2[%c82] : memref<144xf32, #tpu.memory_space<smem>>
    %450 = vector.broadcast %449 : f32 to vector<1x256xf32>
    %451 = arith.mulf %450, %75 : vector<1x256xf32>
    %452 = arith.addf %448, %451 : vector<1x256xf32>
    %c91 = arith.constant 91 : index
    %453 = memref.load %arg2[%c91] : memref<144xf32, #tpu.memory_space<smem>>
    %454 = vector.broadcast %453 : f32 to vector<1x256xf32>
    %455 = arith.mulf %454, %77 : vector<1x256xf32>
    %456 = arith.addf %452, %455 : vector<1x256xf32>
    %c100 = arith.constant 100 : index
    %457 = memref.load %arg2[%c100] : memref<144xf32, #tpu.memory_space<smem>>
    %458 = vector.broadcast %457 : f32 to vector<1x256xf32>
    %459 = arith.mulf %458, %79 : vector<1x256xf32>
    %460 = arith.addf %456, %459 : vector<1x256xf32>
    %c74 = arith.constant 74 : index
    %461 = memref.load %arg2[%c74] : memref<144xf32, #tpu.memory_space<smem>>
    %462 = vector.broadcast %461 : f32 to vector<1x256xf32>
    %463 = arith.mulf %462, %81 : vector<1x256xf32>
    %464 = arith.addf %460, %463 : vector<1x256xf32>
    %c83 = arith.constant 83 : index
    %465 = memref.load %arg2[%c83] : memref<144xf32, #tpu.memory_space<smem>>
    %466 = vector.broadcast %465 : f32 to vector<1x256xf32>
    %467 = arith.mulf %466, %83 : vector<1x256xf32>
    %468 = arith.addf %464, %467 : vector<1x256xf32>
    %c92 = arith.constant 92 : index
    %469 = memref.load %arg2[%c92] : memref<144xf32, #tpu.memory_space<smem>>
    %470 = vector.broadcast %469 : f32 to vector<1x256xf32>
    %471 = arith.mulf %470, %85 : vector<1x256xf32>
    %472 = arith.addf %468, %471 : vector<1x256xf32>
    %c101 = arith.constant 101 : index
    %473 = memref.load %arg2[%c101] : memref<144xf32, #tpu.memory_space<smem>>
    %474 = vector.broadcast %473 : f32 to vector<1x256xf32>
    %475 = arith.mulf %474, %87 : vector<1x256xf32>
    %476 = arith.addf %472, %475 : vector<1x256xf32>
    %c75 = arith.constant 75 : index
    %477 = memref.load %arg2[%c75] : memref<144xf32, #tpu.memory_space<smem>>
    %478 = vector.broadcast %477 : f32 to vector<1x256xf32>
    %479 = arith.mulf %478, %89 : vector<1x256xf32>
    %480 = arith.addf %476, %479 : vector<1x256xf32>
    %c84 = arith.constant 84 : index
    %481 = memref.load %arg2[%c84] : memref<144xf32, #tpu.memory_space<smem>>
    %482 = vector.broadcast %481 : f32 to vector<1x256xf32>
    %483 = arith.mulf %482, %91 : vector<1x256xf32>
    %484 = arith.addf %480, %483 : vector<1x256xf32>
    %c93 = arith.constant 93 : index
    %485 = memref.load %arg2[%c93] : memref<144xf32, #tpu.memory_space<smem>>
    %486 = vector.broadcast %485 : f32 to vector<1x256xf32>
    %487 = arith.mulf %486, %93 : vector<1x256xf32>
    %488 = arith.addf %484, %487 : vector<1x256xf32>
    %c102 = arith.constant 102 : index
    %489 = memref.load %arg2[%c102] : memref<144xf32, #tpu.memory_space<smem>>
    %490 = vector.broadcast %489 : f32 to vector<1x256xf32>
    %491 = arith.mulf %490, %95 : vector<1x256xf32>
    %492 = arith.addf %488, %491 : vector<1x256xf32>
    %c76 = arith.constant 76 : index
    %493 = memref.load %arg2[%c76] : memref<144xf32, #tpu.memory_space<smem>>
    %494 = vector.broadcast %493 : f32 to vector<1x256xf32>
    %495 = arith.mulf %494, %97 : vector<1x256xf32>
    %496 = arith.addf %492, %495 : vector<1x256xf32>
    %c85 = arith.constant 85 : index
    %497 = memref.load %arg2[%c85] : memref<144xf32, #tpu.memory_space<smem>>
    %498 = vector.broadcast %497 : f32 to vector<1x256xf32>
    %499 = arith.mulf %498, %99 : vector<1x256xf32>
    %500 = arith.addf %496, %499 : vector<1x256xf32>
    %c94 = arith.constant 94 : index
    %501 = memref.load %arg2[%c94] : memref<144xf32, #tpu.memory_space<smem>>
    %502 = vector.broadcast %501 : f32 to vector<1x256xf32>
    %503 = arith.mulf %502, %101 : vector<1x256xf32>
    %504 = arith.addf %500, %503 : vector<1x256xf32>
    %c103 = arith.constant 103 : index
    %505 = memref.load %arg2[%c103] : memref<144xf32, #tpu.memory_space<smem>>
    %506 = vector.broadcast %505 : f32 to vector<1x256xf32>
    %507 = arith.mulf %506, %103 : vector<1x256xf32>
    %508 = arith.addf %504, %507 : vector<1x256xf32>
    %c77 = arith.constant 77 : index
    %509 = memref.load %arg2[%c77] : memref<144xf32, #tpu.memory_space<smem>>
    %510 = vector.broadcast %509 : f32 to vector<1x256xf32>
    %511 = arith.mulf %510, %105 : vector<1x256xf32>
    %512 = arith.addf %508, %511 : vector<1x256xf32>
    %c86 = arith.constant 86 : index
    %513 = memref.load %arg2[%c86] : memref<144xf32, #tpu.memory_space<smem>>
    %514 = vector.broadcast %513 : f32 to vector<1x256xf32>
    %515 = arith.mulf %514, %107 : vector<1x256xf32>
    %516 = arith.addf %512, %515 : vector<1x256xf32>
    %c95 = arith.constant 95 : index
    %517 = memref.load %arg2[%c95] : memref<144xf32, #tpu.memory_space<smem>>
    %518 = vector.broadcast %517 : f32 to vector<1x256xf32>
    %519 = arith.mulf %518, %109 : vector<1x256xf32>
    %520 = arith.addf %516, %519 : vector<1x256xf32>
    %c104 = arith.constant 104 : index
    %521 = memref.load %arg2[%c104] : memref<144xf32, #tpu.memory_space<smem>>
    %522 = vector.broadcast %521 : f32 to vector<1x256xf32>
    %523 = arith.mulf %522, %111 : vector<1x256xf32>
    %524 = arith.addf %520, %523 : vector<1x256xf32>
    %c78 = arith.constant 78 : index
    %525 = memref.load %arg2[%c78] : memref<144xf32, #tpu.memory_space<smem>>
    %526 = vector.broadcast %525 : f32 to vector<1x256xf32>
    %527 = arith.mulf %526, %113 : vector<1x256xf32>
    %528 = arith.addf %524, %527 : vector<1x256xf32>
    %c87 = arith.constant 87 : index
    %529 = memref.load %arg2[%c87] : memref<144xf32, #tpu.memory_space<smem>>
    %530 = vector.broadcast %529 : f32 to vector<1x256xf32>
    %531 = arith.mulf %530, %115 : vector<1x256xf32>
    %532 = arith.addf %528, %531 : vector<1x256xf32>
    %c96 = arith.constant 96 : index
    %533 = memref.load %arg2[%c96] : memref<144xf32, #tpu.memory_space<smem>>
    %534 = vector.broadcast %533 : f32 to vector<1x256xf32>
    %535 = arith.mulf %534, %117 : vector<1x256xf32>
    %536 = arith.addf %532, %535 : vector<1x256xf32>
    %c105 = arith.constant 105 : index
    %537 = memref.load %arg2[%c105] : memref<144xf32, #tpu.memory_space<smem>>
    %538 = vector.broadcast %537 : f32 to vector<1x256xf32>
    %539 = arith.mulf %538, %119 : vector<1x256xf32>
    %540 = arith.addf %536, %539 : vector<1x256xf32>
    %c79 = arith.constant 79 : index
    %541 = memref.load %arg2[%c79] : memref<144xf32, #tpu.memory_space<smem>>
    %542 = vector.broadcast %541 : f32 to vector<1x256xf32>
    %543 = arith.mulf %542, %121 : vector<1x256xf32>
    %544 = arith.addf %540, %543 : vector<1x256xf32>
    %c88 = arith.constant 88 : index
    %545 = memref.load %arg2[%c88] : memref<144xf32, #tpu.memory_space<smem>>
    %546 = vector.broadcast %545 : f32 to vector<1x256xf32>
    %547 = arith.mulf %546, %123 : vector<1x256xf32>
    %548 = arith.addf %544, %547 : vector<1x256xf32>
    %c97 = arith.constant 97 : index
    %549 = memref.load %arg2[%c97] : memref<144xf32, #tpu.memory_space<smem>>
    %550 = vector.broadcast %549 : f32 to vector<1x256xf32>
    %551 = arith.mulf %550, %125 : vector<1x256xf32>
    %552 = arith.addf %548, %551 : vector<1x256xf32>
    %c106 = arith.constant 106 : index
    %553 = memref.load %arg2[%c106] : memref<144xf32, #tpu.memory_space<smem>>
    %554 = vector.broadcast %553 : f32 to vector<1x256xf32>
    %555 = arith.mulf %554, %127 : vector<1x256xf32>
    %556 = arith.addf %552, %555 : vector<1x256xf32>
    %c80 = arith.constant 80 : index
    %557 = memref.load %arg2[%c80] : memref<144xf32, #tpu.memory_space<smem>>
    %558 = vector.broadcast %557 : f32 to vector<1x256xf32>
    %559 = arith.mulf %558, %129 : vector<1x256xf32>
    %560 = arith.addf %556, %559 : vector<1x256xf32>
    %c89 = arith.constant 89 : index
    %561 = memref.load %arg2[%c89] : memref<144xf32, #tpu.memory_space<smem>>
    %562 = vector.broadcast %561 : f32 to vector<1x256xf32>
    %563 = arith.mulf %562, %131 : vector<1x256xf32>
    %564 = arith.addf %560, %563 : vector<1x256xf32>
    %c98 = arith.constant 98 : index
    %565 = memref.load %arg2[%c98] : memref<144xf32, #tpu.memory_space<smem>>
    %566 = vector.broadcast %565 : f32 to vector<1x256xf32>
    %567 = arith.mulf %566, %133 : vector<1x256xf32>
    %568 = arith.addf %564, %567 : vector<1x256xf32>
    %c107 = arith.constant 107 : index
    %569 = memref.load %arg2[%c107] : memref<144xf32, #tpu.memory_space<smem>>
    %570 = vector.broadcast %569 : f32 to vector<1x256xf32>
    %571 = arith.mulf %570, %135 : vector<1x256xf32>
    %572 = arith.addf %568, %571 : vector<1x256xf32>
    %573 = vector.shape_cast %572 : vector<1x256xf32> to vector<1x1x256xf32>
    %cst_10 = arith.constant 0.000000e+00 : f32
    %574 = vector.broadcast %cst_10 : f32 to vector<1x256xf32>
    %c108 = arith.constant 108 : index
    %575 = memref.load %arg2[%c108] : memref<144xf32, #tpu.memory_space<smem>>
    %576 = vector.broadcast %575 : f32 to vector<1x256xf32>
    %577 = arith.mulf %576, %65 : vector<1x256xf32>
    %578 = arith.addf %574, %577 : vector<1x256xf32>
    %c117 = arith.constant 117 : index
    %579 = memref.load %arg2[%c117] : memref<144xf32, #tpu.memory_space<smem>>
    %580 = vector.broadcast %579 : f32 to vector<1x256xf32>
    %581 = arith.mulf %580, %67 : vector<1x256xf32>
    %582 = arith.addf %578, %581 : vector<1x256xf32>
    %c126 = arith.constant 126 : index
    %583 = memref.load %arg2[%c126] : memref<144xf32, #tpu.memory_space<smem>>
    %584 = vector.broadcast %583 : f32 to vector<1x256xf32>
    %585 = arith.mulf %584, %69 : vector<1x256xf32>
    %586 = arith.addf %582, %585 : vector<1x256xf32>
    %c135 = arith.constant 135 : index
    %587 = memref.load %arg2[%c135] : memref<144xf32, #tpu.memory_space<smem>>
    %588 = vector.broadcast %587 : f32 to vector<1x256xf32>
    %589 = arith.mulf %588, %71 : vector<1x256xf32>
    %590 = arith.addf %586, %589 : vector<1x256xf32>
    %c109 = arith.constant 109 : index
    %591 = memref.load %arg2[%c109] : memref<144xf32, #tpu.memory_space<smem>>
    %592 = vector.broadcast %591 : f32 to vector<1x256xf32>
    %593 = arith.mulf %592, %73 : vector<1x256xf32>
    %594 = arith.addf %590, %593 : vector<1x256xf32>
    %c118 = arith.constant 118 : index
    %595 = memref.load %arg2[%c118] : memref<144xf32, #tpu.memory_space<smem>>
    %596 = vector.broadcast %595 : f32 to vector<1x256xf32>
    %597 = arith.mulf %596, %75 : vector<1x256xf32>
    %598 = arith.addf %594, %597 : vector<1x256xf32>
    %c127 = arith.constant 127 : index
    %599 = memref.load %arg2[%c127] : memref<144xf32, #tpu.memory_space<smem>>
    %600 = vector.broadcast %599 : f32 to vector<1x256xf32>
    %601 = arith.mulf %600, %77 : vector<1x256xf32>
    %602 = arith.addf %598, %601 : vector<1x256xf32>
    %c136 = arith.constant 136 : index
    %603 = memref.load %arg2[%c136] : memref<144xf32, #tpu.memory_space<smem>>
    %604 = vector.broadcast %603 : f32 to vector<1x256xf32>
    %605 = arith.mulf %604, %79 : vector<1x256xf32>
    %606 = arith.addf %602, %605 : vector<1x256xf32>
    %c110 = arith.constant 110 : index
    %607 = memref.load %arg2[%c110] : memref<144xf32, #tpu.memory_space<smem>>
    %608 = vector.broadcast %607 : f32 to vector<1x256xf32>
    %609 = arith.mulf %608, %81 : vector<1x256xf32>
    %610 = arith.addf %606, %609 : vector<1x256xf32>
    %c119 = arith.constant 119 : index
    %611 = memref.load %arg2[%c119] : memref<144xf32, #tpu.memory_space<smem>>
    %612 = vector.broadcast %611 : f32 to vector<1x256xf32>
    %613 = arith.mulf %612, %83 : vector<1x256xf32>
    %614 = arith.addf %610, %613 : vector<1x256xf32>
    %c128 = arith.constant 128 : index
    %615 = memref.load %arg2[%c128] : memref<144xf32, #tpu.memory_space<smem>>
    %616 = vector.broadcast %615 : f32 to vector<1x256xf32>
    %617 = arith.mulf %616, %85 : vector<1x256xf32>
    %618 = arith.addf %614, %617 : vector<1x256xf32>
    %c137 = arith.constant 137 : index
    %619 = memref.load %arg2[%c137] : memref<144xf32, #tpu.memory_space<smem>>
    %620 = vector.broadcast %619 : f32 to vector<1x256xf32>
    %621 = arith.mulf %620, %87 : vector<1x256xf32>
    %622 = arith.addf %618, %621 : vector<1x256xf32>
    %c111 = arith.constant 111 : index
    %623 = memref.load %arg2[%c111] : memref<144xf32, #tpu.memory_space<smem>>
    %624 = vector.broadcast %623 : f32 to vector<1x256xf32>
    %625 = arith.mulf %624, %89 : vector<1x256xf32>
    %626 = arith.addf %622, %625 : vector<1x256xf32>
    %c120 = arith.constant 120 : index
    %627 = memref.load %arg2[%c120] : memref<144xf32, #tpu.memory_space<smem>>
    %628 = vector.broadcast %627 : f32 to vector<1x256xf32>
    %629 = arith.mulf %628, %91 : vector<1x256xf32>
    %630 = arith.addf %626, %629 : vector<1x256xf32>
    %c129 = arith.constant 129 : index
    %631 = memref.load %arg2[%c129] : memref<144xf32, #tpu.memory_space<smem>>
    %632 = vector.broadcast %631 : f32 to vector<1x256xf32>
    %633 = arith.mulf %632, %93 : vector<1x256xf32>
    %634 = arith.addf %630, %633 : vector<1x256xf32>
    %c138 = arith.constant 138 : index
    %635 = memref.load %arg2[%c138] : memref<144xf32, #tpu.memory_space<smem>>
    %636 = vector.broadcast %635 : f32 to vector<1x256xf32>
    %637 = arith.mulf %636, %95 : vector<1x256xf32>
    %638 = arith.addf %634, %637 : vector<1x256xf32>
    %c112 = arith.constant 112 : index
    %639 = memref.load %arg2[%c112] : memref<144xf32, #tpu.memory_space<smem>>
    %640 = vector.broadcast %639 : f32 to vector<1x256xf32>
    %641 = arith.mulf %640, %97 : vector<1x256xf32>
    %642 = arith.addf %638, %641 : vector<1x256xf32>
    %c121 = arith.constant 121 : index
    %643 = memref.load %arg2[%c121] : memref<144xf32, #tpu.memory_space<smem>>
    %644 = vector.broadcast %643 : f32 to vector<1x256xf32>
    %645 = arith.mulf %644, %99 : vector<1x256xf32>
    %646 = arith.addf %642, %645 : vector<1x256xf32>
    %c130 = arith.constant 130 : index
    %647 = memref.load %arg2[%c130] : memref<144xf32, #tpu.memory_space<smem>>
    %648 = vector.broadcast %647 : f32 to vector<1x256xf32>
    %649 = arith.mulf %648, %101 : vector<1x256xf32>
    %650 = arith.addf %646, %649 : vector<1x256xf32>
    %c139 = arith.constant 139 : index
    %651 = memref.load %arg2[%c139] : memref<144xf32, #tpu.memory_space<smem>>
    %652 = vector.broadcast %651 : f32 to vector<1x256xf32>
    %653 = arith.mulf %652, %103 : vector<1x256xf32>
    %654 = arith.addf %650, %653 : vector<1x256xf32>
    %c113 = arith.constant 113 : index
    %655 = memref.load %arg2[%c113] : memref<144xf32, #tpu.memory_space<smem>>
    %656 = vector.broadcast %655 : f32 to vector<1x256xf32>
    %657 = arith.mulf %656, %105 : vector<1x256xf32>
    %658 = arith.addf %654, %657 : vector<1x256xf32>
    %c122 = arith.constant 122 : index
    %659 = memref.load %arg2[%c122] : memref<144xf32, #tpu.memory_space<smem>>
    %660 = vector.broadcast %659 : f32 to vector<1x256xf32>
    %661 = arith.mulf %660, %107 : vector<1x256xf32>
    %662 = arith.addf %658, %661 : vector<1x256xf32>
    %c131 = arith.constant 131 : index
    %663 = memref.load %arg2[%c131] : memref<144xf32, #tpu.memory_space<smem>>
    %664 = vector.broadcast %663 : f32 to vector<1x256xf32>
    %665 = arith.mulf %664, %109 : vector<1x256xf32>
    %666 = arith.addf %662, %665 : vector<1x256xf32>
    %c140 = arith.constant 140 : index
    %667 = memref.load %arg2[%c140] : memref<144xf32, #tpu.memory_space<smem>>
    %668 = vector.broadcast %667 : f32 to vector<1x256xf32>
    %669 = arith.mulf %668, %111 : vector<1x256xf32>
    %670 = arith.addf %666, %669 : vector<1x256xf32>
    %c114 = arith.constant 114 : index
    %671 = memref.load %arg2[%c114] : memref<144xf32, #tpu.memory_space<smem>>
    %672 = vector.broadcast %671 : f32 to vector<1x256xf32>
    %673 = arith.mulf %672, %113 : vector<1x256xf32>
    %674 = arith.addf %670, %673 : vector<1x256xf32>
    %c123 = arith.constant 123 : index
    %675 = memref.load %arg2[%c123] : memref<144xf32, #tpu.memory_space<smem>>
    %676 = vector.broadcast %675 : f32 to vector<1x256xf32>
    %677 = arith.mulf %676, %115 : vector<1x256xf32>
    %678 = arith.addf %674, %677 : vector<1x256xf32>
    %c132 = arith.constant 132 : index
    %679 = memref.load %arg2[%c132] : memref<144xf32, #tpu.memory_space<smem>>
    %680 = vector.broadcast %679 : f32 to vector<1x256xf32>
    %681 = arith.mulf %680, %117 : vector<1x256xf32>
    %682 = arith.addf %678, %681 : vector<1x256xf32>
    %c141 = arith.constant 141 : index
    %683 = memref.load %arg2[%c141] : memref<144xf32, #tpu.memory_space<smem>>
    %684 = vector.broadcast %683 : f32 to vector<1x256xf32>
    %685 = arith.mulf %684, %119 : vector<1x256xf32>
    %686 = arith.addf %682, %685 : vector<1x256xf32>
    %c115 = arith.constant 115 : index
    %687 = memref.load %arg2[%c115] : memref<144xf32, #tpu.memory_space<smem>>
    %688 = vector.broadcast %687 : f32 to vector<1x256xf32>
    %689 = arith.mulf %688, %121 : vector<1x256xf32>
    %690 = arith.addf %686, %689 : vector<1x256xf32>
    %c124 = arith.constant 124 : index
    %691 = memref.load %arg2[%c124] : memref<144xf32, #tpu.memory_space<smem>>
    %692 = vector.broadcast %691 : f32 to vector<1x256xf32>
    %693 = arith.mulf %692, %123 : vector<1x256xf32>
    %694 = arith.addf %690, %693 : vector<1x256xf32>
    %c133 = arith.constant 133 : index
    %695 = memref.load %arg2[%c133] : memref<144xf32, #tpu.memory_space<smem>>
    %696 = vector.broadcast %695 : f32 to vector<1x256xf32>
    %697 = arith.mulf %696, %125 : vector<1x256xf32>
    %698 = arith.addf %694, %697 : vector<1x256xf32>
    %c142 = arith.constant 142 : index
    %699 = memref.load %arg2[%c142] : memref<144xf32, #tpu.memory_space<smem>>
    %700 = vector.broadcast %699 : f32 to vector<1x256xf32>
    %701 = arith.mulf %700, %127 : vector<1x256xf32>
    %702 = arith.addf %698, %701 : vector<1x256xf32>
    %c116 = arith.constant 116 : index
    %703 = memref.load %arg2[%c116] : memref<144xf32, #tpu.memory_space<smem>>
    %704 = vector.broadcast %703 : f32 to vector<1x256xf32>
    %705 = arith.mulf %704, %129 : vector<1x256xf32>
    %706 = arith.addf %702, %705 : vector<1x256xf32>
    %c125 = arith.constant 125 : index
    %707 = memref.load %arg2[%c125] : memref<144xf32, #tpu.memory_space<smem>>
    %708 = vector.broadcast %707 : f32 to vector<1x256xf32>
    %709 = arith.mulf %708, %131 : vector<1x256xf32>
    %710 = arith.addf %706, %709 : vector<1x256xf32>
    %c134 = arith.constant 134 : index
    %711 = memref.load %arg2[%c134] : memref<144xf32, #tpu.memory_space<smem>>
    %712 = vector.broadcast %711 : f32 to vector<1x256xf32>
    %713 = arith.mulf %712, %133 : vector<1x256xf32>
    %714 = arith.addf %710, %713 : vector<1x256xf32>
    %c143 = arith.constant 143 : index
    %715 = memref.load %arg2[%c143] : memref<144xf32, #tpu.memory_space<smem>>
    %716 = vector.broadcast %715 : f32 to vector<1x256xf32>
    %717 = arith.mulf %716, %135 : vector<1x256xf32>
    %718 = arith.addf %714, %717 : vector<1x256xf32>
    %719 = vector.shape_cast %718 : vector<1x256xf32> to vector<1x1x256xf32>
    %720 = tpu.concatenate %281, %427, %573, %719 in 1 : vector<1x1x256xf32>, vector<1x1x256xf32>, vector<1x1x256xf32>, vector<1x1x256xf32> -> vector<1x4x256xf32>
    %cst_11 = arith.constant 0.000000e+00 : f32
    %721 = vector.broadcast %cst_11 : f32 to vector<1x4x256xf32>
    %722 = arith.maximumf %720, %721 : vector<1x4x256xf32>
    %723 = vector.extract_strided_slice %722 {offsets = [0, 0, 240], sizes = [1, 4, 16], strides = [1, 1, 1]} : vector<1x4x256xf32> to vector<1x4x16xf32>
    %724 = vector.extract_strided_slice %722 {offsets = [0, 0, 0], sizes = [1, 4, 240], strides = [1, 1, 1]} : vector<1x4x256xf32> to vector<1x4x240xf32>
    %725 = tpu.concatenate %723, %724 in 2 : vector<1x4x16xf32>, vector<1x4x240xf32> -> vector<1x4x256xf32>
    %726 = vector.extract_strided_slice %725 {offsets = [0, 0, 255], sizes = [1, 4, 1], strides = [1, 1, 1]} : vector<1x4x256xf32> to vector<1x4x1xf32>
    %727 = vector.extract_strided_slice %725 {offsets = [0, 0, 0], sizes = [1, 4, 255], strides = [1, 1, 1]} : vector<1x4x256xf32> to vector<1x4x255xf32>
    %728 = tpu.concatenate %726, %727 in 2 : vector<1x4x1xf32>, vector<1x4x255xf32> -> vector<1x4x256xf32>
    %729 = vector.extract_strided_slice %725 {offsets = [0, 0, 15], sizes = [1, 4, 241], strides = [1, 1, 1]} : vector<1x4x256xf32> to vector<1x4x241xf32>
    %730 = vector.extract_strided_slice %725 {offsets = [0, 0, 0], sizes = [1, 4, 15], strides = [1, 1, 1]} : vector<1x4x256xf32> to vector<1x4x15xf32>
    %731 = tpu.concatenate %729, %730 in 2 : vector<1x4x241xf32>, vector<1x4x15xf32> -> vector<1x4x256xf32>
    %c1_i32_12 = arith.constant 1 : i32
    %732 = vector.broadcast %c1_i32_12 : i32 to vector<1x4x256xi32>
    %733 = arith.cmpi sge, %3, %732 : vector<1x4x256xi32>
    %734 = arith.select %733, %728, %731 : vector<1x4x256xi1>, vector<1x4x256xf32>
    %735 = vector.extract_strided_slice %725 {offsets = [0, 0, 241], sizes = [1, 4, 15], strides = [1, 1, 1]} : vector<1x4x256xf32> to vector<1x4x15xf32>
    %736 = vector.extract_strided_slice %725 {offsets = [0, 0, 0], sizes = [1, 4, 241], strides = [1, 1, 1]} : vector<1x4x256xf32> to vector<1x4x241xf32>
    %737 = tpu.concatenate %735, %736 in 2 : vector<1x4x15xf32>, vector<1x4x241xf32> -> vector<1x4x256xf32>
    %738 = vector.extract_strided_slice %725 {offsets = [0, 0, 1], sizes = [1, 4, 255], strides = [1, 1, 1]} : vector<1x4x256xf32> to vector<1x4x255xf32>
    %739 = vector.extract_strided_slice %725 {offsets = [0, 0, 0], sizes = [1, 4, 1], strides = [1, 1, 1]} : vector<1x4x256xf32> to vector<1x4x1xf32>
    %740 = tpu.concatenate %738, %739 in 2 : vector<1x4x255xf32>, vector<1x4x1xf32> -> vector<1x4x256xf32>
    %c15_i32_13 = arith.constant 15 : i32
    %741 = vector.broadcast %c15_i32_13 : i32 to vector<1x4x256xi32>
    %742 = arith.cmpi sge, %3, %741 : vector<1x4x256xi32>
    %743 = arith.select %742, %737, %740 : vector<1x4x256xi1>, vector<1x4x256xf32>
    %744 = vector.extract_strided_slice %722 {offsets = [0, 0, 255], sizes = [1, 4, 1], strides = [1, 1, 1]} : vector<1x4x256xf32> to vector<1x4x1xf32>
    %745 = vector.extract_strided_slice %722 {offsets = [0, 0, 0], sizes = [1, 4, 255], strides = [1, 1, 1]} : vector<1x4x256xf32> to vector<1x4x255xf32>
    %746 = tpu.concatenate %744, %745 in 2 : vector<1x4x1xf32>, vector<1x4x255xf32> -> vector<1x4x256xf32>
    %747 = vector.extract_strided_slice %722 {offsets = [0, 0, 15], sizes = [1, 4, 241], strides = [1, 1, 1]} : vector<1x4x256xf32> to vector<1x4x241xf32>
    %748 = vector.extract_strided_slice %722 {offsets = [0, 0, 0], sizes = [1, 4, 15], strides = [1, 1, 1]} : vector<1x4x256xf32> to vector<1x4x15xf32>
    %749 = tpu.concatenate %747, %748 in 2 : vector<1x4x241xf32>, vector<1x4x15xf32> -> vector<1x4x256xf32>
    %c1_i32_14 = arith.constant 1 : i32
    %750 = vector.broadcast %c1_i32_14 : i32 to vector<1x4x256xi32>
    %751 = arith.cmpi sge, %3, %750 : vector<1x4x256xi32>
    %752 = arith.select %751, %746, %749 : vector<1x4x256xi1>, vector<1x4x256xf32>
    %753 = vector.extract_strided_slice %722 {offsets = [0, 0, 241], sizes = [1, 4, 15], strides = [1, 1, 1]} : vector<1x4x256xf32> to vector<1x4x15xf32>
    %754 = vector.extract_strided_slice %722 {offsets = [0, 0, 0], sizes = [1, 4, 241], strides = [1, 1, 1]} : vector<1x4x256xf32> to vector<1x4x241xf32>
    %755 = tpu.concatenate %753, %754 in 2 : vector<1x4x15xf32>, vector<1x4x241xf32> -> vector<1x4x256xf32>
    %756 = vector.extract_strided_slice %722 {offsets = [0, 0, 1], sizes = [1, 4, 255], strides = [1, 1, 1]} : vector<1x4x256xf32> to vector<1x4x255xf32>
    %757 = vector.extract_strided_slice %722 {offsets = [0, 0, 0], sizes = [1, 4, 1], strides = [1, 1, 1]} : vector<1x4x256xf32> to vector<1x4x1xf32>
    %758 = tpu.concatenate %756, %757 in 2 : vector<1x4x255xf32>, vector<1x4x1xf32> -> vector<1x4x256xf32>
    %c15_i32_15 = arith.constant 15 : i32
    %759 = vector.broadcast %c15_i32_15 : i32 to vector<1x4x256xi32>
    %760 = arith.cmpi sge, %3, %759 : vector<1x4x256xi32>
    %761 = arith.select %760, %755, %758 : vector<1x4x256xi1>, vector<1x4x256xf32>
    %762 = vector.extract_strided_slice %722 {offsets = [0, 0, 16], sizes = [1, 4, 240], strides = [1, 1, 1]} : vector<1x4x256xf32> to vector<1x4x240xf32>
    %763 = vector.extract_strided_slice %722 {offsets = [0, 0, 0], sizes = [1, 4, 16], strides = [1, 1, 1]} : vector<1x4x256xf32> to vector<1x4x16xf32>
    %764 = tpu.concatenate %762, %763 in 2 : vector<1x4x240xf32>, vector<1x4x16xf32> -> vector<1x4x256xf32>
    %765 = vector.extract_strided_slice %764 {offsets = [0, 0, 255], sizes = [1, 4, 1], strides = [1, 1, 1]} : vector<1x4x256xf32> to vector<1x4x1xf32>
    %766 = vector.extract_strided_slice %764 {offsets = [0, 0, 0], sizes = [1, 4, 255], strides = [1, 1, 1]} : vector<1x4x256xf32> to vector<1x4x255xf32>
    %767 = tpu.concatenate %765, %766 in 2 : vector<1x4x1xf32>, vector<1x4x255xf32> -> vector<1x4x256xf32>
    %768 = vector.extract_strided_slice %764 {offsets = [0, 0, 15], sizes = [1, 4, 241], strides = [1, 1, 1]} : vector<1x4x256xf32> to vector<1x4x241xf32>
    %769 = vector.extract_strided_slice %764 {offsets = [0, 0, 0], sizes = [1, 4, 15], strides = [1, 1, 1]} : vector<1x4x256xf32> to vector<1x4x15xf32>
    %770 = tpu.concatenate %768, %769 in 2 : vector<1x4x241xf32>, vector<1x4x15xf32> -> vector<1x4x256xf32>
    %c1_i32_16 = arith.constant 1 : i32
    %771 = vector.broadcast %c1_i32_16 : i32 to vector<1x4x256xi32>
    %772 = arith.cmpi sge, %3, %771 : vector<1x4x256xi32>
    %773 = arith.select %772, %767, %770 : vector<1x4x256xi1>, vector<1x4x256xf32>
    %774 = vector.extract_strided_slice %764 {offsets = [0, 0, 241], sizes = [1, 4, 15], strides = [1, 1, 1]} : vector<1x4x256xf32> to vector<1x4x15xf32>
    %775 = vector.extract_strided_slice %764 {offsets = [0, 0, 0], sizes = [1, 4, 241], strides = [1, 1, 1]} : vector<1x4x256xf32> to vector<1x4x241xf32>
    %776 = tpu.concatenate %774, %775 in 2 : vector<1x4x15xf32>, vector<1x4x241xf32> -> vector<1x4x256xf32>
    %777 = vector.extract_strided_slice %764 {offsets = [0, 0, 1], sizes = [1, 4, 255], strides = [1, 1, 1]} : vector<1x4x256xf32> to vector<1x4x255xf32>
    %778 = vector.extract_strided_slice %764 {offsets = [0, 0, 0], sizes = [1, 4, 1], strides = [1, 1, 1]} : vector<1x4x256xf32> to vector<1x4x1xf32>
    %779 = tpu.concatenate %777, %778 in 2 : vector<1x4x255xf32>, vector<1x4x1xf32> -> vector<1x4x256xf32>
    %c15_i32_17 = arith.constant 15 : i32
    %780 = vector.broadcast %c15_i32_17 : i32 to vector<1x4x256xi32>
    %781 = arith.cmpi sge, %3, %780 : vector<1x4x256xi32>
    %782 = arith.select %781, %776, %779 : vector<1x4x256xi1>, vector<1x4x256xf32>
    %783 = vector.extract_strided_slice %734 {offsets = [0, 0, 0], sizes = [1, 1, 256], strides = [1, 1, 1]} : vector<1x4x256xf32> to vector<1x1x256xf32>
    %784 = vector.shape_cast %783 : vector<1x1x256xf32> to vector<1x256xf32>
    %785 = vector.extract_strided_slice %734 {offsets = [0, 1, 0], sizes = [1, 1, 256], strides = [1, 1, 1]} : vector<1x4x256xf32> to vector<1x1x256xf32>
    %786 = vector.shape_cast %785 : vector<1x1x256xf32> to vector<1x256xf32>
    %787 = vector.extract_strided_slice %734 {offsets = [0, 2, 0], sizes = [1, 1, 256], strides = [1, 1, 1]} : vector<1x4x256xf32> to vector<1x1x256xf32>
    %788 = vector.shape_cast %787 : vector<1x1x256xf32> to vector<1x256xf32>
    %789 = vector.extract_strided_slice %734 {offsets = [0, 3, 0], sizes = [1, 1, 256], strides = [1, 1, 1]} : vector<1x4x256xf32> to vector<1x1x256xf32>
    %790 = vector.shape_cast %789 : vector<1x1x256xf32> to vector<1x256xf32>
    %791 = vector.extract_strided_slice %725 {offsets = [0, 0, 0], sizes = [1, 1, 256], strides = [1, 1, 1]} : vector<1x4x256xf32> to vector<1x1x256xf32>
    %792 = vector.shape_cast %791 : vector<1x1x256xf32> to vector<1x256xf32>
    %793 = vector.extract_strided_slice %725 {offsets = [0, 1, 0], sizes = [1, 1, 256], strides = [1, 1, 1]} : vector<1x4x256xf32> to vector<1x1x256xf32>
    %794 = vector.shape_cast %793 : vector<1x1x256xf32> to vector<1x256xf32>
    %795 = vector.extract_strided_slice %725 {offsets = [0, 2, 0], sizes = [1, 1, 256], strides = [1, 1, 1]} : vector<1x4x256xf32> to vector<1x1x256xf32>
    %796 = vector.shape_cast %795 : vector<1x1x256xf32> to vector<1x256xf32>
    %797 = vector.extract_strided_slice %725 {offsets = [0, 3, 0], sizes = [1, 1, 256], strides = [1, 1, 1]} : vector<1x4x256xf32> to vector<1x1x256xf32>
    %798 = vector.shape_cast %797 : vector<1x1x256xf32> to vector<1x256xf32>
    %799 = vector.extract_strided_slice %743 {offsets = [0, 0, 0], sizes = [1, 1, 256], strides = [1, 1, 1]} : vector<1x4x256xf32> to vector<1x1x256xf32>
    %800 = vector.shape_cast %799 : vector<1x1x256xf32> to vector<1x256xf32>
    %801 = vector.extract_strided_slice %743 {offsets = [0, 1, 0], sizes = [1, 1, 256], strides = [1, 1, 1]} : vector<1x4x256xf32> to vector<1x1x256xf32>
    %802 = vector.shape_cast %801 : vector<1x1x256xf32> to vector<1x256xf32>
    %803 = vector.extract_strided_slice %743 {offsets = [0, 2, 0], sizes = [1, 1, 256], strides = [1, 1, 1]} : vector<1x4x256xf32> to vector<1x1x256xf32>
    %804 = vector.shape_cast %803 : vector<1x1x256xf32> to vector<1x256xf32>
    %805 = vector.extract_strided_slice %743 {offsets = [0, 3, 0], sizes = [1, 1, 256], strides = [1, 1, 1]} : vector<1x4x256xf32> to vector<1x1x256xf32>
    %806 = vector.shape_cast %805 : vector<1x1x256xf32> to vector<1x256xf32>
    %807 = vector.extract_strided_slice %752 {offsets = [0, 0, 0], sizes = [1, 1, 256], strides = [1, 1, 1]} : vector<1x4x256xf32> to vector<1x1x256xf32>
    %808 = vector.shape_cast %807 : vector<1x1x256xf32> to vector<1x256xf32>
    %809 = vector.extract_strided_slice %752 {offsets = [0, 1, 0], sizes = [1, 1, 256], strides = [1, 1, 1]} : vector<1x4x256xf32> to vector<1x1x256xf32>
    %810 = vector.shape_cast %809 : vector<1x1x256xf32> to vector<1x256xf32>
    %811 = vector.extract_strided_slice %752 {offsets = [0, 2, 0], sizes = [1, 1, 256], strides = [1, 1, 1]} : vector<1x4x256xf32> to vector<1x1x256xf32>
    %812 = vector.shape_cast %811 : vector<1x1x256xf32> to vector<1x256xf32>
    %813 = vector.extract_strided_slice %752 {offsets = [0, 3, 0], sizes = [1, 1, 256], strides = [1, 1, 1]} : vector<1x4x256xf32> to vector<1x1x256xf32>
    %814 = vector.shape_cast %813 : vector<1x1x256xf32> to vector<1x256xf32>
    %815 = vector.extract_strided_slice %722 {offsets = [0, 0, 0], sizes = [1, 1, 256], strides = [1, 1, 1]} : vector<1x4x256xf32> to vector<1x1x256xf32>
    %816 = vector.shape_cast %815 : vector<1x1x256xf32> to vector<1x256xf32>
    %817 = vector.extract_strided_slice %722 {offsets = [0, 1, 0], sizes = [1, 1, 256], strides = [1, 1, 1]} : vector<1x4x256xf32> to vector<1x1x256xf32>
    %818 = vector.shape_cast %817 : vector<1x1x256xf32> to vector<1x256xf32>
    %819 = vector.extract_strided_slice %722 {offsets = [0, 2, 0], sizes = [1, 1, 256], strides = [1, 1, 1]} : vector<1x4x256xf32> to vector<1x1x256xf32>
    %820 = vector.shape_cast %819 : vector<1x1x256xf32> to vector<1x256xf32>
    %821 = vector.extract_strided_slice %722 {offsets = [0, 3, 0], sizes = [1, 1, 256], strides = [1, 1, 1]} : vector<1x4x256xf32> to vector<1x1x256xf32>
    %822 = vector.shape_cast %821 : vector<1x1x256xf32> to vector<1x256xf32>
    %823 = vector.extract_strided_slice %761 {offsets = [0, 0, 0], sizes = [1, 1, 256], strides = [1, 1, 1]} : vector<1x4x256xf32> to vector<1x1x256xf32>
    %824 = vector.shape_cast %823 : vector<1x1x256xf32> to vector<1x256xf32>
    %825 = vector.extract_strided_slice %761 {offsets = [0, 1, 0], sizes = [1, 1, 256], strides = [1, 1, 1]} : vector<1x4x256xf32> to vector<1x1x256xf32>
    %826 = vector.shape_cast %825 : vector<1x1x256xf32> to vector<1x256xf32>
    %827 = vector.extract_strided_slice %761 {offsets = [0, 2, 0], sizes = [1, 1, 256], strides = [1, 1, 1]} : vector<1x4x256xf32> to vector<1x1x256xf32>
    %828 = vector.shape_cast %827 : vector<1x1x256xf32> to vector<1x256xf32>
    %829 = vector.extract_strided_slice %761 {offsets = [0, 3, 0], sizes = [1, 1, 256], strides = [1, 1, 1]} : vector<1x4x256xf32> to vector<1x1x256xf32>
    %830 = vector.shape_cast %829 : vector<1x1x256xf32> to vector<1x256xf32>
    %831 = vector.extract_strided_slice %773 {offsets = [0, 0, 0], sizes = [1, 1, 256], strides = [1, 1, 1]} : vector<1x4x256xf32> to vector<1x1x256xf32>
    %832 = vector.shape_cast %831 : vector<1x1x256xf32> to vector<1x256xf32>
    %833 = vector.extract_strided_slice %773 {offsets = [0, 1, 0], sizes = [1, 1, 256], strides = [1, 1, 1]} : vector<1x4x256xf32> to vector<1x1x256xf32>
    %834 = vector.shape_cast %833 : vector<1x1x256xf32> to vector<1x256xf32>
    %835 = vector.extract_strided_slice %773 {offsets = [0, 2, 0], sizes = [1, 1, 256], strides = [1, 1, 1]} : vector<1x4x256xf32> to vector<1x1x256xf32>
    %836 = vector.shape_cast %835 : vector<1x1x256xf32> to vector<1x256xf32>
    %837 = vector.extract_strided_slice %773 {offsets = [0, 3, 0], sizes = [1, 1, 256], strides = [1, 1, 1]} : vector<1x4x256xf32> to vector<1x1x256xf32>
    %838 = vector.shape_cast %837 : vector<1x1x256xf32> to vector<1x256xf32>
    %839 = vector.extract_strided_slice %764 {offsets = [0, 0, 0], sizes = [1, 1, 256], strides = [1, 1, 1]} : vector<1x4x256xf32> to vector<1x1x256xf32>
    %840 = vector.shape_cast %839 : vector<1x1x256xf32> to vector<1x256xf32>
    %841 = vector.extract_strided_slice %764 {offsets = [0, 1, 0], sizes = [1, 1, 256], strides = [1, 1, 1]} : vector<1x4x256xf32> to vector<1x1x256xf32>
    %842 = vector.shape_cast %841 : vector<1x1x256xf32> to vector<1x256xf32>
    %843 = vector.extract_strided_slice %764 {offsets = [0, 2, 0], sizes = [1, 1, 256], strides = [1, 1, 1]} : vector<1x4x256xf32> to vector<1x1x256xf32>
    %844 = vector.shape_cast %843 : vector<1x1x256xf32> to vector<1x256xf32>
    %845 = vector.extract_strided_slice %764 {offsets = [0, 3, 0], sizes = [1, 1, 256], strides = [1, 1, 1]} : vector<1x4x256xf32> to vector<1x1x256xf32>
    %846 = vector.shape_cast %845 : vector<1x1x256xf32> to vector<1x256xf32>
    %847 = vector.extract_strided_slice %782 {offsets = [0, 0, 0], sizes = [1, 1, 256], strides = [1, 1, 1]} : vector<1x4x256xf32> to vector<1x1x256xf32>
    %848 = vector.shape_cast %847 : vector<1x1x256xf32> to vector<1x256xf32>
    %849 = vector.extract_strided_slice %782 {offsets = [0, 1, 0], sizes = [1, 1, 256], strides = [1, 1, 1]} : vector<1x4x256xf32> to vector<1x1x256xf32>
    %850 = vector.shape_cast %849 : vector<1x1x256xf32> to vector<1x256xf32>
    %851 = vector.extract_strided_slice %782 {offsets = [0, 2, 0], sizes = [1, 1, 256], strides = [1, 1, 1]} : vector<1x4x256xf32> to vector<1x1x256xf32>
    %852 = vector.shape_cast %851 : vector<1x1x256xf32> to vector<1x256xf32>
    %853 = vector.extract_strided_slice %782 {offsets = [0, 3, 0], sizes = [1, 1, 256], strides = [1, 1, 1]} : vector<1x4x256xf32> to vector<1x1x256xf32>
    %854 = vector.shape_cast %853 : vector<1x1x256xf32> to vector<1x256xf32>
    %cst_18 = arith.constant 0.000000e+00 : f32
    %855 = vector.broadcast %cst_18 : f32 to vector<1x256xf32>
    %c0_19 = arith.constant 0 : index
    %856 = memref.load %arg3[%c0_19] : memref<144xf32, #tpu.memory_space<smem>>
    %857 = vector.broadcast %856 : f32 to vector<1x256xf32>
    %858 = arith.mulf %857, %784 : vector<1x256xf32>
    %859 = arith.addf %855, %858 : vector<1x256xf32>
    %c9_20 = arith.constant 9 : index
    %860 = memref.load %arg3[%c9_20] : memref<144xf32, #tpu.memory_space<smem>>
    %861 = vector.broadcast %860 : f32 to vector<1x256xf32>
    %862 = arith.mulf %861, %786 : vector<1x256xf32>
    %863 = arith.addf %859, %862 : vector<1x256xf32>
    %c18_21 = arith.constant 18 : index
    %864 = memref.load %arg3[%c18_21] : memref<144xf32, #tpu.memory_space<smem>>
    %865 = vector.broadcast %864 : f32 to vector<1x256xf32>
    %866 = arith.mulf %865, %788 : vector<1x256xf32>
    %867 = arith.addf %863, %866 : vector<1x256xf32>
    %c27_22 = arith.constant 27 : index
    %868 = memref.load %arg3[%c27_22] : memref<144xf32, #tpu.memory_space<smem>>
    %869 = vector.broadcast %868 : f32 to vector<1x256xf32>
    %870 = arith.mulf %869, %790 : vector<1x256xf32>
    %871 = arith.addf %867, %870 : vector<1x256xf32>
    %c1_23 = arith.constant 1 : index
    %872 = memref.load %arg3[%c1_23] : memref<144xf32, #tpu.memory_space<smem>>
    %873 = vector.broadcast %872 : f32 to vector<1x256xf32>
    %874 = arith.mulf %873, %792 : vector<1x256xf32>
    %875 = arith.addf %871, %874 : vector<1x256xf32>
    %c10_24 = arith.constant 10 : index
    %876 = memref.load %arg3[%c10_24] : memref<144xf32, #tpu.memory_space<smem>>
    %877 = vector.broadcast %876 : f32 to vector<1x256xf32>
    %878 = arith.mulf %877, %794 : vector<1x256xf32>
    %879 = arith.addf %875, %878 : vector<1x256xf32>
    %c19_25 = arith.constant 19 : index
    %880 = memref.load %arg3[%c19_25] : memref<144xf32, #tpu.memory_space<smem>>
    %881 = vector.broadcast %880 : f32 to vector<1x256xf32>
    %882 = arith.mulf %881, %796 : vector<1x256xf32>
    %883 = arith.addf %879, %882 : vector<1x256xf32>
    %c28_26 = arith.constant 28 : index
    %884 = memref.load %arg3[%c28_26] : memref<144xf32, #tpu.memory_space<smem>>
    %885 = vector.broadcast %884 : f32 to vector<1x256xf32>
    %886 = arith.mulf %885, %798 : vector<1x256xf32>
    %887 = arith.addf %883, %886 : vector<1x256xf32>
    %c2_27 = arith.constant 2 : index
    %888 = memref.load %arg3[%c2_27] : memref<144xf32, #tpu.memory_space<smem>>
    %889 = vector.broadcast %888 : f32 to vector<1x256xf32>
    %890 = arith.mulf %889, %800 : vector<1x256xf32>
    %891 = arith.addf %887, %890 : vector<1x256xf32>
    %c11_28 = arith.constant 11 : index
    %892 = memref.load %arg3[%c11_28] : memref<144xf32, #tpu.memory_space<smem>>
    %893 = vector.broadcast %892 : f32 to vector<1x256xf32>
    %894 = arith.mulf %893, %802 : vector<1x256xf32>
    %895 = arith.addf %891, %894 : vector<1x256xf32>
    %c20_29 = arith.constant 20 : index
    %896 = memref.load %arg3[%c20_29] : memref<144xf32, #tpu.memory_space<smem>>
    %897 = vector.broadcast %896 : f32 to vector<1x256xf32>
    %898 = arith.mulf %897, %804 : vector<1x256xf32>
    %899 = arith.addf %895, %898 : vector<1x256xf32>
    %c29_30 = arith.constant 29 : index
    %900 = memref.load %arg3[%c29_30] : memref<144xf32, #tpu.memory_space<smem>>
    %901 = vector.broadcast %900 : f32 to vector<1x256xf32>
    %902 = arith.mulf %901, %806 : vector<1x256xf32>
    %903 = arith.addf %899, %902 : vector<1x256xf32>
    %c3_31 = arith.constant 3 : index
    %904 = memref.load %arg3[%c3_31] : memref<144xf32, #tpu.memory_space<smem>>
    %905 = vector.broadcast %904 : f32 to vector<1x256xf32>
    %906 = arith.mulf %905, %808 : vector<1x256xf32>
    %907 = arith.addf %903, %906 : vector<1x256xf32>
    %c12_32 = arith.constant 12 : index
    %908 = memref.load %arg3[%c12_32] : memref<144xf32, #tpu.memory_space<smem>>
    %909 = vector.broadcast %908 : f32 to vector<1x256xf32>
    %910 = arith.mulf %909, %810 : vector<1x256xf32>
    %911 = arith.addf %907, %910 : vector<1x256xf32>
    %c21_33 = arith.constant 21 : index
    %912 = memref.load %arg3[%c21_33] : memref<144xf32, #tpu.memory_space<smem>>
    %913 = vector.broadcast %912 : f32 to vector<1x256xf32>
    %914 = arith.mulf %913, %812 : vector<1x256xf32>
    %915 = arith.addf %911, %914 : vector<1x256xf32>
    %c30_34 = arith.constant 30 : index
    %916 = memref.load %arg3[%c30_34] : memref<144xf32, #tpu.memory_space<smem>>
    %917 = vector.broadcast %916 : f32 to vector<1x256xf32>
    %918 = arith.mulf %917, %814 : vector<1x256xf32>
    %919 = arith.addf %915, %918 : vector<1x256xf32>
    %c4_35 = arith.constant 4 : index
    %920 = memref.load %arg3[%c4_35] : memref<144xf32, #tpu.memory_space<smem>>
    %921 = vector.broadcast %920 : f32 to vector<1x256xf32>
    %922 = arith.mulf %921, %816 : vector<1x256xf32>
    %923 = arith.addf %919, %922 : vector<1x256xf32>
    %c13_36 = arith.constant 13 : index
    %924 = memref.load %arg3[%c13_36] : memref<144xf32, #tpu.memory_space<smem>>
    %925 = vector.broadcast %924 : f32 to vector<1x256xf32>
    %926 = arith.mulf %925, %818 : vector<1x256xf32>
    %927 = arith.addf %923, %926 : vector<1x256xf32>
    %c22_37 = arith.constant 22 : index
    %928 = memref.load %arg3[%c22_37] : memref<144xf32, #tpu.memory_space<smem>>
    %929 = vector.broadcast %928 : f32 to vector<1x256xf32>
    %930 = arith.mulf %929, %820 : vector<1x256xf32>
    %931 = arith.addf %927, %930 : vector<1x256xf32>
    %c31_38 = arith.constant 31 : index
    %932 = memref.load %arg3[%c31_38] : memref<144xf32, #tpu.memory_space<smem>>
    %933 = vector.broadcast %932 : f32 to vector<1x256xf32>
    %934 = arith.mulf %933, %822 : vector<1x256xf32>
    %935 = arith.addf %931, %934 : vector<1x256xf32>
    %c5_39 = arith.constant 5 : index
    %936 = memref.load %arg3[%c5_39] : memref<144xf32, #tpu.memory_space<smem>>
    %937 = vector.broadcast %936 : f32 to vector<1x256xf32>
    %938 = arith.mulf %937, %824 : vector<1x256xf32>
    %939 = arith.addf %935, %938 : vector<1x256xf32>
    %c14_40 = arith.constant 14 : index
    %940 = memref.load %arg3[%c14_40] : memref<144xf32, #tpu.memory_space<smem>>
    %941 = vector.broadcast %940 : f32 to vector<1x256xf32>
    %942 = arith.mulf %941, %826 : vector<1x256xf32>
    %943 = arith.addf %939, %942 : vector<1x256xf32>
    %c23_41 = arith.constant 23 : index
    %944 = memref.load %arg3[%c23_41] : memref<144xf32, #tpu.memory_space<smem>>
    %945 = vector.broadcast %944 : f32 to vector<1x256xf32>
    %946 = arith.mulf %945, %828 : vector<1x256xf32>
    %947 = arith.addf %943, %946 : vector<1x256xf32>
    %c32_42 = arith.constant 32 : index
    %948 = memref.load %arg3[%c32_42] : memref<144xf32, #tpu.memory_space<smem>>
    %949 = vector.broadcast %948 : f32 to vector<1x256xf32>
    %950 = arith.mulf %949, %830 : vector<1x256xf32>
    %951 = arith.addf %947, %950 : vector<1x256xf32>
    %c6_43 = arith.constant 6 : index
    %952 = memref.load %arg3[%c6_43] : memref<144xf32, #tpu.memory_space<smem>>
    %953 = vector.broadcast %952 : f32 to vector<1x256xf32>
    %954 = arith.mulf %953, %832 : vector<1x256xf32>
    %955 = arith.addf %951, %954 : vector<1x256xf32>
    %c15_44 = arith.constant 15 : index
    %956 = memref.load %arg3[%c15_44] : memref<144xf32, #tpu.memory_space<smem>>
    %957 = vector.broadcast %956 : f32 to vector<1x256xf32>
    %958 = arith.mulf %957, %834 : vector<1x256xf32>
    %959 = arith.addf %955, %958 : vector<1x256xf32>
    %c24_45 = arith.constant 24 : index
    %960 = memref.load %arg3[%c24_45] : memref<144xf32, #tpu.memory_space<smem>>
    %961 = vector.broadcast %960 : f32 to vector<1x256xf32>
    %962 = arith.mulf %961, %836 : vector<1x256xf32>
    %963 = arith.addf %959, %962 : vector<1x256xf32>
    %c33_46 = arith.constant 33 : index
    %964 = memref.load %arg3[%c33_46] : memref<144xf32, #tpu.memory_space<smem>>
    %965 = vector.broadcast %964 : f32 to vector<1x256xf32>
    %966 = arith.mulf %965, %838 : vector<1x256xf32>
    %967 = arith.addf %963, %966 : vector<1x256xf32>
    %c7_47 = arith.constant 7 : index
    %968 = memref.load %arg3[%c7_47] : memref<144xf32, #tpu.memory_space<smem>>
    %969 = vector.broadcast %968 : f32 to vector<1x256xf32>
    %970 = arith.mulf %969, %840 : vector<1x256xf32>
    %971 = arith.addf %967, %970 : vector<1x256xf32>
    %c16_48 = arith.constant 16 : index
    %972 = memref.load %arg3[%c16_48] : memref<144xf32, #tpu.memory_space<smem>>
    %973 = vector.broadcast %972 : f32 to vector<1x256xf32>
    %974 = arith.mulf %973, %842 : vector<1x256xf32>
    %975 = arith.addf %971, %974 : vector<1x256xf32>
    %c25_49 = arith.constant 25 : index
    %976 = memref.load %arg3[%c25_49] : memref<144xf32, #tpu.memory_space<smem>>
    %977 = vector.broadcast %976 : f32 to vector<1x256xf32>
    %978 = arith.mulf %977, %844 : vector<1x256xf32>
    %979 = arith.addf %975, %978 : vector<1x256xf32>
    %c34_50 = arith.constant 34 : index
    %980 = memref.load %arg3[%c34_50] : memref<144xf32, #tpu.memory_space<smem>>
    %981 = vector.broadcast %980 : f32 to vector<1x256xf32>
    %982 = arith.mulf %981, %846 : vector<1x256xf32>
    %983 = arith.addf %979, %982 : vector<1x256xf32>
    %c8_51 = arith.constant 8 : index
    %984 = memref.load %arg3[%c8_51] : memref<144xf32, #tpu.memory_space<smem>>
    %985 = vector.broadcast %984 : f32 to vector<1x256xf32>
    %986 = arith.mulf %985, %848 : vector<1x256xf32>
    %987 = arith.addf %983, %986 : vector<1x256xf32>
    %c17_52 = arith.constant 17 : index
    %988 = memref.load %arg3[%c17_52] : memref<144xf32, #tpu.memory_space<smem>>
    %989 = vector.broadcast %988 : f32 to vector<1x256xf32>
    %990 = arith.mulf %989, %850 : vector<1x256xf32>
    %991 = arith.addf %987, %990 : vector<1x256xf32>
    %c26_53 = arith.constant 26 : index
    %992 = memref.load %arg3[%c26_53] : memref<144xf32, #tpu.memory_space<smem>>
    %993 = vector.broadcast %992 : f32 to vector<1x256xf32>
    %994 = arith.mulf %993, %852 : vector<1x256xf32>
    %995 = arith.addf %991, %994 : vector<1x256xf32>
    %c35_54 = arith.constant 35 : index
    %996 = memref.load %arg3[%c35_54] : memref<144xf32, #tpu.memory_space<smem>>
    %997 = vector.broadcast %996 : f32 to vector<1x256xf32>
    %998 = arith.mulf %997, %854 : vector<1x256xf32>
    %999 = arith.addf %995, %998 : vector<1x256xf32>
    %1000 = vector.shape_cast %999 : vector<1x256xf32> to vector<1x1x256xf32>
    %cst_55 = arith.constant 0.000000e+00 : f32
    %1001 = vector.broadcast %cst_55 : f32 to vector<1x256xf32>
    %c36_56 = arith.constant 36 : index
    %1002 = memref.load %arg3[%c36_56] : memref<144xf32, #tpu.memory_space<smem>>
    %1003 = vector.broadcast %1002 : f32 to vector<1x256xf32>
    %1004 = arith.mulf %1003, %784 : vector<1x256xf32>
    %1005 = arith.addf %1001, %1004 : vector<1x256xf32>
    %c45_57 = arith.constant 45 : index
    %1006 = memref.load %arg3[%c45_57] : memref<144xf32, #tpu.memory_space<smem>>
    %1007 = vector.broadcast %1006 : f32 to vector<1x256xf32>
    %1008 = arith.mulf %1007, %786 : vector<1x256xf32>
    %1009 = arith.addf %1005, %1008 : vector<1x256xf32>
    %c54_58 = arith.constant 54 : index
    %1010 = memref.load %arg3[%c54_58] : memref<144xf32, #tpu.memory_space<smem>>
    %1011 = vector.broadcast %1010 : f32 to vector<1x256xf32>
    %1012 = arith.mulf %1011, %788 : vector<1x256xf32>
    %1013 = arith.addf %1009, %1012 : vector<1x256xf32>
    %c63_59 = arith.constant 63 : index
    %1014 = memref.load %arg3[%c63_59] : memref<144xf32, #tpu.memory_space<smem>>
    %1015 = vector.broadcast %1014 : f32 to vector<1x256xf32>
    %1016 = arith.mulf %1015, %790 : vector<1x256xf32>
    %1017 = arith.addf %1013, %1016 : vector<1x256xf32>
    %c37_60 = arith.constant 37 : index
    %1018 = memref.load %arg3[%c37_60] : memref<144xf32, #tpu.memory_space<smem>>
    %1019 = vector.broadcast %1018 : f32 to vector<1x256xf32>
    %1020 = arith.mulf %1019, %792 : vector<1x256xf32>
    %1021 = arith.addf %1017, %1020 : vector<1x256xf32>
    %c46_61 = arith.constant 46 : index
    %1022 = memref.load %arg3[%c46_61] : memref<144xf32, #tpu.memory_space<smem>>
    %1023 = vector.broadcast %1022 : f32 to vector<1x256xf32>
    %1024 = arith.mulf %1023, %794 : vector<1x256xf32>
    %1025 = arith.addf %1021, %1024 : vector<1x256xf32>
    %c55_62 = arith.constant 55 : index
    %1026 = memref.load %arg3[%c55_62] : memref<144xf32, #tpu.memory_space<smem>>
    %1027 = vector.broadcast %1026 : f32 to vector<1x256xf32>
    %1028 = arith.mulf %1027, %796 : vector<1x256xf32>
    %1029 = arith.addf %1025, %1028 : vector<1x256xf32>
    %c64_63 = arith.constant 64 : index
    %1030 = memref.load %arg3[%c64_63] : memref<144xf32, #tpu.memory_space<smem>>
    %1031 = vector.broadcast %1030 : f32 to vector<1x256xf32>
    %1032 = arith.mulf %1031, %798 : vector<1x256xf32>
    %1033 = arith.addf %1029, %1032 : vector<1x256xf32>
    %c38_64 = arith.constant 38 : index
    %1034 = memref.load %arg3[%c38_64] : memref<144xf32, #tpu.memory_space<smem>>
    %1035 = vector.broadcast %1034 : f32 to vector<1x256xf32>
    %1036 = arith.mulf %1035, %800 : vector<1x256xf32>
    %1037 = arith.addf %1033, %1036 : vector<1x256xf32>
    %c47_65 = arith.constant 47 : index
    %1038 = memref.load %arg3[%c47_65] : memref<144xf32, #tpu.memory_space<smem>>
    %1039 = vector.broadcast %1038 : f32 to vector<1x256xf32>
    %1040 = arith.mulf %1039, %802 : vector<1x256xf32>
    %1041 = arith.addf %1037, %1040 : vector<1x256xf32>
    %c56_66 = arith.constant 56 : index
    %1042 = memref.load %arg3[%c56_66] : memref<144xf32, #tpu.memory_space<smem>>
    %1043 = vector.broadcast %1042 : f32 to vector<1x256xf32>
    %1044 = arith.mulf %1043, %804 : vector<1x256xf32>
    %1045 = arith.addf %1041, %1044 : vector<1x256xf32>
    %c65_67 = arith.constant 65 : index
    %1046 = memref.load %arg3[%c65_67] : memref<144xf32, #tpu.memory_space<smem>>
    %1047 = vector.broadcast %1046 : f32 to vector<1x256xf32>
    %1048 = arith.mulf %1047, %806 : vector<1x256xf32>
    %1049 = arith.addf %1045, %1048 : vector<1x256xf32>
    %c39_68 = arith.constant 39 : index
    %1050 = memref.load %arg3[%c39_68] : memref<144xf32, #tpu.memory_space<smem>>
    %1051 = vector.broadcast %1050 : f32 to vector<1x256xf32>
    %1052 = arith.mulf %1051, %808 : vector<1x256xf32>
    %1053 = arith.addf %1049, %1052 : vector<1x256xf32>
    %c48_69 = arith.constant 48 : index
    %1054 = memref.load %arg3[%c48_69] : memref<144xf32, #tpu.memory_space<smem>>
    %1055 = vector.broadcast %1054 : f32 to vector<1x256xf32>
    %1056 = arith.mulf %1055, %810 : vector<1x256xf32>
    %1057 = arith.addf %1053, %1056 : vector<1x256xf32>
    %c57_70 = arith.constant 57 : index
    %1058 = memref.load %arg3[%c57_70] : memref<144xf32, #tpu.memory_space<smem>>
    %1059 = vector.broadcast %1058 : f32 to vector<1x256xf32>
    %1060 = arith.mulf %1059, %812 : vector<1x256xf32>
    %1061 = arith.addf %1057, %1060 : vector<1x256xf32>
    %c66_71 = arith.constant 66 : index
    %1062 = memref.load %arg3[%c66_71] : memref<144xf32, #tpu.memory_space<smem>>
    %1063 = vector.broadcast %1062 : f32 to vector<1x256xf32>
    %1064 = arith.mulf %1063, %814 : vector<1x256xf32>
    %1065 = arith.addf %1061, %1064 : vector<1x256xf32>
    %c40_72 = arith.constant 40 : index
    %1066 = memref.load %arg3[%c40_72] : memref<144xf32, #tpu.memory_space<smem>>
    %1067 = vector.broadcast %1066 : f32 to vector<1x256xf32>
    %1068 = arith.mulf %1067, %816 : vector<1x256xf32>
    %1069 = arith.addf %1065, %1068 : vector<1x256xf32>
    %c49_73 = arith.constant 49 : index
    %1070 = memref.load %arg3[%c49_73] : memref<144xf32, #tpu.memory_space<smem>>
    %1071 = vector.broadcast %1070 : f32 to vector<1x256xf32>
    %1072 = arith.mulf %1071, %818 : vector<1x256xf32>
    %1073 = arith.addf %1069, %1072 : vector<1x256xf32>
    %c58_74 = arith.constant 58 : index
    %1074 = memref.load %arg3[%c58_74] : memref<144xf32, #tpu.memory_space<smem>>
    %1075 = vector.broadcast %1074 : f32 to vector<1x256xf32>
    %1076 = arith.mulf %1075, %820 : vector<1x256xf32>
    %1077 = arith.addf %1073, %1076 : vector<1x256xf32>
    %c67_75 = arith.constant 67 : index
    %1078 = memref.load %arg3[%c67_75] : memref<144xf32, #tpu.memory_space<smem>>
    %1079 = vector.broadcast %1078 : f32 to vector<1x256xf32>
    %1080 = arith.mulf %1079, %822 : vector<1x256xf32>
    %1081 = arith.addf %1077, %1080 : vector<1x256xf32>
    %c41_76 = arith.constant 41 : index
    %1082 = memref.load %arg3[%c41_76] : memref<144xf32, #tpu.memory_space<smem>>
    %1083 = vector.broadcast %1082 : f32 to vector<1x256xf32>
    %1084 = arith.mulf %1083, %824 : vector<1x256xf32>
    %1085 = arith.addf %1081, %1084 : vector<1x256xf32>
    %c50_77 = arith.constant 50 : index
    %1086 = memref.load %arg3[%c50_77] : memref<144xf32, #tpu.memory_space<smem>>
    %1087 = vector.broadcast %1086 : f32 to vector<1x256xf32>
    %1088 = arith.mulf %1087, %826 : vector<1x256xf32>
    %1089 = arith.addf %1085, %1088 : vector<1x256xf32>
    %c59_78 = arith.constant 59 : index
    %1090 = memref.load %arg3[%c59_78] : memref<144xf32, #tpu.memory_space<smem>>
    %1091 = vector.broadcast %1090 : f32 to vector<1x256xf32>
    %1092 = arith.mulf %1091, %828 : vector<1x256xf32>
    %1093 = arith.addf %1089, %1092 : vector<1x256xf32>
    %c68_79 = arith.constant 68 : index
    %1094 = memref.load %arg3[%c68_79] : memref<144xf32, #tpu.memory_space<smem>>
    %1095 = vector.broadcast %1094 : f32 to vector<1x256xf32>
    %1096 = arith.mulf %1095, %830 : vector<1x256xf32>
    %1097 = arith.addf %1093, %1096 : vector<1x256xf32>
    %c42_80 = arith.constant 42 : index
    %1098 = memref.load %arg3[%c42_80] : memref<144xf32, #tpu.memory_space<smem>>
    %1099 = vector.broadcast %1098 : f32 to vector<1x256xf32>
    %1100 = arith.mulf %1099, %832 : vector<1x256xf32>
    %1101 = arith.addf %1097, %1100 : vector<1x256xf32>
    %c51_81 = arith.constant 51 : index
    %1102 = memref.load %arg3[%c51_81] : memref<144xf32, #tpu.memory_space<smem>>
    %1103 = vector.broadcast %1102 : f32 to vector<1x256xf32>
    %1104 = arith.mulf %1103, %834 : vector<1x256xf32>
    %1105 = arith.addf %1101, %1104 : vector<1x256xf32>
    %c60_82 = arith.constant 60 : index
    %1106 = memref.load %arg3[%c60_82] : memref<144xf32, #tpu.memory_space<smem>>
    %1107 = vector.broadcast %1106 : f32 to vector<1x256xf32>
    %1108 = arith.mulf %1107, %836 : vector<1x256xf32>
    %1109 = arith.addf %1105, %1108 : vector<1x256xf32>
    %c69_83 = arith.constant 69 : index
    %1110 = memref.load %arg3[%c69_83] : memref<144xf32, #tpu.memory_space<smem>>
    %1111 = vector.broadcast %1110 : f32 to vector<1x256xf32>
    %1112 = arith.mulf %1111, %838 : vector<1x256xf32>
    %1113 = arith.addf %1109, %1112 : vector<1x256xf32>
    %c43_84 = arith.constant 43 : index
    %1114 = memref.load %arg3[%c43_84] : memref<144xf32, #tpu.memory_space<smem>>
    %1115 = vector.broadcast %1114 : f32 to vector<1x256xf32>
    %1116 = arith.mulf %1115, %840 : vector<1x256xf32>
    %1117 = arith.addf %1113, %1116 : vector<1x256xf32>
    %c52_85 = arith.constant 52 : index
    %1118 = memref.load %arg3[%c52_85] : memref<144xf32, #tpu.memory_space<smem>>
    %1119 = vector.broadcast %1118 : f32 to vector<1x256xf32>
    %1120 = arith.mulf %1119, %842 : vector<1x256xf32>
    %1121 = arith.addf %1117, %1120 : vector<1x256xf32>
    %c61_86 = arith.constant 61 : index
    %1122 = memref.load %arg3[%c61_86] : memref<144xf32, #tpu.memory_space<smem>>
    %1123 = vector.broadcast %1122 : f32 to vector<1x256xf32>
    %1124 = arith.mulf %1123, %844 : vector<1x256xf32>
    %1125 = arith.addf %1121, %1124 : vector<1x256xf32>
    %c70_87 = arith.constant 70 : index
    %1126 = memref.load %arg3[%c70_87] : memref<144xf32, #tpu.memory_space<smem>>
    %1127 = vector.broadcast %1126 : f32 to vector<1x256xf32>
    %1128 = arith.mulf %1127, %846 : vector<1x256xf32>
    %1129 = arith.addf %1125, %1128 : vector<1x256xf32>
    %c44_88 = arith.constant 44 : index
    %1130 = memref.load %arg3[%c44_88] : memref<144xf32, #tpu.memory_space<smem>>
    %1131 = vector.broadcast %1130 : f32 to vector<1x256xf32>
    %1132 = arith.mulf %1131, %848 : vector<1x256xf32>
    %1133 = arith.addf %1129, %1132 : vector<1x256xf32>
    %c53_89 = arith.constant 53 : index
    %1134 = memref.load %arg3[%c53_89] : memref<144xf32, #tpu.memory_space<smem>>
    %1135 = vector.broadcast %1134 : f32 to vector<1x256xf32>
    %1136 = arith.mulf %1135, %850 : vector<1x256xf32>
    %1137 = arith.addf %1133, %1136 : vector<1x256xf32>
    %c62_90 = arith.constant 62 : index
    %1138 = memref.load %arg3[%c62_90] : memref<144xf32, #tpu.memory_space<smem>>
    %1139 = vector.broadcast %1138 : f32 to vector<1x256xf32>
    %1140 = arith.mulf %1139, %852 : vector<1x256xf32>
    %1141 = arith.addf %1137, %1140 : vector<1x256xf32>
    %c71_91 = arith.constant 71 : index
    %1142 = memref.load %arg3[%c71_91] : memref<144xf32, #tpu.memory_space<smem>>
    %1143 = vector.broadcast %1142 : f32 to vector<1x256xf32>
    %1144 = arith.mulf %1143, %854 : vector<1x256xf32>
    %1145 = arith.addf %1141, %1144 : vector<1x256xf32>
    %1146 = vector.shape_cast %1145 : vector<1x256xf32> to vector<1x1x256xf32>
    %cst_92 = arith.constant 0.000000e+00 : f32
    %1147 = vector.broadcast %cst_92 : f32 to vector<1x256xf32>
    %c72_93 = arith.constant 72 : index
    %1148 = memref.load %arg3[%c72_93] : memref<144xf32, #tpu.memory_space<smem>>
    %1149 = vector.broadcast %1148 : f32 to vector<1x256xf32>
    %1150 = arith.mulf %1149, %784 : vector<1x256xf32>
    %1151 = arith.addf %1147, %1150 : vector<1x256xf32>
    %c81_94 = arith.constant 81 : index
    %1152 = memref.load %arg3[%c81_94] : memref<144xf32, #tpu.memory_space<smem>>
    %1153 = vector.broadcast %1152 : f32 to vector<1x256xf32>
    %1154 = arith.mulf %1153, %786 : vector<1x256xf32>
    %1155 = arith.addf %1151, %1154 : vector<1x256xf32>
    %c90_95 = arith.constant 90 : index
    %1156 = memref.load %arg3[%c90_95] : memref<144xf32, #tpu.memory_space<smem>>
    %1157 = vector.broadcast %1156 : f32 to vector<1x256xf32>
    %1158 = arith.mulf %1157, %788 : vector<1x256xf32>
    %1159 = arith.addf %1155, %1158 : vector<1x256xf32>
    %c99_96 = arith.constant 99 : index
    %1160 = memref.load %arg3[%c99_96] : memref<144xf32, #tpu.memory_space<smem>>
    %1161 = vector.broadcast %1160 : f32 to vector<1x256xf32>
    %1162 = arith.mulf %1161, %790 : vector<1x256xf32>
    %1163 = arith.addf %1159, %1162 : vector<1x256xf32>
    %c73_97 = arith.constant 73 : index
    %1164 = memref.load %arg3[%c73_97] : memref<144xf32, #tpu.memory_space<smem>>
    %1165 = vector.broadcast %1164 : f32 to vector<1x256xf32>
    %1166 = arith.mulf %1165, %792 : vector<1x256xf32>
    %1167 = arith.addf %1163, %1166 : vector<1x256xf32>
    %c82_98 = arith.constant 82 : index
    %1168 = memref.load %arg3[%c82_98] : memref<144xf32, #tpu.memory_space<smem>>
    %1169 = vector.broadcast %1168 : f32 to vector<1x256xf32>
    %1170 = arith.mulf %1169, %794 : vector<1x256xf32>
    %1171 = arith.addf %1167, %1170 : vector<1x256xf32>
    %c91_99 = arith.constant 91 : index
    %1172 = memref.load %arg3[%c91_99] : memref<144xf32, #tpu.memory_space<smem>>
    %1173 = vector.broadcast %1172 : f32 to vector<1x256xf32>
    %1174 = arith.mulf %1173, %796 : vector<1x256xf32>
    %1175 = arith.addf %1171, %1174 : vector<1x256xf32>
    %c100_100 = arith.constant 100 : index
    %1176 = memref.load %arg3[%c100_100] : memref<144xf32, #tpu.memory_space<smem>>
    %1177 = vector.broadcast %1176 : f32 to vector<1x256xf32>
    %1178 = arith.mulf %1177, %798 : vector<1x256xf32>
    %1179 = arith.addf %1175, %1178 : vector<1x256xf32>
    %c74_101 = arith.constant 74 : index
    %1180 = memref.load %arg3[%c74_101] : memref<144xf32, #tpu.memory_space<smem>>
    %1181 = vector.broadcast %1180 : f32 to vector<1x256xf32>
    %1182 = arith.mulf %1181, %800 : vector<1x256xf32>
    %1183 = arith.addf %1179, %1182 : vector<1x256xf32>
    %c83_102 = arith.constant 83 : index
    %1184 = memref.load %arg3[%c83_102] : memref<144xf32, #tpu.memory_space<smem>>
    %1185 = vector.broadcast %1184 : f32 to vector<1x256xf32>
    %1186 = arith.mulf %1185, %802 : vector<1x256xf32>
    %1187 = arith.addf %1183, %1186 : vector<1x256xf32>
    %c92_103 = arith.constant 92 : index
    %1188 = memref.load %arg3[%c92_103] : memref<144xf32, #tpu.memory_space<smem>>
    %1189 = vector.broadcast %1188 : f32 to vector<1x256xf32>
    %1190 = arith.mulf %1189, %804 : vector<1x256xf32>
    %1191 = arith.addf %1187, %1190 : vector<1x256xf32>
    %c101_104 = arith.constant 101 : index
    %1192 = memref.load %arg3[%c101_104] : memref<144xf32, #tpu.memory_space<smem>>
    %1193 = vector.broadcast %1192 : f32 to vector<1x256xf32>
    %1194 = arith.mulf %1193, %806 : vector<1x256xf32>
    %1195 = arith.addf %1191, %1194 : vector<1x256xf32>
    %c75_105 = arith.constant 75 : index
    %1196 = memref.load %arg3[%c75_105] : memref<144xf32, #tpu.memory_space<smem>>
    %1197 = vector.broadcast %1196 : f32 to vector<1x256xf32>
    %1198 = arith.mulf %1197, %808 : vector<1x256xf32>
    %1199 = arith.addf %1195, %1198 : vector<1x256xf32>
    %c84_106 = arith.constant 84 : index
    %1200 = memref.load %arg3[%c84_106] : memref<144xf32, #tpu.memory_space<smem>>
    %1201 = vector.broadcast %1200 : f32 to vector<1x256xf32>
    %1202 = arith.mulf %1201, %810 : vector<1x256xf32>
    %1203 = arith.addf %1199, %1202 : vector<1x256xf32>
    %c93_107 = arith.constant 93 : index
    %1204 = memref.load %arg3[%c93_107] : memref<144xf32, #tpu.memory_space<smem>>
    %1205 = vector.broadcast %1204 : f32 to vector<1x256xf32>
    %1206 = arith.mulf %1205, %812 : vector<1x256xf32>
    %1207 = arith.addf %1203, %1206 : vector<1x256xf32>
    %c102_108 = arith.constant 102 : index
    %1208 = memref.load %arg3[%c102_108] : memref<144xf32, #tpu.memory_space<smem>>
    %1209 = vector.broadcast %1208 : f32 to vector<1x256xf32>
    %1210 = arith.mulf %1209, %814 : vector<1x256xf32>
    %1211 = arith.addf %1207, %1210 : vector<1x256xf32>
    %c76_109 = arith.constant 76 : index
    %1212 = memref.load %arg3[%c76_109] : memref<144xf32, #tpu.memory_space<smem>>
    %1213 = vector.broadcast %1212 : f32 to vector<1x256xf32>
    %1214 = arith.mulf %1213, %816 : vector<1x256xf32>
    %1215 = arith.addf %1211, %1214 : vector<1x256xf32>
    %c85_110 = arith.constant 85 : index
    %1216 = memref.load %arg3[%c85_110] : memref<144xf32, #tpu.memory_space<smem>>
    %1217 = vector.broadcast %1216 : f32 to vector<1x256xf32>
    %1218 = arith.mulf %1217, %818 : vector<1x256xf32>
    %1219 = arith.addf %1215, %1218 : vector<1x256xf32>
    %c94_111 = arith.constant 94 : index
    %1220 = memref.load %arg3[%c94_111] : memref<144xf32, #tpu.memory_space<smem>>
    %1221 = vector.broadcast %1220 : f32 to vector<1x256xf32>
    %1222 = arith.mulf %1221, %820 : vector<1x256xf32>
    %1223 = arith.addf %1219, %1222 : vector<1x256xf32>
    %c103_112 = arith.constant 103 : index
    %1224 = memref.load %arg3[%c103_112] : memref<144xf32, #tpu.memory_space<smem>>
    %1225 = vector.broadcast %1224 : f32 to vector<1x256xf32>
    %1226 = arith.mulf %1225, %822 : vector<1x256xf32>
    %1227 = arith.addf %1223, %1226 : vector<1x256xf32>
    %c77_113 = arith.constant 77 : index
    %1228 = memref.load %arg3[%c77_113] : memref<144xf32, #tpu.memory_space<smem>>
    %1229 = vector.broadcast %1228 : f32 to vector<1x256xf32>
    %1230 = arith.mulf %1229, %824 : vector<1x256xf32>
    %1231 = arith.addf %1227, %1230 : vector<1x256xf32>
    %c86_114 = arith.constant 86 : index
    %1232 = memref.load %arg3[%c86_114] : memref<144xf32, #tpu.memory_space<smem>>
    %1233 = vector.broadcast %1232 : f32 to vector<1x256xf32>
    %1234 = arith.mulf %1233, %826 : vector<1x256xf32>
    %1235 = arith.addf %1231, %1234 : vector<1x256xf32>
    %c95_115 = arith.constant 95 : index
    %1236 = memref.load %arg3[%c95_115] : memref<144xf32, #tpu.memory_space<smem>>
    %1237 = vector.broadcast %1236 : f32 to vector<1x256xf32>
    %1238 = arith.mulf %1237, %828 : vector<1x256xf32>
    %1239 = arith.addf %1235, %1238 : vector<1x256xf32>
    %c104_116 = arith.constant 104 : index
    %1240 = memref.load %arg3[%c104_116] : memref<144xf32, #tpu.memory_space<smem>>
    %1241 = vector.broadcast %1240 : f32 to vector<1x256xf32>
    %1242 = arith.mulf %1241, %830 : vector<1x256xf32>
    %1243 = arith.addf %1239, %1242 : vector<1x256xf32>
    %c78_117 = arith.constant 78 : index
    %1244 = memref.load %arg3[%c78_117] : memref<144xf32, #tpu.memory_space<smem>>
    %1245 = vector.broadcast %1244 : f32 to vector<1x256xf32>
    %1246 = arith.mulf %1245, %832 : vector<1x256xf32>
    %1247 = arith.addf %1243, %1246 : vector<1x256xf32>
    %c87_118 = arith.constant 87 : index
    %1248 = memref.load %arg3[%c87_118] : memref<144xf32, #tpu.memory_space<smem>>
    %1249 = vector.broadcast %1248 : f32 to vector<1x256xf32>
    %1250 = arith.mulf %1249, %834 : vector<1x256xf32>
    %1251 = arith.addf %1247, %1250 : vector<1x256xf32>
    %c96_119 = arith.constant 96 : index
    %1252 = memref.load %arg3[%c96_119] : memref<144xf32, #tpu.memory_space<smem>>
    %1253 = vector.broadcast %1252 : f32 to vector<1x256xf32>
    %1254 = arith.mulf %1253, %836 : vector<1x256xf32>
    %1255 = arith.addf %1251, %1254 : vector<1x256xf32>
    %c105_120 = arith.constant 105 : index
    %1256 = memref.load %arg3[%c105_120] : memref<144xf32, #tpu.memory_space<smem>>
    %1257 = vector.broadcast %1256 : f32 to vector<1x256xf32>
    %1258 = arith.mulf %1257, %838 : vector<1x256xf32>
    %1259 = arith.addf %1255, %1258 : vector<1x256xf32>
    %c79_121 = arith.constant 79 : index
    %1260 = memref.load %arg3[%c79_121] : memref<144xf32, #tpu.memory_space<smem>>
    %1261 = vector.broadcast %1260 : f32 to vector<1x256xf32>
    %1262 = arith.mulf %1261, %840 : vector<1x256xf32>
    %1263 = arith.addf %1259, %1262 : vector<1x256xf32>
    %c88_122 = arith.constant 88 : index
    %1264 = memref.load %arg3[%c88_122] : memref<144xf32, #tpu.memory_space<smem>>
    %1265 = vector.broadcast %1264 : f32 to vector<1x256xf32>
    %1266 = arith.mulf %1265, %842 : vector<1x256xf32>
    %1267 = arith.addf %1263, %1266 : vector<1x256xf32>
    %c97_123 = arith.constant 97 : index
    %1268 = memref.load %arg3[%c97_123] : memref<144xf32, #tpu.memory_space<smem>>
    %1269 = vector.broadcast %1268 : f32 to vector<1x256xf32>
    %1270 = arith.mulf %1269, %844 : vector<1x256xf32>
    %1271 = arith.addf %1267, %1270 : vector<1x256xf32>
    %c106_124 = arith.constant 106 : index
    %1272 = memref.load %arg3[%c106_124] : memref<144xf32, #tpu.memory_space<smem>>
    %1273 = vector.broadcast %1272 : f32 to vector<1x256xf32>
    %1274 = arith.mulf %1273, %846 : vector<1x256xf32>
    %1275 = arith.addf %1271, %1274 : vector<1x256xf32>
    %c80_125 = arith.constant 80 : index
    %1276 = memref.load %arg3[%c80_125] : memref<144xf32, #tpu.memory_space<smem>>
    %1277 = vector.broadcast %1276 : f32 to vector<1x256xf32>
    %1278 = arith.mulf %1277, %848 : vector<1x256xf32>
    %1279 = arith.addf %1275, %1278 : vector<1x256xf32>
    %c89_126 = arith.constant 89 : index
    %1280 = memref.load %arg3[%c89_126] : memref<144xf32, #tpu.memory_space<smem>>
    %1281 = vector.broadcast %1280 : f32 to vector<1x256xf32>
    %1282 = arith.mulf %1281, %850 : vector<1x256xf32>
    %1283 = arith.addf %1279, %1282 : vector<1x256xf32>
    %c98_127 = arith.constant 98 : index
    %1284 = memref.load %arg3[%c98_127] : memref<144xf32, #tpu.memory_space<smem>>
    %1285 = vector.broadcast %1284 : f32 to vector<1x256xf32>
    %1286 = arith.mulf %1285, %852 : vector<1x256xf32>
    %1287 = arith.addf %1283, %1286 : vector<1x256xf32>
    %c107_128 = arith.constant 107 : index
    %1288 = memref.load %arg3[%c107_128] : memref<144xf32, #tpu.memory_space<smem>>
    %1289 = vector.broadcast %1288 : f32 to vector<1x256xf32>
    %1290 = arith.mulf %1289, %854 : vector<1x256xf32>
    %1291 = arith.addf %1287, %1290 : vector<1x256xf32>
    %1292 = vector.shape_cast %1291 : vector<1x256xf32> to vector<1x1x256xf32>
    %cst_129 = arith.constant 0.000000e+00 : f32
    %1293 = vector.broadcast %cst_129 : f32 to vector<1x256xf32>
    %c108_130 = arith.constant 108 : index
    %1294 = memref.load %arg3[%c108_130] : memref<144xf32, #tpu.memory_space<smem>>
    %1295 = vector.broadcast %1294 : f32 to vector<1x256xf32>
    %1296 = arith.mulf %1295, %784 : vector<1x256xf32>
    %1297 = arith.addf %1293, %1296 : vector<1x256xf32>
    %c117_131 = arith.constant 117 : index
    %1298 = memref.load %arg3[%c117_131] : memref<144xf32, #tpu.memory_space<smem>>
    %1299 = vector.broadcast %1298 : f32 to vector<1x256xf32>
    %1300 = arith.mulf %1299, %786 : vector<1x256xf32>
    %1301 = arith.addf %1297, %1300 : vector<1x256xf32>
    %c126_132 = arith.constant 126 : index
    %1302 = memref.load %arg3[%c126_132] : memref<144xf32, #tpu.memory_space<smem>>
    %1303 = vector.broadcast %1302 : f32 to vector<1x256xf32>
    %1304 = arith.mulf %1303, %788 : vector<1x256xf32>
    %1305 = arith.addf %1301, %1304 : vector<1x256xf32>
    %c135_133 = arith.constant 135 : index
    %1306 = memref.load %arg3[%c135_133] : memref<144xf32, #tpu.memory_space<smem>>
    %1307 = vector.broadcast %1306 : f32 to vector<1x256xf32>
    %1308 = arith.mulf %1307, %790 : vector<1x256xf32>
    %1309 = arith.addf %1305, %1308 : vector<1x256xf32>
    %c109_134 = arith.constant 109 : index
    %1310 = memref.load %arg3[%c109_134] : memref<144xf32, #tpu.memory_space<smem>>
    %1311 = vector.broadcast %1310 : f32 to vector<1x256xf32>
    %1312 = arith.mulf %1311, %792 : vector<1x256xf32>
    %1313 = arith.addf %1309, %1312 : vector<1x256xf32>
    %c118_135 = arith.constant 118 : index
    %1314 = memref.load %arg3[%c118_135] : memref<144xf32, #tpu.memory_space<smem>>
    %1315 = vector.broadcast %1314 : f32 to vector<1x256xf32>
    %1316 = arith.mulf %1315, %794 : vector<1x256xf32>
    %1317 = arith.addf %1313, %1316 : vector<1x256xf32>
    %c127_136 = arith.constant 127 : index
    %1318 = memref.load %arg3[%c127_136] : memref<144xf32, #tpu.memory_space<smem>>
    %1319 = vector.broadcast %1318 : f32 to vector<1x256xf32>
    %1320 = arith.mulf %1319, %796 : vector<1x256xf32>
    %1321 = arith.addf %1317, %1320 : vector<1x256xf32>
    %c136_137 = arith.constant 136 : index
    %1322 = memref.load %arg3[%c136_137] : memref<144xf32, #tpu.memory_space<smem>>
    %1323 = vector.broadcast %1322 : f32 to vector<1x256xf32>
    %1324 = arith.mulf %1323, %798 : vector<1x256xf32>
    %1325 = arith.addf %1321, %1324 : vector<1x256xf32>
    %c110_138 = arith.constant 110 : index
    %1326 = memref.load %arg3[%c110_138] : memref<144xf32, #tpu.memory_space<smem>>
    %1327 = vector.broadcast %1326 : f32 to vector<1x256xf32>
    %1328 = arith.mulf %1327, %800 : vector<1x256xf32>
    %1329 = arith.addf %1325, %1328 : vector<1x256xf32>
    %c119_139 = arith.constant 119 : index
    %1330 = memref.load %arg3[%c119_139] : memref<144xf32, #tpu.memory_space<smem>>
    %1331 = vector.broadcast %1330 : f32 to vector<1x256xf32>
    %1332 = arith.mulf %1331, %802 : vector<1x256xf32>
    %1333 = arith.addf %1329, %1332 : vector<1x256xf32>
    %c128_140 = arith.constant 128 : index
    %1334 = memref.load %arg3[%c128_140] : memref<144xf32, #tpu.memory_space<smem>>
    %1335 = vector.broadcast %1334 : f32 to vector<1x256xf32>
    %1336 = arith.mulf %1335, %804 : vector<1x256xf32>
    %1337 = arith.addf %1333, %1336 : vector<1x256xf32>
    %c137_141 = arith.constant 137 : index
    %1338 = memref.load %arg3[%c137_141] : memref<144xf32, #tpu.memory_space<smem>>
    %1339 = vector.broadcast %1338 : f32 to vector<1x256xf32>
    %1340 = arith.mulf %1339, %806 : vector<1x256xf32>
    %1341 = arith.addf %1337, %1340 : vector<1x256xf32>
    %c111_142 = arith.constant 111 : index
    %1342 = memref.load %arg3[%c111_142] : memref<144xf32, #tpu.memory_space<smem>>
    %1343 = vector.broadcast %1342 : f32 to vector<1x256xf32>
    %1344 = arith.mulf %1343, %808 : vector<1x256xf32>
    %1345 = arith.addf %1341, %1344 : vector<1x256xf32>
    %c120_143 = arith.constant 120 : index
    %1346 = memref.load %arg3[%c120_143] : memref<144xf32, #tpu.memory_space<smem>>
    %1347 = vector.broadcast %1346 : f32 to vector<1x256xf32>
    %1348 = arith.mulf %1347, %810 : vector<1x256xf32>
    %1349 = arith.addf %1345, %1348 : vector<1x256xf32>
    %c129_144 = arith.constant 129 : index
    %1350 = memref.load %arg3[%c129_144] : memref<144xf32, #tpu.memory_space<smem>>
    %1351 = vector.broadcast %1350 : f32 to vector<1x256xf32>
    %1352 = arith.mulf %1351, %812 : vector<1x256xf32>
    %1353 = arith.addf %1349, %1352 : vector<1x256xf32>
    %c138_145 = arith.constant 138 : index
    %1354 = memref.load %arg3[%c138_145] : memref<144xf32, #tpu.memory_space<smem>>
    %1355 = vector.broadcast %1354 : f32 to vector<1x256xf32>
    %1356 = arith.mulf %1355, %814 : vector<1x256xf32>
    %1357 = arith.addf %1353, %1356 : vector<1x256xf32>
    %c112_146 = arith.constant 112 : index
    %1358 = memref.load %arg3[%c112_146] : memref<144xf32, #tpu.memory_space<smem>>
    %1359 = vector.broadcast %1358 : f32 to vector<1x256xf32>
    %1360 = arith.mulf %1359, %816 : vector<1x256xf32>
    %1361 = arith.addf %1357, %1360 : vector<1x256xf32>
    %c121_147 = arith.constant 121 : index
    %1362 = memref.load %arg3[%c121_147] : memref<144xf32, #tpu.memory_space<smem>>
    %1363 = vector.broadcast %1362 : f32 to vector<1x256xf32>
    %1364 = arith.mulf %1363, %818 : vector<1x256xf32>
    %1365 = arith.addf %1361, %1364 : vector<1x256xf32>
    %c130_148 = arith.constant 130 : index
    %1366 = memref.load %arg3[%c130_148] : memref<144xf32, #tpu.memory_space<smem>>
    %1367 = vector.broadcast %1366 : f32 to vector<1x256xf32>
    %1368 = arith.mulf %1367, %820 : vector<1x256xf32>
    %1369 = arith.addf %1365, %1368 : vector<1x256xf32>
    %c139_149 = arith.constant 139 : index
    %1370 = memref.load %arg3[%c139_149] : memref<144xf32, #tpu.memory_space<smem>>
    %1371 = vector.broadcast %1370 : f32 to vector<1x256xf32>
    %1372 = arith.mulf %1371, %822 : vector<1x256xf32>
    %1373 = arith.addf %1369, %1372 : vector<1x256xf32>
    %c113_150 = arith.constant 113 : index
    %1374 = memref.load %arg3[%c113_150] : memref<144xf32, #tpu.memory_space<smem>>
    %1375 = vector.broadcast %1374 : f32 to vector<1x256xf32>
    %1376 = arith.mulf %1375, %824 : vector<1x256xf32>
    %1377 = arith.addf %1373, %1376 : vector<1x256xf32>
    %c122_151 = arith.constant 122 : index
    %1378 = memref.load %arg3[%c122_151] : memref<144xf32, #tpu.memory_space<smem>>
    %1379 = vector.broadcast %1378 : f32 to vector<1x256xf32>
    %1380 = arith.mulf %1379, %826 : vector<1x256xf32>
    %1381 = arith.addf %1377, %1380 : vector<1x256xf32>
    %c131_152 = arith.constant 131 : index
    %1382 = memref.load %arg3[%c131_152] : memref<144xf32, #tpu.memory_space<smem>>
    %1383 = vector.broadcast %1382 : f32 to vector<1x256xf32>
    %1384 = arith.mulf %1383, %828 : vector<1x256xf32>
    %1385 = arith.addf %1381, %1384 : vector<1x256xf32>
    %c140_153 = arith.constant 140 : index
    %1386 = memref.load %arg3[%c140_153] : memref<144xf32, #tpu.memory_space<smem>>
    %1387 = vector.broadcast %1386 : f32 to vector<1x256xf32>
    %1388 = arith.mulf %1387, %830 : vector<1x256xf32>
    %1389 = arith.addf %1385, %1388 : vector<1x256xf32>
    %c114_154 = arith.constant 114 : index
    %1390 = memref.load %arg3[%c114_154] : memref<144xf32, #tpu.memory_space<smem>>
    %1391 = vector.broadcast %1390 : f32 to vector<1x256xf32>
    %1392 = arith.mulf %1391, %832 : vector<1x256xf32>
    %1393 = arith.addf %1389, %1392 : vector<1x256xf32>
    %c123_155 = arith.constant 123 : index
    %1394 = memref.load %arg3[%c123_155] : memref<144xf32, #tpu.memory_space<smem>>
    %1395 = vector.broadcast %1394 : f32 to vector<1x256xf32>
    %1396 = arith.mulf %1395, %834 : vector<1x256xf32>
    %1397 = arith.addf %1393, %1396 : vector<1x256xf32>
    %c132_156 = arith.constant 132 : index
    %1398 = memref.load %arg3[%c132_156] : memref<144xf32, #tpu.memory_space<smem>>
    %1399 = vector.broadcast %1398 : f32 to vector<1x256xf32>
    %1400 = arith.mulf %1399, %836 : vector<1x256xf32>
    %1401 = arith.addf %1397, %1400 : vector<1x256xf32>
    %c141_157 = arith.constant 141 : index
    %1402 = memref.load %arg3[%c141_157] : memref<144xf32, #tpu.memory_space<smem>>
    %1403 = vector.broadcast %1402 : f32 to vector<1x256xf32>
    %1404 = arith.mulf %1403, %838 : vector<1x256xf32>
    %1405 = arith.addf %1401, %1404 : vector<1x256xf32>
    %c115_158 = arith.constant 115 : index
    %1406 = memref.load %arg3[%c115_158] : memref<144xf32, #tpu.memory_space<smem>>
    %1407 = vector.broadcast %1406 : f32 to vector<1x256xf32>
    %1408 = arith.mulf %1407, %840 : vector<1x256xf32>
    %1409 = arith.addf %1405, %1408 : vector<1x256xf32>
    %c124_159 = arith.constant 124 : index
    %1410 = memref.load %arg3[%c124_159] : memref<144xf32, #tpu.memory_space<smem>>
    %1411 = vector.broadcast %1410 : f32 to vector<1x256xf32>
    %1412 = arith.mulf %1411, %842 : vector<1x256xf32>
    %1413 = arith.addf %1409, %1412 : vector<1x256xf32>
    %c133_160 = arith.constant 133 : index
    %1414 = memref.load %arg3[%c133_160] : memref<144xf32, #tpu.memory_space<smem>>
    %1415 = vector.broadcast %1414 : f32 to vector<1x256xf32>
    %1416 = arith.mulf %1415, %844 : vector<1x256xf32>
    %1417 = arith.addf %1413, %1416 : vector<1x256xf32>
    %c142_161 = arith.constant 142 : index
    %1418 = memref.load %arg3[%c142_161] : memref<144xf32, #tpu.memory_space<smem>>
    %1419 = vector.broadcast %1418 : f32 to vector<1x256xf32>
    %1420 = arith.mulf %1419, %846 : vector<1x256xf32>
    %1421 = arith.addf %1417, %1420 : vector<1x256xf32>
    %c116_162 = arith.constant 116 : index
    %1422 = memref.load %arg3[%c116_162] : memref<144xf32, #tpu.memory_space<smem>>
    %1423 = vector.broadcast %1422 : f32 to vector<1x256xf32>
    %1424 = arith.mulf %1423, %848 : vector<1x256xf32>
    %1425 = arith.addf %1421, %1424 : vector<1x256xf32>
    %c125_163 = arith.constant 125 : index
    %1426 = memref.load %arg3[%c125_163] : memref<144xf32, #tpu.memory_space<smem>>
    %1427 = vector.broadcast %1426 : f32 to vector<1x256xf32>
    %1428 = arith.mulf %1427, %850 : vector<1x256xf32>
    %1429 = arith.addf %1425, %1428 : vector<1x256xf32>
    %c134_164 = arith.constant 134 : index
    %1430 = memref.load %arg3[%c134_164] : memref<144xf32, #tpu.memory_space<smem>>
    %1431 = vector.broadcast %1430 : f32 to vector<1x256xf32>
    %1432 = arith.mulf %1431, %852 : vector<1x256xf32>
    %1433 = arith.addf %1429, %1432 : vector<1x256xf32>
    %c143_165 = arith.constant 143 : index
    %1434 = memref.load %arg3[%c143_165] : memref<144xf32, #tpu.memory_space<smem>>
    %1435 = vector.broadcast %1434 : f32 to vector<1x256xf32>
    %1436 = arith.mulf %1435, %854 : vector<1x256xf32>
    %1437 = arith.addf %1433, %1436 : vector<1x256xf32>
    %1438 = vector.shape_cast %1437 : vector<1x256xf32> to vector<1x1x256xf32>
    %1439 = tpu.concatenate %1000, %1146, %1292, %1438 in 1 : vector<1x1x256xf32>, vector<1x1x256xf32>, vector<1x1x256xf32>, vector<1x1x256xf32> -> vector<1x4x256xf32>
    %1440 = arith.addf %1439, %0 : vector<1x4x256xf32>
    %cst_166 = arith.constant 0.000000e+00 : f32
    %1441 = vector.broadcast %cst_166 : f32 to vector<1x4x256xf32>
    %1442 = arith.maximumf %1440, %1441 : vector<1x4x256xf32>
    %c0_167 = arith.constant 0 : index
    %c0_168 = arith.constant 0 : index
    %c0_169 = arith.constant 0 : index
    %1443 = vector.load %arg4[%c0_167, %c0_168, %c0_169] : memref<1x4x256xf32, #tpu.memory_space<vmem>>, vector<1x4x256xf32>
    tpu.vector_store %arg4[%c0_167, %c0_168, %c0_169], %1442 {strides = array<i32>} : memref<1x4x256xf32, #tpu.memory_space<vmem>>, vector<1x4x256xf32>,
    return
  }
  func.func @transform_0(%arg0: i32) -> (i32, i32, i32) {
    %c0_i32 = arith.constant 0 : i32
    %c0_i32_0 = arith.constant 0 : i32
    %c0_i32_1 = arith.constant 0 : i32
    return %arg0, %c0_i32, %c0_i32_0 : i32, i32, i32
  }
  func.func @transform_1(%arg0: i32) -> i32 {
    %c0_i32 = arith.constant 0 : i32
    %c0_i32_0 = arith.constant 0 : i32
    return %c0_i32 : i32
  }
  func.func @transform_2(%arg0: i32) -> i32 {
    %c0_i32 = arith.constant 0 : i32
    %c0_i32_0 = arith.constant 0 : i32
    return %c0_i32 : i32
  }
  func.func @transform_3(%arg0: i32) -> (i32, i32, i32) {
    %c0_i32 = arith.constant 0 : i32
    %c0_i32_0 = arith.constant 0 : i32
    %c0_i32_1 = arith.constant 0 : i32
    return %arg0, %c0_i32, %c0_i32_0 : i32, i32, i32
  }
}

</mosaic_0001>

<bundles_post_ra>
// kernel: tpu_custom_call.1
= control target key start
LH: loop header
LB: loop body
LE: loop exit
PB: predicated region body
PF: predicated region fallthrough
CT: control target
= control target key end

     0   :  { %s8362_s0 = inlined_call_operand.hbm [shape: f32[2,4,256], index: 0, kind: input, shape index: {}]   ;;  %s8363_s1 = inlined_call_operand.vmem [shape: f32[144], index: 1, kind: input, shape index: {}]   ;;  %s8364_s2 = inlined_call_operand.vmem [shape: f32[144], index: 2, kind: input, shape index: {}]   ;;  %s8365_s3 = inlined_call_operand.hbm [shape: f32[2,4,256], index: 3, kind: output, shape index: {}]  }
   0x1   :  { %8808 = sst [smem:[#allocation156_spill]] %s8362_s0 }
   0x2   :  { %8809 = sst [smem:[#allocation157_spill]] %s8363_s1 }
   0x3   :  { %8810 = sst [smem:[#allocation158_spill]] %s8364_s2 }
   0x4   :  { %8811 = sst [smem:[#allocation159_spill]] %s8365_s3 }
   0x5   :  { %8 = vsyncpa [#allocation3], 0 }
   0x6   :  { %10 = vsyncpa [#allocation3 + $0x1], 0 }
   0x7   :  { %11 = vsyncpa [#allocation5], 0 }
   0x8   :  { %12 = vsyncpa [#allocation8], 0 }
   0x9   :  { %13 = vsyncpa [#allocation4], 0 }
   0xa   :  { %15 = vsyncpa [#allocation4 + $0x1], 0  ;;  %s4343_s12 = smov 0   ;;  %s4345_s13 = smov 0  }
   0xb   :  { %s4347_s14 = smov 0   ;;  %s4349_s15 = smov 0  }
   0xc LB: > { %8812 = sst [smem:[#allocation14_spill]] %s4299_s12  ;;  %s4364_s16 = sadd.s32 4294967295, %s4311_s15   ;;  %s4311_s15 = sphi %s4349_s15, %s9958_s15   ;;  %s4307_s14 = sphi %s4347_s14, %s9961_s14   ;;  %s4303_s13 = sphi %s4345_s13, %s9960_s13   ;;  %s4299_s12 = sphi %s4343_s12, %s9959_s12  }
   0xd   : > { %8813 = sst [smem:[#allocation15_spill]] %s4303_s13  ;;  %s3796_s17 = sadd.s32 4294967294, %s4311_s15  }
   0xe   : > { %8814 = sst [smem:[#allocation16_spill]] %s4307_s14  ;;  %p41_p0 = scmp.ne.s32.totalorder %s4303_s13, %s4299_s12 }
   0xf   : > { %8815 = sst [smem:[#allocation17_spill]] %s4311_s15  ;;  %p8366_p1 = scmp.eq.s32.totalorder %s4364_s16, 0 }
  0x10   : > { %8816 = sst [smem:[#allocation18_spill]] %s4364_s16  ;;  %p113_p3 = scmp.eq.s32.totalorder %s3796_s17, 1 }
  0x11   : > { %p4373_p4 = por %p8366_p1, %p41_p0  ;;  %p3797_p5 = scmp.ge.s32.totalorder %s4311_s15, 1 }
  0x12   : > { %p4378_p6 = por %p113_p3, %p41_p0  ;;  %p120_p7 = scmp.lt.s32.totalorder %s4311_s15, 3 }
  0x13   : > { %s8817_s18 = scalar_select %p4373_p4, 1, 0 }
  0x14   : > { %s8818_s19 = scalar_select %p4378_p6, 1, 0 }
  0x15   : > { %s8820_s1 = sld [smem:[#allocation157_spill]]  ;;  %p4386_p8 = pnand %p3797_p5, %p120_p7 }
  0x16   : > { %8819 = sst [smem:[#allocation19_spill]] %s8818_s19  ;;  %s8822_s2 = sld [smem:[#allocation158_spill]] }
  0x17   : > { %s8821_s23 = scalar_select %p4386_p8, 1, 0 }
  0x18   : > { %p4114_p10 = pneg %p4386_p8  ;;  %s4403_s28 = sadd.s32 1, %s4311_s15  }
  0x19   : > { %8824 = sst [smem:[#allocation20_spill]] %s4403_s28  ;;  %s25_s29 = ssub.s32 %s4311_s15, %s4403_s28 }
  0x1a   : > { %p4398_p11 = pnand %p4114_p10, %p8366_p1 }
  0x1b   : > { %s133_s22 = sshll.u32 %s8820_s1, 4  ;;  %s134_s22 = int_to_ptr.vmem [resolvable:$true] %s133_s22 }
  0x1c   : > { %s144_s26 = sshll.u32 %s8822_s2, 4  ;;  %s4177_s30 = scalar_lea.vmem %s134_s22, 32  ;;  %s145_s26 = int_to_ptr.vmem [resolvable:$true] %s144_s26 }
  0x1d   : > { %p4178_p12 = scmp.ne.s32.totalorder %s134_s22, %s4177_s30  ;;  %p4179_p13 = pneg %p4398_p11 }
  0x1e   : > { %p4185_p5 = scmp.lt.s32.totalorder %s134_s22, %s134_s22  ;;  %p4186_p7 = scmp.lt.s32.totalorder %s4177_s30, %s4177_s30 }
  0x1f   : > { %p4180_p0 = pnand %p4179_p13, %p4178_p12 }
  0x20   : > { %p4187_p9 = por %p4186_p7, %p4185_p5 }
  0x21   : > { %p4181_p3 = pneg %p4180_p0 }
  0x23   : > { %p4188_p2 = pnand %p4187_p9, %p4181_p3 }
  0x25   : > { %4191 = shalt.err (!%p4188_p2)
}
  0x26   : > { %s4313_s4 = smov [#allocation6]   ;;  %s4192_s5 = scalar_lea.vmem %s145_s26, 32 }
  0x27   : > { %4117 = dma.vmem_to_smem (!%p4398_p11), %s134_s22, 32, %s4313_s4, [#allocation5]  }
  0x28   : > { %p4193_p10 = scmp.ne.s32.totalorder %s145_s26, %s4192_s5  ;;  %p4200_p4 = scmp.lt.s32.totalorder %s145_s26, %s145_s26 }
  0x29   : > { %p4201_p8 = scmp.lt.s32.totalorder %s4192_s5, %s4192_s5 }
  0x2a   : > { %p4195_p1 = pnand %p4193_p10, %p4179_p13 }
  0x2b   : > { %p4202_p12 = por %p4201_p8, %p4200_p4 }
  0x2c   : > { %p4196_p6 = pneg %p4195_p1 }
  0x2e   : > { %p4203_p0 = pnand %p4202_p12, %p4196_p6 }
  0x30   : > { %4206 = shalt.err (!%p4203_p0)
}
  0x31   : > { %s4314_s6 = smov [#allocation7]   ;;  %p26_p2 = scmp.eq.s32.totalorder %s25_s29, 0 }
  0x32   : > { %4120 = dma.vmem_to_smem (!%p4398_p11), %s145_s26, 32, %s4314_s6, [#allocation8]  }
  0x33   : > { %s28_s7 = sadd.s32 1, %s4307_s14  ;;  %p35_p1 = scmp.ne.s32.totalorder %s4307_s14, %s4303_s13 }
  0x34   : > { %p36_p9 = scmp.eq.s32.totalorder %s4311_s15, 0  ;;  %p8826_p6 = scmp.eq.s32.totalorder %s4364_s16, 1 }
  0x35   : > { %s4418_s8 = scalar_select %p26_p2, %s4307_s14, %s28_s7  }
  0x36   : > { %p37_p4 = por %p36_p9, %p35_p1  ;;  %p4422_p8 = por %p8826_p6, %p35_p1 }
  0x37   : > { %8825 = sst [smem:[#allocation21_spill]] %s4418_s8  ;;  %p4131_p13 = scmp.lt.s32.totalorder %s4311_s15, 2 }
  0x38   : > { %s8827_s9 = scalar_select %p4422_p8, 1, 0 }
  0x39   : > { %s155_s10 = sand.u32 1, %s4307_s14   ;;  %s4100_s17 = sshll.u32 %s4311_s15, 7 }
  0x3a   : > { %8828 = sst [smem:[#allocation22_spill]] %s8827_s9  ;;  %s3801_s11 = sshll.u32 %s155_s10, 3 }
  0x3b   : > { %s8829_s0 = sld [smem:[#allocation156_spill]]  ;;  %s159_s24 = scalar_lea.vmem [#allocation2], %s3801_s11 }
  0x3c   : > { %s167_s25 = sshll.u32 %s159_s24, 4  ;;  %p4436_p11 = pnand %p4131_p13, %p37_p4  ;;  %s4434_s25 = int_to_ptr.vmem [resolvable:$true] %s167_s25 }
  0x3d   : > { %s156_s27 = scalar_lea.sflag [#allocation3], %s155_s10 }
  0x3e   : > { %p4209_p5 = pneg %p4436_p11 }
  0x41   : > { %s4432_s22 = scalar_lea.hbm %s8829_s0, %s4100_s17  ;;  %s4212_s5 = scalar_lea.hbm %s8829_s0, 256 }
  0x42   : > { %s4207_s29 = scalar_lea.hbm %s4432_s22, 128  ;;  %p4213_p12 = scmp.lt.u32.totalorder %s4432_s22, %s8829_s0 }
  0x43   : > { %p4208_p3 = scmp.ne.s32.totalorder %s4432_s22, %s4207_s29  ;;  %p4214_p0 = scmp.lt.u32.totalorder %s4212_s5, %s4207_s29 }
  0x44   : > { %p4216_p1 = scmp.lt.u32.totalorder %s4207_s29, %s4432_s22 }
  0x45   : > { %p4210_p7 = pnand %p4209_p5, %p4208_p3  ;;  %p4215_p2 = por %p4214_p0, %p4213_p12 }
  0x47   : > { %p4211_p10 = pneg %p4210_p7  ;;  %p4217_p9 = por %p4216_p1, %p4215_p2 }
  0x49   : > { %p4218_p4 = pnand %p4217_p9, %p4211_p10 }
  0x4b   : > { %4221 = shalt.err (!%p4218_p4)
}
  0x4c   : > { %s4222_s10 = scalar_lea.vmem %s4434_s25, 128  ;;  %s4315_s11 = smov [#allocation2]  }
  0x4d   : > { %p4223_p6 = scmp.ne.s32.totalorder %s4434_s25, %s4222_s10  ;;  %s4227_s17 = sshll.u32 %s4315_s11, 4  ;;  %s4228_s17 = int_to_ptr.vmem [resolvable:$false] %s4227_s17 }
  0x4e   : > { %s4229_s20 = scalar_lea.vmem %s4228_s17, 256  ;;  %p4230_p7 = scmp.lt.s32.totalorder %s4434_s25, %s4228_s17 }
  0x4f   : > { %p4225_p13 = pnand %p4223_p6, %p4209_p5  ;;  %p4231_p12 = scmp.lt.s32.totalorder %s4229_s20, %s4222_s10 }
  0x51   : > { %p4226_p3 = pneg %p4225_p13  ;;  %p4232_p0 = por %p4231_p12, %p4230_p7 }
  0x53   : > { %p4233_p2 = pnand %p4232_p0, %p4226_p3 }
  0x55   : > { %4236 = shalt.err (!%p4233_p2)
}
  0x56   : > { %4124 = dma.hbm_to_vmem [thread:$0]  (!%p4436_p11), %s4432_s22, 128, %s4434_s25, %s156_s27  }
  0x57   : > { %p8831_p10 = scmp.ne.s32.totalorder %s8821_s23, 0 }
  0x59   : > { %176 = sbr.rel (%p8831_p10) target bundleno = 1084 (0x43c), region = 32 }
  0x60   : > { %s4468_s21 = sand.u32 1, %s4303_s13   ;;  %p8834_p5 = scmp.ne.s32.totalorder %s8817_s18, 0 }
  0x61   : > { %8832 = sst [smem:[#allocation23_spill]] %s4468_s21  ;;  %s8369_s24 = sshll.u32 %s4468_s21, 3 }
  0x62   : > { %s179_s29 = scalar_lea.sflag [#allocation3], %s4468_s21  ;;  %s4474_s30 = scalar_lea.vmem [#allocation2], %s8369_s24 }
  0x63   : > { %8833 = sst [smem:[#allocation24_spill]] %s4474_s30 }
  0x64   : > { %4282 = dma.done.wait (%p8834_p5), %s179_s29, 128  }
  0x65   : > { %4284 = vsyncadd (%p8834_p5), %s179_s29, 4294967168  ;;  %p8835_p11 = scmp.eq.s32.totalorder %s4364_s16, 0 }
  0x67   : > { %4286 = dma.done.wait (%p8835_p11), [#allocation5], 32   ;;  %p8836_p1 = pmov %p8835_p11 }
  0x69   : > { %4288 = vsyncadd (%p8836_p1), [#allocation5], 4294967264  ;;  %p8837_p9 = pmov %p8836_p1 }
  0x6a   : > { %p8838_p4 = pmov %p8836_p1 }
  0x6b   : > { %4290 = dma.done.wait (%p8837_p9), [#allocation8], 32  }
  0x6c   : > { %4292 = vsyncadd (%p8838_p4), [#allocation8], 4294967264 }
  0x6d   : > { %195 = sfence }
  0x6e   : > { %v4489_v0 = vld [vmem:[%s4474_s30] sm:$0xff]  ;;  %s8372_s18 = smov 112   ;;  %s8374_s23 = smov 16   ;;  %vm227_vm0 = vcmask 130048   ;;  %vm325_vm1 = vcmask 916480   ;;  %v215_v10 = vlaneseq  ;;  %vm238_vm2 = vcmask 7168  }
  0x6f   : > { %v4493_v1 = vcombine.high %v4489_v0, %v4489_v0  ;;  %321 = vrot.lane.b32.xlu1 %v4489_v0, %s8372_s18  ;;  %s8370_s22 = smov 1   ;;  %s8380_s25 = smov 113   ;;  %vm247_vm3 = vcmask 924672   ;;  %vm262_vm6 = vcmask 121856   ;;  %vm271_vm7 = vcmask 1039360  }
  0x70   : > { %s8378_s26 = smov 15   ;;  %s8376_s27 = smov 127   ;;  %v4611_v11 = vand.u32 127, %v215_v10  ;;  %v545_v26 = vshrl.u32 %v215_v10, 7  ;;  %vm1990_vm10 = vcmask 1040384   ;;  %vm1993_vm11 = vcmask 1041408  }
  0x71   : > { %8839 = vst [vmem:[#allocation25_spill] sm:$0xff] %v4493_v1  ;;  %222 = vrot.lane.b32.xlu0 %v4493_v1, %s8374_s23  ;;  %s4551_s4 = sld [smem:[#allocation6 + $0x1]]  ;;  %s4553_s5 = sld [smem:[#allocation6 + $0xa]]  ;;  %vm1996_vm12 = vcmask 1042432  }
  0x72   : > { %s4555_s6 = sld [smem:[#allocation6 + $0x25]]  ;;  %s4557_s7 = sld [smem:[#allocation6 + $0x2e]]  ;;  %v4640_v22 = vadd.s32 128, %v4611_v11  ;;  %v4676_v44 = vsub.s32 0, %v545_v26  ;;  %v4678_v45 = vsub.s32 4, %v545_v26  ;;  %v4683_v47 = vsub.s32 1, %v545_v26 }
  0x73   : > { %323 = vrot.lane.b32.xlu1 %v4493_v1, %s8372_s18  ;;  %s4559_s10 = sld [smem:[#allocation6 + $0x49]]  ;;  %s4561_s11 = sld [smem:[#allocation6 + $0x52]]  ;;  %v4685_v48 = vsub.s32 5, %v545_v26  ;;  %v4687_v49 = vsub.s32 2, %v545_v26  ;;  %v4693_v52 = vsub.s32 6, %v545_v26  ;;  %v4699_v55 = vsub.s32 3, %v545_v26 }
  0x74   : > { %s4563_s17 = sld [smem:[#allocation6 + $0x6d]]  ;;  %s4565_s20 = sld [smem:[#allocation6 + $0x76]]  ;;  %8862 = vst [vmem:[#allocation45_spill] sm:$0xff] %v4676_v44  ;;  %8863 = vst [vmem:[#allocation46_spill] sm:$0xff] %v4678_v45  ;;  %v4701_v56 = vsub.s32 7, %v545_v26 }
  0x75   : > { %225 = vrot.lane.b32.xlu0 %v4489_v0, %s8374_s23  ;;  %s4571_s29 = sld [smem:[#allocation6 + $0x13]]  ;;  %s4573_s24 = sld [smem:[#allocation6 + $0x1c]]  ;;  %8864 = vst [vmem:[#allocation47_spill] sm:$0xff] %v4683_v47  ;;  %8865 = vst [vmem:[#allocation48_spill] sm:$0xff] %v4685_v48 }
  0x76   : > { %s4577_s18 = sld [smem:[#allocation6 + $0x40]]  ;;  %s4579_s23 = sld [smem:[#allocation6 + $0x5b]]  ;;  %8866 = vst [vmem:[#allocation49_spill] sm:$0xff] %v4687_v49  ;;  %8868 = vst [vmem:[#allocation51_spill] sm:$0xff] %v4693_v52 }
  0x77   : > { %s4585_s0 = sld [smem:[#allocation6 + $0x88]]  ;;  %s8848_s1 = smov 15   ;;  %v415_v12 = vstv %s4551_s4  ;;  %v421_v13 = vstv %s4553_s5  ;;  %8870 = vst [vmem:[#allocation53_spill] sm:$0xff] %v4699_v55  ;;  %8871 = vst [vmem:[#allocation54_spill] sm:$0xff] %v4701_v56 }
  0x78   : > { %s4593_s2 = sld [smem:[#allocation6 + $0x10]]  ;;  %s4595_s8 = sld [smem:[#allocation6 + $0x2b]]  ;;  %v815_v14 = vstv %s4555_s6  ;;  %v821_v15 = vstv %s4557_s7 }
  0x79   : > { %8841 = sst [smem:[#allocation27_spill]] %s4559_s10  ;;  %s4597_s14 = sld [smem:[#allocation6 + $0x34]]  ;;  %v1215_v16 = vstv %s4559_s10  ;;  %v1221_v17 = vstv %s4561_s11 }
  0x7a   : > { %8842 = sst [smem:[#allocation28_spill]] %s4561_s11  ;;  %s4599_s13 = sld [smem:[#allocation6 + $0x4f]]  ;;  %v1615_v18 = vstv %s4563_s17  ;;  %v1621_v19 = vstv %s4565_s20 }
  0x7b   : > { %8843 = sst [smem:[#allocation29_spill]] %s4563_s17  ;;  %s4601_s28 = sld [smem:[#allocation6 + $0x58]]  ;;  %v433_v20 = vstv %s4571_s29  ;;  %v8448_v21 = vstv %s4573_s24 }
  0x7c   : > { %8844 = sst [smem:[#allocation30_spill]] %s4565_s20  ;;  %s4603_s15 = sld [smem:[#allocation6 + $0x73]]  ;;  %v8446_v24 = vstv %s4577_s18  ;;  %v8447_v25 = vstv %s4579_s23 }
  0x7d   : > { %8845 = sst [smem:[#allocation31_spill]] %s4571_s29  ;;  %s4605_s19 = sld [smem:[#allocation6 + $0x7c]]  ;;  %v8462_v29 = vstv %s4585_s0 }
  0x7e   : > { %8846 = sst [smem:[#allocation32_spill]] %s4573_s24  ;;  %s8852_s12 = smov 127  }
  0x7f   : > { %8847 = sst [smem:[#allocation33_spill]] %s4579_s23  ;;  %s4613_s3 = sld [smem:[#allocation6]] }
  0x80   : > { %8850 = sst [smem:[#allocation35_spill]] %s4599_s13  ;;  %s4615_s9 = sld [smem:[#allocation6 + $0x4]] }
  0x81   : > { %s4617_s21 = sld [smem:[#allocation6 + $0x9]]  ;;  %s4619_s16 = sld [smem:[#allocation6 + $0x12]] }
  0x82   : > { %8851 = sst [smem:[#allocation36_spill]] %s4603_s15  ;;  %s4623_s30 = sld [smem:[#allocation6 + $0x1b]] }
  0x83   : > { %s4642_s10 = sld [smem:[#allocation6 + $0x24]]  ;;  %s4644_s11 = sld [smem:[#allocation6 + $0x28]] }
  0x84   : > { %s4649_s29 = sld [smem:[#allocation6 + $0x2d]]  ;;  %s4651_s24 = sld [smem:[#allocation6 + $0x31]] }
  0x85   : > { %8853 = sst [smem:[#allocation37_spill]] %s4613_s3  ;;  %s4656_s20 = sld [smem:[#allocation6 + $0x36]] }
  0x86   : > { %s4662_s23 = sld [smem:[#allocation6 + $0x3f]]  ;;  %v541_v41 = vstv %s4615_s9  ;;  %s4680_s15 = sld [smem:[#allocation6 + $0x43]] }
  0x87   : > { %8854 = sst [smem:[#allocation38_spill]] %s4617_s21  ;;  %s4633_s21 = sld [smem:[#allocation6 + $0x1f]]  ;;  %v4690_v50 = vmul.f32 %v541_v41, %v4489_v0 }
  0x88   : > { %8855 = sst [smem:[#allocation39_spill]] %s4619_s16  ;;  %s4696_s9 = sld [smem:[#allocation6 + $0x48]] }
  0x89   : > { %8856 = sst [smem:[#allocation40_spill]] %s4623_s30  ;;  %8867 = vst [vmem:[#allocation50_spill] sm:$0xff] %v4690_v50  ;;  %v941_v57 = vstv %s4644_s11  ;;  %s4706_s16 = sld [smem:[#allocation6 + $0x4c]] }
  0x8a   : > { %8857 = sst [smem:[#allocation41_spill]] %s4642_s10  ;;  %v957_v61 = vstv %s4651_s24  ;;  %s4730_s11 = sld [smem:[#allocation6 + $0x63]]  ;;  %v4743_v26 = vmul.f32 %v941_v57, %v4489_v0 }
  0x8b   : > { %8858 = sst [smem:[#allocation42_spill]] %s4649_s29  ;;  %s4732_s24 = sld [smem:[#allocation6 + $0x5e]] }
  0x8c   : > { %8860 = sst [smem:[#allocation43_spill]] %s4656_s20  ;;  %8878 = vst [vmem:[#allocation61_spill] sm:$0xff] %v4743_v26  ;;  %s4745_s29 = sld [smem:[#allocation6 + $0x67]] }
  0x8d   : > { %8861 = sst [smem:[#allocation44_spill]] %s4662_s23  ;;  %v589_v53 = vstv %s4633_s21  ;;  %s4716_s21 = sld [smem:[#allocation6 + $0x55]] }
  0x8e   : > { %8869 = sst [smem:[#allocation52_spill]] %s4696_s9  ;;  %s4758_s23 = sld [smem:[#allocation6 + $0x70]] }
  0x8f   : > { %s4770_s20 = sld [smem:[#allocation6 + $0x6c]]  ;;  %s4772_s10 = sld [smem:[#allocation6 + $0x79]] }
  0x90   : > { %8877 = sst [smem:[#allocation60_spill]] %s4730_s11  ;;  %s4783_s30 = sld [smem:[#allocation6 + $0x82]] }
  0x91   : > { %s4793_s17 = sld [smem:[#allocation6 + $0x8b]]  ;;  %s4812_s13 = sld [smem:[#allocation6 + $0x7e]] }
  0x92   : > { %s4927_s5 = sld [smem:[#allocation6 + $0x38]]  ;;  %s4945_s7 = sld [smem:[#allocation6 + $0x4a]] }
  0x93   : > { %v1357_v43 = vstv %s4716_s21  ;;  %s4963_s4 = sld [smem:[#allocation6 + $0x5c]]  ;;  %s8911_s6 = sld [smem:[#allocation33_spill]] }
  0x94   : > { %v4836_v39 = vmul.f32 %v1357_v43, %v4489_v0  ;;  %v1741_v57 = vstv %s4758_s23  ;;  %s4978_s21 = sld [smem:[#allocation6 + $0x65]]  ;;  %s4992_s3 = sld [smem:[#allocation6 + $0x6e]] }
  0x95   : > { %8880 = sst [smem:[#allocation63_spill]] %s4770_s20  ;;  %v1757_v36 = vstv %s4772_s10  ;;  %s4882_s10 = sld [smem:[#allocation6 + $0xb]] }
  0x96   : > { %8890 = vst [vmem:[#allocation68_spill] sm:$0xff] %v4836_v39  ;;  %v1773_v32 = vstv %s4783_s30  ;;  %v4870_v43 = vmul.f32 %v1757_v36, %v4489_v0  ;;  %s4880_s30 = sld [smem:[#allocation6 + $0x2]]  ;;  %s4929_s20 = sld [smem:[#allocation6 + $0x41]] }
  0x97   : > { %8886 = sst [smem:[#allocation27_spill]] %s4812_s13  ;;  %v1789_v38 = vstv %s4793_s17  ;;  %v4878_v33 = vmul.f32 %v1773_v32, %v4489_v0  ;;  %s4895_s17 = sld [smem:[#allocation6 + $0x14]] }
  0x98   : > { %8895 = vst [vmem:[#allocation72_spill] sm:$0xff] %v4870_v43  ;;  %8905 = sst [smem:[#allocation31_spill]] %s4927_s5  ;;  %s5046_s5 = sld [smem:[#allocation6 + $0x46]] }
  0x99   : > { %8896 = vst [vmem:[#allocation73_spill] sm:$0xff] %v4878_v33  ;;  %8908 = sst [smem:[#allocation79_spill]] %s4945_s7  ;;  %s5062_s7 = sld [smem:[#allocation6 + $0x6a]] }
  0x9a   : > { %8910 = sst [smem:[#allocation81_spill]] %s4963_s4  ;;  %s5002_s23 = sld [smem:[#allocation6 + $0x77]] }
  0x9b   : > { %8898 = sst [smem:[#allocation29_spill]] %s4882_s10  ;;  %s5014_s10 = sld [smem:[#allocation6 + $0x89]] }
  0x9c   : > { %8897 = sst [smem:[#allocation30_spill]] %s4880_s30  ;;  %s5012_s30 = sld [smem:[#allocation6 + $0x80]] }
  0x9d   : > { %8900 = sst [smem:[#allocation75_spill]] %s4895_s17  ;;  %s5076_s13 = sld [smem:[#allocation6 + $0x85]] }
  0x9e   : > { %8912 = sst [smem:[#allocation33_spill]] %s4978_s21  ;;  %s5140_s21 = sld [smem:[#allocation6 + $0x54]] }
  0x9f   : > { %8913 = sst [smem:[#allocation82_spill]] %s4992_s3  ;;  %s5122_s3 = sld [smem:[#allocation6 + $0x39]] }
  0xa0   : > { %8914 = sst [smem:[#allocation83_spill]] %s5002_s23  ;;  %s5118_s23 = sld [smem:[#allocation6 + $0x30]] }
  0xa1   : > { %8916 = sst [smem:[#allocation85_spill]] %s5014_s10  ;;  %s5138_s10 = sld [smem:[#allocation6 + $0x4b]] }
  0xa2   : > { %8915 = sst [smem:[#allocation84_spill]] %s5012_s30  ;;  %s5124_s30 = sld [smem:[#allocation6 + $0x42]] }
  0xa3   : > { %s5156_s4 = sld [smem:[#allocation6 + $0x66]]  ;;  %s5188_s17 = sld [smem:[#allocation6 + $0x81]] }
  0xa4   : > { %8940 = sst [smem:[#allocation98_spill]] %s5140_s21  ;;  %s5190_s11 = sld [smem:[#allocation6 + $0x8a]] }
  0xa5   : > { %s5250_s9 = sld [smem:[#allocation6 + $0x56]]  ;;  %s9027_s21 = sld [smem:[#allocation37_spill]] }
  0xa6   : > { %8931 = sst [smem:[#allocation93_spill]] %s5118_s23  ;;  %s5372_s23 = sld [smem:[#allocation6 + $0x60]] }
  0xa7   : > { %8939 = sst [smem:[#allocation97_spill]] %s5138_s10 }
  0xa8   : > { %8934 = sst [smem:[#allocation94_spill]] %s5124_s30  ;;  %s5382_s30 = sld [smem:[#allocation6 + $0x7b]] }
  0xa9   : > { %8946 = sst [smem:[#allocation102_spill]] %s5156_s4  ;;  %s9029_s4 = sld [smem:[#allocation39_spill]] }
  0xab   : > { %8974 = sst [smem:[#allocation123_spill]] %s5250_s9  ;;  %s5272_s9 = sld [smem:[#allocation6 + $0x71]] }
  0xac   : > { %9011 = sst [smem:[#allocation147_spill]] %s5372_s23 }
  0xe1   : > { %v322_v6 = vpop.permute.xlu1 %321 }
  0xe3   : > { %v223_v2 = vpop.permute.xlu0 %222 }
  0xe5   : > { %v324_v7 = vpop.permute.xlu1 %323 }
  0xe6   : > { %v4542_v8 = vsel %vm325_vm1, %v322_v6, %v324_v7  ;;  %v4545_v9 = vsel %vm325_vm1, %v324_v7, %v322_v6  ;;  %v1389_v6 = vstv %s4745_s29  ;;  %s4897_s29 = sld [smem:[#allocation6 + $0x1d]] }
  0xe7   : > { %v226_v3 = vpop.permute.xlu0 %225  ;;  %8840 = vst [vmem:[#allocation26_spill] sm:$0xff] %v4545_v9  ;;  %v4847_v42 = vmul.f32 %v1389_v6, %v4489_v0 }
  0xe8   : > { %v4504_v4 = vsel %vm227_vm0, %v226_v3, %v223_v2  ;;  %v4507_v5 = vsel %vm227_vm0, %v223_v2, %v226_v3  ;;  %v4727_v2 = vmul.f32 %v589_v53, %v4489_v0  ;;  %v989_v3 = vstv %s4680_s15  ;;  %s4781_s15 = sld [smem:[#allocation6 + $0x75]] }
  0xe9   : > { %236 = vrot.lane.b32.xlu1 %v4507_v5, %s8370_s22  ;;  %232 = vrot.lane.b32.xlu0 %v4504_v4, %s8370_s22  ;;  %v4721_v62 = vmul.f32 %v421_v13, %v4507_v5  ;;  %v4740_v10 = vmul.f32 %v821_v15, %v4507_v5  ;;  %v4750_v41 = vmul.f32 %v415_v12, %v4507_v5 }
  0xea   : > { %8876 = vst [vmem:[#allocation59_spill] sm:$0xff] %v4727_v2  ;;  %v4767_v7 = vmul.f32 %v815_v14, %v4507_v5  ;;  %v4833_v59 = vmul.f32 %v1215_v16, %v4507_v5  ;;  %8892 = vst [vmem:[#allocation70_spill] sm:$0xff] %v4847_v42  ;;  %v4857_v54 = vmul.f32 %v1621_v19, %v4507_v5 }
  0xeb   : > { %v4890_v35 = vmul.f32 %v1615_v18, %v4507_v5  ;;  %v4907_v6 = vmul.f32 %v421_v13, %v4504_v4  ;;  %v4920_v32 = vmul.f32 %v821_v15, %v4504_v4  ;;  %v4925_v13 = vmul.f32 %v1221_v17, %v4504_v4 }
  0xec   : > { %8901 = sst [smem:[#allocation76_spill]] %s4897_s29  ;;  %v4938_v15 = vmul.f32 %v415_v12, %v4504_v4  ;;  %v4956_v12 = vmul.f32 %v815_v14, %v4504_v4  ;;  %v4976_v14 = vmul.f32 %v8448_v21, %v4507_v5  ;;  %v4985_v36 = vmul.f32 %v1615_v18, %v4504_v4  ;;  %s5032_s29 = sld [smem:[#allocation6 + $0x19]] }
  0xed   : > { %245 = vrot.lane.b32.xlu1 %v4504_v4, %s8380_s25  ;;  %243 = vrot.lane.b32.xlu0 %v4507_v5, %s8380_s25  ;;  %v5000_v34 = vmul.f32 %v8446_v24, %v4507_v5  ;;  %v5010_v30 = vmul.f32 %v8447_v25, %v4507_v5 }
  0xee   : > { %8882 = sst [smem:[#allocation28_spill]] %s4781_s15  ;;  %s8906_s15 = sld [smem:[#allocation32_spill]] }
  0xef   : > { %8907 = sst [smem:[#allocation32_spill]] %s4929_s20  ;;  %s5044_s20 = sld [smem:[#allocation6 + $0x3d]] }
  0xf1   : > { %260 = vrot.lane.b32.xlu1 %v4507_v5, %s8378_s26  ;;  %257 = vrot.lane.b32.xlu0 %v4504_v4, %s8378_s26 }
  0xf4   : > { %v8917_v37 = vstv %s8906_s15  ;;  %s5078_s15 = sld [smem:[#allocation6 + $0x8e]] }
  0xf5   : > { %269 = vrot.lane.b32.xlu1 %v4504_v4, %s8376_s27  ;;  %267 = vrot.lane.b32.xlu0 %v4507_v5, %s8376_s27  ;;  %v1107_v55 = vstv %s5044_s20  ;;  %s5236_s20 = sld [smem:[#allocation6 + $0x3b]] }
  0xf9   : > { %284 = vrot.lane.b32.xlu1 %v4489_v0, %s8370_s22  ;;  %281 = vrot.lane.b32.xlu0 %v4493_v1, %s8370_s22 }
  0xfd   : > { %292 = vrot.lane.b32.xlu1 %v4493_v1, %s8380_s25  ;;  %290 = vrot.lane.b32.xlu0 %v4489_v0, %s8380_s25 }
 0x101   : > { %304 = vrot.lane.b32.xlu1 %v4489_v0, %s8378_s26  ;;  %301 = vrot.lane.b32.xlu0 %v4493_v1, %s8378_s26  ;;  %s4583_s26 = sld [smem:[#allocation6 + $0x7f]] }
 0x105   : > { %312 = vrot.lane.b32.xlu1 %v4493_v1, %s8376_s27  ;;  %310 = vrot.lane.b32.xlu0 %v4489_v0, %s8376_s27  ;;  %s4581_s27 = sld [smem:[#allocation6 + $0x64]] }
 0x107   : > { %v8457_v28 = vstv %s4583_s26  ;;  %v8924_v33 = vstv %s4583_s26  ;;  %s5116_s26 = sld [smem:[#allocation6 + $0x27]] }
 0x108   : > { %v5030_v21 = vmul.f32 %v8457_v28, %v4507_v5  ;;  %v5053_v28 = vmul.f32 %v433_v20, %v4504_v4 }
 0x109   : > { %335 = vrot.lane.b32.xlu1 %v4542_v8, %s8370_s22  ;;  %332 = vrot.lane.b32.xlu0 %v4545_v9, %s8370_s22  ;;  %s4575_s22 = sld [smem:[#allocation6 + $0x37]] }
 0x10b   : > { %v8463_v27 = vstv %s4581_s27 }
 0x10c   : > { %v5022_v31 = vmul.f32 %v8463_v27, %v4507_v5  ;;  %v5101_v27 = vmul.f32 %v8924_v33, %v4504_v4 }
 0x10d   : > { %343 = vrot.lane.b32.xlu1 %v4545_v9, %s8380_s25  ;;  %341 = vrot.lane.b32.xlu0 %v4542_v8, %s8380_s25  ;;  %s4591_s25 = sld [smem:[#allocation6 + $0x7]]  ;;  %8930 = sst [smem:[#allocation92_spill]] %s5116_s26 }
 0x10e   : > { %8925 = vst [vmem:[#allocation88_spill] sm:$0xff] %v5101_v27  ;;  %s5374_s26 = sld [smem:[#allocation6 + $0x69]] }
 0x10f   : > { %v8441_v23 = vstv %s4575_s22  ;;  %v8918_v18 = vstv %s4575_s22  ;;  %s5094_s22 = sld [smem:[#allocation6 + $0xc]] }
 0x110   : > { %v5069_v25 = vmul.f32 %v8918_v18, %v4504_v4  ;;  %v8921_v18 = vstv %s4581_s27  ;;  %s5108_s27 = sld [smem:[#allocation6 + $0x15]] }
 0x111   : > { %355 = vrot.lane.b32.xlu1 %v4542_v8, %s8848_s1  ;;  %352 = vrot.lane.b32.xlu0 %v4545_v9, %s8848_s1  ;;  %s4631_s1 = sld [smem:[#allocation6 + $0x16]]  ;;  %v5090_v1 = vmul.f32 %v8921_v18, %v4504_v4 }
 0x113   : > { %8849 = sst [smem:[#allocation34_spill]] %s4591_s25 }
 0x114   : > { %s4672_s25 = sld [smem:[#allocation6 + $0x3a]]  ;;  %9012 = sst [smem:[#allocation148_spill]] %s5374_s26 }
 0x115   : > { %363 = vrot.lane.b32.xlu1 %v4545_v9, %s8852_s12  ;;  %361 = vrot.lane.b32.xlu0 %v4542_v8, %s8852_s12  ;;  %s4625_s12 = sld [smem:[#allocation6 + $0xd]]  ;;  %8923 = sst [smem:[#allocation87_spill]] %s5094_s22 }
 0x116   : > { %8928 = sst [smem:[#allocation90_spill]] %s5108_s27  ;;  %s5352_s22 = sld [smem:[#allocation6 + $0x4e]] }
 0x117   : > { %v573_v51 = vstv %s4631_s1  ;;  %s4714_s1 = sld [smem:[#allocation6 + $0x5a]]  ;;  %s9028_s26 = sld [smem:[#allocation38_spill]] }
 0x118   : > { %v4724_v63 = vmul.f32 %v573_v51, %v4489_v0  ;;  %v4755_v51 = vmul.f32 %v957_v61, %v4489_v0  ;;  %v4800_v61 = vmul.f32 %v989_v3, %v4489_v0  ;;  %v1373_v3 = vstv %s4732_s24  ;;  %s4909_s24 = sld [smem:[#allocation6 + $0x26]] }
 0x11a   : > { %8875 = vst [vmem:[#allocation58_spill] sm:$0xff] %v4724_v63  ;;  %8879 = vst [vmem:[#allocation62_spill] sm:$0xff] %v4755_v51  ;;  %v973_v53 = vstv %s4672_s25  ;;  %s4947_s25 = sld [smem:[#allocation6 + $0x53]] }
 0x11b   : > { %v557_v46 = vstv %s4625_s12  ;;  %s4704_s12 = sld [smem:[#allocation6 + $0x51]]  ;;  %v4791_v60 = vmul.f32 %v973_v53, %v4489_v0  ;;  %8884 = vst [vmem:[#allocation65_spill] sm:$0xff] %v4800_v61  ;;  %v4809_v53 = vmul.f32 %v1221_v17, %v4507_v5  ;;  %v4943_v17 = vmul.f32 %v1621_v19, %v4504_v4 }
 0x11c   : > { %v4709_v58 = vmul.f32 %v557_v46, %v4489_v0  ;;  %v1341_v46 = vstv %s4706_s16  ;;  %s4818_s16 = sld [smem:[#allocation6 + $0x87]]  ;;  %v4961_v19 = vmul.f32 %v433_v20, %v4507_v5  ;;  %v8919_v20 = vstv %s4577_s18  ;;  %s5092_s18 = sld [smem:[#allocation6 + $0x3]] }
 0x11d   : > { %8874 = sst [smem:[#allocation57_spill]] %s4714_s1  ;;  %8883 = vst [vmem:[#allocation64_spill] sm:$0xff] %v4791_v60  ;;  %v4825_v40 = vmul.f32 %v1341_v46, %v4489_v0  ;;  %v4843_v46 = vmul.f32 %v1373_v3, %v4489_v0  ;;  %v4860_v3 = vmul.f32 %v1741_v57, %v4489_v0  ;;  %v4893_v57 = vmul.f32 %v1789_v38, %v4489_v0  ;;  %s5214_s1 = sld [smem:[#allocation6 + $0x20]] }
 0x11e   : > { %8873 = vst [vmem:[#allocation56_spill] sm:$0xff] %v4709_v58  ;;  %8902 = sst [smem:[#allocation77_spill]] %s4909_s24  ;;  %v4971_v38 = vmul.f32 %v1215_v16, %v4504_v4  ;;  %v4990_v16 = vmul.f32 %v8441_v23, %v4507_v5  ;;  %s5034_s24 = sld [smem:[#allocation6 + $0x22]]  ;;  %v5042_v23 = vmul.f32 %v8462_v29, %v4507_v5  ;;  %v5058_v0 = vmul.f32 %v8917_v37, %v4504_v4 }
 0x11f   : > { %8889 = vst [vmem:[#allocation67_spill] sm:$0xff] %v4825_v40  ;;  %8891 = vst [vmem:[#allocation69_spill] sm:$0xff] %v4843_v46  ;;  %v5074_v29 = vmul.f32 %v8919_v20, %v4504_v4  ;;  %v8920_v5 = vstv %s8911_s6  ;;  %s5110_s6 = sld [smem:[#allocation6 + $0x1e]]  ;;  %v8941_v20 = vstv %s4597_s14  ;;  %s5168_s14 = sld [smem:[#allocation6 + $0x6f]] }
 0x120   : > { %8894 = vst [vmem:[#allocation71_spill] sm:$0xff] %v4860_v3  ;;  %8899 = vst [vmem:[#allocation74_spill] sm:$0xff] %v4893_v57  ;;  %8909 = sst [smem:[#allocation80_spill]] %s4947_s25  ;;  %s5060_s25 = sld [smem:[#allocation6 + $0x61]]  ;;  %v5085_v24 = vmul.f32 %v8920_v5, %v4504_v4  ;;  %v8926_v5 = vstv %s4585_s0  ;;  %v8943_v43 = vmov %v8941_v20 }
 0x121   : > { %8872 = sst [smem:[#allocation55_spill]] %s4704_s12  ;;  %v5106_v37 = vmul.f32 %v8926_v5, %v4504_v4  ;;  %s8932_s0 = sld [smem:[#allocation34_spill]]  ;;  %v8935_v5 = vstv %s4593_s2  ;;  %v5150_v52 = vmul.f32 %v8943_v43, %v4545_v9 }
 0x122   : > { %8887 = sst [smem:[#allocation66_spill]] %s4818_s16  ;;  %s4911_s16 = sld [smem:[#allocation6 + $0x2f]]  ;;  %v5129_v56 = vmul.f32 %v8935_v5, %v4542_v8  ;;  %v8937_v18 = vmov %v8935_v5  ;;  %v5145_v5 = vmul.f32 %v8941_v20, %v4542_v8  ;;  %v8949_v20 = vstv %s4601_s28 }
 0x123   : > { %8922 = sst [smem:[#allocation86_spill]] %s5092_s18  ;;  %8927 = vst [vmem:[#allocation89_spill] sm:$0xff] %v5106_v37  ;;  %v5134_v57 = vmul.f32 %v8937_v18, %v4545_v9  ;;  %8944 = vst [vmem:[#allocation100_spill] sm:$0xff] %v5150_v52  ;;  %s5154_s2 = sld [smem:[#allocation6 + $0x5d]]  ;;  %v5166_v42 = vmul.f32 %v8949_v20, %v4542_v8  ;;  %v8955_v18 = vstv %s4595_s8 }
 0x124   : > { %8933 = sst [smem:[#allocation34_spill]] %s5122_s3  ;;  %8936 = vst [vmem:[#allocation95_spill] sm:$0xff] %v5129_v56  ;;  %8942 = vst [vmem:[#allocation99_spill] sm:$0xff] %v5145_v5  ;;  %v5180_v61 = vmul.f32 %v8955_v18, %v4542_v8  ;;  %v719_v18 = vstv %s5034_s24  ;;  %s5202_s28 = sld [smem:[#allocation6 + $0xe]]  ;;  %v5245_v5 = vmul.f32 %v1107_v55, %v4545_v9 }
 0x125   : > { %8929 = sst [smem:[#allocation91_spill]] %s5110_s6  ;;  %8938 = vst [vmem:[#allocation96_spill] sm:$0xff] %v5134_v57  ;;  %8950 = vst [vmem:[#allocation104_spill] sm:$0xff] %v5166_v42  ;;  %v5233_v52 = vmul.f32 %v719_v18, %v4545_v9  ;;  %s5238_s12 = sld [smem:[#allocation6 + $0x44]]  ;;  %v5242_v42 = vmul.f32 %v1107_v55, %v4542_v8 }
 0x126   : > { %8951 = sst [smem:[#allocation105_spill]] %s5168_s14  ;;  %8956 = vst [vmem:[#allocation108_spill] sm:$0xff] %v5180_v61  ;;  %v5230_v61 = vmul.f32 %v719_v18, %v4542_v8  ;;  %8972 = vst [vmem:[#allocation121_spill] sm:$0xff] %v5245_v5  ;;  %s5354_s18 = sld [smem:[#allocation6 + $0x57]] }
 0x127   : > { %v8947_v4 = vstv %s8932_s0  ;;  %s5200_s0 = sld [smem:[#allocation6 + $0x5]]  ;;  %8963 = sst [smem:[#allocation112_spill]] %s5214_s1  ;;  %8969 = vst [vmem:[#allocation118_spill] sm:$0xff] %v5233_v52  ;;  %8971 = vst [vmem:[#allocation120_spill] sm:$0xff] %v5242_v42 }
 0x128   : > { %8903 = sst [smem:[#allocation78_spill]] %s4911_s16  ;;  %v5161_v3 = vmul.f32 %v8947_v4, %v4542_v8  ;;  %s5170_s16 = sld [smem:[#allocation6 + $0x78]]  ;;  %v8953_v43 = vmov %v8947_v4  ;;  %v8957_v4 = vmov %v8949_v20  ;;  %v707_v20 = vstv %s5032_s29  ;;  %8968 = vst [vmem:[#allocation117_spill] sm:$0xff] %v5230_v61 }
 0x129   : > { %8945 = sst [smem:[#allocation101_spill]] %s5154_s2  ;;  %v5175_v33 = vmul.f32 %v8953_v43, %v4545_v9  ;;  %v8959_v43 = vstv %s4605_s19  ;;  %v5218_v2 = vmul.f32 %v707_v20, %v4542_v8  ;;  %v5221_v57 = vmul.f32 %v707_v20, %v4545_v9  ;;  %s5224_s24 = sld [smem:[#allocation6 + $0x29]] }
 0x12a   : > { %8948 = vst [vmem:[#allocation103_spill] sm:$0xff] %v5161_v3  ;;  %v5185_v3 = vmul.f32 %v8957_v4, %v4545_v9  ;;  %v8961_v46 = vmov %v8959_v43  ;;  %s5212_s29 = sld [smem:[#allocation6 + $0x17]]  ;;  %v1119_v4 = vstv %s5046_s5  ;;  %s5226_s19 = sld [smem:[#allocation6 + $0x32]]  ;;  %v1907_v20 = vstv %s5076_s13 }
 0x12b   : > { %8954 = vst [vmem:[#allocation107_spill] sm:$0xff] %v5175_v33  ;;  %v5197_v33 = vmul.f32 %v8959_v43, %v4542_v8  ;;  %v5209_v60 = vmul.f32 %v8961_v46, %v4545_v9  ;;  %8964 = vst [vmem:[#allocation113_spill] sm:$0xff] %v5218_v2  ;;  %v1507_v43 = vstv %s5060_s25  ;;  %8970 = sst [smem:[#allocation119_spill]] %s5238_s12  ;;  %v1519_v46 = vstv %s5062_s7  ;;  %s5248_s5 = sld [smem:[#allocation6 + $0x4d]] }
 0x12c   : > { %8958 = vst [vmem:[#allocation109_spill] sm:$0xff] %v5185_v3  ;;  %8965 = vst [vmem:[#allocation114_spill] sm:$0xff] %v5221_v57  ;;  %v5254_v3 = vmul.f32 %v1119_v4, %v4542_v8  ;;  %v5257_v56 = vmul.f32 %v1119_v4, %v4545_v9  ;;  %s5260_s25 = sld [smem:[#allocation6 + $0x5f]]  ;;  %s5262_s12 = sld [smem:[#allocation6 + $0x68]]  ;;  %v5267_v49 = vmul.f32 %v1507_v43, %v4542_v8 }
 0x12d   : > { %8960 = vst [vmem:[#allocation110_spill] sm:$0xff] %v5197_v33  ;;  %8962 = vst [vmem:[#allocation111_spill] sm:$0xff] %v5209_v60  ;;  %v5270_v18 = vmul.f32 %v1507_v43, %v4545_v9  ;;  %s8981_s7 = sld [smem:[#allocation35_spill]]  ;;  %s5274_s13 = sld [smem:[#allocation6 + $0x7a]]  ;;  %v5279_v55 = vmul.f32 %v1519_v46, %v4542_v8  ;;  %v5282_v33 = vmul.f32 %v1519_v46, %v4545_v9  ;;  %v1919_v60 = vstv %s5078_s15 }
 0x12e   : > { %8952 = sst [smem:[#allocation106_spill]] %s5170_s16  ;;  %8975 = vst [vmem:[#allocation124_spill] sm:$0xff] %v5254_v3  ;;  %8976 = vst [vmem:[#allocation125_spill] sm:$0xff] %v5257_v56  ;;  %v5291_v4 = vmul.f32 %v1907_v20, %v4542_v8  ;;  %v8989_v46 = vstv %s4595_s8  ;;  %s5312_s15 = sld [smem:[#allocation6 + $0x21]]  ;;  %v5333_v57 = vmul.f32 %v1907_v20, %v4545_v9  ;;  %v9003_v43 = vand.u32 15, %v4611_v11 }
 0x12f   : > { %8966 = sst [smem:[#allocation115_spill]] %s5224_s24  ;;  %8979 = vst [vmem:[#allocation128_spill] sm:$0xff] %v5267_v49  ;;  %8980 = vst [vmem:[#allocation129_spill] sm:$0xff] %v5270_v18  ;;  %v5301_v52 = vmul.f32 %v8989_v46, %v4545_v9  ;;  %s5326_s8 = sld [smem:[#allocation6 + $0x2a]]  ;;  %v9008_v20 = vmov 0 }
 0x130   : > { %8967 = sst [smem:[#allocation116_spill]] %s5226_s19  ;;  %8984 = vst [vmem:[#allocation131_spill] sm:$0xff] %v5279_v55  ;;  %8985 = vst [vmem:[#allocation132_spill] sm:$0xff] %v5282_v33  ;;  %vm5358_vm4 = vcmp.ge.s32.totalorder %v9003_v43, 1  ;;  %v9007_v33 = vand.u32 15, %v4640_v22  ;;  %s9013_s6 = sld [smem:[#allocation119_spill]] }
 0x131   : > { %8973 = sst [smem:[#allocation122_spill]] %s5248_s5  ;;  %s5286_s5 = sld [smem:[#allocation6 + $0x8c]]  ;;  %8988 = vst [vmem:[#allocation134_spill] sm:$0xff] %v5291_v4  ;;  %8990 = vst [vmem:[#allocation135_spill] sm:$0xff] %v5301_v52 }
 0x132   : > { %8977 = sst [smem:[#allocation126_spill]] %s5260_s25  ;;  %s5284_s25 = sld [smem:[#allocation6 + $0x83]]  ;;  %8999 = vst [vmem:[#allocation141_spill] sm:$0xff] %v5333_v57  ;;  %vm5364_vm5 = vcmp.ge.s32.totalorder %v9007_v33, 1 }
 0x133   : > { %8978 = sst [smem:[#allocation127_spill]] %s5262_s12  ;;  %s8986_s12 = sld [smem:[#allocation36_spill]]  ;;  %v8991_v61 = vstv %s8981_s7  ;;  %v9009_v20 = vsel %vm5364_vm5, 4294967295, %v9008_v20 }
 0x134   : > { %8982 = sst [smem:[#allocation35_spill]] %s5272_s9  ;;  %s5296_s9 = sld [smem:[#allocation6 + $0xf]]  ;;  %v5306_v2 = vmul.f32 %v8991_v61, %v4542_v8  ;;  %v8995_v5 = vmov %v8991_v61  ;;  %9010 = vst [vmem:[#allocation146_spill] sm:$0xff] %v9009_v20 }
 0x135   : > { %8983 = sst [smem:[#allocation130_spill]] %s5274_s13  ;;  %s5294_s13 = sld [smem:[#allocation6 + $0x6]]  ;;  %v5317_v42 = vmul.f32 %v8995_v5, %v4545_v9  ;;  %v5346_v5 = vmul.f32 %v1919_v60, %v4545_v9 }
 0x136   : > { %8992 = vst [vmem:[#allocation136_spill] sm:$0xff] %v5306_v2  ;;  %8994 = sst [smem:[#allocation138_spill]] %s5312_s15  ;;  %s5340_s7 = sld [smem:[#allocation6 + $0x3c]] }
 0x137   : > { %8987 = sst [smem:[#allocation133_spill]] %s5286_s5  ;;  %s5310_s5 = sld [smem:[#allocation6 + $0x18]]  ;;  %8996 = vst [vmem:[#allocation139_spill] sm:$0xff] %v5317_v42  ;;  %9001 = vst [vmem:[#allocation143_spill] sm:$0xff] %v5346_v5 }
 0x138   : > { %9002 = sst [smem:[#allocation144_spill]] %s5354_s18  ;;  %s9015_s18 = sld [smem:[#allocation123_spill]] }
 0x139   : > { %v8997_v46 = vstv %s8986_s12  ;;  %s5342_s12 = sld [smem:[#allocation6 + $0x45]]  ;;  %s9014_s27 = sld [smem:[#allocation122_spill]] }
 0x13a   : > { %v5322_v52 = vmul.f32 %v8997_v46, %v4542_v8  ;;  %v5336_v46 = vmul.f32 %v1919_v60, %v4542_v8  ;;  %v9004_v60 = vmov 0  ;;  %s5380_s3 = sld [smem:[#allocation6 + $0x72]]  ;;  %9016 = sst [smem:[#allocation119_spill]] %s5382_s30 }
 0x13b   : > { %v9005_v60 = vsel %vm5358_vm4, 4294967295, %v9004_v60  ;;  %s9017_s10 = sld [smem:[#allocation126_spill]]  ;;  %s9019_s23 = sld [smem:[#allocation35_spill]] }
 0x13c   : > { %8998 = vst [vmem:[#allocation140_spill] sm:$0xff] %v5322_v52  ;;  %9000 = vst [vmem:[#allocation142_spill] sm:$0xff] %v5336_v46  ;;  %s5392_s16 = sld [smem:[#allocation6 + $0x84]]  ;;  %s5394_s2 = sld [smem:[#allocation6 + $0x8d]]  ;;  %v9032_v46 = vstv %s9027_s21  ;;  %v9034_v52 = vstv %s9028_s26 }
 0x13d   : > { %8993 = sst [smem:[#allocation137_spill]] %s5310_s5  ;;  %s5328_s5 = sld [smem:[#allocation6 + $0x33]]  ;;  %9006 = vst [vmem:[#allocation145_spill] sm:$0xff] %v9005_v60 }
 0x13e   : > { %s9022_s14 = sld [smem:[#allocation137_spill]]  ;;  %s9025_s19 = sld [smem:[#allocation147_spill]] }
 0x13f   : > { %s9026_s1 = sld [smem:[#allocation148_spill]]  ;;  %s9030_s15 = sld [smem:[#allocation40_spill]] }
 0x140   : > { %s9031_s24 = sld [smem:[#allocation41_spill]]  ;;  %s9036_s30 = sld [smem:[#allocation42_spill]] }
 0x141   : > { %s9042_s21 = sld [smem:[#allocation44_spill]]  ;;  %s9052_s26 = sld [smem:[#allocation55_spill]] }
 0x142   : > { %9023 = sst [smem:[#allocation122_spill]] %s5394_s2  ;;  %s9039_s2 = sld [smem:[#allocation43_spill]] }
 0x15b   : > { %v237_v18 = vpop.permute.xlu1 %236  ;;  %v233_v33 = vpop.permute.xlu0 %232 }
 0x15c   : > { %v239_v57 = vsel %vm238_vm2, %v237_v18, %v233_v33  ;;  %v242_v9 = vsel %vm238_vm2, %v233_v33, %v237_v18  ;;  %v9033_v18 = vmov %v9032_v46 }
 0x15f   : > { %v246_v49 = vpop.permute.xlu1 %245  ;;  %v244_v3 = vpop.permute.xlu0 %243 }
 0x160   : > { %v248_v4 = vsel %vm247_vm3, %v244_v3, %v246_v49  ;;  %v252_v55 = vsel %vm247_vm3, %v246_v49, %v244_v3  ;;  %v9035_v3 = vmov %v9034_v52 }
 0x161   : > { %v5426_v56 = vsel %vm5358_vm4, %v242_v9, %v248_v4  ;;  %v5430_v61 = vsel %vm5364_vm5, %v239_v57, %v252_v55  ;;  %v9037_v4 = vstv %s9029_s4  ;;  %s9049_s4 = sld [smem:[#allocation52_spill]] }
 0x162   : > { %v374_v5 = vmul.f32 %v9032_v46, %v5426_v56  ;;  %v375_v33 = vmul.f32 %v9033_v18, %v5430_v61  ;;  %v380_v49 = vmul.f32 %v9034_v52, %v5426_v56  ;;  %v381_v9 = vmul.f32 %v9035_v3, %v5430_v61 }
 0x163   : > { %v392_v57 = vmul.f32 %v9037_v4, %v5426_v56  ;;  %v9038_v55 = vmov %v9037_v4  ;;  %v9040_v46 = vstv %s9030_s15  ;;  %v9043_v3 = vstv %s9031_s24  ;;  %s9063_s24 = sld [smem:[#allocation63_spill]]  ;;  %s9067_s15 = sld [smem:[#allocation28_spill]] }
 0x164   : > { %v393_v2 = vmul.f32 %v9038_v55, %v5430_v61  ;;  %v404_v43 = vmul.f32 %v9040_v46, %v5426_v56  ;;  %v9041_v18 = vmov %v9040_v46  ;;  %v384_v8 = vrot.slane %v380_v49, 1 }
 0x165   : > { %v405_v52 = vmul.f32 %v9041_v18, %v5430_v61  ;;  %v385_v42 = vrot.slane %v381_v9, 1  ;;  %v774_v63 = vmul.f32 %v9043_v3, %v5426_v56  ;;  %v9044_v4 = vmov %v9043_v3 }
 0x166   : > { %v775_v39 = vmul.f32 %v9044_v4, %v5430_v61  ;;  %v396_v40 = vrot.slane %v392_v57, 2  ;;  %v397_v51 = vrot.slane %v393_v2, 2  ;;  %v408_v55 = vrot.slane %v404_v43, 3 }
 0x167   : > { %v409_v26 = vrot.slane %v405_v52, 3  ;;  %v388_v48 = vadd.f32 %v384_v8, %v374_v5  ;;  %v389_v47 = vadd.f32 %v385_v42, %v375_v33  ;;  %v9045_v46 = vstv %s9036_s30  ;;  %s9053_s30 = sld [smem:[#allocation57_spill]] }
 0x168   : > { %v780_v58 = vmul.f32 %v9045_v46, %v5426_v56  ;;  %v9046_v18 = vmov %v9045_v46  ;;  %v9047_v49 = vstv %s9039_s2  ;;  %v9050_v57 = vstv %s9042_s21  ;;  %s9058_s2 = sld [smem:[#allocation60_spill]]  ;;  %s9069_s21 = sld [smem:[#allocation27_spill]] }
 0x169   : > { %v781_v45 = vmul.f32 %v9046_v18, %v5430_v61  ;;  %v792_v9 = vmul.f32 %v9047_v49, %v5426_v56  ;;  %v9048_v3 = vmov %v9047_v49  ;;  %v804_v2 = vmul.f32 %v9050_v57, %v5426_v56 }
 0x16a   : > { %v793_v44 = vmul.f32 %v9048_v3, %v5430_v61  ;;  %v9051_v5 = vmov %v9050_v57  ;;  %v400_v8 = vadd.f32 %v396_v40, %v388_v48  ;;  %v401_v43 = vadd.f32 %v397_v51, %v389_v47 }
 0x16b   : > { %v805_v42 = vmul.f32 %v9051_v5, %v5430_v61  ;;  %v784_v33 = vrot.slane %v780_v58, 1  ;;  %v785_v52 = vrot.slane %v781_v45, 1  ;;  %v796_v4 = vrot.slane %v792_v9, 2 }
 0x16c   : > { %v797_v46 = vrot.slane %v793_v44, 2  ;;  %v808_v18 = vrot.slane %v804_v2, 3  ;;  %v412_v50 = vadd.f32 %v408_v55, %v400_v8  ;;  %v413_v3 = vadd.f32 %v409_v26, %v401_v43 }
 0x16d   : > { %v809_v49 = vrot.slane %v805_v42, 3  ;;  %v788_v20 = vadd.f32 %v784_v33, %v774_v63  ;;  %v789_v60 = vadd.f32 %v785_v52, %v775_v39  ;;  %v9054_v57 = vstv %s9049_s4  ;;  %s9072_s4 = sld [smem:[#allocation66_spill]] }
 0x16e   : > { %v1174_v37 = vmul.f32 %v9054_v57, %v5426_v56  ;;  %v9055_v5 = vmov %v9054_v57  ;;  %v9056_v40 = vstv %s9052_s26  ;;  %v418_v48 = vadd.f32 %v4750_v41, %v412_v50  ;;  %v261_v57 = vpop.permute.xlu1 %260  ;;  %s9088_s26 = sld [smem:[#allocation30_spill]] }
 0x16f   : > { %v1175_v27 = vmul.f32 %v9055_v5, %v5430_v61  ;;  %v1180_v47 = vmul.f32 %v9056_v40, %v5426_v56  ;;  %v9057_v45 = vmov %v9056_v40  ;;  %v419_v58 = vadd.f32 %v4938_v15, %v413_v3 }
 0x170   : > { %v1181_v44 = vmul.f32 %v9057_v45, %v5430_v61  ;;  %v800_v51 = vadd.f32 %v796_v4, %v788_v20  ;;  %v801_v26 = vadd.f32 %v797_v46, %v789_v60  ;;  %v9059_v55 = vstv %s9053_s30  ;;  %s9090_s30 = sld [smem:[#allocation29_spill]] }
 0x171   : > { %v1184_v39 = vrot.slane %v1180_v47, 1  ;;  %v1192_v9 = vmul.f32 %v9059_v55, %v5426_v56  ;;  %v9060_v2 = vmov %v9059_v55  ;;  %v9061_v8 = vrot.slane %v4721_v62, 1 }
 0x172   : > { %v1185_v63 = vrot.slane %v1181_v44, 1  ;;  %v1193_v42 = vmul.f32 %v9060_v2, %v5430_v61  ;;  %v9062_v50 = vrot.slane %v4907_v6, 1  ;;  %v812_v15 = vadd.f32 %v808_v18, %v800_v51 }
 0x173   : > { %v430_v43 = vadd.f32 %v9061_v8, %v418_v48  ;;  %v813_v20 = vadd.f32 %v809_v49, %v801_v26  ;;  %v1188_v60 = vadd.f32 %v1184_v39, %v1174_v37  ;;  %v1196_v52 = vrot.slane %v1192_v9, 2 }
 0x174   : > { %v431_v41 = vadd.f32 %v9062_v50, %v419_v58  ;;  %v1189_v33 = vadd.f32 %v1185_v63, %v1175_v27  ;;  %v1197_v4 = vrot.slane %v1193_v42, 2  ;;  %v9064_v46 = vand.u32 15, %v4611_v11  ;;  %v258_v11 = vpop.permute.xlu0 %257 }
 0x175   : > { %v818_v62 = vadd.f32 %v4767_v7, %v812_v15  ;;  %v819_v6 = vadd.f32 %v4956_v12, %v813_v20  ;;  %v9068_v18 = vstv %s9058_s2  ;;  %v9071_v5 = vand.u32 15, %v4640_v22  ;;  %s9094_s2 = sld [smem:[#allocation75_spill]] }
 0x176   : > { %vm5508_vm8 = vcmp.ge.s32.totalorder %v9064_v46, 15  ;;  %v1204_v49 = vmul.f32 %v9068_v18, %v5426_v56  ;;  %v9070_v27 = vmov %v9068_v18  ;;  %v1200_v7 = vadd.f32 %v1196_v52, %v1188_v60 }
 0x177   : > { %v1205_v37 = vmul.f32 %v9070_v27, %v5430_v61  ;;  %vm5522_vm9 = vcmp.ge.s32.totalorder %v9071_v5, 15  ;;  %v1201_v12 = vadd.f32 %v1197_v4, %v1189_v33  ;;  %v9075_v47 = vstv %s9063_s24  ;;  %s9100_s24 = sld [smem:[#allocation76_spill]] }
 0x178   : > { %v1574_v45 = vmul.f32 %v9075_v47, %v5426_v56  ;;  %v9076_v44 = vmov %v9075_v47  ;;  %v9077_v58 = vrot.slane %v4740_v10, 1  ;;  %v9078_v26 = vrot.slane %v4920_v32, 1  ;;  %v270_v47 = vpop.permute.xlu1 %269 }
 0x179   : > { %v1575_v48 = vmul.f32 %v9076_v44, %v5430_v61  ;;  %v1208_v39 = vrot.slane %v1204_v49, 3  ;;  %v1209_v63 = vrot.slane %v1205_v37, 3  ;;  %v9079_v55 = vstv %s9067_s15  ;;  %v268_v44 = vpop.permute.xlu0 %267  ;;  %s9105_s15 = sld [smem:[#allocation77_spill]] }
 0x17a   : > { %v830_v51 = vadd.f32 %v9077_v58, %v818_v62  ;;  %v5536_v22 = vadd.f32 %v9078_v26, %v819_v6  ;;  %v1580_v9 = vmul.f32 %v9079_v55, %v5426_v56  ;;  %v9080_v2 = vmov %v9079_v55 }
 0x17b   : > { %v1581_v42 = vmul.f32 %v9080_v2, %v5430_v61  ;;  %v9081_v8 = vstv %s9069_s21  ;;  %v1212_v10 = vadd.f32 %v1208_v39, %v1200_v7  ;;  %v1213_v60 = vadd.f32 %v1209_v63, %v1201_v12  ;;  %s9109_s21 = sld [smem:[#allocation78_spill]] }
 0x17c   : > { %v1592_v50 = vmul.f32 %v9081_v8, %v5426_v56  ;;  %v9082_v15 = vmov %v9081_v8  ;;  %v9083_v32 = vstv %s9072_s4  ;;  %v1584_v46 = vrot.slane %v1580_v9, 1  ;;  %s9113_s4 = sld [smem:[#allocation31_spill]] }
 0x17d   : > { %v1593_v20 = vmul.f32 %v9082_v15, %v5430_v61  ;;  %v1604_v33 = vmul.f32 %v9083_v32, %v5426_v56  ;;  %v9084_v52 = vmov %v9083_v32  ;;  %v1585_v62 = vrot.slane %v1581_v42, 1 }
 0x17e   : > { %v1605_v4 = vmul.f32 %v9084_v52, %v5430_v61  ;;  %v1596_v6 = vrot.slane %v1592_v50, 2  ;;  %v1218_v49 = vadd.f32 %v4833_v59, %v1212_v10  ;;  %v1219_v27 = vadd.f32 %v4971_v38, %v1213_v60 }
 0x17f   : > { %v1597_v18 = vrot.slane %v1593_v20, 2  ;;  %v1608_v37 = vrot.slane %v1604_v33, 3  ;;  %v1588_v7 = vadd.f32 %v1584_v46, %v1574_v45  ;;  %v1589_v12 = vadd.f32 %v1585_v62, %v1575_v48 }
 0x180   : > { %v1609_v5 = vrot.slane %v1605_v4, 3  ;;  %v263_v58 = vsel %vm262_vm6, %v261_v57, %v258_v11  ;;  %v266_v56 = vsel %vm262_vm6, %v258_v11, %v261_v57  ;;  %v9085_v61 = vrot.slane %v4809_v53, 1 }
 0x181   : > { %v9086_v39 = vrot.slane %v4925_v13, 1  ;;  %v9087_v59 = vrot.slane %v4961_v19, 2  ;;  %v9089_v55 = vrot.slane %v4990_v16, 2  ;;  %v1600_v45 = vadd.f32 %v1596_v6, %v1588_v7 }
 0x182   : > { %v1230_v26 = vadd.f32 %v9085_v61, %v1218_v49  ;;  %v1601_v48 = vadd.f32 %v1597_v18, %v1589_v12  ;;  %v272_v2 = vsel %vm271_vm7, %v268_v44, %v270_v47  ;;  %v276_v57 = vsel %vm271_vm7, %v270_v47, %v268_v44 }
 0x183   : > { %v1231_v63 = vadd.f32 %v9086_v39, %v1219_v27  ;;  %v442_v38 = vadd.f32 %v9087_v59, %v430_v43  ;;  %v842_v9 = vadd.f32 %v9089_v55, %v830_v51  ;;  %v9091_v53 = vrot.slane %v4976_v14, 3 }
 0x184   : > { %v9092_v11 = vrot.slane %v5000_v34, 3  ;;  %v9093_v43 = vrot.slane %v5010_v30, 2  ;;  %v5578_v16 = vsel %vm5508_vm8, %v266_v56, %v272_v2  ;;  %v1612_v51 = vadd.f32 %v1608_v37, %v1600_v45 }
 0x185   : > { %v454_v13 = vadd.f32 %v9091_v53, %v442_v38  ;;  %v1613_v8 = vadd.f32 %v1609_v5, %v1601_v48  ;;  %v5582_v50 = vsel %vm5522_vm9, %v263_v58, %v276_v57  ;;  %v9095_v14 = vrot.slane %v5053_v28, 2 }
 0x186   : > { %v854_v19 = vadd.f32 %v9092_v11, %v842_v9  ;;  %v1242_v42 = vadd.f32 %v9093_v43, %v1230_v26  ;;  %v9096_v34 = vrot.slane %v5022_v31, 3  ;;  %v9097_v30 = vstv %s9088_s26  ;;  %s9116_s26 = sld [smem:[#allocation32_spill]] }
 0x187   : > { %v443_v15 = vadd.f32 %v9095_v14, %v431_v41  ;;  %v458_v10 = vmul.f32 %v9097_v30, %v5578_v16  ;;  %v9098_v60 = vmov %v9097_v30  ;;  %v9099_v33 = vstv %s9090_s30  ;;  %s9119_s30 = sld [smem:[#allocation79_spill]] }
 0x188   : > { %v1254_v20 = vadd.f32 %v9096_v34, %v1242_v42  ;;  %v459_v32 = vmul.f32 %v9098_v60, %v5582_v50  ;;  %v464_v52 = vmul.f32 %v9099_v33, %v5578_v16  ;;  %v1618_v4 = vadd.f32 %v4890_v35, %v1612_v51 }
 0x189   : > { %v1619_v46 = vadd.f32 %v4985_v36, %v1613_v8  ;;  %v9101_v28 = vrot.slane %v5058_v0, 3  ;;  %v9102_v31 = vmov %v9099_v33  ;;  %v460_v6 = vadd.f32 %v458_v10, %v454_v13 }
 0x18a   : > { %v465_v62 = vmul.f32 %v9102_v31, %v5582_v50  ;;  %v468_v18 = vrot.slane %v464_v52, 1  ;;  %v9103_v49 = vstv %s9094_s2  ;;  %v9106_v35 = vrot.slane %v4857_v54, 1  ;;  %s9124_s2 = sld [smem:[#allocation80_spill]] }
 0x18b   : > { %v455_v41 = vadd.f32 %v9101_v28, %v443_v15  ;;  %v476_v27 = vmul.f32 %v9103_v49, %v5578_v16  ;;  %v9104_v37 = vmov %v9103_v49  ;;  %v9107_v0 = vrot.slane %v4943_v17, 1 }
 0x18c   : > { %v477_v5 = vmul.f32 %v9104_v37, %v5582_v50  ;;  %v1630_v36 = vadd.f32 %v9106_v35, %v1618_v4  ;;  %v469_v7 = vrot.slane %v465_v62, 1  ;;  %v472_v12 = vadd.f32 %v468_v18, %v460_v6 }
 0x18d   : > { %v1631_v47 = vadd.f32 %v9107_v0, %v1619_v46  ;;  %v461_v44 = vadd.f32 %v459_v32, %v455_v41  ;;  %v480_v58 = vrot.slane %v476_v27, 2  ;;  %v9108_v61 = vstv %s9100_s24  ;;  %s9127_s24 = sld [smem:[#allocation81_spill]] }
 0x18e   : > { %v481_v56 = vrot.slane %v477_v5, 2  ;;  %v488_v26 = vmul.f32 %v9108_v61, %v5578_v16  ;;  %v9110_v39 = vrot.slane %v5030_v21, 2  ;;  %v9111_v54 = vmov %v9108_v61 }
 0x18f   : > { %v473_v38 = vadd.f32 %v469_v7, %v461_v44  ;;  %v489_v55 = vmul.f32 %v9111_v54, %v5582_v50  ;;  %v9112_v17 = vrot.slane %v5069_v25, 2  ;;  %v484_v45 = vadd.f32 %v480_v58, %v472_v12 }
 0x190   : > { %v1642_v59 = vadd.f32 %v9110_v39, %v1630_v36  ;;  %v492_v48 = vrot.slane %v488_v26, 3  ;;  %v9114_v2 = vstv %s9105_s15  ;;  %v9117_v13 = vrot.slane %v5042_v23, 3  ;;  %s9130_s15 = sld [smem:[#allocation33_spill]] }
 0x191   : > { %v843_v9 = vadd.f32 %v9112_v17, %v5536_v22  ;;  %v858_v57 = vmul.f32 %v9114_v2, %v5578_v16  ;;  %v9115_v53 = vmov %v9114_v2  ;;  %v485_v43 = vadd.f32 %v481_v56, %v473_v38 }
 0x192   : > { %v859_v21 = vmul.f32 %v9115_v53, %v5582_v50  ;;  %v1654_v11 = vadd.f32 %v9117_v13, %v1642_v59  ;;  %v493_v42 = vrot.slane %v489_v55, 3  ;;  %v9118_v25 = vrot.slane %v5074_v29, 3 }
 0x193   : > { %v5635_v22 = vadd.f32 %v492_v48, %v484_v45  ;;  %v860_v8 = vadd.f32 %v858_v57, %v854_v19  ;;  %v9120_v14 = vstv %s9109_s21  ;;  %v9122_v60 = vstv %s9113_s4  ;;  %s9136_s21 = sld [smem:[#allocation82_spill]]  ;;  %s9139_s4 = sld [smem:[#allocation83_spill]] }
 0x194   : > { %v855_v51 = vadd.f32 %v9118_v25, %v843_v9  ;;  %v864_v15 = vmul.f32 %v9120_v14, %v5578_v16  ;;  %v9121_v34 = vmov %v9120_v14  ;;  %v5643_v10 = vadd.f32 %v493_v42, %v485_v43  ;;  %v285_v25 = vpop.permute.xlu1 %284  ;;  %v9142_v14 = vld [vmem:[#allocation88_spill] sm:$0xff] }
 0x195   : > { %v865_v30 = vmul.f32 %v9121_v34, %v5582_v50  ;;  %v876_v32 = vmul.f32 %v9122_v60, %v5578_v16  ;;  %v9123_v29 = vmov %v9122_v60  ;;  %v9125_v19 = vstv %s9116_s26  ;;  %s9141_s26 = sld [smem:[#allocation84_spill]] }
 0x196   : > { %v861_v23 = vadd.f32 %v859_v21, %v855_v51  ;;  %v877_v33 = vmul.f32 %v9123_v29, %v5582_v50  ;;  %v868_v52 = vrot.slane %v864_v15, 1  ;;  %v888_v46 = vmul.f32 %v9125_v19, %v5578_v16  ;;  %v282_v51 = vpop.permute.xlu0 %281 }
 0x197   : > { %v869_v4 = vrot.slane %v865_v30, 1  ;;  %v9126_v28 = vmov %v9125_v19  ;;  %v880_v31 = vrot.slane %v876_v32, 2  ;;  %v9128_v6 = vrot.slane %v5085_v24, 2 }
 0x198   : > { %v889_v41 = vmul.f32 %v9126_v28, %v5582_v50  ;;  %v881_v62 = vrot.slane %v877_v33, 2  ;;  %v9129_v49 = vstv %s9119_s30  ;;  %v872_v37 = vadd.f32 %v868_v52, %v860_v8  ;;  %s9146_s30 = sld [smem:[#allocation85_spill]] }
 0x199   : > { %v1243_v18 = vadd.f32 %v9128_v6, %v1231_v63  ;;  %v1258_v27 = vmul.f32 %v9129_v49, %v5578_v16  ;;  %v873_v5 = vadd.f32 %v869_v4, %v861_v23  ;;  %v892_v35 = vrot.slane %v888_v46, 3 }
 0x19a   : > { %v893_v36 = vrot.slane %v889_v41, 3  ;;  %v9131_v0 = vrot.slane %v5090_v1, 3  ;;  %v9132_v7 = vmov %v9129_v49  ;;  %v9133_v56 = vstv %s9124_s2  ;;  %v9149_v41 = vld [vmem:[#allocation89_spill] sm:$0xff]  ;;  %s9154_s2 = sld [smem:[#allocation86_spill]] }
 0x19b   : > { %v1259_v12 = vmul.f32 %v9132_v7, %v5582_v50  ;;  %v1260_v58 = vadd.f32 %v1258_v27, %v1254_v20  ;;  %v1264_v24 = vmul.f32 %v9133_v56, %v5578_v16  ;;  %v884_v63 = vadd.f32 %v880_v31, %v872_v37 }
 0x19c   : > { %v1255_v44 = vadd.f32 %v9131_v0, %v1243_v18  ;;  %v885_v61 = vadd.f32 %v881_v62, %v873_v5  ;;  %v9134_v26 = vmov %v9133_v56  ;;  %v9135_v59 = vstv %s9127_s24  ;;  %s9156_s24 = sld [smem:[#allocation87_spill]] }
 0x19d   : > { %v1265_v39 = vmul.f32 %v9134_v26, %v5582_v50  ;;  %v1276_v38 = vmul.f32 %v9135_v59, %v5578_v16  ;;  %v1268_v1 = vrot.slane %v1264_v24, 1  ;;  %v9137_v55 = vmov %v9135_v59  ;;  %v291_v26 = vpop.permute.xlu0 %290 }
 0x19e   : > { %v1261_v54 = vadd.f32 %v1259_v12, %v1255_v44  ;;  %v1277_v17 = vmul.f32 %v9137_v55, %v5582_v50  ;;  %v9138_v20 = vstv %s9130_s15  ;;  %v5682_v45 = vadd.f32 %v892_v35, %v884_v63  ;;  %s9157_s15 = sld [smem:[#allocation90_spill]] }
 0x19f   : > { %v1288_v9 = vmul.f32 %v9138_v20, %v5578_v16  ;;  %v5684_v48 = vadd.f32 %v893_v36, %v885_v61  ;;  %v1269_v2 = vrot.slane %v1265_v39, 1  ;;  %v1280_v57 = vrot.slane %v1276_v38, 2  ;;  %v293_v61 = vpop.permute.xlu1 %292 }
 0x1a0   : > { %v1272_v53 = vadd.f32 %v1268_v1, %v1260_v58  ;;  %v1281_v21 = vrot.slane %v1277_v17, 2  ;;  %v9140_v13 = vmov %v9138_v20  ;;  %v9143_v15 = vrot.slane %v9142_v14, 2 }
 0x1a1   : > { %v1289_v43 = vmul.f32 %v9140_v13, %v5582_v50  ;;  %v1292_v42 = vrot.slane %v1288_v9, 3  ;;  %v1273_v8 = vadd.f32 %v1269_v2, %v1261_v54  ;;  %v9144_v30 = vstv %s9136_s21  ;;  %s9159_s21 = sld [smem:[#allocation91_spill]] }
 0x1a2   : > { %v1643_v34 = vadd.f32 %v9143_v15, %v1631_v47  ;;  %v1658_v23 = vmul.f32 %v9144_v30, %v5578_v16  ;;  %v9145_v60 = vmov %v9144_v30  ;;  %v1284_v29 = vadd.f32 %v1280_v57, %v1272_v53 }
 0x1a3   : > { %v1659_v32 = vmul.f32 %v9145_v60, %v5582_v50  ;;  %v1293_v33 = vrot.slane %v1289_v43, 3  ;;  %v9147_v52 = vstv %s9139_s4  ;;  %v1285_v28 = vadd.f32 %v1281_v21, %v1273_v8  ;;  %s9163_s4 = sld [smem:[#allocation92_spill]] }
 0x1a4   : > { %v1664_v4 = vmul.f32 %v9147_v52, %v5578_v16  ;;  %v9148_v19 = vmov %v9147_v52  ;;  %v9150_v31 = vrot.slane %v9149_v41, 3  ;;  %v1660_v62 = vadd.f32 %v1658_v23, %v1654_v11 }
 0x1a5   : > { %v1665_v46 = vmul.f32 %v9148_v19, %v5582_v50  ;;  %v9151_v6 = vstv %s9141_s26  ;;  %v5708_v49 = vadd.f32 %v1292_v42, %v1284_v29  ;;  %v5713_v36 = vadd.f32 %v1293_v33, %v1285_v28  ;;  %s9167_s26 = sld [smem:[#allocation93_spill]] }
 0x1a6   : > { %v1655_v47 = vadd.f32 %v9150_v31, %v1643_v34  ;;  %v1676_v18 = vmul.f32 %v9151_v6, %v5578_v16  ;;  %v1668_v27 = vrot.slane %v1664_v4, 1  ;;  %v9152_v5 = vmov %v9151_v6 }
 0x1a7   : > { %v1669_v37 = vrot.slane %v1665_v46, 1  ;;  %v1677_v35 = vmul.f32 %v9152_v5, %v5582_v50  ;;  %v9153_v7 = vstv %s9146_s30  ;;  %v286_v63 = vsel %vm238_vm2, %v285_v25, %v282_v51  ;;  %s9170_s30 = sld [smem:[#allocation34_spill]] }
 0x1a8   : > { %v1661_v0 = vadd.f32 %v1659_v32, %v1655_v47  ;;  %v1680_v44 = vrot.slane %v1676_v18, 2  ;;  %v1688_v12 = vmul.f32 %v9153_v7, %v5578_v16  ;;  %v1672_v58 = vadd.f32 %v1668_v27, %v1660_v62 }
 0x1a9   : > { %v1681_v11 = vrot.slane %v1677_v35, 2  ;;  %v9155_v56 = vmov %v9153_v7  ;;  %v289_v38 = vsel %vm238_vm2, %v282_v51, %v285_v25  ;;  %v294_v16 = vsel %vm247_vm3, %v291_v26, %v293_v61 }
 0x1aa   : > { %v1689_v24 = vmul.f32 %v9155_v56, %v5582_v50  ;;  %v1673_v39 = vadd.f32 %v1669_v37, %v1661_v0  ;;  %v1692_v59 = vrot.slane %v1688_v12, 3  ;;  %v1684_v54 = vadd.f32 %v1680_v44, %v1672_v58 }
 0x1ab   : > { %v298_v55 = vsel %vm247_vm3, %v293_v61, %v291_v26  ;;  %v5727_v50 = vsel %vm5358_vm4, %v289_v38, %v294_v16  ;;  %v9161_v57 = vstv %s9154_s2  ;;  %v9162_v21 = vstv %s9156_s24  ;;  %s9173_s2 = sld [smem:[#allocation94_spill]]  ;;  %s9178_s24 = sld [smem:[#allocation97_spill]] }
 0x1ac   : > { %v1693_v1 = vrot.slane %v1689_v24, 3  ;;  %v1685_v20 = vadd.f32 %v1681_v11, %v1673_v39  ;;  %v5731_v2 = vsel %vm5364_vm5, %v286_v63, %v298_v55  ;;  %v500_v53 = vmul.f32 %v9161_v57, %v5727_v50  ;;  %v9183_v55 = vld [vmem:[#allocation50_spill] sm:$0xff] }
 0x1ad   : > { %v506_v13 = vmul.f32 %v9162_v21, %v5727_v50  ;;  %v5739_v43 = vadd.f32 %v1692_v59, %v1684_v54  ;;  %v9164_v42 = vmov %v9161_v57  ;;  %v9165_v51 = vmov %v9162_v21 }
 0x1ae   : > { %v501_v25 = vmul.f32 %v9164_v42, %v5731_v2  ;;  %v507_v8 = vmul.f32 %v9165_v51, %v5731_v2  ;;  %v9166_v14 = vstv %s9157_s15  ;;  %v5750_v34 = vadd.f32 %v1693_v1, %v1685_v20  ;;  %s9181_s15 = sld [smem:[#allocation98_spill]]  ;;  %v9184_v20 = vld [vmem:[#allocation45_spill] sm:$0xff] }
 0x1af   : > { %v518_v15 = vmul.f32 %v9166_v14, %v5727_v50  ;;  %v502_v30 = vadd.f32 %v500_v53, %v5635_v22  ;;  %v510_v23 = vrot.slane %v506_v13, 1  ;;  %v9168_v60 = vmov %v9166_v14 }
 0x1b0   : > { %v519_v32 = vmul.f32 %v9168_v60, %v5731_v2  ;;  %v503_v29 = vadd.f32 %v501_v25, %v5643_v10  ;;  %v511_v33 = vrot.slane %v507_v8, 1  ;;  %v9169_v4 = vstv %s9159_s21  ;;  %v9186_v25 = vld [vmem:[#allocation46_spill] sm:$0xff]  ;;  %s9188_s21 = sld [smem:[#allocation101_spill]] }
 0x1b1   : > { %v522_v52 = vrot.slane %v518_v15, 2  ;;  %v530_v19 = vmul.f32 %v9169_v4, %v5727_v50  ;;  %v514_v46 = vadd.f32 %v510_v23, %v502_v30  ;;  %v9171_v41 = vmov %v9169_v4  ;;  %v9190_v60 = vld [vmem:[#allocation56_spill] sm:$0xff] }
 0x1b2   : > { %v523_v28 = vrot.slane %v519_v32, 2  ;;  %v531_v31 = vmul.f32 %v9171_v41, %v5731_v2  ;;  %v9172_v22 = vstv %s9163_s4  ;;  %v515_v62 = vadd.f32 %v511_v33, %v503_v29  ;;  %v9191_v32 = vld [vmem:[#allocation47_spill] sm:$0xff]  ;;  %s9193_s4 = sld [smem:[#allocation102_spill]]  ;;  %v9196_v41 = vld [vmem:[#allocation48_spill] sm:$0xff] }
 0x1b3   : > { %v900_v47 = vmul.f32 %v9172_v22, %v5727_v50  ;;  %v534_v6 = vrot.slane %v530_v19, 3  ;;  %v9174_v10 = vmov %v9172_v22  ;;  %v9175_v27 = vstv %s9167_s26  ;;  %s9202_s26 = sld [smem:[#allocation105_spill]] }
 0x1b4   : > { %v901_v18 = vmul.f32 %v9174_v10, %v5731_v2  ;;  %v906_v37 = vmul.f32 %v9175_v27, %v5727_v50  ;;  %v526_v5 = vadd.f32 %v522_v52, %v514_v46  ;;  %v535_v35 = vrot.slane %v531_v31, 3 }
 0x1b5   : > { %v902_v0 = vadd.f32 %v900_v47, %v5682_v45  ;;  %v9176_v44 = vmov %v9175_v27  ;;  %v527_v12 = vadd.f32 %v523_v28, %v515_v62  ;;  %v9177_v56 = vstv %s9170_s30  ;;  %s9205_s30 = sld [smem:[#allocation106_spill]] }
 0x1b6   : > { %v907_v7 = vmul.f32 %v9176_v44, %v5731_v2  ;;  %v903_v58 = vadd.f32 %v901_v18, %v5684_v48  ;;  %v910_v11 = vrot.slane %v906_v37, 1  ;;  %v918_v24 = vmul.f32 %v9177_v56, %v5727_v50 }
 0x1b7   : > { %v538_v63 = vadd.f32 %v534_v6, %v526_v5  ;;  %v9179_v26 = vmov %v9177_v56  ;;  %v9180_v59 = vstv %s9173_s2  ;;  %v539_v38 = vadd.f32 %v535_v35, %v527_v12  ;;  %s6243_s2 = sld [smem:[#allocation6 + $0x7d]] }
 0x1b8   : > { %v911_v61 = vrot.slane %v907_v7, 1  ;;  %v919_v39 = vmul.f32 %v9179_v26, %v5731_v2  ;;  %v930_v45 = vmul.f32 %v9180_v59, %v5727_v50  ;;  %v914_v16 = vadd.f32 %v910_v11, %v902_v0  ;;  %v9200_v0 = vld [vmem:[#allocation61_spill] sm:$0xff] }
 0x1b9   : > { %v922_v54 = vrot.slane %v918_v24, 2  ;;  %v9182_v48 = vmov %v9180_v59  ;;  %v9185_v57 = vrot.slane %v9183_v55, %v9184_v20  ;;  %v9187_v51 = vrot.slane %v9183_v55, %v9186_v25  ;;  %v9208_v59 = vld [vmem:[#allocation62_spill] sm:$0xff] }
 0x1ba   : > { %v931_v1 = vmul.f32 %v9182_v48, %v5731_v2  ;;  %v915_v21 = vadd.f32 %v911_v61, %v903_v58  ;;  %v923_v13 = vrot.slane %v919_v39, 2  ;;  %v934_v42 = vrot.slane %v930_v45, 3 }
 0x1bb   : > { %v554_v53 = vadd.f32 %v9185_v57, %v538_v63  ;;  %v555_v8 = vadd.f32 %v9187_v51, %v539_v38  ;;  %v926_v14 = vadd.f32 %v922_v54, %v914_v16  ;;  %v9189_v30 = vstv %s9178_s24  ;;  %s6245_s24 = sld [smem:[#allocation6 + $0x86]] }
 0x1bc   : > { %v935_v15 = vrot.slane %v931_v1, 3  ;;  %v1300_v23 = vmul.f32 %v9189_v30, %v5727_v50  ;;  %v9192_v29 = vrot.slane %v9190_v60, %v9191_v32  ;;  %v927_v52 = vadd.f32 %v923_v13, %v915_v21 }
 0x1bd   : > { %v9194_v4 = vmov %v9189_v30  ;;  %v9195_v46 = vstv %s9181_s15  ;;  %v9197_v31 = vrot.slane %v9190_v60, %v9196_v41  ;;  %v938_v47 = vadd.f32 %v934_v42, %v926_v14  ;;  %v305_v60 = vpop.permute.xlu1 %304  ;;  %s6270_s15 = sld [smem:[#allocation6 + $0x8f]] }
 0x1be   : > { %v570_v33 = vadd.f32 %v9192_v29, %v554_v53  ;;  %v1301_v19 = vmul.f32 %v9194_v4, %v5731_v2  ;;  %v1306_v28 = vmul.f32 %v9195_v46, %v5727_v50  ;;  %v1302_v62 = vadd.f32 %v1300_v23, %v5708_v49  ;;  %v302_v29 = vpop.permute.xlu0 %301 }
 0x1bf   : > { %v5810_v22 = vadd.f32 %v9197_v31, %v555_v8  ;;  %v9198_v6 = vmov %v9195_v46  ;;  %v939_v18 = vadd.f32 %v935_v15, %v927_v52  ;;  %v9199_v5 = vstv %s9188_s21  ;;  %s9388_s21 = smov 16  }
 0x1c0   : > { %v1307_v10 = vmul.f32 %v9198_v6, %v5731_v2  ;;  %v1303_v27 = vadd.f32 %v1301_v19, %v5713_v36  ;;  %v1310_v37 = vrot.slane %v1306_v28, 1  ;;  %v1318_v35 = vmul.f32 %v9199_v5, %v5727_v50 }
 0x1c1   : > { %v9201_v44 = vrot.slane %v9200_v0, %v9184_v20  ;;  %v9203_v58 = vmov %v9199_v5  ;;  %v9204_v11 = vstv %s9193_s4  ;;  %v9206_v36 = vrot.slane %v9200_v0, %v9186_v25  ;;  %s9389_s4 = smov 112  }
 0x1c2   : > { %v1311_v12 = vrot.slane %v1307_v10, 1  ;;  %v1319_v49 = vmul.f32 %v9203_v58, %v5731_v2  ;;  %v1330_v56 = vmul.f32 %v9204_v11, %v5727_v50  ;;  %v1314_v63 = vadd.f32 %v1310_v37, %v1302_v62 }
 0x1c3   : > { %v954_v7 = vadd.f32 %v9201_v44, %v938_v47  ;;  %v955_v24 = vadd.f32 %v9206_v36, %v939_v18  ;;  %v1322_v61 = vrot.slane %v1318_v35, 2  ;;  %v9207_v26 = vmov %v9204_v11  ;;  %v9217_v18 = vld [vmem:[#allocation67_spill] sm:$0xff]  ;;  %v9222_v11 = vld [vmem:[#allocation68_spill] sm:$0xff] }
 0x1c4   : > { %v1331_v39 = vmul.f32 %v9207_v26, %v5731_v2  ;;  %v9209_v45 = vrot.slane %v9208_v59, %v9191_v32  ;;  %v1315_v16 = vadd.f32 %v1311_v12, %v1303_v27  ;;  %v1323_v54 = vrot.slane %v1319_v49, 2 }
 0x1c5   : > { %v1334_v48 = vrot.slane %v1330_v56, 3  ;;  %v9210_v1 = vrot.slane %v9208_v59, %v9196_v41  ;;  %v1326_v57 = vadd.f32 %v1322_v61, %v1314_v63  ;;  %v9211_v21 = vstv %s9202_s26  ;;  %s9390_s26 = smov 1  }
 0x1c6   : > { %v970_v38 = vadd.f32 %v9209_v45, %v954_v7  ;;  %v1335_v53 = vrot.slane %v1331_v39, 3  ;;  %v1700_v13 = vmul.f32 %v9211_v21, %v5727_v50  ;;  %v1327_v42 = vadd.f32 %v1323_v54, %v1315_v16  ;;  %v313_v16 = vpop.permute.xlu1 %312  ;;  %v311_v54 = vpop.permute.xlu0 %310 }
 0x1c7   : > { %v5841_v55 = vadd.f32 %v9210_v1, %v955_v24  ;;  %v9212_v51 = vmov %v9211_v21  ;;  %v9213_v14 = vstv %s9205_s30  ;;  %v1338_v52 = vadd.f32 %v1334_v48, %v1326_v57  ;;  %v9226_v48 = vld [vmem:[#allocation49_spill] sm:$0xff]  ;;  %s9391_s30 = smov 113  }
 0x1c8   : > { %v1701_v8 = vmul.f32 %v9212_v51, %v5731_v2  ;;  %v1706_v15 = vmul.f32 %v9213_v14, %v5727_v50  ;;  %v9214_v30 = vmov %v9213_v14  ;;  %v1702_v4 = vadd.f32 %v1700_v13, %v5739_v43 }
 0x1c9   : > { %v1707_v23 = vmul.f32 %v9214_v30, %v5731_v2  ;;  %v9215_v19 = vstv %s5188_s17  ;;  %v1339_v47 = vadd.f32 %v1335_v53, %v1327_v42  ;;  %v9218_v27 = vrot.slane %v9217_v18, %v9184_v20  ;;  %v9228_v53 = vld [vmem:[#allocation64_spill] sm:$0xff]  ;;  %s9252_s17 = sld [smem:[#allocation115_spill]] }
 0x1ca   : > { %v1718_v46 = vmul.f32 %v9215_v19, %v5727_v50  ;;  %v9216_v28 = vmov %v9215_v19  ;;  %v1703_v62 = vadd.f32 %v1701_v8, %v5750_v34  ;;  %v1710_v6 = vrot.slane %v1706_v15, 1  ;;  %v9230_v42 = vld [vmem:[#allocation69_spill] sm:$0xff] }
 0x1cb   : > { %v1719_v31 = vmul.f32 %v9216_v28, %v5731_v2  ;;  %v1711_v10 = vrot.slane %v1707_v23, 1  ;;  %v1354_v37 = vadd.f32 %v9218_v27, %v1338_v52  ;;  %v9219_v0 = vstv %s5190_s11  ;;  %v9237_v28 = vld [vmem:[#allocation70_spill] sm:$0xff]  ;;  %s9245_s11 = sld [smem:[#allocation112_spill]] }
 0x1cc   : > { %v1722_v5 = vrot.slane %v1718_v46, 2  ;;  %v1730_v43 = vmul.f32 %v9219_v0, %v5727_v50  ;;  %v9220_v44 = vrot.slane %v9217_v18, %v9186_v25  ;;  %v1714_v12 = vadd.f32 %v1710_v6, %v1702_v4  ;;  %v9235_v4 = vld [vmem:[#allocation65_spill] sm:$0xff]  ;;  %v9239_v6 = vld [vmem:[#allocation71_spill] sm:$0xff] }
 0x1cd   : > { %v1723_v35 = vrot.slane %v1719_v31, 2  ;;  %v1715_v58 = vadd.f32 %v1711_v10, %v1703_v62  ;;  %v9221_v49 = vmov %v9219_v0  ;;  %v9223_v56 = vrot.slane %v9222_v11, %v9191_v32 }
 0x1ce   : > { %v1355_v7 = vadd.f32 %v9220_v44, %v1339_v47  ;;  %v1731_v34 = vmul.f32 %v9221_v49, %v5731_v2  ;;  %v1734_v24 = vrot.slane %v1730_v43, 3  ;;  %v306_v63 = vsel %vm262_vm6, %v305_v60, %v302_v29  ;;  %v9225_v2 = vld [vmem:[#allocation58_spill] sm:$0xff] }
 0x1cf   : > { %v1370_v36 = vadd.f32 %v9223_v56, %v1354_v37  ;;  %v309_v61 = vsel %vm262_vm6, %v302_v29, %v305_v60  ;;  %v9224_v50 = vrot.slane %v9222_v11, %v9196_v41  ;;  %v1726_v39 = vadd.f32 %v1722_v5, %v1714_v12  ;;  %v9232_v60 = vld [vmem:[#allocation59_spill] sm:$0xff]  ;;  %v9242_v5 = vld [vmem:[#allocation51_spill] sm:$0xff]  ;;  %v9250_v56 = vld [vmem:[#allocation72_spill] sm:$0xff] }
 0x1d0   : > { %v1727_v59 = vadd.f32 %v1723_v35, %v1715_v58  ;;  %v1735_v45 = vrot.slane %v1731_v34, 3  ;;  %v9227_v1 = vrot.slane %v9225_v2, %v9226_v48  ;;  %v9229_v21 = vrot.slane %v9228_v53, %v9226_v48  ;;  %v9233_v29 = vld [vmem:[#allocation53_spill] sm:$0xff] }
 0x1d1   : > { %v5883_v26 = vadd.f32 %v9224_v50, %v1355_v7  ;;  %v9231_v51 = vrot.slane %v9230_v42, %v9226_v48  ;;  %v314_v14 = vsel %vm271_vm7, %v311_v54, %v313_v16  ;;  %v1738_v15 = vadd.f32 %v1734_v24, %v1726_v39 }
 0x1d2   : > { %v586_v57 = vadd.f32 %v9227_v1, %v570_v33  ;;  %v986_v13 = vadd.f32 %v9229_v21, %v970_v38  ;;  %v1739_v30 = vadd.f32 %v1735_v45, %v1727_v59  ;;  %v318_v23 = vsel %vm271_vm7, %v313_v16, %v311_v54 }
 0x1d3   : > { %v1386_v8 = vadd.f32 %v9231_v51, %v1370_v36  ;;  %v5898_v33 = vsel %vm5508_vm8, %v309_v61, %v314_v14  ;;  %v9234_v38 = vrot.slane %v9232_v60, %v9233_v29  ;;  %v9236_v19 = vrot.slane %v9235_v4, %v9233_v29  ;;  %v9254_v61 = vld [vmem:[#allocation54_spill] sm:$0xff] }
 0x1d4   : > { %v9238_v31 = vrot.slane %v9237_v28, %v9233_v29  ;;  %v5911_v62 = vsel %vm5522_vm9, %v306_v63, %v318_v23  ;;  %v9240_v10 = vrot.slane %v9239_v6, %v9184_v20  ;;  %v9241_v27 = vrot.slane %v9239_v6, %v9186_v25 }
 0x1d5   : > { %v602_v52 = vadd.f32 %v9234_v38, %v586_v57  ;;  %v1002_v46 = vadd.f32 %v9236_v19, %v986_v13  ;;  %v9243_v35 = vrot.slane %v9225_v2, %v9242_v5  ;;  %v9244_v43 = vstv %s5200_s0  ;;  %s9260_s0 = sld [smem:[#allocation116_spill]] }
 0x1d6   : > { %v1402_v47 = vadd.f32 %v9238_v31, %v1386_v8  ;;  %v1754_v18 = vadd.f32 %v9240_v10, %v1738_v15  ;;  %v1755_v37 = vadd.f32 %v9241_v27, %v1739_v30  ;;  %v606_v44 = vmul.f32 %v9244_v43, %v5898_v33 }
 0x1d7   : > { %v587_v0 = vadd.f32 %v9243_v35, %v5810_v22  ;;  %v9246_v7 = vmov %v9244_v43  ;;  %v9247_v20 = vstv %s5202_s28  ;;  %v9249_v34 = vstv %s5212_s29  ;;  %s9277_s28 = sld [smem:[#allocation127_spill]]  ;;  %s9343_s29 = sld [smem:[#allocation36_spill]] }
 0x1d8   : > { %v607_v12 = vmul.f32 %v9246_v7, %v5911_v62  ;;  %v612_v58 = vmul.f32 %v9247_v20, %v5898_v33  ;;  %v9248_v49 = vmov %v9247_v20  ;;  %v624_v11 = vmul.f32 %v9249_v34, %v5898_v33 }
 0x1d9   : > { %v613_v25 = vmul.f32 %v9248_v49, %v5911_v62  ;;  %v9251_v22 = vrot.slane %v9250_v56, %v9191_v32  ;;  %v9253_v24 = vrot.slane %v9250_v56, %v9196_v41  ;;  %v9255_v50 = vrot.slane %v9232_v60, %v9254_v61  ;;  %v9257_v32 = vld [vmem:[#allocation73_spill] sm:$0xff] }
 0x1da   : > { %v608_v59 = vadd.f32 %v606_v44, %v602_v52  ;;  %v616_v45 = vrot.slane %v612_v58, 1  ;;  %v9256_v54 = vmov %v9249_v34  ;;  %v628_v1 = vrot.slane %v624_v11, 2  ;;  %v9264_v52 = vld [vmem:[#allocation74_spill] sm:$0xff] }
 0x1db   : > { %v1770_v36 = vadd.f32 %v9251_v22, %v1754_v18  ;;  %v5944_v63 = vadd.f32 %v9253_v24, %v1755_v37  ;;  %v603_v39 = vadd.f32 %v9255_v50, %v587_v0  ;;  %v617_v16 = vrot.slane %v613_v25, 1 }
 0x1dc   : > { %v625_v2 = vmul.f32 %v9256_v54, %v5911_v62  ;;  %v9258_v57 = vrot.slane %v9257_v32, %v9226_v48  ;;  %v9259_v41 = vstv %s9245_s11  ;;  %v620_v15 = vadd.f32 %v616_v45, %v608_v59  ;;  %s9392_s11 = smov 15  }
 0x1dd   : > { %v609_v13 = vadd.f32 %v607_v12, %v603_v39  ;;  %v636_v51 = vmul.f32 %v9259_v41, %v5898_v33  ;;  %v9261_v8 = vmov %v9259_v41  ;;  %v9262_v23 = vrot.slane %v9228_v53, %v9242_v5 }
 0x1de   : > { %v1786_v21 = vadd.f32 %v9258_v57, %v1770_v36  ;;  %v637_v14 = vmul.f32 %v9261_v8, %v5911_v62  ;;  %v629_v30 = vrot.slane %v625_v2, 2  ;;  %v9263_v48 = vstv %s9252_s17  ;;  %s9393_s17 = smov 127  }
 0x1df   : > { %v987_v60 = vadd.f32 %v9262_v23, %v5841_v55  ;;  %v1006_v38 = vmul.f32 %v9263_v48, %v5898_v33  ;;  %v9265_v19 = vrot.slane %v9264_v52, %v9233_v29  ;;  %v621_v6 = vadd.f32 %v617_v16, %v609_v13 }
 0x1e0   : > { %v640_v10 = vrot.slane %v636_v51, 3  ;;  %v641_v18 = vrot.slane %v637_v14, 3  ;;  %v632_v27 = vadd.f32 %v628_v1, %v620_v15  ;;  %v9266_v37 = vrot.slane %v9235_v4, %v9254_v61 }
 0x1e1   : > { %v1802_v31 = vadd.f32 %v9265_v19, %v1786_v21  ;;  %v9267_v53 = vmov %v9263_v48  ;;  %v1008_v0 = vadd.f32 %v1006_v38, %v1002_v46  ;;  %v633_v43 = vadd.f32 %v629_v30, %v621_v6 }
 0x1e2   : > { %v1003_v35 = vadd.f32 %v9266_v37, %v987_v60  ;;  %v1007_v55 = vmul.f32 %v9267_v53, %v5911_v62  ;;  %v9268_v44 = vstv %s9260_s0  ;;  %v9270_v20 = vstv %s5236_s20  ;;  %s6213_s20 = sld [smem:[#allocation6 + $0x3e]]  ;;  %s6470_s0 = sld [smem:[#allocation7 + $0x4]] }
 0x1e3   : > { %v1012_v7 = vmul.f32 %v9268_v44, %v5898_v33  ;;  %v9269_v29 = vmov %v9268_v44  ;;  %v1024_v58 = vmul.f32 %v9270_v20, %v5898_v33  ;;  %v5986_v49 = vadd.f32 %v640_v10, %v632_v27 }
 0x1e4   : > { %v1013_v12 = vmul.f32 %v9269_v29, %v5911_v62  ;;  %v1009_v4 = vadd.f32 %v1007_v55, %v1003_v35  ;;  %v9271_v25 = vmov %v9270_v20  ;;  %v9272_v46 = vstv %s9013_s6  ;;  %v333_v20 = vpop.permute.xlu0 %332  ;;  %s9340_s6 = sld [smem:[#allocation122_spill]] }
 0x1e5   : > { %v1025_v34 = vmul.f32 %v9271_v25, %v5911_v62  ;;  %v1036_v11 = vmul.f32 %v9272_v46, %v5898_v33  ;;  %v5994_v56 = vadd.f32 %v641_v18, %v633_v43  ;;  %v1016_v22 = vrot.slane %v1012_v7, 1 }
 0x1e6   : > { %v1017_v36 = vrot.slane %v1013_v12, 1  ;;  %v1028_v24 = vrot.slane %v1024_v58, 2  ;;  %v9273_v39 = vmov %v9272_v46  ;;  %v9274_v16 = vrot.slane %v9230_v42, %v9242_v5  ;;  %v336_v12 = vpop.permute.xlu1 %335 }
 0x1e7   : > { %v1029_v50 = vrot.slane %v1025_v34, 2  ;;  %v1037_v59 = vmul.f32 %v9273_v39, %v5911_v62  ;;  %v1040_v45 = vrot.slane %v1036_v11, 3  ;;  %v1020_v2 = vadd.f32 %v1016_v22, %v1008_v0 }
 0x1e8   : > { %v1387_v54 = vadd.f32 %v9274_v16, %v5883_v26  ;;  %v1021_v1 = vadd.f32 %v1017_v36, %v1009_v4  ;;  %v9275_v57 = vstv %s9014_s27  ;;  %v9278_v8 = vrot.slane %v9237_v28, %v9254_v61  ;;  %s6197_s27 = sld [smem:[#allocation6 + $0x1a]] }
 0x1e9   : > { %v1406_v21 = vmul.f32 %v9275_v57, %v5898_v33  ;;  %v9276_v13 = vmov %v9275_v57  ;;  %v1041_v51 = vrot.slane %v1037_v59, 3  ;;  %v9279_v15 = vstv %s9015_s18  ;;  %s9283_s18 = sld [smem:[#allocation130_spill]] }
 0x1ea   : > { %v1407_v41 = vmul.f32 %v9276_v13, %v5911_v62  ;;  %v1403_v14 = vadd.f32 %v9278_v8, %v1387_v54  ;;  %v1412_v30 = vmul.f32 %v9279_v15, %v5898_v33  ;;  %v9280_v26 = vmov %v9279_v15 }
 0x1eb   : > { %v1413_v42 = vmul.f32 %v9280_v26, %v5911_v62  ;;  %v1032_v23 = vadd.f32 %v1028_v24, %v1020_v2  ;;  %v1033_v60 = vadd.f32 %v1029_v50, %v1021_v1  ;;  %v1408_v48 = vadd.f32 %v1406_v21, %v1402_v47 }
 0x1ec   : > { %v9281_v38 = vstv %s9017_s10  ;;  %v1409_v6 = vadd.f32 %v1407_v41, %v1403_v14  ;;  %v1416_v10 = vrot.slane %v1412_v30, 1  ;;  %v9284_v55 = vstv %s9277_s28  ;;  %s9289_s10 = sld [smem:[#allocation133_spill]]  ;;  %s6472_s28 = sld [smem:[#allocation7 + $0xd]] }
 0x1ed   : > { %v1424_v19 = vmul.f32 %v9281_v38, %v5898_v33  ;;  %v1417_v18 = vrot.slane %v1413_v42, 1  ;;  %v9282_v28 = vmov %v9281_v38  ;;  %v6024_v37 = vadd.f32 %v1040_v45, %v1032_v23  ;;  %v344_v23 = vpop.permute.xlu1 %343 }
 0x1ee   : > { %v1425_v27 = vmul.f32 %v9282_v28, %v5911_v62  ;;  %v6026_v35 = vadd.f32 %v1041_v51, %v1033_v60  ;;  %v1436_v47 = vmul.f32 %v9284_v55, %v5898_v33  ;;  %v1420_v0 = vadd.f32 %v1416_v10, %v1408_v48  ;;  %v342_v60 = vpop.permute.xlu0 %341 }
 0x1ef   : > { %v1428_v53 = vrot.slane %v1424_v19, 2  ;;  %v1421_v43 = vadd.f32 %v1417_v18, %v1409_v6  ;;  %v9285_v7 = vmov %v9284_v55  ;;  %v9286_v4 = vrot.slane %v9257_v32, %v9242_v5 }
 0x1f0   : > { %v1429_v44 = vrot.slane %v1425_v27, 2  ;;  %v1437_v29 = vmul.f32 %v9285_v7, %v5911_v62  ;;  %v1440_v58 = vrot.slane %v1436_v47, 3  ;;  %v9287_v34 = vstv %s9019_s23  ;;  %s9297_s23 = sld [smem:[#allocation138_spill]] }
 0x1f1   : > { %v1787_v25 = vadd.f32 %v9286_v4, %v5944_v63  ;;  %v1806_v46 = vmul.f32 %v9287_v34, %v5898_v33  ;;  %v9288_v11 = vmov %v9287_v34  ;;  %v1432_v36 = vadd.f32 %v1428_v53, %v1420_v0 }
 0x1f2   : > { %v1807_v22 = vmul.f32 %v9288_v11, %v5911_v62  ;;  %v1433_v24 = vadd.f32 %v1429_v44, %v1421_v43  ;;  %v1441_v50 = vrot.slane %v1437_v29, 3  ;;  %v9290_v39 = vstv %s9283_s18  ;;  %s6474_s18 = sld [smem:[#allocation7 + $0x16]] }
 0x1f3   : > { %v1812_v59 = vmul.f32 %v9290_v39, %v5898_v33  ;;  %v9291_v45 = vrot.slane %v9264_v52, %v9254_v61  ;;  %v1808_v5 = vadd.f32 %v1806_v46, %v1802_v31  ;;  %v9292_v63 = vmov %v9290_v39 }
 0x1f4   : > { %v1813_v32 = vmul.f32 %v9292_v63, %v5911_v62  ;;  %v9293_v54 = vstv %s5284_s25  ;;  %v6056_v1 = vadd.f32 %v1440_v58, %v1432_v36  ;;  %v6058_v57 = vadd.f32 %v1441_v50, %v1433_v24  ;;  %s6227_s25 = sld [smem:[#allocation6 + $0x59]] }
 0x1f5   : > { %v1803_v16 = vadd.f32 %v9291_v45, %v1787_v25  ;;  %v1824_v2 = vmul.f32 %v9293_v54, %v5898_v33  ;;  %v1816_v21 = vrot.slane %v1812_v59, 1  ;;  %v9294_v13 = vmov %v9293_v54 }
 0x1f6   : > { %v1825_v41 = vmul.f32 %v9294_v13, %v5911_v62  ;;  %v1817_v8 = vrot.slane %v1813_v32, 1  ;;  %v9295_v61 = vstv %s9289_s10  ;;  %v337_v42 = vsel %vm238_vm2, %v336_v12, %v333_v20  ;;  %s6476_s10 = sld [smem:[#allocation7 + $0x1f]] }
 0x1f7   : > { %v1809_v51 = vadd.f32 %v1807_v22, %v1803_v16  ;;  %v1828_v14 = vrot.slane %v1824_v2, 2  ;;  %v1836_v52 = vmul.f32 %v9295_v61, %v5898_v33  ;;  %v1820_v31 = vadd.f32 %v1816_v21, %v1808_v5 }
 0x1f8   : > { %v1829_v15 = vrot.slane %v1825_v41, 2  ;;  %v9296_v30 = vmov %v9295_v61  ;;  %v340_v19 = vsel %vm238_vm2, %v333_v20, %v336_v12  ;;  %v345_v33 = vsel %vm247_vm3, %v342_v60, %v344_v23 }
 0x1f9   : > { %v1837_v26 = vmul.f32 %v9296_v30, %v5911_v62  ;;  %v1821_v48 = vadd.f32 %v1817_v8, %v1809_v51  ;;  %v1840_v38 = vrot.slane %v1836_v52, 3  ;;  %v1832_v6 = vadd.f32 %v1828_v14, %v1820_v31 }
 0x1fa   : > { %v349_v18 = vsel %vm247_vm3, %v344_v23, %v342_v60  ;;  %v6075_v62 = vsel %vm5358_vm4, %v340_v19, %v345_v33  ;;  %v9298_v53 = vstv %s5294_s13  ;;  %v9299_v47 = vstv %s5296_s9  ;;  %s9313_s9 = sld [smem:[#allocation144_spill]]  ;;  %s6229_s13 = sld [smem:[#allocation6 + $0x62]] }
 0x1fb   : > { %v1841_v10 = vrot.slane %v1837_v26, 3  ;;  %v1833_v28 = vadd.f32 %v1829_v15, %v1821_v48  ;;  %v6079_v27 = vsel %vm5364_vm5, %v337_v42, %v349_v18  ;;  %v648_v55 = vmul.f32 %v9298_v53, %v6075_v62  ;;  %v9315_v18 = vld [vmem:[#allocation103_spill] sm:$0xff] }
 0x1fc   : > { %v654_v0 = vmul.f32 %v9299_v47, %v6075_v62  ;;  %v6087_v43 = vadd.f32 %v1840_v38, %v1832_v6  ;;  %v9300_v44 = vmov %v9298_v53  ;;  %v9301_v29 = vmov %v9299_v47 }
 0x1fd   : > { %v649_v7 = vmul.f32 %v9300_v44, %v6079_v27  ;;  %v655_v12 = vmul.f32 %v9301_v29, %v6079_v27  ;;  %v9302_v20 = vstv %s9022_s14  ;;  %v6098_v4 = vadd.f32 %v1841_v10, %v1833_v28  ;;  %s6208_s14 = sld [smem:[#allocation6 + $0x2c]] }
 0x1fe   : > { %v666_v58 = vmul.f32 %v9302_v20, %v6075_v62  ;;  %v650_v25 = vadd.f32 %v648_v55, %v5986_v49  ;;  %v658_v34 = vrot.slane %v654_v0, 1  ;;  %v9303_v46 = vmov %v9302_v20  ;;  %v9316_v0 = vld [vmem:[#allocation107_spill] sm:$0xff] }
 0x1ff   : > { %v667_v11 = vmul.f32 %v9303_v46, %v6079_v27  ;;  %v651_v22 = vadd.f32 %v649_v7, %v5994_v56  ;;  %v659_v36 = vrot.slane %v655_v12, 1  ;;  %v9304_v50 = vstv %s9297_s23  ;;  %s6478_s23 = sld [smem:[#allocation7 + $0x28]] }
 0x200   : > { %v670_v24 = vrot.slane %v666_v58, 2  ;;  %v678_v39 = vmul.f32 %v9304_v50, %v6075_v62  ;;  %v662_v59 = vadd.f32 %v658_v34, %v650_v25  ;;  %v9305_v16 = vmov %v9304_v50  ;;  %v9318_v58 = vld [vmem:[#allocation95_spill] sm:$0xff]  ;;  %v9322_v50 = vld [vmem:[#allocation96_spill] sm:$0xff] }
 0x201   : > { %v671_v45 = vrot.slane %v667_v11, 2  ;;  %v679_v5 = vmul.f32 %v9305_v16, %v6079_v27  ;;  %v9306_v49 = vstv %s5326_s8  ;;  %v663_v32 = vadd.f32 %v659_v36, %v651_v22  ;;  %s6236_s8 = sld [smem:[#allocation6 + $0x6b]] }
 0x202   : > { %v1048_v63 = vmul.f32 %v9306_v49, %v6075_v62  ;;  %v682_v54 = vrot.slane %v678_v39, 3  ;;  %v9307_v56 = vmov %v9306_v49  ;;  %v9308_v21 = vstv %s5328_s5  ;;  %s6221_s5 = sld [smem:[#allocation6 + $0x50]] }
 0x203   : > { %v1049_v2 = vmul.f32 %v9307_v56, %v6079_v27  ;;  %v1054_v13 = vmul.f32 %v9308_v21, %v6075_v62  ;;  %v674_v41 = vadd.f32 %v670_v24, %v662_v59  ;;  %v683_v51 = vrot.slane %v679_v5, 3 }
 0x204   : > { %v1050_v8 = vadd.f32 %v1048_v63, %v6024_v37  ;;  %v9309_v14 = vmov %v9308_v21  ;;  %v675_v52 = vadd.f32 %v671_v45, %v663_v32  ;;  %v9310_v30 = vstv %s5340_s7  ;;  %v9326_v21 = vld [vmem:[#allocation108_spill] sm:$0xff]  ;;  %s6239_s7 = sld [smem:[#allocation6 + $0x74]] }
 0x205   : > { %v1055_v61 = vmul.f32 %v9309_v14, %v6079_v27  ;;  %v1051_v31 = vadd.f32 %v1049_v2, %v6026_v35  ;;  %v1058_v15 = vrot.slane %v1054_v13, 1  ;;  %v1066_v26 = vmul.f32 %v9310_v30, %v6075_v62 }
 0x206   : > { %v686_v42 = vadd.f32 %v682_v54, %v674_v41  ;;  %v9311_v60 = vmov %v9310_v30  ;;  %v9312_v38 = vstv %s5342_s12  ;;  %v687_v19 = vadd.f32 %v683_v51, %v675_v52  ;;  %s9330_s12 = sld [smem:[#allocation119_spill]] }
 0x207   : > { %v1059_v23 = vrot.slane %v1055_v61, 1  ;;  %v1067_v48 = vmul.f32 %v9311_v60, %v6079_v27  ;;  %v1078_v37 = vmul.f32 %v9312_v38, %v6075_v62  ;;  %v1062_v33 = vadd.f32 %v1058_v15, %v1050_v8  ;;  %v9329_v61 = vld [vmem:[#allocation135_spill] sm:$0xff] }
 0x208   : > { %v1070_v6 = vrot.slane %v1066_v26, 2  ;;  %v9314_v35 = vmov %v9312_v38  ;;  %v692_v28 = vadd.f32 %v9315_v18, %v686_v42  ;;  %v693_v44 = vadd.f32 %v9316_v0, %v687_v19  ;;  %v9332_v26 = vld [vmem:[#allocation99_spill] sm:$0xff] }
 0x209   : > { %v1079_v10 = vmul.f32 %v9314_v35, %v6079_v27  ;;  %v1063_v53 = vadd.f32 %v1059_v23, %v1051_v31  ;;  %v1071_v55 = vrot.slane %v1067_v48, 2  ;;  %v1082_v47 = vrot.slane %v1078_v37, 3  ;;  %v9334_v37 = vld [vmem:[#allocation100_spill] sm:$0xff] }
 0x20a   : > { %v1074_v7 = vadd.f32 %v1070_v6, %v1062_v33  ;;  %v9317_v12 = vstv %s5352_s22  ;;  %v9319_v25 = vrot.slane %v9318_v58, 1  ;;  %v9321_v36 = vstv %s9313_s9  ;;  %s6184_s22 = sld [smem:[#allocation6 + $0x8]]  ;;  %s6480_s9 = sld [smem:[#allocation7 + $0x31]] }
 0x20b   : > { %v1083_v29 = vrot.slane %v1079_v10, 3  ;;  %v1448_v20 = vmul.f32 %v9317_v12, %v6075_v62  ;;  %v1075_v46 = vadd.f32 %v1071_v55, %v1063_v53  ;;  %v9320_v11 = vmov %v9317_v12 }
 0x20c   : > { %v6144_v34 = vadd.f32 %v9319_v25, %v692_v28  ;;  %v1449_v22 = vmul.f32 %v9320_v11, %v6079_v27  ;;  %v1454_v24 = vmul.f32 %v9321_v36, %v6075_v62  ;;  %v9323_v39 = vrot.slane %v9322_v50, 1 }
 0x20d   : > { %v1086_v45 = vadd.f32 %v1082_v47, %v1074_v7  ;;  %v1450_v16 = vadd.f32 %v1448_v20, %v6056_v1  ;;  %v9324_v5 = vmov %v9321_v36  ;;  %v1087_v63 = vadd.f32 %v1083_v29, %v1075_v46 }
 0x20e   : > { %v6154_v59 = vadd.f32 %v9323_v39, %v693_v44  ;;  %v1455_v49 = vmul.f32 %v9324_v5, %v6079_v27  ;;  %v1451_v32 = vadd.f32 %v1449_v22, %v6058_v57  ;;  %v1458_v54 = vrot.slane %v1454_v24, 1 }
 0x20f   : > { %v9325_v56 = vstv %s9025_s19  ;;  %v1092_v13 = vadd.f32 %v9326_v21, %v1086_v45  ;;  %v9328_v14 = vstv %s9026_s1  ;;  %v1093_v52 = vadd.f32 %v9329_v61, %v1087_v63  ;;  %s6195_s1 = sld [smem:[#allocation6 + $0x11]]  ;;  %s6211_s19 = sld [smem:[#allocation6 + $0x35]]  ;;  %v9353_v61 = vld [vmem:[#allocation109_spill] sm:$0xff] }
 0x210   : > { %v1466_v2 = vmul.f32 %v9325_v56, %v6075_v62  ;;  %v1459_v41 = vrot.slane %v1455_v49, 1  ;;  %v9327_v51 = vmov %v9325_v56  ;;  %v1478_v1 = vmul.f32 %v9328_v14, %v6075_v62  ;;  %v9346_v49 = vld [vmem:[#allocation139_spill] sm:$0xff] }
 0x211   : > { %v1467_v8 = vmul.f32 %v9327_v51, %v6079_v27  ;;  %v1462_v57 = vadd.f32 %v1458_v54, %v1450_v16  ;;  %v9331_v15 = vmov %v9328_v14  ;;  %v9333_v42 = vrot.slane %v9332_v26, 1  ;;  %v9352_v14 = vld [vmem:[#allocation141_spill] sm:$0xff]  ;;  %v353_v26 = vpop.permute.xlu0 %352 }
 0x212   : > { %v1470_v31 = vrot.slane %v1466_v2, 2  ;;  %v1479_v30 = vmul.f32 %v9331_v15, %v6079_v27  ;;  %v1463_v60 = vadd.f32 %v1459_v41, %v1451_v32  ;;  %v1482_v38 = vrot.slane %v1478_v1, 3  ;;  %v9348_v2 = vld [vmem:[#allocation26_spill] sm:$0xff] }
 0x213   : > { %v1104_v23 = vadd.f32 %v9333_v42, %v1092_v13  ;;  %v1471_v48 = vrot.slane %v1467_v8, 2  ;;  %v9335_v19 = vrot.slane %v9334_v37, 1  ;;  %v9336_v10 = vstv %s5380_s3  ;;  %s6206_s3 = sld [smem:[#allocation6 + $0x23]]  ;;  %v9350_v41 = vld [vmem:[#allocation104_spill] sm:$0xff] }
 0x214   : > { %v1474_v6 = vadd.f32 %v1470_v31, %v1462_v57  ;;  %v1483_v35 = vrot.slane %v1479_v30, 3  ;;  %v1848_v18 = vmul.f32 %v9336_v10, %v6075_v62  ;;  %v9337_v53 = vmov %v9336_v10  ;;  %v356_v30 = vpop.permute.xlu1 %355  ;;  %v9357_v37 = vld [vmem:[#allocation142_spill] sm:$0xff] }
 0x215   : > { %v6179_v33 = vadd.f32 %v9335_v19, %v1093_v52  ;;  %v1475_v28 = vadd.f32 %v1471_v48, %v1463_v60  ;;  %v1849_v55 = vmul.f32 %v9337_v53, %v6079_v27  ;;  %v9338_v47 = vstv %s9330_s12  ;;  %v9355_v60 = vld [vmem:[#allocation113_spill] sm:$0xff]  ;;  %s6482_s12 = sld [smem:[#allocation7 + $0x3a]] }
 0x216   : > { %v1854_v0 = vmul.f32 %v9338_v47, %v6075_v62  ;;  %v9339_v44 = vmov %v9338_v47  ;;  %v1486_v29 = vadd.f32 %v1482_v38, %v1474_v6  ;;  %v1850_v12 = vadd.f32 %v1848_v18, %v6087_v43  ;;  %v9344_v43 = vld [vmem:[#allocation136_spill] sm:$0xff]  ;;  %v9358_v6 = vld [vmem:[#allocation143_spill] sm:$0xff]  ;;  %v9359_v53 = vld [vmem:[#allocation120_spill] sm:$0xff] }
 0x217   : > { %v1855_v7 = vmul.f32 %v9339_v44, %v6079_v27  ;;  %v9341_v20 = vstv %s5392_s16  ;;  %v1487_v11 = vadd.f32 %v1483_v35, %v1475_v28  ;;  %v1851_v22 = vadd.f32 %v1849_v55, %v6098_v4  ;;  %s6219_s16 = sld [smem:[#allocation6 + $0x47]] }
 0x218   : > { %v1866_v58 = vmul.f32 %v9341_v20, %v6075_v62  ;;  %v9342_v25 = vmov %v9341_v20  ;;  %v1858_v36 = vrot.slane %v1854_v0, 1  ;;  %v1492_v50 = vadd.f32 %v9344_v43, %v1486_v29  ;;  %v9361_v0 = vld [vmem:[#allocation117_spill] sm:$0xff]  ;;  %v9363_v20 = vld [vmem:[#allocation140_spill] sm:$0xff] }
 0x219   : > { %v1867_v46 = vmul.f32 %v9342_v25, %v6079_v27  ;;  %v1859_v24 = vrot.slane %v1855_v7, 1  ;;  %v9345_v16 = vstv %s9340_s6  ;;  %v1493_v4 = vadd.f32 %v9346_v49, %v1487_v11  ;;  %v9364_v11 = vld [vmem:[#allocation124_spill] sm:$0xff]  ;;  %s6490_s6 = sld [smem:[#allocation7 + $0x5e]] }
 0x21a   : > { %v1870_v39 = vrot.slane %v1866_v58, 2  ;;  %v1878_v5 = vmul.f32 %v9345_v16, %v6075_v62  ;;  %v1862_v63 = vadd.f32 %v1858_v36, %v1850_v12  ;;  %v9347_v54 = vmov %v9345_v16  ;;  %v9368_v16 = vld [vmem:[#allocation110_spill] sm:$0xff] }
 0x21b   : > { %v1871_v45 = vrot.slane %v1867_v46, 2  ;;  %v1863_v32 = vadd.f32 %v1859_v24, %v1851_v22  ;;  %v1879_v56 = vmul.f32 %v9347_v54, %v6079_v27  ;;  %v9349_v21 = vstv %s9343_s29  ;;  %v364_v54 = vpop.permute.xlu1 %363  ;;  %s6496_s29 = sld [smem:[#allocation7 + $0x79]] }
 0x21c   : > { %v1891_v13 = vmul.f32 %v9349_v21, %v9348_v2  ;;  %v9351_v62 = vrot.slane %v9350_v41, 1  ;;  %v1882_v8 = vrot.slane %v1878_v5, 3  ;;  %v1913_v1 = vrot.slane %v9352_v14, 2  ;;  %v362_v21 = vpop.permute.xlu0 %361 }
 0x21d   : > { %v9354_v52 = vrot.slane %v9353_v61, 1  ;;  %v1874_v57 = vadd.f32 %v1870_v39, %v1862_v63  ;;  %v1875_v31 = vadd.f32 %v1871_v45, %v1863_v32  ;;  %v1883_v15 = vrot.slane %v1879_v56, 3 }
 0x21e   : > { %v1504_v51 = vadd.f32 %v9351_v62, %v1492_v50  ;;  %v357_v42 = vsel %vm262_vm6, %v356_v30, %v353_v26  ;;  %v9356_v48 = vrot.slane %v9355_v60, 2  ;;  %v1924_v19 = vrot.slane %v9357_v37, 3  ;;  %v9366_v50 = vld [vmem:[#allocation128_spill] sm:$0xff] }
 0x21f   : > { %v1505_v27 = vadd.f32 %v9354_v52, %v1493_v4  ;;  %v1925_v35 = vrot.slane %v9358_v6, 3  ;;  %v1886_v10 = vadd.f32 %v1882_v8, %v1874_v57  ;;  %v1887_v18 = vadd.f32 %v1883_v15, %v1875_v31  ;;  %v9370_v4 = vld [vmem:[#allocation111_spill] sm:$0xff]  ;;  %v9374_v52 = vld [vmem:[#allocation134_spill] sm:$0xff] }
 0x220   : > { %v716_v38 = vadd.f32 %v9356_v48, %v6144_v34  ;;  %v360_v28 = vsel %vm262_vm6, %v353_v26, %v356_v30  ;;  %v9360_v55 = vrot.slane %v9359_v53, 2  ;;  %v9362_v44 = vrot.slane %v9361_v0, 3 }
 0x221   : > { %v731_v29 = vstv %s6184_s22  ;;  %v737_v34 = vstv %s6195_s1  ;;  %v749_v12 = vstv %s6197_s27  ;;  %v1892_v58 = vadd.f32 %v9363_v20, %v1886_v10  ;;  %v9380_v20 = vld [vmem:[#allocation129_spill] sm:$0xff]  ;;  %s6484_s22 = sld [smem:[#allocation7 + $0x43]]  ;;  %s6486_s1 = sld [smem:[#allocation7 + $0x4c]] }
 0x222   : > { %v1116_v47 = vadd.f32 %v9360_v55, %v1104_v23  ;;  %v728_v7 = vadd.f32 %v9362_v44, %v716_v38  ;;  %v1893_v25 = vadd.f32 %v1891_v13, %v1887_v18  ;;  %v761_v46 = vstv %s6206_s3  ;;  %v9372_v13 = vld [vmem:[#allocation131_spill] sm:$0xff]  ;;  %v9376_v38 = vld [vmem:[#allocation114_spill] sm:$0xff]  ;;  %s6488_s27 = sld [smem:[#allocation7 + $0x55]]  ;;  %s6492_s3 = sld [smem:[#allocation7 + $0x67]] }
 0x223   : > { %v9365_v22 = vrot.slane %v9364_v11, 3  ;;  %v1131_v24 = vstv %s6208_s14  ;;  %v1137_v23 = vstv %s6211_s19  ;;  %v1149_v43 = vstv %s6213_s20  ;;  %v9378_v18 = vld [vmem:[#allocation121_spill] sm:$0xff]  ;;  %v9382_v11 = vld [vmem:[#allocation118_spill] sm:$0xff]  ;;  %s6494_s14 = sld [smem:[#allocation7 + $0x70]]  ;;  %s6498_s19 = sld [smem:[#allocation7 + $0x82]] }
 0x224   : > { %v9367_v39 = vrot.slane %v9366_v50, 2  ;;  %v9369_v5 = vrot.slane %v9368_v16, 1  ;;  %v9371_v63 = vrot.slane %v9370_v4, 1  ;;  %v1161_v56 = vstv %s6219_s16  ;;  %s6500_s20 = sld [smem:[#allocation7 + $0x8b]]  ;;  %s6507_s16 = sld [smem:[#allocation7 + $0x1]] }
 0x225   : > { %v1128_v36 = vadd.f32 %v9365_v22, %v1116_v47  ;;  %v1531_v2 = vstv %s6221_s5  ;;  %v9373_v41 = vrot.slane %v9372_v13, 3  ;;  %v1537_v8 = vstv %s6227_s25  ;;  %s6513_s5 = sld [smem:[#allocation7 + $0xa]]  ;;  %s6515_s25 = sld [smem:[#allocation7 + $0x25]] }
 0x226   : > { %v1516_v45 = vadd.f32 %v9367_v39, %v1504_v51  ;;  %v1904_v49 = vadd.f32 %v9369_v5, %v1892_v58  ;;  %v6276_v32 = vadd.f32 %v9371_v63, %v1893_v25  ;;  %v1549_v61 = vstv %s6229_s13  ;;  %s6525_s13 = sld [smem:[#allocation7 + $0x2e]] }
 0x227   : > { %v1561_v51 = vstv %s6236_s8  ;;  %v9375_v57 = vrot.slane %v9374_v52, 2  ;;  %v1931_v15 = vstv %s6239_s7  ;;  %v1937_v30 = vstv %s6243_s2  ;;  %s6527_s8 = sld [smem:[#allocation7 + $0x49]]  ;;  %s6537_s7 = sld [smem:[#allocation7 + $0x52]] }
 0x228   : > { %v6282_v62 = vadd.f32 %v9373_v41, %v1516_v45  ;;  %v1949_v26 = vstv %s6245_s24  ;;  %v365_v60 = vsel %vm271_vm7, %v362_v21, %v364_v54  ;;  %v369_v48 = vsel %vm271_vm7, %v364_v54, %v362_v21  ;;  %v9384_v41 = vld [vmem:[#allocation125_spill] sm:$0xff]  ;;  %s6539_s2 = sld [smem:[#allocation7 + $0x6d]]  ;;  %s6549_s24 = sld [smem:[#allocation7 + $0x13]] }
 0x229   : > { %v1916_v31 = vadd.f32 %v9375_v57, %v1904_v49  ;;  %v9377_v37 = vrot.slane %v9376_v38, 2  ;;  %v9379_v53 = vrot.slane %v9378_v18, 2  ;;  %v6304_v0 = vsel %vm5508_vm8, %v360_v28, %v365_v60 }
 0x22a   : > { %v6308_v44 = vsel %vm5522_vm9, %v357_v42, %v369_v48  ;;  %v9381_v58 = vrot.slane %v9380_v20, 2  ;;  %v9383_v22 = vrot.slane %v9382_v11, 3  ;;  %v732_v50 = vmul.f32 %v731_v29, %v6304_v0 }
 0x22b   : > { %v717_v10 = vadd.f32 %v9377_v37, %v6154_v59  ;;  %v1117_v55 = vadd.f32 %v9379_v53, %v6179_v33  ;;  %v6300_v47 = vadd.f32 %v1924_v19, %v1916_v31  ;;  %v733_v33 = vmul.f32 %v731_v29, %v6308_v44 }
 0x22c   : > { %v1517_v25 = vadd.f32 %v9381_v58, %v1505_v27  ;;  %v738_v19 = vmul.f32 %v737_v34, %v6304_v0  ;;  %v739_v39 = vmul.f32 %v737_v34, %v6308_v44  ;;  %v750_v28 = vmul.f32 %v749_v12, %v6304_v0 }
 0x22d   : > { %v729_v59 = vadd.f32 %v9383_v22, %v717_v10  ;;  %v751_v45 = vmul.f32 %v749_v12, %v6308_v44  ;;  %v762_v42 = vmul.f32 %v761_v46, %v6304_v0  ;;  %v1961_v16 = vstv %s6270_s15  ;;  %9398 = sst [smem:[#allocation123_spill]] %s6527_s8  ;;  %s6551_s15 = sld [smem:[#allocation7 + $0x1c]] }
 0x22e   : > { %v734_v5 = vadd.f32 %v732_v50, %v728_v7  ;;  %v742_v49 = vrot.slane %v738_v19, 1  ;;  %v743_v4 = vrot.slane %v739_v39, 1  ;;  %v754_v63 = vrot.slane %v750_v28, 2  ;;  %v9386_v50 = vld [vmem:[#allocation132_spill] sm:$0xff]  ;;  %9401 = sst [smem:[#allocation126_spill]] %s6539_s2 }
 0x22f   : > { %v735_v27 = vadd.f32 %v733_v33, %v729_v59  ;;  %v755_v54 = vrot.slane %v751_v45, 2  ;;  %v6323_v21 = vmul.f32 %v761_v46, %v6308_v44  ;;  %v766_v13 = vrot.slane %v762_v42, 3 }
 0x230   : > { %v746_v29 = vadd.f32 %v742_v49, %v734_v5  ;;  %v9385_v34 = vrot.slane %v9384_v41, 3  ;;  %v1132_v57 = vmul.f32 %v1131_v24, %v6304_v0  ;;  %v1133_v31 = vmul.f32 %v1131_v24, %v6308_v44 }
 0x231   : > { %v747_v12 = vadd.f32 %v743_v4, %v735_v27  ;;  %v1138_v7 = vmul.f32 %v1137_v23, %v6304_v0  ;;  %v1139_v60 = vmul.f32 %v1137_v23, %v6308_v44  ;;  %v1150_v37 = vmul.f32 %v1149_v43, %v6304_v0 }
 0x232   : > { %v1129_v52 = vadd.f32 %v9385_v34, %v1117_v55  ;;  %v758_v48 = vadd.f32 %v754_v63, %v746_v29  ;;  %v1134_v38 = vadd.f32 %v1132_v57, %v1128_v36  ;;  %v1151_v46 = vmul.f32 %v1149_v43, %v6308_v44 }
 0x233   : > { %v767_v10 = vrot.slane %v6323_v21, 3  ;;  %v1142_v53 = vrot.slane %v1138_v7, 1  ;;  %v1143_v55 = vrot.slane %v1139_v60, 1  ;;  %v759_v20 = vadd.f32 %v755_v54, %v747_v12  ;;  %9404 = sst [smem:[#allocation35_spill]] %s6551_s15 }
 0x234   : > { %v1135_v18 = vadd.f32 %v1133_v31, %v1129_v52  ;;  %v6334_v58 = vadd.f32 %v766_v13, %v758_v48  ;;  %v1154_v24 = vrot.slane %v1150_v37, 2  ;;  %v1162_v11 = vmul.f32 %v1161_v56, %v6304_v0 }
 0x235   : > { %v1146_v23 = vadd.f32 %v1142_v53, %v1134_v38  ;;  %v1155_v22 = vrot.slane %v1151_v46, 2  ;;  %v1163_v59 = vmul.f32 %v1161_v56, %v6308_v44  ;;  %v9387_v33 = vrot.slane %v9386_v50, 3 }
 0x236   : > { %v1147_v36 = vadd.f32 %v1143_v55, %v1135_v18  ;;  %v1166_v43 = vrot.slane %v1162_v11, 3  ;;  %v1532_v39 = vmul.f32 %v1531_v2, %v6304_v0  ;;  %v1533_v28 = vmul.f32 %v1531_v2, %v6308_v44 }
 0x237   : > { %v1529_v19 = vadd.f32 %v9387_v33, %v1517_v25  ;;  %v1158_v45 = vadd.f32 %v1154_v24, %v1146_v23  ;;  %v1167_v5 = vrot.slane %v1163_v59, 3  ;;  %v1538_v27 = vmul.f32 %v1537_v8, %v6304_v0 }
 0x238   : > { %v1159_v42 = vadd.f32 %v1155_v22, %v1147_v36  ;;  %v1534_v56 = vadd.f32 %v1532_v39, %v6282_v62  ;;  %v1539_v25 = vmul.f32 %v1537_v8, %v6308_v44  ;;  %v1550_v4 = vmul.f32 %v1549_v61, %v6304_v0 }
 0x239   : > { %v1535_v49 = vadd.f32 %v1533_v28, %v1529_v19  ;;  %v1170_v2 = vadd.f32 %v1166_v43, %v1158_v45  ;;  %v1542_v54 = vrot.slane %v1538_v27, 1  ;;  %v1551_v21 = vmul.f32 %v1549_v61, %v6308_v44 }
 0x23a   : > { %v1171_v63 = vadd.f32 %v1167_v5, %v1159_v42  ;;  %v1543_v29 = vrot.slane %v1539_v25, 1  ;;  %v1554_v13 = vrot.slane %v1550_v4, 2  ;;  %v1562_v62 = vmul.f32 %v1561_v51, %v6304_v0 }
 0x23b   : > { %v1563_v8 = vmul.f32 %v1561_v51, %v6308_v44  ;;  %v1546_v41 = vadd.f32 %v1542_v54, %v1534_v56  ;;  %v1555_v34 = vrot.slane %v1551_v21, 2  ;;  %v1917_v52 = vadd.f32 %v1913_v1, %v6276_v32 }
 0x23c   : > { %v1932_v61 = vmul.f32 %v1931_v15, %v6304_v0  ;;  %v1547_v57 = vadd.f32 %v1543_v29, %v1535_v49  ;;  %v1566_v12 = vrot.slane %v1562_v62, 3  ;;  %v1933_v7 = vmul.f32 %v1931_v15, %v6308_v44 }
 0x23d   : > { %v1567_v31 = vrot.slane %v1563_v8, 3  ;;  %v1558_v60 = vadd.f32 %v1554_v13, %v1546_v41  ;;  %v1929_v51 = vadd.f32 %v1925_v35, %v1917_v52  ;;  %v1938_v14 = vmul.f32 %v1937_v30, %v6304_v0 }
 0x23e   : > { %v1934_v48 = vadd.f32 %v1932_v61, %v6300_v47  ;;  %v1559_v1 = vadd.f32 %v1555_v34, %v1547_v57  ;;  %v1939_v32 = vmul.f32 %v1937_v30, %v6308_v44  ;;  %v1950_v38 = vmul.f32 %v1949_v26, %v6304_v0 }
 0x23f   : > { %v1951_v15 = vmul.f32 %v1949_v26, %v6308_v44  ;;  %v1570_v37 = vadd.f32 %v1566_v12, %v1558_v60  ;;  %v1935_v46 = vadd.f32 %v1933_v7, %v1929_v51  ;;  %v1942_v6 = vrot.slane %v1938_v14, 1 }
 0x240   : > { %v1962_v35 = vmul.f32 %v1961_v16, %v6304_v0  ;;  %v771_v47 = vadd.f32 %v767_v10, %v759_v20  ;;  %v1571_v18 = vadd.f32 %v1567_v31, %v1559_v1  ;;  %v1943_v53 = vrot.slane %v1939_v32, 1 }
 0x241   : > { %v1954_v55 = vrot.slane %v1950_v38, 2  ;;  %v1946_v24 = vadd.f32 %v1942_v6, %v1934_v48  ;;  %v1955_v11 = vrot.slane %v1951_v15, 2  ;;  %v1963_v30 = vmul.f32 %v1961_v16, %v6308_v44 }
 0x242   : > { %v1974_v23 = vrot.slane %v1170_v2, 7  ;;  %v1947_v36 = vadd.f32 %v1943_v53, %v1935_v46  ;;  %v1975_v22 = vrot.slane %v1171_v63, 7  ;;  %v1980_v59 = vrot.slane %v1570_v37, 6 }
 0x243   : > { %v1981_v26 = vrot.slane %v1571_v18, 6  ;;  %v1958_v43 = vadd.f32 %v1954_v55, %v1946_v24  ;;  %v1966_v50 = vrot.slane %v1962_v35, 3  ;;  %v1967_v10 = vrot.slane %v1963_v30, 3 }
 0x244   : > { %v1991_v33 = vsel %vm1990_vm10, %v6334_v58, %v1974_v23  ;;  %v1959_v0 = vadd.f32 %v1955_v11, %v1947_v36  ;;  %v1992_v20 = vsel %vm1990_vm10, %v771_v47, %v1975_v22  ;;  %v2318_v29 = vstv %s6472_s28  ;;  %s6601_s28 = sld [smem:[#allocation7 + $0x19]] }
 0x245   : > { %v1994_v19 = vsel %vm1993_vm11, %v1991_v33, %v1980_v59  ;;  %v1970_v39 = vadd.f32 %v1966_v50, %v1958_v43  ;;  %v1995_v28 = vsel %vm1993_vm11, %v1992_v20, %v1981_v26  ;;  %v2330_v13 = vstv %s6474_s18  ;;  %s6603_s18 = sld [smem:[#allocation7 + $0x22]] }
 0x246   : > { %v1971_v44 = vadd.f32 %v1967_v10, %v1959_v0  ;;  %v2312_v62 = vstv %s6470_s0  ;;  %v2342_v8 = vstv %s6476_s10  ;;  %v2690_v41 = vstv %s6478_s23  ;;  %s6615_s10 = sld [smem:[#allocation7 + $0x2b]]  ;;  %s6687_s0 = sld [smem:[#allocation7 + $0x88]] }
 0x247   : > { %v1986_v16 = vrot.slane %v1970_v39, 5  ;;  %v2696_v34 = vstv %s6480_s9  ;;  %v2708_v52 = vstv %s6482_s12  ;;  %v2720_v61 = vstv %s6484_s22  ;;  %s6617_s9 = sld [smem:[#allocation7 + $0x34]]  ;;  %s6627_s12 = sld [smem:[#allocation7 + $0x3d]] }
 0x248   : > { %v1987_v45 = vrot.slane %v1971_v44, 5  ;;  %v3068_v57 = vstv %s6486_s1  ;;  %v3074_v7 = vstv %s6488_s27  ;;  %v3086_v60 = vstv %s6490_s6  ;;  %s6629_s22 = sld [smem:[#allocation7 + $0x46]]  ;;  %s6639_s27 = sld [smem:[#allocation7 + $0x4f]] }
 0x249   : > { %v1997_v42 = vsel %vm1996_vm12, %v1994_v19, %v1986_v16  ;;  %v3098_v14 = vstv %s6492_s3  ;;  %v3446_v1 = vstv %s6494_s14  ;;  %v3452_v15 = vstv %s6496_s29  ;;  %s6641_s6 = sld [smem:[#allocation7 + $0x76]]  ;;  %s6651_s3 = sld [smem:[#allocation7 + $0x58]] }
 0x24a   : > { %v1998_v5 = vsel %vm1996_vm12, %v1995_v28, %v1987_v45  ;;  %v6398_v27 = vmax.f32 %v1997_v42, 0.0  ;;  %v3464_v37 = vstv %s6498_s19  ;;  %v3476_v47 = vstv %s6500_s20  ;;  %s6653_s29 = sld [smem:[#allocation7 + $0x61]]  ;;  %s6673_s19 = sld [smem:[#allocation7 + $0x6a]] }
 0x24b   : > { %v6400_v58 = vmax.f32 %v1998_v5, 0.0  ;;  %s6675_s20 = sld [smem:[#allocation7 + $0x7f]]  ;;  %s6707_s23 = sld [smem:[#allocation7 + $0x7c]] }
 0x24c   : > { %2006 = vrot.lane.b32.xlu1 %v6398_v27, %s9388_s21  ;;  %v6518_v12 = vmul.f32 %v2318_v29, %v6398_v27  ;;  %v6521_v31 = vmul.f32 %v2330_v13, %v6398_v27  ;;  %v6533_v48 = vmul.f32 %v2342_v8, %v6398_v27  ;;  %v6556_v46 = vmul.f32 %v2312_v62, %v6398_v27  ;;  %s6711_s1 = sld [smem:[#allocation7 + $0x12]]  ;;  %s6729_s14 = sld [smem:[#allocation7 + $0x2d]] }
 0x24d   : > { %2002 = vrot.lane.b32.xlu0 %v6400_v58, %s9388_s21  ;;  %v6530_v51 = vmul.f32 %v2318_v29, %v6400_v58  ;;  %v6542_v32 = vmul.f32 %v2330_v13, %v6400_v58  ;;  %v6545_v38 = vmul.f32 %v2342_v8, %v6400_v58  ;;  %v6559_v6 = vmul.f32 %v2696_v34, %v6398_v27  ;;  %s6565_s21 = sld [smem:[#allocation7 + $0x37]] }
 0x24e   : > { %9396 = vst [vmem:[#allocation50_spill] sm:$0xff] %v6518_v12  ;;  %9397 = vst [vmem:[#allocation45_spill] sm:$0xff] %v6521_v31  ;;  %v6562_v35 = vmul.f32 %v2696_v34, %v6400_v58  ;;  %v6572_v55 = vmul.f32 %v2708_v52, %v6398_v27  ;;  %v6575_v24 = vmul.f32 %v2708_v52, %v6400_v58  ;;  %9423 = sst [smem:[#allocation37_spill]] %s6639_s27  ;;  %v2942_v29 = vstv %s6527_s8  ;;  %s6751_s8 = sld [smem:[#allocation7 + $0x5a]] }
 0x24f   : > { %9399 = vst [vmem:[#allocation46_spill] sm:$0xff] %v6530_v51  ;;  %9400 = vst [vmem:[#allocation56_spill] sm:$0xff] %v6533_v48  ;;  %v6584_v23 = vmul.f32 %v2720_v61, %v6398_v27  ;;  %v6587_v36 = vmul.f32 %v2720_v61, %v6400_v58  ;;  %v6596_v26 = vmul.f32 %v3074_v7, %v6398_v27  ;;  %9424 = sst [smem:[#allocation38_spill]] %s6641_s6  ;;  %v2570_v61 = vstv %s6525_s13  ;;  %s6745_s13 = sld [smem:[#allocation7 + $0x51]] }
 0x250   : > { %2095 = vrot.lane.b32.xlu1 %v6400_v58, %s9389_s4  ;;  %9402 = vst [vmem:[#allocation47_spill] sm:$0xff] %v6542_v32  ;;  %9403 = vst [vmem:[#allocation48_spill] sm:$0xff] %v6545_v38  ;;  %v6599_v43 = vmul.f32 %v3074_v7, %v6400_v58  ;;  %v6608_v0 = vmul.f32 %v3086_v60, %v6398_v27  ;;  %v6611_v10 = vmul.f32 %v3086_v60, %v6400_v58  ;;  %9431 = sst [smem:[#allocation39_spill]] %s6673_s19  ;;  %s6691_s19 = sld [smem:[#allocation7 + $0x73]] }
 0x251   : > { %2093 = vrot.lane.b32.xlu0 %v6398_v27, %s9389_s4  ;;  %9405 = vst [vmem:[#allocation61_spill] sm:$0xff] %v6556_v46  ;;  %9406 = vst [vmem:[#allocation62_spill] sm:$0xff] %v6559_v6  ;;  %s6567_s4 = sld [smem:[#allocation7 + $0x40]]  ;;  %v6620_v39 = vmul.f32 %v3098_v14, %v6398_v27  ;;  %v6623_v28 = vmul.f32 %v3098_v14, %v6400_v58  ;;  %v6632_v45 = vmul.f32 %v3452_v15, %v6398_v27  ;;  %9439 = sst [smem:[#allocation43_spill]] %s6707_s23 }
 0x252   : > { %9407 = vst [vmem:[#allocation67_spill] sm:$0xff] %v6562_v35  ;;  %9408 = vst [vmem:[#allocation68_spill] sm:$0xff] %v6572_v55  ;;  %v6635_v42 = vmul.f32 %v3452_v15, %v6400_v58  ;;  %v6656_v13 = vmul.f32 %v3476_v47, %v6398_v27  ;;  %v6659_v8 = vmul.f32 %v3476_v47, %v6400_v58  ;;  %9432 = sst [smem:[#allocation40_spill]] %s6675_s20  ;;  %v2192_v47 = vstv %s6513_s5  ;;  %s6724_s23 = sld [smem:[#allocation7 + $0x24]] }
 0x253   : > { %9409 = vst [vmem:[#allocation58_spill] sm:$0xff] %v6575_v24  ;;  %9412 = vst [vmem:[#allocation49_spill] sm:$0xff] %v6584_v23  ;;  %v6664_v34 = vmul.f32 %v2312_v62, %v6400_v58  ;;  %v6669_v52 = vmul.f32 %v2690_v41, %v6398_v27  ;;  %v6680_v60 = vmul.f32 %v2690_v41, %v6400_v58  ;;  %s6693_s20 = sld [smem:[#allocation7]]  ;;  %9441 = sst [smem:[#allocation52_spill]] %s6711_s1  ;;  %v2564_v7 = vstv %s6515_s25 }
 0x254   : > { %9413 = vst [vmem:[#allocation64_spill] sm:$0xff] %v6587_v36  ;;  %9415 = vst [vmem:[#allocation69_spill] sm:$0xff] %v6596_v26  ;;  %v6685_v62 = vmul.f32 %v3068_v57, %v6398_v27  ;;  %v6698_v41 = vmul.f32 %v3068_v57, %v6400_v58  ;;  %v2186_v57 = vstv %s6507_s16  ;;  %v6717_v15 = vmul.f32 %v3446_v1, %v6400_v58  ;;  %9445 = sst [smem:[#allocation60_spill]] %s6729_s14  ;;  %s6731_s16 = sld [smem:[#allocation7 + $0x36]] }
 0x255   : > { %9416 = vst [vmem:[#allocation59_spill] sm:$0xff] %v6599_v43  ;;  %9417 = vst [vmem:[#allocation53_spill] sm:$0xff] %v6608_v0  ;;  %v2204_v14 = vstv %s6549_s24  ;;  %s6737_s5 = sld [smem:[#allocation7 + $0x3f]]  ;;  %s6739_s25 = sld [smem:[#allocation7 + $0x48]] }
 0x256   : > { %9418 = vst [vmem:[#allocation65_spill] sm:$0xff] %v6611_v10  ;;  %9419 = vst [vmem:[#allocation70_spill] sm:$0xff] %v6620_v39  ;;  %9435 = sst [smem:[#allocation41_spill]] %s6691_s19  ;;  %s9451_s24 = sld [smem:[#allocation40_spill]] }
 0x257   : > { %9420 = vst [vmem:[#allocation71_spill] sm:$0xff] %v6623_v28  ;;  %9421 = vst [vmem:[#allocation51_spill] sm:$0xff] %v6632_v45  ;;  %s6709_s19 = sld [smem:[#allocation7 + $0x9]]  ;;  %9449 = sst [smem:[#allocation66_spill]] %s6745_s13 }
 0x258   : > { %9422 = vst [vmem:[#allocation72_spill] sm:$0xff] %v6635_v42  ;;  %9427 = vst [vmem:[#allocation74_spill] sm:$0xff] %v6656_v13  ;;  %9444 = sst [smem:[#allocation57_spill]] %s6724_s23  ;;  %s6774_s27 = sld [smem:[#allocation7 + $0x75]] }
 0x259   : > { %9428 = vst [vmem:[#allocation103_spill] sm:$0xff] %v6659_v8  ;;  %9429 = vst [vmem:[#allocation107_spill] sm:$0xff] %v6664_v34  ;;  %9436 = sst [smem:[#allocation42_spill]] %s6693_s20  ;;  %s6721_s20 = sld [smem:[#allocation7 + $0x1b]] }
 0x25a   : > { %9430 = vst [vmem:[#allocation95_spill] sm:$0xff] %v6669_v52  ;;  %9433 = vst [vmem:[#allocation96_spill] sm:$0xff] %v6680_v60  ;;  %9446 = sst [smem:[#allocation63_spill]] %s6731_s16  ;;  %s6776_s6 = sld [smem:[#allocation7 + $0x7e]] }
 0x25b   : > { %9434 = vst [vmem:[#allocation108_spill] sm:$0xff] %v6685_v62  ;;  %9437 = vst [vmem:[#allocation135_spill] sm:$0xff] %v6698_v41  ;;  %9447 = sst [smem:[#allocation28_spill]] %s6737_s5  ;;  %s6949_s13 = sld [smem:[#allocation7 + $0x53]]  ;;  %v9502_v41 = vstv %s6617_s9 }
 0x25c   : > { %9442 = vst [vmem:[#allocation100_spill] sm:$0xff] %v6717_v15  ;;  %9448 = sst [smem:[#allocation27_spill]] %s6739_s25  ;;  %s9463_s25 = sld [smem:[#allocation126_spill]] }
 0x25d   : > { %9440 = sst [smem:[#allocation44_spill]] %s6709_s19  ;;  %s6960_s5 = sld [smem:[#allocation7 + $0x6e]] }
 0x25e   : > { %9454 = sst [smem:[#allocation30_spill]] %s6751_s8  ;;  %s6980_s16 = sld [smem:[#allocation7 + $0x3]] }
 0x25f   : > { %9443 = sst [smem:[#allocation55_spill]] %s6721_s20  ;;  %s7011_s23 = sld [smem:[#allocation7 + $0x5]] }
 0x260   : > { %9458 = sst [smem:[#allocation76_spill]] %s6774_s27  ;;  %s6933_s27 = sld [smem:[#allocation7 + $0x41]] }
 0x261   : > { %9459 = sst [smem:[#allocation77_spill]] %s6776_s6  ;;  %s6917_s6 = sld [smem:[#allocation7 + $0x2f]] }
 0x262   : > { %9489 = sst [smem:[#allocation85_spill]] %s6949_s13  ;;  %s7033_s9 = sld [smem:[#allocation7 + $0xe]] }
 0x263   : > { %s7035_s14 = sld [smem:[#allocation7 + $0x17]]  ;;  %s9524_s20 = sld [smem:[#allocation38_spill]] }
 0x264   : > { %9499 = sst [smem:[#allocation87_spill]] %s6980_s16  ;;  %s7067_s1 = sld [smem:[#allocation7 + $0x18]] }
 0x265   : > { %9509 = sst [smem:[#allocation91_spill]] %s7011_s23  ;;  %s7083_s19 = sld [smem:[#allocation7 + $0x27]] }
 0x266   : > { %9484 = sst [smem:[#allocation84_spill]] %s6933_s27  ;;  %s7189_s27 = sld [smem:[#allocation7 + $0x45]] }
 0x267   : > { %9479 = sst [smem:[#allocation82_spill]] %s6917_s6  ;;  %s7199_s16 = sld [smem:[#allocation7 + $0x35]] }
 0x268   : > { %9518 = sst [smem:[#allocation92_spill]] %s7033_s9  ;;  %s7205_s23 = sld [smem:[#allocation7 + $0x3e]] }
 0x269   : > { %9519 = sst [smem:[#allocation93_spill]] %s7035_s14  ;;  %s7207_s14 = sld [smem:[#allocation7 + $0x47]] }
 0x26a   : > { %9530 = sst [smem:[#allocation94_spill]] %s7067_s1  ;;  %s7097_s1 = sld [smem:[#allocation7 + $0x30]] }
 0x26b   : > { %s9575_s6 = sld [smem:[#allocation44_spill]]  ;;  %s7243_s9 = sld [smem:[#allocation7 + $0x5d]] }
 0x26c   : > { %9564 = sst [smem:[#allocation127_spill]] %s7189_s27  ;;  %s9585_s27 = sld [smem:[#allocation57_spill]] }
 0x26d   : > { %9570 = sst [smem:[#allocation138_spill]] %s7199_s16 }
 0x26e   : > { %9572 = sst [smem:[#allocation144_spill]] %s7205_s23 }
 0x26f   : > { %9573 = sst [smem:[#allocation119_spill]] %s7207_s14  ;;  %s7349_s23 = sld [smem:[#allocation7 + $0x57]] }
 0x270   : > { %9541 = sst [smem:[#allocation98_spill]] %s7097_s1  ;;  %s7115_s1 = sld [smem:[#allocation7 + $0x42]] }
 0x271   : > { %s9602_s14 = sld [smem:[#allocation30_spill]] }
 0x275   : > { %9617 = sst [smem:[#allocation123_spill]] %s7349_s23  ;;  %s9655_s23 = sld [smem:[#allocation82_spill]] }
 0x276   : > { %9547 = sst [smem:[#allocation102_spill]] %s7115_s1  ;;  %s7148_s1 = sld [smem:[#allocation7 + $0x29]] }
 0x2be   : > { %v2007_v56 = vpop.permute.xlu1 %2006 }
 0x2bf   : > { %v2003_v49 = vpop.permute.xlu0 %2002 }
 0x2c0   : > { %v6411_v25 = vsel %vm227_vm0, %v2007_v56, %v2003_v49  ;;  %v6414_v4 = vsel %vm227_vm0, %v2003_v49, %v2007_v56  ;;  %v6644_v49 = vmul.f32 %v3464_v37, %v6398_v27 }
 0x2c1   : > { %2016 = vrot.lane.b32.xlu1 %v6414_v4, %s9390_s26  ;;  %2012 = vrot.lane.b32.xlu0 %v6411_v25, %s9390_s26  ;;  %v6772_v59 = vmul.f32 %v2192_v47, %v6414_v4  ;;  %v6781_v20 = vmul.f32 %v2192_v47, %v6411_v25  ;;  %v6784_v19 = vmul.f32 %v2570_v61, %v6414_v4 }
 0x2c2   : > { %v2096_v2 = vpop.permute.xlu1 %2095  ;;  %9425 = vst [vmem:[#allocation54_spill] sm:$0xff] %v6644_v49  ;;  %v6787_v50 = vmul.f32 %v2570_v61, %v6411_v25  ;;  %v6796_v44 = vmul.f32 %v2186_v57, %v6414_v4  ;;  %v6799_v47 = vmul.f32 %v2186_v57, %v6411_v25  ;;  %v6805_v16 = vmul.f32 %v2564_v7, %v6414_v4 }
 0x2c3   : > { %v2094_v63 = vpop.permute.xlu0 %2093  ;;  %v6808_v22 = vmul.f32 %v2564_v7, %v6411_v25  ;;  %v6819_v7 = vmul.f32 %v2942_v29, %v6414_v4  ;;  %v6830_v57 = vmul.f32 %v2942_v29, %v6411_v25  ;;  %v6834_v18 = vmul.f32 %v2204_v14, %v6414_v4 }
 0x2c4   : > { %v6449_v54 = vsel %vm325_vm1, %v2094_v63, %v2096_v2  ;;  %v6452_v21 = vsel %vm325_vm1, %v2096_v2, %v2094_v63  ;;  %v6647_v2 = vmul.f32 %v3464_v37, %v6400_v58  ;;  %v6703_v37 = vmul.f32 %v3446_v1, %v6398_v27 }
 0x2c5   : > { %2024 = vrot.lane.b32.xlu1 %v6411_v25, %s9391_s30  ;;  %2022 = vrot.lane.b32.xlu0 %v6414_v4, %s9391_s30  ;;  %9394 = vst [vmem:[#allocation88_spill] sm:$0xff] %v6449_v54  ;;  %9395 = vst [vmem:[#allocation89_spill] sm:$0xff] %v6452_v21  ;;  %v8647_v1 = vstv %s6539_s2  ;;  %v2582_v63 = vstv %s6565_s21  ;;  %s6789_s2 = sld [smem:[#allocation7 + $0x87]]  ;;  %v6837_v11 = vmul.f32 %v2204_v14, %v6411_v25  ;;  %s6883_s21 = sld [smem:[#allocation7 + $0x2]] }
 0x2c6   : > { %9426 = vst [vmem:[#allocation73_spill] sm:$0xff] %v6647_v2  ;;  %9438 = vst [vmem:[#allocation99_spill] sm:$0xff] %v6703_v37  ;;  %v6857_v14 = vmul.f32 %v8647_v1, %v6414_v4  ;;  %v6862_v30 = vmul.f32 %v2582_v63, %v6414_v4  ;;  %v6867_v5 = vmul.f32 %v2582_v63, %v6411_v25 }
 0x2c7   : > { %v6991_v62 = vmul.f32 %v9502_v41, %v6449_v54 }
 0x2c9   : > { %2036 = vrot.lane.b32.xlu1 %v6414_v4, %s9392_s11  ;;  %2033 = vrot.lane.b32.xlu0 %v6411_v25, %s9392_s11  ;;  %9503 = vst [vmem:[#allocation143_spill] sm:$0xff] %v6991_v62 }
 0x2cb   : > { %9460 = sst [smem:[#allocation78_spill]] %s6789_s2  ;;  %s6906_s2 = sld [smem:[#allocation7 + $0x1d]] }
 0x2cc   : > { %9469 = sst [smem:[#allocation32_spill]] %s6883_s21  ;;  %s7161_s21 = sld [smem:[#allocation7 + $0x3b]] }
 0x2cd   : > { %2044 = vrot.lane.b32.xlu1 %v6411_v25, %s9393_s17  ;;  %2042 = vrot.lane.b32.xlu0 %v6414_v4, %s9393_s17  ;;  %s9626_s16 = sld [smem:[#allocation78_spill]] }
 0x2d1   : > { %2056 = vrot.lane.b32.xlu1 %v6398_v27, %s9390_s26  ;;  %2053 = vrot.lane.b32.xlu0 %v6400_v58, %s9390_s26  ;;  %9475 = sst [smem:[#allocation81_spill]] %s6906_s2  ;;  %s7176_s2 = sld [smem:[#allocation7 + $0x33]] }
 0x2d5   : > { %2064 = vrot.lane.b32.xlu1 %v6400_v58, %s9391_s30  ;;  %2062 = vrot.lane.b32.xlu0 %v6398_v27, %s9391_s30 }
 0x2d7   : > { %9561 = sst [smem:[#allocation115_spill]] %s7176_s2  ;;  %s9578_s2 = sld [smem:[#allocation55_spill]] }
 0x2d9   : > { %2076 = vrot.lane.b32.xlu1 %v6398_v27, %s9392_s11  ;;  %2073 = vrot.lane.b32.xlu0 %v6400_v58, %s9392_s11 }
 0x2dd   : > { %2084 = vrot.lane.b32.xlu1 %v6400_v58, %s9393_s17  ;;  %2082 = vrot.lane.b32.xlu0 %v6398_v27, %s9393_s17  ;;  %v2948_v58 = vstv %s6537_s7  ;;  %v2216_v27 = vstv %s6551_s15  ;;  %s9450_s7 = sld [smem:[#allocation39_spill]] }
 0x2de   : > { %v6822_v53 = vmul.f32 %v2948_v58, %v6414_v4  ;;  %v6825_v33 = vmul.f32 %v2948_v58, %v6411_v25  ;;  %v6846_v58 = vmul.f32 %v2216_v27, %v6414_v4  ;;  %v6851_v29 = vmul.f32 %v2216_v27, %v6411_v25 }
 0x2df   : > { %v9467_v27 = vstv %s6567_s4  ;;  %s6904_s4 = sld [smem:[#allocation7 + $0x14]] }
 0x2e0   : > { %v6874_v61 = vmul.f32 %v9467_v27, %v6414_v4  ;;  %v9468_v1 = vmov %v9467_v27 }
 0x2e1   : > { %2103 = vrot.lane.b32.xlu0 %v6452_v21, %s9390_s26  ;;  %2106 = vrot.lane.b32.xlu1 %v6449_v54, %s9390_s26  ;;  %s6577_s26 = sld [smem:[#allocation7 + $0x5b]]  ;;  %v6879_v13 = vmul.f32 %v9468_v1, %v6411_v25  ;;  %v9473_v1 = vstv %s9463_s25  ;;  %s6915_s25 = sld [smem:[#allocation7 + $0x26]] }
 0x2e2   : > { %v6900_v42 = vmul.f32 %v9473_v1, %v6411_v25 }
 0x2e5   : > { %2112 = vrot.lane.b32.xlu0 %v6449_v54, %s9391_s30  ;;  %2114 = vrot.lane.b32.xlu1 %v6452_v21, %s9391_s30  ;;  %s6579_s30 = sld [smem:[#allocation7 + $0x64]]  ;;  %9474 = sst [smem:[#allocation80_spill]] %s6904_s4 }
 0x2e6   : > { %s7169_s4 = sld [smem:[#allocation7 + $0x2a]] }
 0x2e7   : > { %9410 = sst [smem:[#allocation137_spill]] %s6577_s26  ;;  %s6885_s26 = sld [smem:[#allocation7 + $0xb]] }
 0x2e8   : > { %s9465_s8 = sld [smem:[#allocation137_spill]]  ;;  %9478 = sst [smem:[#allocation33_spill]] %s6915_s25 }
 0x2e9   : > { %2123 = vrot.lane.b32.xlu0 %v6452_v21, %s9392_s11  ;;  %2126 = vrot.lane.b32.xlu1 %v6449_v54, %s9392_s11  ;;  %s6591_s11 = sld [smem:[#allocation7 + $0x7]]  ;;  %s7178_s25 = sld [smem:[#allocation7 + $0x3c]] }
 0x2eb   : > { %9411 = sst [smem:[#allocation147_spill]] %s6579_s30  ;;  %s6757_s30 = sld [smem:[#allocation7 + $0x63]] }
 0x2ec   : > { %s9466_s15 = sld [smem:[#allocation147_spill]]  ;;  %9560 = sst [smem:[#allocation112_spill]] %s7169_s4 }
 0x2ed   : > { %2132 = vrot.lane.b32.xlu0 %v6449_v54, %s9393_s17  ;;  %2134 = vrot.lane.b32.xlu1 %v6452_v21, %s9393_s17  ;;  %s6593_s17 = sld [smem:[#allocation7 + $0x10]]  ;;  %9470 = sst [smem:[#allocation79_spill]] %s6885_s26 }
 0x2ee   : > { %v9471_v63 = vstv %s9465_s8  ;;  %s7191_s26 = sld [smem:[#allocation7 + $0x65]]  ;;  %s9577_s4 = sld [smem:[#allocation42_spill]] }
 0x2ef   : > { %9414 = sst [smem:[#allocation148_spill]] %s6591_s11  ;;  %s6763_s11 = sld [smem:[#allocation7 + $0x6c]]  ;;  %v6890_v8 = vmul.f32 %v9471_v63, %v6414_v4  ;;  %v9472_v27 = vmov %v9471_v63 }
 0x2f0   : > { %v6895_v56 = vmul.f32 %v9472_v27, %v6411_v25  ;;  %s9477_s8 = sld [smem:[#allocation148_spill]]  ;;  %9562 = sst [smem:[#allocation116_spill]] %s7178_s25 }
 0x2f1   : > { %9456 = sst [smem:[#allocation29_spill]] %s6757_s30  ;;  %s9567_s25 = sld [smem:[#allocation98_spill]] }
 0x2f2   : > { %s6839_s30 = sld [smem:[#allocation7 + $0x85]]  ;;  %v9476_v63 = vstv %s9466_s15  ;;  %s6947_s15 = sld [smem:[#allocation7 + $0x4a]] }
 0x2f3   : > { %v6911_v45 = vmul.f32 %v9476_v63, %v6414_v4  ;;  %v9480_v2 = vmov %v9476_v63  ;;  %v9481_v15 = vstv %s6593_s17  ;;  %s6958_s17 = sld [smem:[#allocation7 + $0x5c]] }
 0x2f4   : > { %v6922_v49 = vmul.f32 %v9480_v2, %v6411_v25  ;;  %v6927_v37 = vmul.f32 %v9481_v15, %v6449_v54  ;;  %v9485_v1 = vmov %v9481_v15  ;;  %v9487_v2 = vstv %s6601_s28  ;;  %9566 = sst [smem:[#allocation130_spill]] %s7191_s26  ;;  %s9584_s26 = sld [smem:[#allocation60_spill]] }
 0x2f5   : > { %9457 = sst [smem:[#allocation75_spill]] %s6763_s11  ;;  %s6931_s11 = sld [smem:[#allocation7 + $0x38]]  ;;  %v6938_v28 = vmul.f32 %v9485_v1, %v6452_v21  ;;  %v6943_v39 = vmul.f32 %v9487_v2, %v6449_v54  ;;  %v9494_v15 = vstv %s6601_s28 }
 0x2f6   : > { %9482 = vst [vmem:[#allocation136_spill] sm:$0xff] %v6927_v37  ;;  %v9490_v27 = vstv %s9477_s8  ;;  %v6970_v43 = vmul.f32 %v9494_v15, %v6452_v21  ;;  %s6993_s28 = sld [smem:[#allocation7 + $0xc]]  ;;  %s6995_s8 = sld [smem:[#allocation7 + $0x15]] }
 0x2f7   : > { %9486 = vst [vmem:[#allocation139_spill] sm:$0xff] %v6938_v28  ;;  %9488 = vst [vmem:[#allocation26_spill] sm:$0xff] %v6943_v39  ;;  %v6954_v10 = vmul.f32 %v9490_v27, %v6449_v54  ;;  %v9492_v2 = vmov %v9490_v27  ;;  %v9496_v27 = vstv %s6603_s18  ;;  %s7009_s18 = sld [smem:[#allocation7 + $0x1e]] }
 0x2f8   : > { %9464 = sst [smem:[#allocation31_spill]] %s6839_s30  ;;  %v6965_v63 = vmul.f32 %v9492_v2, %v6452_v21  ;;  %9495 = vst [vmem:[#allocation109_spill] sm:$0xff] %v6970_v43  ;;  %v6975_v1 = vmul.f32 %v9496_v27, %v6449_v54  ;;  %v9500_v26 = vmov %v9496_v27  ;;  %v9505_v2 = vmov %v9502_v41 }
 0x2f9   : > { %9491 = vst [vmem:[#allocation104_spill] sm:$0xff] %v6954_v10  ;;  %s6978_s30 = sld [smem:[#allocation7 + $0x77]]  ;;  %v6986_v15 = vmul.f32 %v9500_v26, %v6452_v21  ;;  %v7002_v36 = vmul.f32 %v9505_v2, %v6452_v21  ;;  %v9507_v26 = vstv %s6627_s12  ;;  %v9510_v41 = vstv %s6615_s10  ;;  %s7049_s10 = sld [smem:[#allocation7 + $0x20]] }
 0x2fa   : > { %9493 = vst [vmem:[#allocation141_spill] sm:$0xff] %v6965_v63  ;;  %9497 = vst [vmem:[#allocation113_spill] sm:$0xff] %v6975_v1  ;;  %v7007_v23 = vmul.f32 %v9507_v26, %v6449_v54  ;;  %v7016_v37 = vmul.f32 %v9510_v41, %v6449_v54  ;;  %v9512_v0 = vmov %v9510_v41  ;;  %v9514_v2 = vmov %v9507_v26  ;;  %s7051_s12 = sld [smem:[#allocation7 + $0x6]] }
 0x2fb   : > { %9483 = sst [smem:[#allocation83_spill]] %s6931_s11  ;;  %9501 = vst [vmem:[#allocation142_spill] sm:$0xff] %v6986_v15  ;;  %9506 = vst [vmem:[#allocation120_spill] sm:$0xff] %v7002_v36  ;;  %v7021_v27 = vmul.f32 %v9512_v0, %v6452_v21  ;;  %v7026_v39 = vmul.f32 %v9514_v2, %v6452_v21  ;;  %v9516_v26 = vstv %s6629_s22  ;;  %v9522_v2 = vstv %s6651_s3  ;;  %s7065_s22 = sld [smem:[#allocation7 + $0xf]] }
 0x2fc   : > { %9504 = sst [smem:[#allocation90_spill]] %s6995_s8  ;;  %9508 = vst [vmem:[#allocation117_spill] sm:$0xff] %v7007_v23  ;;  %9511 = vst [vmem:[#allocation140_spill] sm:$0xff] %v7016_v37  ;;  %v7031_v28 = vmul.f32 %v9516_v26, %v6449_v54  ;;  %v9520_v0 = vmov %v9516_v26  ;;  %v7047_v24 = vmul.f32 %v9522_v2, %v6449_v54  ;;  %v9525_v37 = vmov %v9522_v2  ;;  %s7081_s3 = sld [smem:[#allocation7 + $0x21]] }
 0x2fd   : > { %9513 = vst [vmem:[#allocation124_spill] sm:$0xff] %v7021_v27  ;;  %9515 = vst [vmem:[#allocation128_spill] sm:$0xff] %v7026_v39  ;;  %v7042_v27 = vmul.f32 %v9520_v0, %v6452_v21  ;;  %v7058_v1 = vmul.f32 %v9525_v37, %v6452_v21  ;;  %v9527_v0 = vstv %s6653_s29  ;;  %v9533_v37 = vstv %s9450_s7  ;;  %s9539_s29 = sld [smem:[#allocation37_spill]]  ;;  %s7113_s7 = sld [smem:[#allocation7 + $0x8]] }
 0x2fe   : > { %9517 = vst [vmem:[#allocation110_spill] sm:$0xff] %v7031_v28  ;;  %9523 = vst [vmem:[#allocation131_spill] sm:$0xff] %v7047_v24  ;;  %v7063_v43 = vmul.f32 %v9527_v0, %v6449_v54  ;;  %v9531_v41 = vmov %v9527_v0  ;;  %v7079_v15 = vmul.f32 %v9533_v37, %v6449_v54  ;;  %v9536_v26 = vmov %v9533_v37  ;;  %s9571_s8 = sld [smem:[#allocation102_spill]]  ;;  %s7219_s11 = sld [smem:[#allocation7 + $0x54]] }
 0x2ff   : > { %9498 = sst [smem:[#allocation86_spill]] %s6978_s30  ;;  %9521 = vst [vmem:[#allocation111_spill] sm:$0xff] %v7042_v27  ;;  %9526 = vst [vmem:[#allocation134_spill] sm:$0xff] %v7058_v1  ;;  %v7074_v62 = vmul.f32 %v9531_v41, %v6452_v21  ;;  %v7090_v23 = vmul.f32 %v9536_v26, %v6452_v21  ;;  %v9538_v41 = vstv %s9524_s20  ;;  %v9545_v26 = vstv %s9451_s24  ;;  %s7129_s20 = sld [smem:[#allocation7 + $0x11]] }
 0x300   : > { %9528 = vst [vmem:[#allocation114_spill] sm:$0xff] %v7063_v43  ;;  %9534 = vst [vmem:[#allocation129_spill] sm:$0xff] %v7079_v15  ;;  %v7095_v36 = vmul.f32 %v9538_v41, %v6414_v4  ;;  %v9543_v2 = vmov %v9538_v41  ;;  %v7111_v39 = vmul.f32 %v9545_v26, %v6414_v4  ;;  %v9548_v0 = vmov %v9545_v26  ;;  %s7146_s24 = sld [smem:[#allocation7 + $0x23]]  ;;  %s7197_s30 = sld [smem:[#allocation7 + $0x2c]] }
 0x301   : > { %9529 = sst [smem:[#allocation34_spill]] %s7065_s22  ;;  %9532 = vst [vmem:[#allocation121_spill] sm:$0xff] %v7074_v62  ;;  %9537 = vst [vmem:[#allocation118_spill] sm:$0xff] %v7090_v23  ;;  %v7106_v28 = vmul.f32 %v9543_v2, %v6411_v25  ;;  %v7122_v24 = vmul.f32 %v9548_v0, %v6411_v25  ;;  %v9550_v2 = vstv %s6687_s0  ;;  %s7217_s22 = sld [smem:[#allocation7 + $0x4b]] }
 0x302   : > { %9535 = sst [smem:[#allocation97_spill]] %s7081_s3  ;;  %9540 = vst [vmem:[#allocation125_spill] sm:$0xff] %v7095_v36  ;;  %s7099_s3 = sld [smem:[#allocation7 + $0x39]]  ;;  %9546 = vst [vmem:[#allocation149_spill] sm:$0xff] %v7111_v39  ;;  %v7127_v27 = vmul.f32 %v9550_v2, %v6414_v4  ;;  %v9555_v0 = vmov %v9550_v2  ;;  %v9588_v39 = vstv %s9578_s2 }
 0x303   : > { %9544 = vst [vmem:[#allocation132_spill] sm:$0xff] %v7106_v28  ;;  %9549 = vst [vmem:[#allocation150_spill] sm:$0xff] %v7122_v24  ;;  %v9553_v26 = vstv %s9539_s29  ;;  %v7143_v43 = vmul.f32 %v9555_v0, %v6411_v25  ;;  %s7159_s0 = sld [smem:[#allocation7 + $0x32]]  ;;  %s7167_s29 = sld [smem:[#allocation7 + $0x44]]  ;;  %v9589_v28 = vmov %v9588_v39 }
 0x304   : > { %9551 = vst [vmem:[#allocation151_spill] sm:$0xff] %v7127_v27  ;;  %v7136_v55 = vmul.f32 %v9553_v26, %v6449_v54  ;;  %v9557_v2 = vmov %v9553_v26  ;;  %s9595_s2 = sld [smem:[#allocation28_spill]] }
 0x305   : > { %9556 = vst [vmem:[#allocation153_spill] sm:$0xff] %v7143_v43  ;;  %v7153_v26 = vmul.f32 %v9557_v2, %v6452_v21 }
 0x306   : > { %9554 = vst [vmem:[#allocation152_spill] sm:$0xff] %v7136_v55  ;;  %9569 = sst [smem:[#allocation133_spill]] %s7197_s30  ;;  %s9618_s30 = sld [smem:[#allocation75_spill]] }
 0x307   : > { %9558 = vst [vmem:[#allocation154_spill] sm:$0xff] %v7153_v26 }
 0x308   : > { %9542 = sst [smem:[#allocation101_spill]] %s7099_s3  ;;  %s7131_s3 = sld [smem:[#allocation7 + $0x1a]] }
 0x309   : > { %9559 = sst [smem:[#allocation106_spill]] %s7167_s29  ;;  %s9568_s13 = sld [smem:[#allocation101_spill]] }
 0x30a   : > { %s7245_s29 = sld [smem:[#allocation7 + $0x66]] }
 0x30e   : > { %9552 = sst [smem:[#allocation105_spill]] %s7131_s3  ;;  %s9576_s3 = sld [smem:[#allocation52_spill]] }
 0x310   : > { %9579 = sst [smem:[#allocation122_spill]] %s7245_s29  ;;  %s7375_s29 = sld [smem:[#allocation7 + $0x80]] }
 0x316   : > { %9627 = sst [smem:[#allocation137_spill]] %s7375_s29  ;;  %s9648_s29 = sld [smem:[#allocation32_spill]] }
 0x333   : > { %v2017_v15 = vpop.permute.xlu1 %2016  ;;  %v2013_v0 = vpop.permute.xlu0 %2012 }
 0x334   : > { %v2018_v1 = vsel %vm238_vm2, %v2017_v15, %v2013_v0  ;;  %v2021_v37 = vsel %vm238_vm2, %v2013_v0, %v2017_v15 }
 0x337   : > { %v2025_v21 = vpop.permute.xlu1 %2024  ;;  %v2023_v54 = vpop.permute.xlu0 %2022 }
 0x338   : > { %v2026_v23 = vsel %vm247_vm3, %v2023_v54, %v2025_v21  ;;  %v2030_v26 = vsel %vm247_vm3, %v2025_v21, %v2023_v54  ;;  %v9580_v54 = vstv %s9575_s6  ;;  %s9590_s6 = sld [smem:[#allocation63_spill]] }
 0x339   : > { %v7235_v2 = vsel %vm5358_vm4, %v2021_v37, %v2026_v23  ;;  %v7239_v4 = vsel %vm5364_vm5, %v2018_v1, %v2030_v26  ;;  %v9581_v23 = vmov %v9580_v54  ;;  %v9582_v26 = vstv %s9576_s3  ;;  %s7307_s3 = sld [smem:[#allocation7 + $0x56]] }
 0x33a   : > { %v2151_v21 = vmul.f32 %v9580_v54, %v7235_v2  ;;  %v2152_v15 = vmul.f32 %v9581_v23, %v7239_v4  ;;  %v2163_v0 = vmul.f32 %v9582_v26, %v7235_v2  ;;  %v9583_v25 = vmov %v9582_v26 }
 0x33b   : > { %v2164_v62 = vmul.f32 %v9583_v25, %v7239_v4  ;;  %v7261_v41 = vpop.permute.xlu1 %2036  ;;  %v7263_v55 = vpop.permute.xlu0 %2033  ;;  %v9586_v23 = vstv %s9577_s4  ;;  %v2175_v25 = vmul.f32 %v9588_v39, %v7235_v2  ;;  %v2176_v36 = vmul.f32 %v9589_v28, %v7239_v4  ;;  %s9596_s4 = sld [smem:[#allocation66_spill]] }
 0x33c   : > { %v2145_v37 = vmul.f32 %v9586_v23, %v7235_v2  ;;  %v9587_v1 = vmov %v9586_v23  ;;  %v2155_v26 = vrot.slane %v2151_v21, 1  ;;  %v2156_v24 = vrot.slane %v2152_v15, 1 }
 0x33d   : > { %v2146_v27 = vmul.f32 %v9587_v1, %v7239_v4  ;;  %v9591_v23 = vstv %s9584_s26  ;;  %v2167_v1 = vrot.slane %v2163_v0, 2  ;;  %v2168_v6 = vrot.slane %v2164_v62, 2  ;;  %s9599_s26 = sld [smem:[#allocation27_spill]] }
 0x33e   : > { %v2159_v43 = vadd.f32 %v2155_v26, %v2145_v37  ;;  %v2529_v35 = vmul.f32 %v9591_v23, %v7235_v2  ;;  %v9592_v21 = vmov %v9591_v23  ;;  %v9593_v39 = vstv %s9585_s27  ;;  %s7305_s27 = sld [smem:[#allocation7 + $0x4d]] }
 0x33f   : > { %v2160_v10 = vadd.f32 %v2156_v24, %v2146_v27  ;;  %v2530_v15 = vmul.f32 %v9592_v21, %v7239_v4  ;;  %v2523_v60 = vmul.f32 %v9593_v39, %v7235_v2  ;;  %v9594_v28 = vmov %v9593_v39  ;;  %v7293_v54 = vpop.permute.xlu1 %2044  ;;  %v7295_v37 = vpop.permute.xlu0 %2042  ;;  %9601 = sst [smem:[#allocation39_spill]] %s7307_s3  ;;  %s7367_s3 = sld [smem:[#allocation7 + $0x69]] }
 0x340   : > { %v2524_v52 = vmul.f32 %v9594_v28, %v7239_v4  ;;  %v2533_v24 = vrot.slane %v2529_v35, 1  ;;  %v9597_v26 = vstv %s9590_s6  ;;  %v2179_v21 = vrot.slane %v2175_v25, 3  ;;  %s9610_s6 = sld [smem:[#allocation29_spill]] }
 0x341   : > { %v2534_v27 = vrot.slane %v2530_v15, 1  ;;  %v2541_v0 = vmul.f32 %v9597_v26, %v7235_v2  ;;  %v9598_v62 = vmov %v9597_v26  ;;  %v2180_v39 = vrot.slane %v2176_v36, 3 }
 0x342   : > { %v2542_v23 = vmul.f32 %v9598_v62, %v7239_v4  ;;  %v2171_v35 = vadd.f32 %v2167_v1, %v2159_v43  ;;  %v2172_v15 = vadd.f32 %v2168_v6, %v2160_v10  ;;  %v2537_v38 = vadd.f32 %v2533_v24, %v2523_v60 }
 0x343   : > { %v2538_v48 = vadd.f32 %v2534_v27, %v2524_v52  ;;  %v9603_v26 = vstv %s9595_s2  ;;  %v9605_v36 = vstv %s9596_s4  ;;  %v2545_v51 = vrot.slane %v2541_v0, 2  ;;  %v7327_v60 = vpop.permute.xlu1 %2056  ;;  %v7329_v1 = vpop.permute.xlu0 %2053  ;;  %s7337_s2 = sld [smem:[#allocation7 + $0x5f]]  ;;  %s7339_s4 = sld [smem:[#allocation7 + $0x68]] }
 0x344   : > { %9600 = sst [smem:[#allocation36_spill]] %s7305_s27  ;;  %v2553_v32 = vmul.f32 %v9603_v26, %v7235_v2  ;;  %v9604_v25 = vmov %v9603_v26  ;;  %v2907_v28 = vmul.f32 %v9605_v36, %v7235_v2  ;;  %v9606_v63 = vmov %v9605_v36  ;;  %9609 = vst [vmem:[#allocation155_spill] sm:$0xff] %v7327_v60  ;;  %s7365_s27 = sld [smem:[#allocation7 + $0x60]] }
 0x345   : > { %v2554_v62 = vmul.f32 %v9604_v25, %v7239_v4  ;;  %v2908_v31 = vmul.f32 %v9606_v63, %v7239_v4  ;;  %v2546_v12 = vrot.slane %v2542_v23, 2  ;;  %v9607_v43 = vstv %s9599_s26  ;;  %s7347_s26 = sld [smem:[#allocation7 + $0x4e]]  ;;  %9623 = sst [smem:[#allocation126_spill]] %s7367_s3 }
 0x346   : > { %v2901_v6 = vmul.f32 %v9607_v43, %v7235_v2  ;;  %v9608_v10 = vmov %v9607_v43  ;;  %v2911_v24 = vrot.slane %v2907_v28, 1  ;;  %v9611_v26 = vstv %s9602_s14  ;;  %s9615_s14 = sld [smem:[#allocation76_spill]]  ;;  %s9649_s3 = sld [smem:[#allocation80_spill]] }
 0x347   : > { %v2902_v52 = vmul.f32 %v9608_v10, %v7239_v4  ;;  %v2912_v27 = vrot.slane %v2908_v31, 1  ;;  %v2919_v25 = vmul.f32 %v9611_v26, %v7235_v2  ;;  %v9612_v63 = vmov %v9611_v26 }
 0x348   : > { %v2920_v0 = vmul.f32 %v9612_v63, %v7239_v4  ;;  %v2183_v23 = vadd.f32 %v2179_v21, %v2171_v35  ;;  %v2184_v36 = vadd.f32 %v2180_v39, %v2172_v15  ;;  %v2549_v43 = vadd.f32 %v2545_v51, %v2537_v38 }
 0x349   : > { %v2550_v34 = vadd.f32 %v2546_v12, %v2538_v48  ;;  %v2915_v10 = vadd.f32 %v2911_v24, %v2901_v6  ;;  %v2916_v46 = vadd.f32 %v2912_v27, %v2902_v52  ;;  %v2923_v9 = vrot.slane %v2919_v25, 2  ;;  %v7353_v6 = vpop.permute.xlu1 %2064  ;;  %v7355_v52 = vpop.permute.xlu0 %2062 }
 0x34a   : > { %v2924_v17 = vrot.slane %v2920_v0, 2  ;;  %v2557_v31 = vrot.slane %v2553_v32, 3  ;;  %v2558_v28 = vrot.slane %v2554_v62, 3  ;;  %v9613_v26 = vstv %s9610_s6  ;;  %s9619_s6 = sld [smem:[#allocation77_spill]]  ;;  %9622 = sst [smem:[#allocation35_spill]] %s7365_s27 }
 0x34b   : > { %v2931_v60 = vmul.f32 %v9613_v26, %v7235_v2  ;;  %v9614_v21 = vmov %v9613_v26  ;;  %9616 = sst [smem:[#allocation40_spill]] %s7347_s26  ;;  %v2927_v12 = vadd.f32 %v2923_v9, %v2915_v10  ;;  %v2189_v24 = vadd.f32 %v6796_v44, %v2183_v23  ;;  %s7413_s26 = sld [smem:[#allocation7 + $0x6b]] }
 0x34c   : > { %v2932_v51 = vmul.f32 %v9614_v21, %v7239_v4  ;;  %v2928_v48 = vadd.f32 %v2924_v17, %v2916_v46  ;;  %v2561_v32 = vadd.f32 %v2557_v31, %v2549_v43  ;;  %v2562_v35 = vadd.f32 %v2558_v28, %v2550_v34  ;;  %s9652_s27 = sld [smem:[#allocation81_spill]] }
 0x34d   : > { %v2935_v15 = vrot.slane %v2931_v60, 3  ;;  %v2190_v27 = vadd.f32 %v6799_v47, %v2184_v36  ;;  %v9620_v17 = vstv %s9615_s14  ;;  %v9624_v63 = vstv %s9618_s30  ;;  %s7377_s14 = sld [smem:[#allocation7 + $0x89]]  ;;  %s7403_s30 = sld [smem:[#allocation7 + $0x50]] }
 0x34e   : > { %v2936_v62 = vrot.slane %v2932_v51, 3  ;;  %v3285_v9 = vmul.f32 %v9620_v17, %v7235_v2  ;;  %v9621_v46 = vmov %v9620_v17  ;;  %v3279_v0 = vmul.f32 %v9624_v63, %v7235_v2 }
 0x34f   : > { %v3286_v25 = vmul.f32 %v9621_v46, %v7239_v4  ;;  %v2939_v34 = vadd.f32 %v2935_v15, %v2927_v12  ;;  %v9625_v44 = vmov %v9624_v63  ;;  %v2567_v26 = vadd.f32 %v6805_v16, %v2561_v32 }
 0x350   : > { %v2940_v60 = vadd.f32 %v2936_v62, %v2928_v48  ;;  %v3280_v47 = vmul.f32 %v9625_v44, %v7239_v4  ;;  %v3289_v23 = vrot.slane %v3285_v9, 1  ;;  %v9629_v43 = vstv %s9619_s6  ;;  %v7397_v44 = vpop.permute.xlu1 %2076  ;;  %s7405_s6 = sld [smem:[#allocation7 + $0x59]] }
 0x351   : > { %v3290_v36 = vrot.slane %v3286_v25, 1  ;;  %v3297_v10 = vmul.f32 %v9629_v43, %v7235_v2  ;;  %v9630_v31 = vmov %v9629_v43  ;;  %v2568_v21 = vadd.f32 %v6808_v22, %v2562_v35  ;;  %v7399_v43 = vpop.permute.xlu0 %2073  ;;  %9636 = sst [smem:[#allocation38_spill]] %s7413_s26  ;;  %s9659_s26 = sld [smem:[#allocation83_spill]] }
 0x352   : > { %v3298_v28 = vmul.f32 %v9630_v31, %v7239_v4  ;;  %v2945_v51 = vadd.f32 %v6819_v7, %v2939_v34  ;;  %v2946_v12 = vadd.f32 %v6830_v57, %v2940_v60  ;;  %v3293_v48 = vadd.f32 %v3289_v23, %v3279_v0 }
 0x353   : > { %9628 = sst [smem:[#allocation147_spill]] %s7377_s14  ;;  %v3294_v15 = vadd.f32 %v3290_v36, %v3280_v47  ;;  %v9631_v9 = vstv %s9626_s16  ;;  %v9634_v57 = vrot.slane %v6772_v59, 1  ;;  %s7411_s16 = sld [smem:[#allocation7 + $0x62]]  ;;  %v9637_v34 = vrot.slane %v6784_v19, 1 }
 0x354   : > { %v3309_v46 = vmul.f32 %v9631_v9, %v7235_v2  ;;  %v9632_v25 = vmov %v9631_v9  ;;  %9633 = sst [smem:[#allocation148_spill]] %s7403_s30  ;;  %v9635_v2 = vrot.slane %v6781_v20, 1  ;;  %v3302_v35 = vrot.slane %v3298_v28, 2  ;;  %s9647_s14 = sld [smem:[#allocation79_spill]] }
 0x355   : > { %v3310_v63 = vmul.f32 %v9632_v25, %v7239_v4  ;;  %v2201_v7 = vadd.f32 %v9634_v57, %v2189_v24  ;;  %v3301_v4 = vrot.slane %v3297_v10, 2  ;;  %v2579_v60 = vadd.f32 %v9637_v34, %v2567_v26  ;;  %s9658_s30 = sld [smem:[#allocation33_spill]] }
 0x356   : > { %v2202_v32 = vadd.f32 %v9635_v2, %v2190_v27  ;;  %v9638_v0 = vrot.slane %v6787_v50, 1  ;;  %v9639_v59 = vrot.slane %v6822_v53, 1  ;;  %v9640_v20 = vrot.slane %v6825_v33, 1  ;;  %v7447_v2 = vpop.permute.xlu0 %2082 }
 0x357   : > { %v3305_v27 = vadd.f32 %v3301_v4, %v3293_v48  ;;  %v3306_v36 = vadd.f32 %v3302_v35, %v3294_v15  ;;  %v3313_v28 = vrot.slane %v3309_v46, 3  ;;  %v3314_v9 = vrot.slane %v3310_v63, 3 }
 0x358   : > { %v2580_v47 = vadd.f32 %v9638_v0, %v2568_v21  ;;  %v2957_v24 = vadd.f32 %v9639_v59, %v2945_v51  ;;  %v2958_v23 = vadd.f32 %v9640_v20, %v2946_v12  ;;  %v9641_v19 = vrot.slane %v6834_v18, 2 }
 0x359   : > { %v9642_v50 = vrot.slane %v6837_v11, 2  ;;  %v2046_v53 = vsel %vm271_vm7, %v7295_v37, %v7293_v54  ;;  %v2050_v33 = vsel %vm271_vm7, %v7293_v54, %v7295_v37  ;;  %v9643_v51 = vrot.slane %v6862_v30, 2 }
 0x35a   : > { %v2213_v26 = vadd.f32 %v9641_v19, %v2201_v7  ;;  %v9644_v48 = vrot.slane %v6867_v5, 2  ;;  %v9645_v11 = vrot.slane %v6890_v8, 2  ;;  %v9646_v46 = vrot.slane %v6895_v56, 2  ;;  %v7445_v7 = vpop.permute.xlu1 %2084 }
 0x35b   : > { %v2214_v21 = vadd.f32 %v9642_v50, %v2202_v32  ;;  %v2591_v12 = vadd.f32 %v9643_v51, %v2579_v60  ;;  %v3317_v32 = vadd.f32 %v3313_v28, %v3305_v27  ;;  %v3318_v54 = vadd.f32 %v3314_v9, %v3306_v36  ;;  %v7505_v51 = vpop.permute.xlu0 %2103 }
 0x35c   : > { %v2592_v18 = vadd.f32 %v9644_v48, %v2580_v47  ;;  %v2969_v15 = vadd.f32 %v9645_v11, %v2957_v24  ;;  %v2970_v63 = vadd.f32 %v9646_v46, %v2958_v23  ;;  %v2038_v30 = vsel %vm262_vm6, %v7261_v41, %v7263_v55 }
 0x35d   : > { %v2041_v5 = vsel %vm262_vm6, %v7263_v55, %v7261_v41  ;;  %v7461_v8 = vsel %vm5522_vm9, %v2038_v30, %v2050_v33  ;;  %v9650_v35 = vrot.slane %v6846_v58, 3  ;;  %v9651_v55 = vrot.slane %v6851_v29, 3 }
 0x35e   : > { %v7457_v56 = vsel %vm5508_vm8, %v2041_v5, %v2046_v53  ;;  %v9653_v47 = vrot.slane %v6874_v61, 3  ;;  %v9654_v24 = vrot.slane %v6879_v13, 3  ;;  %v9656_v23 = vrot.slane %v6911_v45, 3  ;;  %v7503_v33 = vpop.permute.xlu1 %2106 }
 0x35f   : > { %v2225_v34 = vadd.f32 %v9650_v35, %v2213_v26  ;;  %v2226_v41 = vadd.f32 %v9651_v55, %v2214_v21  ;;  %v9657_v27 = vrot.slane %v6922_v49, 3  ;;  %v7480_v36 = vadd.f32 %v6857_v14, %v3317_v32 }
 0x360   : > { %v2603_v59 = vadd.f32 %v9653_v47, %v2591_v12  ;;  %v2604_v20 = vadd.f32 %v9654_v24, %v2592_v18  ;;  %v2981_v58 = vadd.f32 %v9656_v23, %v2969_v15  ;;  %v7483_v61 = vadd.f32 %v6900_v42, %v3318_v54 }
 0x361   : > { %v2982_v29 = vadd.f32 %v9657_v27, %v2970_v63  ;;  %v9660_v13 = vstv %s9647_s14  ;;  %v9662_v19 = vstv %s9648_s29  ;;  %v9664_v14 = vstv %s9649_s3  ;;  %s9670_s29 = sld [smem:[#allocation84_spill]]  ;;  %s9861_s14 = sld [smem:[#allocation123_spill]] }
 0x362   : > { %v2235_v28 = vmul.f32 %v9660_v13, %v7457_v56  ;;  %v9661_v45 = vmov %v9660_v13  ;;  %v2229_v49 = vmul.f32 %v9662_v19, %v7457_v56  ;;  %v9663_v26 = vmov %v9662_v19  ;;  %s9716_s3 = sld [smem:[#allocation94_spill]] }
 0x363   : > { %v2236_v9 = vmul.f32 %v9661_v45, %v7461_v8  ;;  %v2230_v50 = vmul.f32 %v9663_v26, %v7461_v8  ;;  %v2247_v21 = vmul.f32 %v9664_v14, %v7457_v56  ;;  %v9665_v53 = vmov %v9664_v14 }
 0x364   : > { %v2248_v42 = vmul.f32 %v9665_v53, %v7461_v8  ;;  %v9666_v12 = vstv %s9652_s27  ;;  %v9668_v15 = vstv %s9655_s23  ;;  %v9671_v54 = vstv %s9658_s30  ;;  %s9675_s23 = sld [smem:[#allocation85_spill]]  ;;  %s9704_s27 = sld [smem:[#allocation91_spill]] }
 0x365   : > { %v2259_v48 = vmul.f32 %v9666_v12, %v7457_v56  ;;  %v9667_v18 = vmov %v9666_v12  ;;  %v7516_v46 = vmul.f32 %v9668_v15, %v7457_v56  ;;  %v9669_v63 = vmov %v9668_v15  ;;  %s9867_s30 = sld [smem:[#allocation35_spill]] }
 0x366   : > { %v2260_v11 = vmul.f32 %v9667_v18, %v7461_v8  ;;  %v7521_v32 = vmul.f32 %v9669_v63, %v7461_v8  ;;  %v2607_v30 = vmul.f32 %v9671_v54, %v7457_v56  ;;  %v9672_v5 = vmov %v9671_v54 }
 0x367   : > { %v2608_v35 = vmul.f32 %v9672_v5, %v7461_v8  ;;  %v9673_v55 = vstv %s9659_s26  ;;  %v2231_v27 = vadd.f32 %v2229_v49, %v2225_v34  ;;  %v2232_v13 = vadd.f32 %v2230_v50, %v2226_v41  ;;  %s9846_s26 = sld [smem:[#allocation36_spill]] }
 0x368   : > { %v7532_v47 = vmul.f32 %v9673_v55, %v7457_v56  ;;  %v9674_v24 = vmov %v9673_v55  ;;  %v2239_v45 = vrot.slane %v2235_v28, 1  ;;  %v2240_v19 = vrot.slane %v2236_v9, 1 }
 0x369   : > { %v7537_v23 = vmul.f32 %v9674_v24, %v7461_v8  ;;  %v2251_v26 = vrot.slane %v2247_v21, 2  ;;  %v2252_v14 = vrot.slane %v2248_v42, 2  ;;  %v7539_v53 = vadd.f32 %v2607_v30, %v2603_v59  ;;  %v2115_v21 = vpop.permute.xlu1 %2114  ;;  %v2113_v42 = vpop.permute.xlu0 %2112 }
 0x36a   : > { %v7541_v12 = vadd.f32 %v2608_v35, %v2604_v20  ;;  %v2617_v18 = vrot.slane %v7516_v46, 1  ;;  %v2618_v15 = vrot.slane %v7521_v32, 1  ;;  %v9676_v34 = vstv %s9670_s29  ;;  %s9868_s29 = sld [smem:[#allocation126_spill]] }
 0x36b   : > { %v7548_v41 = vmul.f32 %v9676_v34, %v7457_v56  ;;  %v9677_v28 = vmov %v9676_v34  ;;  %v2629_v59 = vrot.slane %v7532_v47, 2  ;;  %v2630_v20 = vrot.slane %v7537_v23, 2 }
 0x36c   : > { %v7553_v9 = vmul.f32 %v9677_v28, %v7461_v8  ;;  %v2066_v49 = vsel %vm247_vm3, %v7355_v52, %v7353_v6  ;;  %v2070_v50 = vsel %vm247_vm3, %v7353_v6, %v7355_v52  ;;  %v9678_v63 = vstv %s6947_s15  ;;  %s9689_s15 = sld [smem:[#allocation87_spill]] }
 0x36d   : > { %v2985_v54 = vmul.f32 %v9678_v63, %v7457_v56  ;;  %v9679_v30 = vmov %v9678_v63  ;;  %v9680_v35 = vstv %s9675_s23  ;;  %v9682_v28 = vstv %s6958_s17  ;;  %v9684_v63 = vld [vmem:[#allocation155_spill] sm:$0xff]  ;;  %v2127_v22 = vpop.permute.xlu1 %2126  ;;  %s9693_s17 = sld [smem:[#allocation86_spill]]  ;;  %s8099_s23 = sld [smem:[#allocation7 + $0x78]] }
 0x36e   : > { %v2986_v5 = vmul.f32 %v9679_v30, %v7461_v8  ;;  %v7572_v55 = vmul.f32 %v9680_v35, %v7457_v56  ;;  %v9681_v24 = vmov %v9680_v35  ;;  %v7582_v0 = vmul.f32 %v9682_v28, %v7457_v56 }
 0x36f   : > { %v7577_v34 = vmul.f32 %v9681_v24, %v7461_v8  ;;  %v9683_v6 = vmov %v9682_v28  ;;  %v2058_v30 = vsel %vm238_vm2, %v9684_v63, %v7329_v1  ;;  %v2061_v35 = vsel %vm238_vm2, %v7329_v1, %v9684_v63 }
 0x370   : > { %v7587_v52 = vmul.f32 %v9683_v6, %v7461_v8  ;;  %v9685_v60 = vstv %s6960_s5  ;;  %v7607_v6 = vsel %vm5358_vm4, %v2061_v35, %v2066_v49  ;;  %v7611_v25 = vsel %vm5364_vm5, %v2058_v30, %v2070_v50  ;;  %s9690_s5 = sld [smem:[#allocation90_spill]]  ;;  %v2124_v50 = vpop.permute.xlu0 %2123 }
 0x371   : > { %v7598_v24 = vmul.f32 %v9685_v60, %v7457_v56  ;;  %v9686_v37 = vmov %v9685_v60  ;;  %v7613_v31 = vadd.f32 %v2985_v54, %v2981_v58  ;;  %v7615_v1 = vadd.f32 %v2986_v5, %v2982_v29 }
 0x372   : > { %v7603_v28 = vmul.f32 %v9686_v37, %v7461_v8  ;;  %v2243_v60 = vadd.f32 %v2239_v45, %v2231_v27  ;;  %v2244_v63 = vadd.f32 %v2240_v19, %v2232_v13  ;;  %v2995_v37 = vrot.slane %v7572_v55, 1 }
 0x373   : > { %v2263_v49 = vrot.slane %v2259_v48, 3  ;;  %v2264_v35 = vrot.slane %v2260_v11, 3  ;;  %v9691_v29 = vstv %s6993_s28  ;;  %v2086_v45 = vsel %vm271_vm7, %v7447_v2, %v7445_v7  ;;  %s9702_s28 = sld [smem:[#allocation92_spill]] }
 0x374   : > { %v2255_v58 = vadd.f32 %v2251_v26, %v2243_v60  ;;  %v2256_v54 = vadd.f32 %v2252_v14, %v2244_v63  ;;  %v2277_v5 = vmul.f32 %v9691_v29, %v7607_v6  ;;  %v9692_v27 = vmov %v9691_v29 }
 0x375   : > { %v2278_v13 = vmul.f32 %v9692_v27, %v7611_v25  ;;  %v2090_v48 = vsel %vm271_vm7, %v7445_v7, %v7447_v2  ;;  %v9694_v11 = vstv %s9689_s15  ;;  %v2078_v17 = vsel %vm262_vm6, %v7397_v44, %v7399_v43  ;;  %s9879_s15 = sld [smem:[#allocation137_spill]] }
 0x376   : > { %v2271_v19 = vmul.f32 %v9694_v11, %v7607_v6  ;;  %v9695_v26 = vmov %v9694_v11  ;;  %v2267_v30 = vadd.f32 %v2263_v49, %v2255_v58  ;;  %v2268_v60 = vadd.f32 %v2264_v35, %v2256_v54 }
 0x377   : > { %v2272_v14 = vmul.f32 %v9695_v26, %v7611_v25  ;;  %v9696_v63 = vstv %s9690_s5  ;;  %v2081_v7 = vsel %vm262_vm6, %v7399_v43, %v7397_v44  ;;  %v9698_v2 = vstv %s7009_s18  ;;  %s9703_s18 = sld [smem:[#allocation93_spill]]  ;;  %s9884_s5 = sld [smem:[#allocation147_spill]] }
 0x378   : > { %v2289_v29 = vmul.f32 %v9696_v63, %v7607_v6  ;;  %v9697_v27 = vmov %v9696_v63  ;;  %v2301_v11 = vmul.f32 %v9698_v2, %v7607_v6  ;;  %v9699_v49 = vmov %v9698_v2 }
 0x379   : > { %v2290_v16 = vmul.f32 %v9697_v27, %v7611_v25  ;;  %v2302_v35 = vmul.f32 %v9699_v49, %v7611_v25  ;;  %v2273_v58 = vadd.f32 %v2271_v19, %v2267_v30  ;;  %v2274_v54 = vadd.f32 %v2272_v14, %v2268_v60  ;;  %v2135_v19 = vpop.permute.xlu1 %2134  ;;  %v2133_v14 = vpop.permute.xlu0 %2132 }
 0x37a   : > { %v2281_v26 = vrot.slane %v2277_v5, 1  ;;  %v2282_v63 = vrot.slane %v2278_v13, 1  ;;  %v9700_v27 = vstv %s9693_s17  ;;  %v7667_v44 = vsel %vm5508_vm8, %v2081_v7, %v2086_v45  ;;  %s8111_s17 = sld [smem:[#allocation7 + $0x81]] }
 0x37b   : > { %v7658_v38 = vmul.f32 %v9700_v27, %v7457_v56  ;;  %v9701_v62 = vmov %v9700_v27  ;;  %v7671_v43 = vsel %vm5522_vm9, %v2078_v17, %v2090_v48  ;;  %v2293_v30 = vrot.slane %v2289_v29, 2 }
 0x37c   : > { %v7663_v39 = vmul.f32 %v9701_v62, %v7461_v8  ;;  %v2285_v5 = vadd.f32 %v2281_v26, %v2273_v58  ;;  %v2286_v13 = vadd.f32 %v2282_v63, %v2274_v54  ;;  %v2294_v60 = vrot.slane %v2290_v16, 2 }
 0x37d   : > { %v2108_v62 = vsel %vm238_vm2, %v7503_v33, %v7505_v51  ;;  %v2111_v45 = vsel %vm238_vm2, %v7505_v51, %v7503_v33  ;;  %v2116_v17 = vsel %vm247_vm3, %v2113_v42, %v2115_v21  ;;  %v2120_v48 = vsel %vm247_vm3, %v2115_v21, %v2113_v42 }
 0x37e   : > { %v2297_v29 = vadd.f32 %v2293_v30, %v2285_v5  ;;  %v2298_v7 = vadd.f32 %v2294_v60, %v2286_v13  ;;  %v2305_v16 = vrot.slane %v2301_v11, 3  ;;  %v2306_v2 = vrot.slane %v2302_v35, 3 }
 0x37f   : > { %v2128_v49 = vsel %vm262_vm6, %v2127_v22, %v2124_v50  ;;  %v2131_v58 = vsel %vm262_vm6, %v2124_v50, %v2127_v22  ;;  %v2136_v54 = vsel %vm271_vm7, %v2133_v14, %v2135_v19  ;;  %v2140_v33 = vsel %vm271_vm7, %v2135_v19, %v2133_v14 }
 0x380   : > { %v2309_v51 = vadd.f32 %v2305_v16, %v2297_v29  ;;  %v2310_v26 = vadd.f32 %v2306_v2, %v2298_v7  ;;  %v9705_v63 = vstv %s9702_s28  ;;  %v9707_v11 = vstv %s9703_s18  ;;  %v9711_v29 = vld [vmem:[#allocation61_spill] sm:$0xff]  ;;  %s8119_s28 = sld [smem:[#allocation7 + $0x8a]] }
 0x381   : > { %v2361_v21 = vmul.f32 %v9705_v63, %v7667_v44  ;;  %v9706_v42 = vmov %v9705_v63  ;;  %v2373_v35 = vmul.f32 %v9707_v11, %v7667_v44  ;;  %v9708_v5 = vmov %v9707_v11  ;;  %v9712_v16 = vld [vmem:[#allocation107_spill] sm:$0xff]  ;;  %s8153_s18 = sld [smem:[#allocation7 + $0x7a]] }
 0x382   : > { %v2362_v27 = vmul.f32 %v9706_v42, %v7671_v43  ;;  %v2374_v22 = vmul.f32 %v9708_v5, %v7671_v43  ;;  %v9709_v50 = vstv %s7049_s10  ;;  %v7705_v30 = vsel %vm5358_vm4, %v2111_v45, %v2116_v17  ;;  %s9713_s10 = sld [smem:[#allocation34_spill]] }
 0x383   : > { %v2385_v13 = vmul.f32 %v9709_v50, %v7667_v44  ;;  %v9710_v19 = vmov %v9709_v50  ;;  %v7709_v60 = vsel %vm5364_vm5, %v2108_v62, %v2120_v48  ;;  %v2315_v7 = vadd.f32 %v9711_v29, %v2309_v51  ;;  %v9717_v48 = vld [vmem:[#allocation50_spill] sm:$0xff]  ;;  %v9721_v50 = vld [vmem:[#allocation45_spill] sm:$0xff] }
 0x384   : > { %v2386_v14 = vmul.f32 %v9710_v19, %v7671_v43  ;;  %v2316_v2 = vadd.f32 %v9712_v16, %v2310_v26  ;;  %v7715_v63 = vsel %vm5508_vm8, %v2131_v58, %v2136_v54  ;;  %v7719_v4 = vsel %vm5522_vm9, %v2128_v49, %v2140_v33  ;;  %v9719_v26 = vld [vmem:[#allocation46_spill] sm:$0xff]  ;;  %v9723_v16 = vld [vmem:[#allocation47_spill] sm:$0xff] }
 0x385   : > { %v9714_v45 = vstv %s9704_s27  ;;  %v9718_v51 = vrot.slane %v9717_v48, 1  ;;  %v9720_v58 = vrot.slane %v9719_v26, 1  ;;  %v2365_v42 = vrot.slane %v2361_v21, 1  ;;  %s9907_s27 = sld [smem:[#allocation148_spill]] }
 0x386   : > { %v2355_v57 = vmul.f32 %v9714_v45, %v7667_v44  ;;  %v9715_v62 = vmov %v9714_v45  ;;  %v2366_v40 = vrot.slane %v2362_v27, 1  ;;  %v2377_v11 = vrot.slane %v2373_v35, 2 }
 0x387   : > { %v2356_v17 = vmul.f32 %v9715_v62, %v7671_v43  ;;  %v2327_v3 = vadd.f32 %v9718_v51, %v2315_v7  ;;  %v2328_v54 = vadd.f32 %v9720_v58, %v2316_v2  ;;  %v2378_v49 = vrot.slane %v2374_v22, 2  ;;  %v9731_v58 = vld [vmem:[#allocation56_spill] sm:$0xff] }
 0x388   : > { %v2389_v33 = vrot.slane %v2385_v13, 3  ;;  %v2390_v5 = vrot.slane %v2386_v14, 3  ;;  %v9722_v19 = vrot.slane %v9721_v50, 2  ;;  %v9724_v45 = vrot.slane %v9723_v16, 2 }
 0x389   : > { %v9725_v48 = vstv %s7051_s12  ;;  %v9727_v21 = vstv %s9713_s10  ;;  %v9729_v13 = vstv %s9716_s3  ;;  %s9735_s12 = sld [smem:[#allocation97_spill]]  ;;  %s8167_s10 = sld [smem:[#allocation7 + $0x71]] }
 0x38a   : > { %v2339_v29 = vadd.f32 %v9722_v19, %v2327_v3  ;;  %v2340_v62 = vadd.f32 %v9724_v45, %v2328_v54  ;;  %v2397_v7 = vmul.f32 %v9725_v48, %v7705_v30  ;;  %v9726_v51 = vmov %v9725_v48  ;;  %v9733_v19 = vld [vmem:[#allocation48_spill] sm:$0xff]  ;;  %s8169_s3 = sld [smem:[#allocation7 + $0x83]] }
 0x38b   : > { %v2398_v2 = vmul.f32 %v9726_v51, %v7709_v60  ;;  %v2403_v27 = vmul.f32 %v9727_v21, %v7705_v30  ;;  %v9728_v35 = vmov %v9727_v21  ;;  %v2415_v14 = vmul.f32 %v9729_v13, %v7705_v30 }
 0x38c   : > { %v2404_v22 = vmul.f32 %v9728_v35, %v7709_v60  ;;  %v9730_v3 = vmov %v9729_v13  ;;  %v9732_v54 = vrot.slane %v9731_v58, 3  ;;  %v9734_v16 = vrot.slane %v9733_v19, 3 }
 0x38d   : > { %v2416_v26 = vmul.f32 %v9730_v3, %v7709_v60  ;;  %v2621_v48 = vadd.f32 %v2617_v18, %v7539_v53  ;;  %v2622_v51 = vadd.f32 %v2618_v15, %v7541_v12  ;;  %v2641_v21 = vrot.slane %v7548_v41, 3 }
 0x38e   : > { %v2351_v50 = vadd.f32 %v9732_v54, %v2339_v29  ;;  %v2352_v45 = vadd.f32 %v9734_v16, %v2340_v62  ;;  %v2642_v35 = vrot.slane %v7553_v9, 3  ;;  %v9736_v13 = vstv %s7083_s19  ;;  %s9746_s19 = sld [smem:[#allocation105_spill]] }
 0x38f   : > { %v2649_v29 = vmul.f32 %v9736_v13, %v7607_v6  ;;  %v9737_v3 = vmov %v9736_v13  ;;  %v2633_v46 = vadd.f32 %v2629_v59, %v2621_v48  ;;  %v2634_v32 = vadd.f32 %v2630_v20, %v2622_v51 }
 0x390   : > { %v2650_v62 = vmul.f32 %v9737_v3, %v7611_v25  ;;  %v2357_v58 = vadd.f32 %v2355_v57, %v2351_v50  ;;  %v2358_v54 = vadd.f32 %v2356_v17, %v2352_v45  ;;  %v9738_v53 = vstv %s9567_s25  ;;  %s9776_s25 = sld [smem:[#allocation115_spill]] }
 0x391   : > { %v2655_v12 = vmul.f32 %v9738_v53, %v7607_v6  ;;  %v9739_v18 = vmov %v9738_v53  ;;  %v9740_v41 = vstv %s9568_s13  ;;  %v2645_v59 = vadd.f32 %v2641_v21, %v2633_v46  ;;  %s9763_s13 = sld [smem:[#allocation106_spill]] }
 0x392   : > { %v2656_v15 = vmul.f32 %v9739_v18, %v7611_v25  ;;  %v2667_v9 = vmul.f32 %v9740_v41, %v7607_v6  ;;  %v9741_v19 = vmov %v9740_v41  ;;  %v2369_v17 = vadd.f32 %v2365_v42, %v2357_v58 }
 0x393   : > { %v2668_v57 = vmul.f32 %v9741_v19, %v7611_v25  ;;  %v2370_v47 = vadd.f32 %v2366_v40, %v2358_v54  ;;  %v2646_v50 = vadd.f32 %v2642_v35, %v2634_v32  ;;  %v9742_v23 = vstv %s9735_s12  ;;  %s9913_s12 = sld [smem:[#allocation38_spill]] }
 0x394   : > { %v2427_v20 = vmul.f32 %v9742_v23, %v7705_v30  ;;  %v9743_v16 = vmov %v9742_v23  ;;  %v2659_v48 = vrot.slane %v2655_v12, 1  ;;  %v2660_v51 = vrot.slane %v2656_v15, 1 }
 0x395   : > { %v2428_v45 = vmul.f32 %v9743_v16, %v7709_v60  ;;  %v2381_v13 = vadd.f32 %v2377_v11, %v2369_v17  ;;  %v2382_v3 = vadd.f32 %v2378_v49, %v2370_v47  ;;  %v2651_v53 = vadd.f32 %v2649_v29, %v2645_v59 }
 0x396   : > { %v2652_v18 = vadd.f32 %v2650_v62, %v2646_v50  ;;  %v2671_v41 = vrot.slane %v2667_v9, 2  ;;  %v2672_v10 = vrot.slane %v2668_v57, 2  ;;  %v9744_v19 = vstv %s9571_s8  ;;  %s9792_s8 = sld [smem:[#allocation112_spill]] }
 0x397   : > { %v2679_v42 = vmul.f32 %v9744_v19, %v7607_v6  ;;  %v9745_v40 = vmov %v9744_v19  ;;  %v2393_v35 = vadd.f32 %v2389_v33, %v2381_v13  ;;  %v2394_v58 = vadd.f32 %v2390_v5, %v2382_v3  ;;  %v9752_v13 = vld [vmem:[#allocation96_spill] sm:$0xff] }
 0x398   : > { %v2680_v21 = vmul.f32 %v9745_v40, %v7611_v25  ;;  %v2663_v54 = vadd.f32 %v2659_v48, %v2651_v53  ;;  %v2664_v46 = vadd.f32 %v2660_v51, %v2652_v18  ;;  %v2407_v32 = vrot.slane %v2403_v27, 1  ;;  %v9751_v48 = vld [vmem:[#allocation95_spill] sm:$0xff] }
 0x399   : > { %v2408_v12 = vrot.slane %v2404_v22, 1  ;;  %v2683_v11 = vrot.slane %v2679_v42, 3  ;;  %v2399_v29 = vadd.f32 %v2397_v7, %v2393_v35  ;;  %v2400_v62 = vadd.f32 %v2398_v2, %v2394_v58 }
 0x39a   : > { %v2684_v49 = vrot.slane %v2680_v21, 3  ;;  %v2675_v15 = vadd.f32 %v2671_v41, %v2663_v54  ;;  %v2676_v9 = vadd.f32 %v2672_v10, %v2664_v46  ;;  %v2419_v57 = vrot.slane %v2415_v14, 2  ;;  %v9757_v46 = vld [vmem:[#allocation62_spill] sm:$0xff] }
 0x39b   : > { %v2420_v17 = vrot.slane %v2416_v26, 2  ;;  %v2431_v33 = vrot.slane %v2427_v20, 3  ;;  %v2432_v5 = vrot.slane %v2428_v45, 3  ;;  %v2411_v27 = vadd.f32 %v2407_v32, %v2399_v29 }
 0x39c   : > { %v2412_v47 = vadd.f32 %v2408_v12, %v2400_v62  ;;  %v2687_v22 = vadd.f32 %v2683_v11, %v2675_v15  ;;  %v2688_v59 = vadd.f32 %v2684_v49, %v2676_v9  ;;  %v9747_v50 = vstv %s7113_s7  ;;  %v9759_v11 = vld [vmem:[#allocation67_spill] sm:$0xff]  ;;  %s9803_s7 = sld [smem:[#allocation130_spill]] }
 0x39d   : > { %v7802_v23 = vmul.f32 %v9747_v50, %v7715_v63  ;;  %v9748_v7 = vmov %v9747_v50  ;;  %v9749_v10 = vstv %s7129_s20  ;;  %v2423_v16 = vadd.f32 %v2419_v57, %v2411_v27  ;;  %s9812_s20 = sld [smem:[#allocation122_spill]] }
 0x39e   : > { %v7807_v2 = vmul.f32 %v9748_v7, %v7719_v4  ;;  %v7812_v14 = vmul.f32 %v9749_v10, %v7715_v63  ;;  %v9750_v26 = vmov %v9749_v10  ;;  %v2424_v45 = vadd.f32 %v2420_v17, %v2412_v47  ;;  %v9764_v47 = vld [vmem:[#allocation104_spill] sm:$0xff]  ;;  %v9768_v10 = vld [vmem:[#allocation58_spill] sm:$0xff] }
 0x39f   : > { %v7817_v20 = vmul.f32 %v9750_v26, %v7719_v4  ;;  %v2693_v51 = vadd.f32 %v9751_v48, %v2687_v22  ;;  %v2694_v3 = vadd.f32 %v9752_v13, %v2688_v59  ;;  %v9753_v53 = vstv %s9746_s19  ;;  %v9766_v59 = vld [vmem:[#allocation68_spill] sm:$0xff]  ;;  %s8181_s19 = sld [smem:[#allocation7 + $0x8c]] }
 0x3a0   : > { %v7824_v18 = vmul.f32 %v9753_v53, %v7715_v63  ;;  %v9754_v41 = vmov %v9753_v53  ;;  %v9755_v42 = vstv %s7146_s24  ;;  %v2435_v58 = vadd.f32 %v2431_v33, %v2423_v16  ;;  %s9827_s24 = sld [smem:[#allocation119_spill]] }
 0x3a1   : > { %v7829_v19 = vmul.f32 %v9754_v41, %v7719_v4  ;;  %v7834_v40 = vmul.f32 %v9755_v42, %v7715_v63  ;;  %v9756_v21 = vmov %v9755_v42  ;;  %v2436_v54 = vadd.f32 %v2432_v5, %v2424_v45  ;;  %v9765_v5 = vld [vmem:[#allocation141_spill] sm:$0xff] }
 0x3a2   : > { %v7839_v35 = vmul.f32 %v9756_v21, %v7719_v4  ;;  %v9758_v32 = vrot.slane %v9757_v46, 1  ;;  %v9760_v49 = vrot.slane %v9759_v11, 1  ;;  %v2491_v62 = vrot.slane %v7812_v14, 1  ;;  %v9774_v21 = vld [vmem:[#allocation136_spill] sm:$0xff]  ;;  %v9777_v46 = vld [vmem:[#allocation139_spill] sm:$0xff] }
 0x3a3   : > { %v2492_v15 = vrot.slane %v7817_v20, 1  ;;  %v9761_v9 = vstv %s7159_s0  ;;  %v2441_v33 = vadd.f32 %v9764_v47, %v2435_v58  ;;  %v2442_v22 = vadd.f32 %v9765_v5, %v2436_v54  ;;  %v9779_v11 = vld [vmem:[#allocation49_spill] sm:$0xff]  ;;  %s9836_s0 = sld [smem:[#allocation39_spill]] }
 0x3a4   : > { %v2705_v12 = vadd.f32 %v9758_v32, %v2693_v51  ;;  %v2706_v29 = vadd.f32 %v9760_v49, %v2694_v3  ;;  %v2739_v57 = vmul.f32 %v9761_v9, %v7667_v44  ;;  %v9762_v17 = vmov %v9761_v9  ;;  %v9781_v9 = vld [vmem:[#allocation64_spill] sm:$0xff] }
 0x3a5   : > { %v2740_v27 = vmul.f32 %v9762_v17, %v7671_v43  ;;  %v9767_v50 = vrot.slane %v9766_v59, 2  ;;  %v9769_v26 = vrot.slane %v9768_v10, 2  ;;  %v9770_v45 = vstv %s7148_s1  ;;  %s9787_s1 = sld [smem:[#allocation116_spill]] }
 0x3a6   : > { %v2733_v48 = vmul.f32 %v9770_v45, %v7667_v44  ;;  %v9771_v51 = vmov %v9770_v45  ;;  %v9772_v3 = vstv %s7161_s21  ;;  %v9775_v58 = vrot.slane %v9774_v21, 1  ;;  %s9790_s21 = sld [smem:[#allocation127_spill]] }
 0x3a7   : > { %v2717_v7 = vadd.f32 %v9767_v50, %v2705_v12  ;;  %v2718_v16 = vadd.f32 %v9769_v26, %v2706_v29  ;;  %v2734_v13 = vmul.f32 %v9771_v51, %v7671_v43  ;;  %v2751_v53 = vmul.f32 %v9772_v3, %v7667_v44  ;;  %v9785_v51 = vld [vmem:[#allocation26_spill] sm:$0xff] }
 0x3a8   : > { %v9773_v41 = vmov %v9772_v3  ;;  %v2453_v54 = vadd.f32 %v9775_v58, %v2441_v33  ;;  %v9778_v32 = vrot.slane %v9777_v46, 1  ;;  %v9780_v49 = vrot.slane %v9779_v11, 3  ;;  %v9793_v11 = vld [vmem:[#allocation113_spill] sm:$0xff] }
 0x3a9   : > { %v2752_v42 = vmul.f32 %v9773_v41, %v7671_v43  ;;  %v9782_v17 = vrot.slane %v9781_v9, 3  ;;  %v2743_v5 = vrot.slane %v2739_v57, 1  ;;  %v2744_v59 = vrot.slane %v2740_v27, 1 }
 0x3aa   : > { %v2454_v12 = vadd.f32 %v9778_v32, %v2442_v22  ;;  %v2729_v29 = vadd.f32 %v9780_v49, %v2717_v7  ;;  %v9783_v50 = vstv %s9763_s13  ;;  %v9786_v33 = vrot.slane %v9785_v51, 2  ;;  %v9788_v22 = vld [vmem:[#allocation109_spill] sm:$0xff]  ;;  %s8200_s13 = sld [smem:[#allocation7 + $0x7b]] }
 0x3ab   : > { %v2730_v47 = vadd.f32 %v9782_v17, %v2718_v16  ;;  %v2763_v10 = vmul.f32 %v9783_v50, %v7667_v44  ;;  %v9784_v26 = vmov %v9783_v50  ;;  %v9789_v41 = vrot.slane %v9788_v22, 2 }
 0x3ac   : > { %v2764_v45 = vmul.f32 %v9784_v26, %v7671_v43  ;;  %v2465_v3 = vadd.f32 %v9786_v33, %v2453_v54  ;;  %v2735_v7 = vadd.f32 %v2733_v48, %v2729_v29  ;;  %v2503_v57 = vrot.slane %v7824_v18, 2  ;;  %v9795_v54 = vld [vmem:[#allocation142_spill] sm:$0xff] }
 0x3ad   : > { %v2466_v21 = vadd.f32 %v9789_v41, %v2454_v12  ;;  %v2736_v58 = vadd.f32 %v2734_v13, %v2730_v47  ;;  %v2755_v27 = vrot.slane %v2751_v53, 2  ;;  %v2756_v16 = vrot.slane %v2752_v42, 2 }
 0x3ae   : > { %v9791_v46 = vstv %s9776_s25  ;;  %v9794_v49 = vrot.slane %v9793_v11, 3  ;;  %v9796_v17 = vrot.slane %v9795_v54, 3  ;;  %v2747_v48 = vadd.f32 %v2743_v5, %v2735_v7  ;;  %s8232_s25 = sld [smem:[#allocation7 + $0x8d]] }
 0x3af   : > { %v2781_v32 = vmul.f32 %v9791_v46, %v7705_v30  ;;  %v2748_v12 = vadd.f32 %v2744_v59, %v2736_v58  ;;  %v2767_v13 = vrot.slane %v2763_v10, 3  ;;  %v2768_v29 = vrot.slane %v2764_v45, 3 }
 0x3b0   : > { %v2477_v9 = vadd.f32 %v9794_v49, %v2465_v3  ;;  %v7897_v50 = vadd.f32 %v9796_v17, %v2466_v21  ;;  %v9797_v53 = vmov %v9791_v46  ;;  %v9798_v47 = vstv %s9787_s1  ;;  %s8251_s1 = sld [smem:[#allocation7 + $0x8e]] }
 0x3b1   : > { %v2782_v42 = vmul.f32 %v9797_v53, %v7709_v60  ;;  %v2793_v26 = vmul.f32 %v9798_v47, %v7705_v30  ;;  %v2759_v51 = vadd.f32 %v2755_v27, %v2747_v48  ;;  %v2760_v33 = vadd.f32 %v2756_v16, %v2748_v12 }
 0x3b2   : > { %v9799_v22 = vmov %v9798_v47  ;;  %v9800_v41 = vstv %s9790_s21  ;;  %v2504_v5 = vrot.slane %v7829_v19, 2  ;;  %v2515_v59 = vrot.slane %v7834_v40, 3  ;;  %s9935_s21 = sld [smem:[#allocation43_spill]] }
 0x3b3   : > { %v2794_v3 = vmul.f32 %v9799_v22, %v7709_v60  ;;  %v2805_v21 = vmul.f32 %v9800_v41, %v7705_v30  ;;  %v9801_v10 = vstv %s9792_s8  ;;  %v2771_v27 = vadd.f32 %v2767_v13, %v2759_v51  ;;  %s8261_s8 = sld [smem:[#allocation7 + $0x7d]] }
 0x3b4   : > { %v2775_v45 = vmul.f32 %v9801_v10, %v7705_v30  ;;  %v9802_v7 = vmov %v9801_v10  ;;  %v2772_v16 = vadd.f32 %v2768_v29, %v2760_v33  ;;  %v2785_v46 = vrot.slane %v2781_v32, 1 }
 0x3b5   : > { %v2776_v58 = vmul.f32 %v9802_v7, %v7709_v60  ;;  %v9804_v11 = vmov %v9800_v41  ;;  %v2786_v54 = vrot.slane %v2782_v42, 1  ;;  %v2797_v17 = vrot.slane %v2793_v26, 2 }
 0x3b6   : > { %v2806_v49 = vmul.f32 %v9804_v11, %v7709_v60  ;;  %v2999_v48 = vadd.f32 %v2995_v37, %v7613_v31  ;;  %v9805_v12 = vrot.slane %v7577_v34, 1  ;;  %v2777_v47 = vadd.f32 %v2775_v45, %v2771_v27 }
 0x3b7   : > { %v2778_v22 = vadd.f32 %v2776_v58, %v2772_v16  ;;  %v2798_v41 = vrot.slane %v2794_v3, 2  ;;  %v2809_v13 = vrot.slane %v2805_v21, 3  ;;  %v3007_v32 = vrot.slane %v7582_v0, 2 }
 0x3b8   : > { %v3000_v53 = vadd.f32 %v9805_v12, %v7615_v1  ;;  %v3008_v29 = vrot.slane %v7587_v52, 2  ;;  %v9806_v42 = vstv %s9803_s7  ;;  %v2483_v34 = vadd.f32 %v7802_v23, %v2477_v9  ;;  %s9936_s7 = sld [smem:[#allocation41_spill]] }
 0x3b9   : > { %v3015_v26 = vmul.f32 %v9806_v42, %v7457_v56  ;;  %v9807_v55 = vmov %v9806_v42  ;;  %v2789_v1 = vadd.f32 %v2785_v46, %v2777_v47  ;;  %v2790_v37 = vadd.f32 %v2786_v54, %v2778_v22  ;;  %v9816_v42 = vld [vmem:[#allocation140_spill] sm:$0xff] }
 0x3ba   : > { %v3016_v31 = vmul.f32 %v9807_v55, %v7461_v8  ;;  %v2810_v51 = vrot.slane %v2806_v49, 3  ;;  %v3011_v33 = vadd.f32 %v3007_v32, %v2999_v48  ;;  %v3012_v3 = vadd.f32 %v3008_v29, %v3000_v53  ;;  %v9817_v55 = vld [vmem:[#allocation124_spill] sm:$0xff] }
 0x3bb   : > { %v3019_v0 = vrot.slane %v3015_v26, 3  ;;  %v2801_v52 = vadd.f32 %v2797_v17, %v2789_v1  ;;  %v2802_v10 = vadd.f32 %v2798_v41, %v2790_v37  ;;  %v9808_v45 = vstv %s7217_s22  ;;  %s9815_s22 = sld [smem:[#allocation138_spill]] }
 0x3bc   : > { %v3020_v21 = vrot.slane %v3016_v31, 3  ;;  %v3027_v7 = vmul.f32 %v9808_v45, %v7607_v6  ;;  %v9809_v58 = vmov %v9808_v45  ;;  %v9810_v23 = vstv %s7219_s11  ;;  %s9818_s11 = sld [smem:[#allocation133_spill]] }
 0x3bd   : > { %v3028_v27 = vmul.f32 %v9809_v58, %v7611_v25  ;;  %v3023_v16 = vadd.f32 %v3019_v0, %v3011_v33  ;;  %v3033_v9 = vmul.f32 %v9810_v23, %v7607_v6  ;;  %v9811_v46 = vmov %v9810_v23  ;;  %v9823_v58 = vld [vmem:[#allocation120_spill] sm:$0xff] }
 0x3be   : > { %v3024_v11 = vadd.f32 %v3020_v21, %v3012_v3  ;;  %v3034_v49 = vmul.f32 %v9811_v46, %v7611_v25  ;;  %v2813_v54 = vadd.f32 %v2809_v13, %v2801_v52  ;;  %v2814_v48 = vadd.f32 %v2810_v51, %v2802_v10  ;;  %v9821_v10 = vld [vmem:[#allocation143_spill] sm:$0xff] }
 0x3bf   : > { %v9813_v17 = vstv %s7243_s9  ;;  %v3029_v22 = vadd.f32 %v3027_v7, %v3023_v16  ;;  %v3037_v32 = vrot.slane %v3033_v9, 1  ;;  %v9819_v51 = vstv %s9812_s20  ;;  %s9826_s9 = sld [smem:[#allocation144_spill]] }
 0x3c0   : > { %v3045_v12 = vmul.f32 %v9813_v17, %v7607_v6  ;;  %v9814_v53 = vmov %v9813_v17  ;;  %v3030_v41 = vadd.f32 %v3028_v27, %v3024_v11  ;;  %v3038_v29 = vrot.slane %v3034_v49, 1  ;;  %s9937_s20 = sld [smem:[#allocation31_spill]] }
 0x3c1   : > { %v3046_v47 = vmul.f32 %v9814_v53, %v7611_v25  ;;  %v2819_v26 = vadd.f32 %v9816_v42, %v2813_v54  ;;  %v2820_v31 = vadd.f32 %v9817_v55, %v2814_v48  ;;  %v3041_v33 = vadd.f32 %v3037_v32, %v3029_v22  ;;  %v9830_v22 = vld [vmem:[#allocation128_spill] sm:$0xff] }
 0x3c2   : > { %v3049_v1 = vrot.slane %v3045_v12, 2  ;;  %v3042_v13 = vadd.f32 %v3038_v29, %v3030_v41  ;;  %v3057_v3 = vmul.f32 %v9819_v51, %v7607_v6  ;;  %v9820_v0 = vmov %v9819_v51  ;;  %v9828_v12 = vld [vmem:[#allocation117_spill] sm:$0xff] }
 0x3c3   : > { %v3050_v37 = vrot.slane %v3046_v47, 2  ;;  %v3058_v21 = vmul.f32 %v9820_v0, %v7611_v25  ;;  %v2516_v52 = vrot.slane %v7839_v35, 3  ;;  %v9822_v45 = vrot.slane %v9821_v10, 1 }
 0x3c4   : > { %v9824_v27 = vrot.slane %v9823_v58, 1  ;;  %v9825_v11 = vstv %s9815_s22  ;;  %v3053_v9 = vadd.f32 %v3049_v1, %v3041_v33  ;;  %v3061_v49 = vrot.slane %v3057_v3, 3  ;;  %s8267_s22 = sld [smem:[#allocation7 + $0x74]] }
 0x3c5   : > { %v2831_v7 = vadd.f32 %v9822_v45, %v2819_v26  ;;  %v2865_v23 = vmul.f32 %v9825_v11, %v7715_v63  ;;  %v3054_v46 = vadd.f32 %v3050_v37, %v3042_v13  ;;  %v3062_v54 = vrot.slane %v3058_v21, 3 }
 0x3c6   : > { %v2832_v16 = vadd.f32 %v9824_v27, %v2820_v31  ;;  %v2484_v48 = vadd.f32 %v7807_v2, %v7897_v50  ;;  %v2495_v17 = vadd.f32 %v2491_v62, %v2483_v34  ;;  %v9829_v53 = vrot.slane %v9828_v12, 2  ;;  %v9834_v2 = vld [vmem:[#allocation110_spill] sm:$0xff]  ;;  %v9837_v62 = vld [vmem:[#allocation111_spill] sm:$0xff]  ;;  %v9844_v27 = vld [vmem:[#allocation135_spill] sm:$0xff] }
 0x3c7   : > { %v9831_v41 = vrot.slane %v9830_v22, 2  ;;  %v9832_v29 = vstv %s9818_s11  ;;  %v9833_v26 = vmov %v9825_v11  ;;  %v3065_v31 = vadd.f32 %v3061_v49, %v3053_v9  ;;  %s8278_s11 = sld [smem:[#allocation7 + $0x86]] }
 0x3c8   : > { %v2843_v47 = vadd.f32 %v9829_v53, %v2831_v7  ;;  %v2859_v42 = vmul.f32 %v9832_v29, %v7715_v63  ;;  %v7985_v55 = vmul.f32 %v9833_v26, %v7719_v4  ;;  %v3066_v1 = vadd.f32 %v3062_v54, %v3054_v46  ;;  %v9843_v7 = vld [vmem:[#allocation108_spill] sm:$0xff]  ;;  %v9847_v53 = vld [vmem:[#allocation69_spill] sm:$0xff] }
 0x3c9   : > { %v2844_v32 = vadd.f32 %v9831_v41, %v2832_v16  ;;  %v9835_v50 = vrot.slane %v9834_v2, 3  ;;  %v9838_v34 = vrot.slane %v9837_v62, 3  ;;  %v9839_v33 = vmov %v9832_v29  ;;  %v9849_v41 = vld [vmem:[#allocation59_spill] sm:$0xff] }
 0x3ca   : > { %v2860_v13 = vmul.f32 %v9839_v33, %v7719_v4  ;;  %v9840_v51 = vstv %s9826_s9  ;;  %v9842_v10 = vstv %s9827_s24  ;;  %v3071_v58 = vadd.f32 %v9843_v7, %v3065_v31  ;;  %v9857_v33 = vld [vmem:[#allocation65_spill] sm:$0xff]  ;;  %s8286_s9 = sld [smem:[#allocation7 + $0x8f]]  ;;  %s9946_s24 = sld [smem:[#allocation24_spill]] }
 0x3cb   : > { %v2855_v14 = vadd.f32 %v9835_v50, %v2843_v47  ;;  %v2856_v37 = vadd.f32 %v9838_v34, %v2844_v32  ;;  %v7997_v3 = vmul.f32 %v9840_v51, %v7715_v63  ;;  %v9841_v0 = vmov %v9840_v51  ;;  %v9855_v50 = vld [vmem:[#allocation53_spill] sm:$0xff] }
 0x3cc   : > { %v8002_v21 = vmul.f32 %v9841_v0, %v7719_v4  ;;  %v8007_v45 = vmul.f32 %v9842_v10, %v7715_v63  ;;  %v3072_v16 = vadd.f32 %v9844_v27, %v3066_v1  ;;  %v2496_v11 = vadd.f32 %v2492_v15, %v2484_v48 }
 0x3cd   : > { %v2507_v9 = vadd.f32 %v2503_v57, %v2495_v17  ;;  %v2869_v46 = vrot.slane %v2865_v23, 1  ;;  %v9845_v49 = vmov %v9842_v10  ;;  %v2870_v12 = vrot.slane %v7985_v55, 1  ;;  %v9908_v55 = vld [vmem:[#allocation129_spill] sm:$0xff] }
 0x3ce   : > { %v8018_v54 = vmul.f32 %v9845_v49, %v7719_v4  ;;  %v9848_v47 = vrot.slane %v9847_v53, 1  ;;  %v9850_v32 = vrot.slane %v9849_v41, 1  ;;  %v9851_v20 = vstv %s9836_s0  ;;  %v9862_v49 = vld [vmem:[#allocation70_spill] sm:$0xff]  ;;  %s9947_s0 = sld [smem:[#allocation18_spill]] }
 0x3cf   : > { %v3117_v15 = vmul.f32 %v9851_v20, %v7667_v44  ;;  %v2881_v18 = vrot.slane %v7997_v3, 2  ;;  %v9852_v57 = vmov %v9851_v20  ;;  %v9853_v48 = vstv %s7337_s2  ;;  %s9859_s2 = sld [smem:[#allocation40_spill]] }
 0x3d0   : > { %v3083_v22 = vadd.f32 %v9848_v47, %v3071_v58  ;;  %v3084_v29 = vadd.f32 %v9850_v32, %v3072_v16  ;;  %v3118_v23 = vmul.f32 %v9852_v57, %v7671_v43  ;;  %v3129_v17 = vmul.f32 %v9853_v48, %v7667_v44 }
 0x3d1   : > { %v9854_v26 = vmov %v9853_v48  ;;  %v2882_v1 = vrot.slane %v8002_v21, 2  ;;  %v2893_v2 = vrot.slane %v8007_v45, 3  ;;  %v9856_v62 = vrot.slane %v9855_v50, 2 }
 0x3d2   : > { %v3130_v31 = vmul.f32 %v9854_v26, %v7671_v43  ;;  %v9858_v51 = vrot.slane %v9857_v33, 2  ;;  %v8046_v10 = vadd.f32 %v2504_v5, %v2496_v11  ;;  %v8050_v7 = vadd.f32 %v2515_v59, %v2507_v9 }
 0x3d3   : > { %v3095_v34 = vadd.f32 %v9856_v62, %v3083_v22  ;;  %v2894_v58 = vrot.slane %v8018_v54, 3  ;;  %v9860_v27 = vstv %s9846_s26  ;;  %v9863_v53 = vrot.slane %v9862_v49, 3  ;;  %v9864_v22 = vld [vmem:[#allocation71_spill] sm:$0xff]  ;;  %s9948_s26 = sld [smem:[#allocation23_spill]] }
 0x3d4   : > { %v3096_v0 = vadd.f32 %v9858_v51, %v3084_v29  ;;  %v3111_v16 = vmul.f32 %v9860_v27, %v7667_v44  ;;  %v9865_v19 = vrot.slane %v9864_v22, 3  ;;  %v9866_v5 = vmov %v9860_v27 }
 0x3d5   : > { %v3107_v47 = vadd.f32 %v9863_v53, %v3095_v34  ;;  %v3112_v11 = vmul.f32 %v9866_v5, %v7671_v43  ;;  %v3121_v40 = vrot.slane %v3117_v15, 1  ;;  %v2861_v59 = vadd.f32 %v2859_v42, %v2855_v14 }
 0x3d6   : > { %v3108_v41 = vadd.f32 %v9865_v19, %v3096_v0  ;;  %v3122_v9 = vrot.slane %v3118_v23, 1  ;;  %v3133_v32 = vrot.slane %v3129_v17, 2  ;;  %v3134_v29 = vrot.slane %v3130_v31, 2 }
 0x3d7   : > { %v3113_v20 = vadd.f32 %v3111_v16, %v3107_v47  ;;  %v9869_v48 = vstv %s7339_s4  ;;  %v8069_v34 = vadd.f32 %v2860_v13, %v2856_v37  ;;  %v9871_v15 = vstv %s9859_s2  ;;  %s8097_s4 = sld [smem:[#allocation7 + $0x6f]] }
 0x3d8   : > { %v3114_v57 = vadd.f32 %v3112_v11, %v3108_v41  ;;  %v3141_v26 = vmul.f32 %v9869_v48, %v7667_v44  ;;  %v9870_v50 = vmov %v9869_v48  ;;  %v3153_v33 = vmul.f32 %v9871_v15, %v7705_v30 }
 0x3d9   : > { %v3142_v62 = vmul.f32 %v9870_v50, %v7671_v43  ;;  %v9872_v42 = vstv %s9861_s14  ;;  %v3125_v31 = vadd.f32 %v3121_v40, %v3113_v20  ;;  %v9874_v0 = vstv %s9867_s30  ;;  %v9880_v20 = vld [vmem:[#allocation125_spill] sm:$0xff]  ;;  %s4101_s14 = sshll.u32 %s9947_s0, 7  ;;  %s9951_s30 = sshll.u32 %s9948_s26, 3 }
 0x3da   : > { %v3159_v14 = vmul.f32 %v9872_v42, %v7705_v30  ;;  %v9873_v23 = vmov %v9872_v42  ;;  %v3126_v51 = vadd.f32 %v3122_v9, %v3114_v57  ;;  %v3171_v27 = vmul.f32 %v9874_v0, %v7705_v30  ;;  %v9882_v50 = vld [vmem:[#allocation132_spill] sm:$0xff] }
 0x3db   : > { %v3160_v17 = vmul.f32 %v9873_v23, %v7709_v60  ;;  %v9875_v16 = vmov %v9874_v0  ;;  %v8086_v53 = vadd.f32 %v2869_v46, %v2861_v59  ;;  %v9876_v37 = vmov %v9871_v15 }
 0x3dc   : > { %v3172_v49 = vmul.f32 %v9875_v16, %v7709_v60  ;;  %v3154_v13 = vmul.f32 %v9876_v37, %v7709_v60  ;;  %v9877_v47 = vstv %s9868_s29  ;;  %v3137_v5 = vadd.f32 %v3133_v32, %v3125_v31  ;;  %s213_s29 = scalar_lea.vmem [#allocation9], %s9951_s30 }
 0x3dd   : > { %v3183_v22 = vmul.f32 %v9877_v47, %v7705_v30  ;;  %v9878_v19 = vmov %v9877_v47  ;;  %v3138_v11 = vadd.f32 %v3134_v29, %v3126_v51  ;;  %v3145_v40 = vrot.slane %v3141_v26, 3  ;;  %v9885_v51 = vld [vmem:[#allocation149_spill] sm:$0xff] }
 0x3de   : > { %v3184_v41 = vmul.f32 %v9878_v19, %v7709_v60  ;;  %v3146_v9 = vrot.slane %v3142_v62, 3  ;;  %v3163_v46 = vrot.slane %v3159_v14, 1  ;;  %v3164_v59 = vrot.slane %v3160_v17, 1  ;;  %v9887_v17 = vld [vmem:[#allocation150_spill] sm:$0xff] }
 0x3df   : > { %v9881_v57 = vrot.slane %v9880_v20, 1  ;;  %v9883_v15 = vrot.slane %v9882_v50, 1  ;;  %v3149_v32 = vadd.f32 %v3145_v40, %v3137_v5  ;;  %v3175_v26 = vrot.slane %v3171_v27, 2  ;;  %v9891_v27 = vld [vmem:[#allocation151_spill] sm:$0xff] }
 0x3e0   : > { %v3150_v29 = vadd.f32 %v3146_v9, %v3138_v11  ;;  %v3176_v62 = vrot.slane %v3172_v49, 2  ;;  %v3187_v23 = vrot.slane %v3183_v22, 3  ;;  %v3188_v31 = vrot.slane %v3184_v41, 3  ;;  %v9893_v41 = vld [vmem:[#allocation153_spill] sm:$0xff] }
 0x3e1   : > { %v3335_v48 = vadd.f32 %v9881_v57, %v7480_v36  ;;  %v3336_v42 = vadd.f32 %v9883_v15, %v7483_v61  ;;  %v9886_v14 = vrot.slane %v9885_v51, 2  ;;  %v9888_v16 = vrot.slane %v9887_v17, 2 }
 0x3e2   : > { %v3155_v36 = vadd.f32 %v3153_v33, %v3149_v32  ;;  %v3156_v47 = vadd.f32 %v3154_v13, %v3150_v29  ;;  %v9889_v61 = vstv %s9879_s15  ;;  %v9892_v49 = vrot.slane %v9891_v27, 3 }
 0x3e3   : > { %v3347_v0 = vadd.f32 %v9886_v14, %v3335_v48  ;;  %v3348_v37 = vadd.f32 %v9888_v16, %v3336_v42  ;;  %v3381_v19 = vmul.f32 %v9889_v61, %v7457_v56  ;;  %v9890_v5 = vmov %v9889_v61 }
 0x3e4   : > { %v3382_v11 = vmul.f32 %v9890_v5, %v7461_v8  ;;  %v9894_v40 = vrot.slane %v9893_v41, 3  ;;  %v9895_v20 = vstv %s9884_s5  ;;  %v3167_v48 = vadd.f32 %v3163_v46, %v3155_v36  ;;  %v9898_v5 = vld [vmem:[#allocation154_spill] sm:$0xff]  ;;  %s9952_s5 = sld [smem:[#allocation159_spill]] }
 0x3e5   : > { %v3359_v22 = vadd.f32 %v9892_v49, %v3347_v0  ;;  %v3393_v33 = vmul.f32 %v9895_v20, %v7457_v56  ;;  %v9896_v13 = vmov %v9895_v20  ;;  %v3168_v50 = vadd.f32 %v3164_v59, %v3156_v47 }
 0x3e6   : > { %v3360_v9 = vadd.f32 %v9894_v40, %v3348_v37  ;;  %v3394_v57 = vmul.f32 %v9896_v13, %v7461_v8  ;;  %v3373_v15 = vrot.slane %v7658_v38, 1  ;;  %v3374_v42 = vrot.slane %v7663_v39, 1  ;;  %v9899_v40 = vld [vmem:[#allocation131_spill] sm:$0xff] }
 0x3e7   : > { %v3365_v32 = vadd.f32 %v7598_v24, %v3359_v22  ;;  %v3385_v51 = vrot.slane %v3381_v19, 2  ;;  %v3386_v14 = vrot.slane %v3382_v11, 2  ;;  %v3179_v0 = vadd.f32 %v3175_v26, %v3167_v48  ;;  %v9897_v26 = vld [vmem:[#allocation152_spill] sm:$0xff] }
 0x3e8   : > { %v3366_v29 = vadd.f32 %v7603_v28, %v3360_v9  ;;  %v3180_v17 = vadd.f32 %v3176_v62, %v3168_v50  ;;  %v3404_v16 = vstv %s8097_s4  ;;  %v3410_v56 = vstv %s8099_s23  ;;  %s3704_s4 = sshll.u32 %s213_s29, 4  ;;  %s8320_s4 = int_to_ptr.vmem [resolvable:$true] %s3704_s4 }
 0x3e9   : > { %v3377_v37 = vadd.f32 %v3373_v15, %v3365_v32  ;;  %v3397_v46 = vrot.slane %v3393_v33, 3  ;;  %v3398_v59 = vrot.slane %v3394_v57, 3  ;;  %v3191_v36 = vadd.f32 %v3187_v23, %v3179_v0  ;;  %v9901_v33 = vld [vmem:[#allocation134_spill] sm:$0xff]  ;;  %v9903_v0 = vld [vmem:[#allocation114_spill] sm:$0xff] }
 0x3ea   : > { %v3378_v8 = vadd.f32 %v3374_v42, %v3366_v29  ;;  %v3192_v38 = vadd.f32 %v3188_v31, %v3180_v17  ;;  %v3411_v39 = vmul.f32 %v3410_v56, %v7607_v6  ;;  %v3412_v24 = vmul.f32 %v3410_v56, %v7611_v25  ;;  %v9905_v56 = vld [vmem:[#allocation121_spill] sm:$0xff] }
 0x3eb   : > { %v3389_v47 = vadd.f32 %v3385_v51, %v3377_v37  ;;  %v3405_v61 = vmul.f32 %v3404_v16, %v7607_v6  ;;  %v3422_v19 = vstv %s8111_s17  ;;  %v3197_v62 = vadd.f32 %v9897_v26, %v3191_v36  ;;  %s8318_s17 = scalar_lea.hbm %s9952_s5, %s4101_s14 }
 0x3ec   : > { %v3390_v28 = vadd.f32 %v3386_v14, %v3378_v8  ;;  %v3198_v11 = vadd.f32 %v9898_v5, %v3192_v38  ;;  %v3406_v27 = vmul.f32 %v3404_v16, %v7611_v25  ;;  %v3434_v49 = vstv %s8119_s28  ;;  %s3690_s28 = scalar_lea.sflag [#allocation4], %s9948_s26 }
 0x3ed   : > { %v3401_v22 = vadd.f32 %v3397_v46, %v3389_v47  ;;  %v3423_v23 = vmul.f32 %v3422_v19, %v7607_v6  ;;  %v3424_v31 = vmul.f32 %v3422_v19, %v7611_v25  ;;  %v9900_v9 = vrot.slane %v9899_v40, 1 }
 0x3ee   : > { %v3402_v41 = vadd.f32 %v3398_v59, %v3390_v28  ;;  %v9902_v13 = vrot.slane %v9901_v33, 1  ;;  %v3415_v48 = vrot.slane %v3411_v39, 1  ;;  %v3416_v50 = vrot.slane %v3412_v24, 1  ;;  %v9920_v33 = vld [vmem:[#allocation99_spill] sm:$0xff] }
 0x3ef   : > { %v3209_v20 = vadd.f32 %v9900_v9, %v3197_v62  ;;  %v3407_v15 = vadd.f32 %v3405_v61, %v3401_v22  ;;  %v3435_v32 = vmul.f32 %v3434_v49, %v7607_v6  ;;  %v3436_v29 = vmul.f32 %v3434_v49, %v7611_v25 }
 0x3f0   : > { %v3210_v57 = vadd.f32 %v9902_v13, %v3198_v11  ;;  %v3408_v42 = vadd.f32 %v3406_v27, %v3402_v41  ;;  %v8158_v51 = vadd.f32 %v2516_v52, %v8046_v10  ;;  %v2874_v14 = vadd.f32 %v2870_v12, %v8069_v34  ;;  %v9910_v34 = vld [vmem:[#allocation118_spill] sm:$0xff] }
 0x3f1   : > { %v9904_v17 = vrot.slane %v9903_v0, 2  ;;  %v9906_v37 = vrot.slane %v9905_v56, 2  ;;  %v3419_v8 = vadd.f32 %v3415_v48, %v3407_v15  ;;  %v3427_v46 = vrot.slane %v3423_v23, 2 }
 0x3f2   : > { %v3420_v25 = vadd.f32 %v3416_v50, %v3408_v42  ;;  %v3428_v35 = vrot.slane %v3424_v31, 2  ;;  %v2885_v52 = vadd.f32 %v2881_v18, %v8086_v53  ;;  %v9909_v12 = vrot.slane %v9908_v55, 3  ;;  %v9927_v55 = vld [vmem:[#allocation54_spill] sm:$0xff] }
 0x3f3   : > { %v3221_v16 = vadd.f32 %v9904_v17, %v3209_v20  ;;  %v3222_v6 = vadd.f32 %v9906_v37, %v3210_v57  ;;  %v9911_v59 = vrot.slane %v9910_v34, 3  ;;  %v9912_v38 = vstv %s7405_s6  ;;  %v9921_v57 = vld [vmem:[#allocation100_spill] sm:$0xff]  ;;  %s8215_s6 = sld [smem:[#allocation7 + $0x72]]  ;;  %v9929_v34 = vld [vmem:[#allocation73_spill] sm:$0xff] }
 0x3f4   : > { %v3243_v39 = vmul.f32 %v9912_v38, %v7715_v63  ;;  %v3431_v24 = vadd.f32 %v3427_v46, %v3419_v8  ;;  %v3432_v47 = vadd.f32 %v3428_v35, %v3420_v25  ;;  %v3439_v28 = vrot.slane %v3435_v32, 3  ;;  %v9925_v17 = vld [vmem:[#allocation72_spill] sm:$0xff] }
 0x3f5   : > { %v3233_v10 = vadd.f32 %v9909_v12, %v3221_v16  ;;  %v3234_v36 = vadd.f32 %v9911_v59, %v3222_v6  ;;  %v3440_v61 = vrot.slane %v3436_v29, 3  ;;  %v9914_v19 = vstv %s9907_s27  ;;  %v9923_v29 = vld [vmem:[#allocation51_spill] sm:$0xff]  ;;  %s4322_s27 = smov [#allocation9]  }
 0x3f6   : > { %v3237_v3 = vmul.f32 %v9914_v19, %v7715_v63  ;;  %v9915_v18 = vmov %v9912_v38  ;;  %v9916_v26 = vstv %s7411_s16  ;;  %v2886_v27 = vadd.f32 %v2882_v1, %v2874_v14  ;;  %s8223_s16 = sld [smem:[#allocation7 + $0x84]] }
 0x3f7   : > { %v3244_v53 = vmul.f32 %v9915_v18, %v7719_v4  ;;  %v3255_v62 = vmul.f32 %v9916_v26, %v7715_v63  ;;  %v9917_v5 = vmov %v9916_v26  ;;  %v9918_v49 = vmov %v9914_v19  ;;  %v9933_v18 = vld [vmem:[#allocation103_spill] sm:$0xff] }
 0x3f8   : > { %v3256_v11 = vmul.f32 %v9917_v5, %v7719_v4  ;;  %v3238_v22 = vmul.f32 %v9918_v49, %v7719_v4  ;;  %v3443_v41 = vadd.f32 %v3439_v28, %v3431_v24  ;;  %v3444_v23 = vadd.f32 %v3440_v61, %v3432_v47  ;;  %v9931_v61 = vld [vmem:[#allocation74_spill] sm:$0xff] }
 0x3f9   : > { %v8204_v31 = vadd.f32 %v2893_v2, %v2885_v52  ;;  %v3239_v40 = vadd.f32 %v3237_v3, %v3233_v10  ;;  %v3247_v9 = vrot.slane %v3243_v39, 1  ;;  %v9919_v20 = vstv %s9913_s12 }
 0x3fa   : > { %v3267_v21 = vmul.f32 %v9919_v20, %v7715_v63  ;;  %v3240_v1 = vadd.f32 %v3238_v22, %v3234_v36  ;;  %v3449_v13 = vadd.f32 %v9920_v33, %v3443_v41  ;;  %v3450_v48 = vadd.f32 %v9921_v57, %v3444_v23 }
 0x3fb   : > { %v3494_v50 = vstv %s8153_s18  ;;  %v3248_v15 = vrot.slane %v3244_v53, 1  ;;  %v3259_v42 = vrot.slane %v3255_v62, 2  ;;  %v3260_v32 = vrot.slane %v3256_v11, 2  ;;  %s4237_s18 = scalar_lea.vmem %s8320_s4, 128 }
 0x3fc   : > { %v9922_v45 = vmov %v9919_v20  ;;  %v9924_v14 = vrot.slane %v9923_v29, 1  ;;  %v9926_v16 = vrot.slane %v9925_v17, 1  ;;  %v3488_v37 = vstv %s8167_s10  ;;  %p4238_p6 = scmp.ne.s32.totalorder %s8320_s4, %s4237_s18  ;;  %s4241_s10 = sshll.u32 %s4322_s27, 4  ;;  %s4242_s10 = int_to_ptr.vmem [resolvable:$false] %s4241_s10 }
 0x3fd   : > { %v3268_v2 = vmul.f32 %v9922_v45, %v7719_v4  ;;  %v3506_v6 = vstv %s8169_s3  ;;  %v3251_v8 = vadd.f32 %v3247_v9, %v3239_v40  ;;  %v3271_v25 = vrot.slane %v3267_v21, 3  ;;  %s4243_s3 = scalar_lea.vmem %s4242_s10, 256  ;;  %p4244_p7 = scmp.lt.s32.totalorder %s8320_s4, %s4242_s10 }
 0x3fe   : > { %v3461_v0 = vadd.f32 %v9924_v14, %v3449_v13  ;;  %v3462_v56 = vadd.f32 %v9926_v16, %v3450_v48  ;;  %v3495_v46 = vmul.f32 %v3494_v50, %v7667_v44  ;;  %v3496_v35 = vmul.f32 %v3494_v50, %v7671_v43  ;;  %p4239_p13 = pnand %p4238_p6, %p4422_p8  ;;  %p4245_p12 = scmp.lt.s32.totalorder %s4243_s3, %s4237_s18 }
 0x3ff   : > { %v3252_v52 = vadd.f32 %v3248_v15, %v3240_v1  ;;  %v9928_v12 = vrot.slane %v9927_v55, 2  ;;  %v9930_v59 = vrot.slane %v9929_v34, 2  ;;  %v3518_v38 = vstv %s8181_s19 }
 0x400   : > { %v3272_v39 = vrot.slane %v3268_v2, 3  ;;  %v3489_v24 = vmul.f32 %v3488_v37, %v7667_v44  ;;  %v3507_v47 = vmul.f32 %v3506_v6, %v7667_v44  ;;  %v3508_v28 = vmul.f32 %v3506_v6, %v7671_v43  ;;  %p4240_p3 = pneg %p4239_p13  ;;  %p4246_p0 = por %p4245_p12, %p4244_p7 }
 0x401   : > { %v3473_v10 = vadd.f32 %v9928_v12, %v3461_v0  ;;  %v3474_v36 = vadd.f32 %v9930_v59, %v3462_v56  ;;  %v9932_v19 = vrot.slane %v9931_v61, 3  ;;  %v9934_v53 = vrot.slane %v9933_v18, 3 }
 0x402   : > { %v3490_v62 = vmul.f32 %v3488_v37, %v7671_v43  ;;  %v3536_v5 = vstv %s8200_s13  ;;  %v3263_v11 = vadd.f32 %v3259_v42, %v3251_v8  ;;  %v3499_v49 = vrot.slane %v3495_v46, 1  ;;  %p4247_p2 = pnand %p4246_p0, %p4240_p3 }
 0x403   : > { %v3485_v3 = vadd.f32 %v9932_v19, %v3473_v10  ;;  %v3486_v26 = vadd.f32 %v9934_v53, %v3474_v36  ;;  %v3519_v22 = vmul.f32 %v3518_v38, %v7667_v44  ;;  %v3520_v41 = vmul.f32 %v3518_v38, %v7671_v43 }
 0x404   : > { %v3264_v23 = vadd.f32 %v3260_v32, %v3252_v52  ;;  %v3500_v20 = vrot.slane %v3496_v35, 1  ;;  %v3511_v21 = vrot.slane %v3507_v47, 2  ;;  %v3512_v1 = vrot.slane %v3508_v28, 2  ;;  %v9940_v28 = vld [vmem:[#allocation89_spill] sm:$0xff] }
 0x405   : > { %v3491_v40 = vadd.f32 %v3489_v24, %v3485_v3  ;;  %v3492_v9 = vadd.f32 %v3490_v62, %v3486_v26  ;;  %v3530_v33 = vstv %s8215_s6  ;;  %v3537_v13 = vmul.f32 %v3536_v5, %v7705_v30 }
 0x406   : > { %v3538_v50 = vmul.f32 %v3536_v5, %v7709_v60  ;;  %v3548_v15 = vstv %s8223_s16  ;;  %v2898_v44 = vadd.f32 %v2894_v58, %v2886_v27  ;;  %v3275_v42 = vadd.f32 %v3271_v25, %v3263_v11 }
 0x407   : > { %v3503_v57 = vadd.f32 %v3499_v49, %v3491_v40  ;;  %v3504_v48 = vadd.f32 %v3500_v20, %v3492_v9  ;;  %v3523_v43 = vrot.slane %v3519_v22, 3  ;;  %v3524_v32 = vrot.slane %v3520_v41, 3 }
 0x408   : > { %v3276_v45 = vadd.f32 %v3272_v39, %v3264_v23  ;;  %v3560_v14 = vstv %s8232_s25  ;;  %v3531_v0 = vmul.f32 %v3530_v33, %v7705_v30  ;;  %v3532_v17 = vmul.f32 %v3530_v33, %v7709_v60  ;;  %v9938_v39 = vld [vmem:[#allocation88_spill] sm:$0xff] }
 0x409   : > { %v3515_v2 = vadd.f32 %v3511_v21, %v3503_v57  ;;  %v3516_v29 = vadd.f32 %v3512_v1, %v3504_v48  ;;  %v3549_v16 = vmul.f32 %v3548_v15, %v7705_v30  ;;  %v3550_v56 = vmul.f32 %v3548_v15, %v7709_v60 }
 0x40a   : > { %v3541_v58 = vrot.slane %v3537_v13, 1  ;;  %v3542_v27 = vrot.slane %v3538_v50, 1  ;;  %v3561_v6 = vmul.f32 %v3560_v14, %v7705_v30  ;;  %v3562_v8 = vmul.f32 %v3560_v14, %v7709_v60 }
 0x40b   : > { %v3527_v37 = vadd.f32 %v3523_v43, %v3515_v2  ;;  %v3528_v54 = vadd.f32 %v3524_v32, %v3516_v29  ;;  %v3657_v25 = vrot.slane %v8204_v31, 7  ;;  %v3658_v46 = vrot.slane %v2898_v44, 7 }
 0x40c   : > { %v3663_v55 = vrot.slane %v3275_v42, 6  ;;  %v3664_v12 = vrot.slane %v3276_v45, 6  ;;  %v3553_v10 = vrot.slane %v3549_v16, 2  ;;  %v3554_v34 = vrot.slane %v3550_v56, 2 }
 0x40d   : > { %v3533_v35 = vadd.f32 %v3531_v0, %v3527_v37  ;;  %v3534_v52 = vadd.f32 %v3532_v17, %v3528_v54  ;;  %v3673_v30 = vsel %vm1990_vm10, %v8050_v7, %v3657_v25  ;;  %v3674_v60 = vsel %vm1990_vm10, %v8158_v51, %v3658_v46 }
 0x40e   : > { %v3675_v36 = vsel %vm1993_vm11, %v3673_v30, %v3663_v55  ;;  %v3676_v38 = vsel %vm1993_vm11, %v3674_v60, %v3664_v12  ;;  %v9939_v24 = vstv %s9935_s21  ;;  %v3602_v19 = vstv %s8251_s1 }
 0x40f   : > { %v3545_v31 = vadd.f32 %v3541_v58, %v3533_v35  ;;  %v3546_v59 = vadd.f32 %v3542_v27, %v3534_v52  ;;  %v3579_v47 = vmul.f32 %v9939_v24, %v9938_v39  ;;  %v9941_v61 = vmov %v9939_v24 }
 0x410   : > { %v3580_v7 = vmul.f32 %v9941_v61, %v9940_v28  ;;  %v3565_v18 = vrot.slane %v3561_v6, 3  ;;  %v3566_v53 = vrot.slane %v3562_v8, 3  ;;  %v9942_v26 = vstv %s9936_s7 }
 0x411   : > { %v3557_v51 = vadd.f32 %v3553_v10, %v3545_v31  ;;  %v3558_v3 = vadd.f32 %v3554_v34, %v3546_v59  ;;  %v3573_v62 = vmul.f32 %v9942_v26, %v9938_v39  ;;  %v9943_v5 = vstv %s9937_s20 }
 0x412   : > { %v3591_v11 = vmul.f32 %v9943_v5, %v9938_v39  ;;  %v9944_v41 = vmov %v9942_v26  ;;  %v9945_v40 = vmov %v9943_v5  ;;  %v3583_v20 = vrot.slane %v3579_v47, 1 }
 0x413   : > { %v3569_v49 = vadd.f32 %v3565_v18, %v3557_v51  ;;  %v3570_v22 = vadd.f32 %v3566_v53, %v3558_v3  ;;  %v3574_v23 = vmul.f32 %v9944_v41, %v9940_v28  ;;  %v3592_v9 = vmul.f32 %v9945_v40, %v9940_v28  ;;  %v9950_v51 = vld [vmem:[#allocation25_spill] sm:$0xff] }
 0x414   : > { %v3584_v21 = vrot.slane %v3580_v7, 1  ;;  %v3603_v1 = vmul.f32 %v3602_v19, %v9938_v39  ;;  %v3604_v57 = vmul.f32 %v3602_v19, %v9940_v28  ;;  %v3620_v48 = vstv %s8261_s8 }
 0x415   : > { %v3575_v33 = vadd.f32 %v3573_v62, %v3569_v49  ;;  %v3576_v13 = vadd.f32 %v3574_v23, %v3570_v22  ;;  %v3595_v50 = vrot.slane %v3591_v11, 2  ;;  %v3596_v42 = vrot.slane %v3592_v9, 2 }
 0x416   : > { %v3614_v43 = vstv %s8267_s22  ;;  %v3621_v32 = vmul.f32 %v3620_v48, %v7715_v63  ;;  %v3622_v45 = vmul.f32 %v3620_v48, %v7719_v4  ;;  %v3632_v2 = vstv %s8278_s11 }
 0x417   : > { %v3587_v15 = vadd.f32 %v3583_v20, %v3575_v33  ;;  %v3588_v44 = vadd.f32 %v3584_v21, %v3576_v13  ;;  %v3607_v0 = vrot.slane %v3603_v1, 3  ;;  %v3608_v17 = vrot.slane %v3604_v57, 3 }
 0x418   : > { %v3615_v16 = vmul.f32 %v3614_v43, %v7715_v63  ;;  %v3616_v56 = vmul.f32 %v3614_v43, %v7719_v4  ;;  %v3644_v37 = vstv %s8286_s9  ;;  %v3633_v27 = vmul.f32 %v3632_v2, %v7715_v63 }
 0x419   : > { %v3599_v29 = vadd.f32 %v3595_v50, %v3587_v15  ;;  %v3600_v14 = vadd.f32 %v3596_v42, %v3588_v44  ;;  %v3634_v6 = vmul.f32 %v3632_v2, %v7719_v4  ;;  %v3625_v8 = vrot.slane %v3621_v32, 1 }
 0x41a   : > { %v3626_v25 = vrot.slane %v3622_v45, 1  ;;  %v3645_v52 = vmul.f32 %v3644_v37, %v7715_v63  ;;  %v3646_v55 = vmul.f32 %v3644_v37, %v7719_v4  ;;  %v3637_v34 = vrot.slane %v3633_v27, 2  ;;  %v4176_v4 = vld [vmem:[%s9946_s24] sm:$0xff] }
 0x41b   : > { %v3611_v54 = vadd.f32 %v3607_v0, %v3599_v29  ;;  %v3612_v58 = vadd.f32 %v3608_v17, %v3600_v14  ;;  %v3638_v30 = vrot.slane %v3634_v6, 2 }
 0x41c   : > { %v3649_v59 = vrot.slane %v3645_v52, 3  ;;  %v3650_v39 = vrot.slane %v3646_v55, 3 }
 0x41d   : > { %v3617_v46 = vadd.f32 %v3615_v16, %v3611_v54  ;;  %v3618_v35 = vadd.f32 %v3616_v56, %v3612_v58 }
 0x41f   : > { %v3629_v12 = vadd.f32 %v3625_v8, %v3617_v46  ;;  %v3630_v10 = vadd.f32 %v3626_v25, %v3618_v35 }
 0x421   : > { %v3641_v60 = vadd.f32 %v3637_v34, %v3629_v12  ;;  %v3642_v31 = vadd.f32 %v3638_v30, %v3630_v10 }
 0x423   : > { %v3653_v24 = vadd.f32 %v3649_v59, %v3641_v60  ;;  %v3654_v47 = vadd.f32 %v3650_v39, %v3642_v31 }
 0x425   : > { %v3669_v28 = vrot.slane %v3653_v24, 5  ;;  %v3670_v61 = vrot.slane %v3654_v47, 5 }
 0x427   : > { %v3677_v63 = vsel %vm1996_vm12, %v3675_v36, %v3669_v28  ;;  %v3678_v7 = vsel %vm1996_vm12, %v3676_v38, %v3670_v61 }
 0x428   : > { %v3680_v19 = vadd.f32 %v4176_v4, %v3677_v63  ;;  %v3681_v3 = vadd.f32 %v3678_v7, %v9950_v51 }
 0x42a   : > { %v3682_v18 = vmax.f32 %v3680_v19, 0.0  ;;  %v3683_v53 = vmax.f32 %v3681_v3, 0.0 }
 0x42c   : > { %v3686_v26 = vcombine.low %v3682_v18, %v3683_v53 }
 0x42e   : > { %3688 = vst [vmem:[%s213_s29] sm:$0xff] %v3686_v26 }
 0x42f   : > { %4250 = shalt.err (!%p4247_p2)
}
 0x430   : > { %s4251_s12 = scalar_lea.hbm %s8318_s17, 128  ;;  %s4255_s6 = scalar_lea.hbm %s9952_s5, 256 }
 0x431   : > { %p4252_p10 = scmp.ne.s32.totalorder %s8318_s17, %s4251_s12  ;;  %p4256_p1 = scmp.lt.u32.totalorder %s8318_s17, %s9952_s5 }
 0x432   : > { %p4257_p9 = scmp.lt.u32.totalorder %s4255_s6, %s4251_s12  ;;  %p4259_p6 = scmp.lt.u32.totalorder %s4251_s12, %s8318_s17 }
 0x433   : > { %p4253_p5 = pnand %p4252_p10, %p4422_p8 }
 0x434   : > { %p4258_p4 = por %p4257_p9, %p4256_p1 }
 0x435   : > { %p4254_p11 = pneg %p4253_p5 }
 0x436   : > { %p4260_p13 = por %p4259_p6, %p4258_p4 }
 0x438   : > { %p4261_p3 = pnand %p4260_p13, %p4254_p11 }
 0x43a   : > { %4264 = shalt.err (!%p4261_p3)
}
 0x43b   : > { %4112 = dma.vmem_to_hbm [thread:$0]  (%p4422_p8), %s8320_s4, 128, %s8318_s17, %s3690_s28  }
 0x43c PF: > { %s9953_s1 = sld [smem:[#allocation14_spill]]  ;;  %s9954_s21 = sld [smem:[#allocation19_spill]] }
 0x43d   : > { %s9955_s8 = sld [smem:[#allocation17_spill]] }
 0x442   : > { %s3716_s7 = sand.u32 1, %s9953_s1   ;;  %p9956_p7 = scmp.ne.s32.totalorder %s9954_s21, 0 }
 0x443   : > { %p9957_p12 = scmp.ge.s32.totalorder %s9955_s8, 2  ;;  %s3717_s20 = scalar_lea.sflag [#allocation4], %s3716_s7 }
 0x445   : > { %p4126_p0 = pnand %p9957_p12, %p9956_p7 }
 0x447   : > { %4294 = dma.done.wait (!%p4126_p0), %s3717_s20, 128  }
 0x448   : > { %4296 = vsyncadd (!%p4126_p0), %s3717_s20, 4294967168  ;;  %s9958_s15 = sld [smem:[#allocation20_spill]]  ;;  %s9959_s12 = sld [smem:[#allocation15_spill]] }
 0x449   : > { %s9960_s13 = sld [smem:[#allocation16_spill]]  ;;  %s9961_s14 = sld [smem:[#allocation21_spill]] }
 0x44e   : > { %p18_p2 = scmp.ge.s32.totalorder %s9958_s15, 4  }
 0x450   :  { %20 = sbr.rel (!%p18_p2) target bundleno = 12 (0xc), region = 86 }
 0x457   :  { %3722 = vsyncpa [#allocation3], 1 }
 0x458   :  { %3724 = vsyncpa [#allocation3 + $0x1], 1 }
 0x459   :  { %3725 = vsyncpa [#allocation4], 1 }
 0x45a   :  { %3727 = vsyncpa [#allocation4 + $0x1], 1 }
 0x45b   :  { %3728 = vsyncpa [#allocation5], 1 }
 0x45c   :  { %3730 = vsyncpa [#allocation5 + $0x1], 1 }
 0x45d   :  { %3731 = vsyncpa [#allocation8], 1 }

</bundles_post_ra>
